<compile_context>
chip_gen: v7x
topology: tpu7x:2x2x1
jax: 0.10.0
libtpu: 0.0.40
codegen_flags: <defaults>
</compile_context>

<pallas_src>
import functools
import math

import jax
import jax.numpy as jnp
from jax.experimental import pallas as pl
from jax.experimental.pallas import tpu as pltpu

F32 = jnp.float32
BF16 = jnp.bfloat16
NEG_BIG = -1e9          # additive bias for padded keys (finite: avoids -inf/NaN traps)
MASK_FLOOR = 1e-30      # clamp for log(mask) -- sigmoid underflow would give log(0)

_ARB = pltpu.CompilerParams(dimension_semantics=("arbitrary",))


def _specs(*shapes):
    out = []
    for s in shapes:
        nd = len(s)
        out.append(pl.BlockSpec(s, lambda i, _nd=nd: (0,) * _nd))
    return out


# ----------------------------------------------------------------------------
# In-kernel helpers (traced inside pallas kernels)
# ----------------------------------------------------------------------------

def _layernorm(x, g, b):
    mean = jnp.mean(x, axis=-1, keepdims=True)
    xc = x - mean
    var = jnp.mean(xc * xc, axis=-1, keepdims=True)
    return xc * jax.lax.rsqrt(var + 1e-5) * g + b


def _softmax_rows(s):
    m = jnp.max(s, axis=-1, keepdims=True)
    p = jnp.exp(s - m)
    denom = jnp.sum(p, axis=-1, keepdims=True)
    return p * pl.reciprocal(denom, approx=True)


def _mha_fused_outproj(q, k, v, wo_b, n_heads, scale, key_bias=None):
    """All-heads attention with the out-projection folded into the head loop.

    q/k/v: [N, D] f32 (heads packed along lanes); wo_b: [D, D] bf16.
    Accumulating (p @ v_h) @ wo[h*hd:(h+1)*hd, :] per head keeps every intermediate
    write lane-dense (no concat of [N, head_dim] fragments)."""
    n, d = q.shape
    hd = d // n_heads
    qb, kb, vb = q.astype(BF16), k.astype(BF16), v.astype(BF16)
    acc = jnp.zeros((n, d), jnp.float32)
    for h in range(n_heads):
        sl = slice(h * hd, (h + 1) * hd)
        s = jax.lax.dot_general(qb[:, sl], kb[:, sl], (((1,), (1,)), ((), ())),
                                preferred_element_type=jnp.float32) * scale
        if key_bias is not None:
            s = s + key_bias
        p = _softmax_rows(s)
        oh = jnp.dot(p.astype(BF16), vb[:, sl], preferred_element_type=jnp.float32)
        acc = acc + jnp.dot(oh.astype(BF16), wo_b[sl, :],
                            preferred_element_type=jnp.float32)
    return acc


def _swiglu(xn, w12, b12, w3, b3):
    """xn f32; w12/w3 bf16; b12/b3 f32."""
    dff = w12.shape[-1] // 2
    h12 = jnp.dot(xn.astype(BF16), w12, preferred_element_type=jnp.float32) + b12
    h1, h2 = h12[:, :dff], h12[:, dff:]
    h = (h1 * jax.nn.sigmoid(h1)) * h2
    return jnp.dot(h.astype(BF16), w3, preferred_element_type=jnp.float32) + b3


# ----------------------------------------------------------------------------
# Fused encoder STACK kernel: grid=(L,), activations resident across layers
# ----------------------------------------------------------------------------

def _encoder_stack_kernel(x_ref, kb_ref, ln1g, ln1b, wqkv, bqkv, wo, bo,
                          ln2g, ln2b, w12, b12, w3, b3, o_ref, *, n_heads):
    l = pl.program_id(0)

    @pl.when(l == 0)
    def _():
        o_ref[...] = x_ref[...]

    x = o_ref[...].astype(jnp.float32)
    d = x.shape[-1]
    scale = 1.0 / math.sqrt(d // n_heads)

    xn = _layernorm(x, ln1g[0], ln1b[0])
    qkv = jnp.dot(xn.astype(BF16), wqkv[0], preferred_element_type=jnp.float32) + bqkv[0]
    attn = _mha_fused_outproj(qkv[:, :d], qkv[:, d:2 * d], qkv[:, 2 * d:],
                              wo[0], n_heads, scale, key_bias=kb_ref[...]) + bo[0]
    x = x + attn

    xn = _layernorm(x, ln2g[0], ln2b[0])
    x = x + _swiglu(xn, w12[0], b12[0], w3[0], b3[0])
    o_ref[...] = x.astype(o_ref.dtype)


@functools.lru_cache(maxsize=None)
def _encoder_stack_call(L, N, D, Dff, n_heads):
    cst = lambda l: (0, 0)
    per = lambda l: (l, 0, 0)
    in_specs = [
        pl.BlockSpec((N, D), cst),            # x (fetched once)
        pl.BlockSpec((1, N), cst),            # key padding bias
        pl.BlockSpec((1, 1, D), per),         # ln1 gamma
        pl.BlockSpec((1, 1, D), per),         # ln1 beta
        pl.BlockSpec((1, D, 3 * D), per),     # wqkv (bf16)
        pl.BlockSpec((1, 1, 3 * D), per),     # bqkv
        pl.BlockSpec((1, D, D), per),         # wo (bf16)
        pl.BlockSpec((1, 1, D), per),         # bo
        pl.BlockSpec((1, 1, D), per),         # ln2 gamma
        pl.BlockSpec((1, 1, D), per),         # ln2 beta
        pl.BlockSpec((1, D, 2 * Dff), per),   # w12 (bf16)
        pl.BlockSpec((1, 1, 2 * Dff), per),   # b12
        pl.BlockSpec((1, Dff, D), per),       # w3 (bf16)
        pl.BlockSpec((1, 1, D), per),         # b3
    ]
    return pl.pallas_call(
        functools.partial(_encoder_stack_kernel, n_heads=n_heads),
        out_shape=jax.ShapeDtypeStruct((N, D), F32),
        grid=(L,),
        in_specs=in_specs,
        out_specs=pl.BlockSpec((N, D), cst),   # resident across layers
        compiler_params=_ARB,
    )


def encoder_stack(x, key_bias, enc, n_heads):
    L, D = enc["wqkv"].shape[0], x.shape[1]
    N = x.shape[0]
    Dff = enc["w3"].shape[1]
    return _encoder_stack_call(L, N, D, Dff, n_heads)(
        x, key_bias,
        enc["ln1g"], enc["ln1b"], enc["wqkv"], enc["bqkv"], enc["wo"], enc["bo"],
        enc["ln2g"], enc["ln2b"], enc["w12"], enc["b12"], enc["w3"], enc["b3"])


# ----------------------------------------------------------------------------
# Fused decoder STACK kernel (all layers + prediction heads in one pallas_call)
# ----------------------------------------------------------------------------

def _decoder_stack_kernel(oq_ref, he_ref, hf_ref, kb_ref,
                          ln1g, ln1b, wsa, bsa, wso, bso,
                          ln2g, ln2b, ln3g, ln3b, w12, b12, w3, b3,
                          cw1, cb1, cw2, cb2, pw1, pb1, pw2, pb2, pw3, pb3,
                          mw1, mb1, mw2, mb2,
                          q_ref, clspar_ref, asg_ref, mask_sc,
                          *, n_heads, n_layers, inv_sqrt_d):
    l = pl.program_id(0)

    @pl.when(l == 0)
    def _():
        q_ref[...] = oq_ref[...]
        mask_sc[...] = jnp.ones_like(mask_sc)   # mask==None on layer 0 -> log(1)=0

    q0 = q_ref[...].astype(jnp.float32)
    he = he_ref[...]                            # [Nh, D] bf16
    hf = hf_ref[...]                            # [Nh, D] bf16
    kb = kb_ref[...]                            # [1, Nh] f32
    d = q0.shape[-1]

    # --- self-attention over object queries (fused in_proj, no masking) ---
    qn = _layernorm(q0, ln1g[0], ln1b[0])
    qkv = jnp.dot(qn.astype(BF16), wsa[0], preferred_element_type=jnp.float32) + bsa[0]
    sa = _mha_fused_outproj(qkv[:, :d], qkv[:, d:2 * d], qkv[:, 2 * d:],
                            wso[0], n_heads, 1.0 / math.sqrt(d // n_heads)) + bso[0]
    q1 = q0 + sa

    # --- mask attention (single head, 1/sqrt(d_model), + log(mask) + key padding) ---
    qn = _layernorm(q1, ln2g[0], ln2b[0])
    s = jax.lax.dot_general(qn.astype(BF16), he, (((1,), (1,)), ((), ())),
                            preferred_element_type=jnp.float32) * inv_sqrt_d
    s = s + kb + jnp.log(jnp.maximum(mask_sc[...], MASK_FLOOR))
    p = _softmax_rows(s)
    ca = jnp.dot(p.astype(BF16), he, preferred_element_type=jnp.float32)
    q2 = q1 + ca

    # --- feed-forward ---
    qn = _layernorm(q2, ln3g[0], ln3b[0])
    q3 = q2 + _swiglu(qn, w12[0], b12[0], w3[0], b3[0])
    q_ref[...] = q3.astype(q_ref.dtype)

    # --- new mask proposals: only consumed by the NEXT layer -> skip on last ---
    @pl.when(l < n_layers - 1)
    def _():
        nm = jax.lax.dot_general(q3.astype(BF16), he, (((1,), (1,)), ((), ())),
                                 preferred_element_type=jnp.float32)
        mask_sc[...] = jax.nn.sigmoid(nm)

    # --- prediction heads (class / param merged into one lane-padded output) ---
    q3b = q3.astype(BF16)
    h = jnp.maximum(jnp.dot(q3b, cw1[...], preferred_element_type=jnp.float32)
                    + cb1[...], 0.0)
    cls = jnp.dot(h.astype(BF16), cw2[...], preferred_element_type=jnp.float32) + cb2[...]

    h = jnp.maximum(jnp.dot(q3b, pw1[...], preferred_element_type=jnp.float32)
                    + pb1[...], 0.0)
    h = jnp.maximum(jnp.dot(h.astype(BF16), pw2[...], preferred_element_type=jnp.float32)
                    + pb2[...], 0.0)
    par = jnp.dot(h.astype(BF16), pw3[...], preferred_element_type=jnp.float32) + pb3[...]

    h = jnp.maximum(jnp.dot(q3b, mw1[...], preferred_element_type=jnp.float32)
                    + mb1[...], 0.0)
    mt = jnp.dot(h.astype(BF16), mw2[...], preferred_element_type=jnp.float32) + mb2[...]
    asg = jax.lax.dot_general(mt.astype(BF16), hf, (((1,), (1,)), ((), ())),
                              preferred_element_type=jnp.float32)

    nq = cls.shape[0]
    clspar = jnp.concatenate([cls, par, jnp.zeros((nq, 3), jnp.float32)], axis=-1)
    clspar_ref[0] = clspar.astype(clspar_ref.dtype)
    asg_ref[0] = asg.astype(asg_ref.dtype)


@functools.lru_cache(maxsize=None)
def _decoder_stack_call(L, Nq, Nh, D, Dff, n_heads):
    cst = lambda l: (0, 0)
    per = lambda l: (l, 0, 0)
    in_specs = [
        pl.BlockSpec((Nq, D), cst),            # object queries
        pl.BlockSpec((Nh, D), cst),            # hit embeddings (bf16, fetched once)
        pl.BlockSpec((Nh, D), cst),            # hit features   (bf16, fetched once)
        pl.BlockSpec((1, Nh), cst),            # key padding bias
        # per-layer stacked decoder weights
        pl.BlockSpec((1, 1, D), per), pl.BlockSpec((1, 1, D), per),          # ln1
        pl.BlockSpec((1, D, 3 * D), per), pl.BlockSpec((1, 1, 3 * D), per),  # wsa/bsa
        pl.BlockSpec((1, D, D), per), pl.BlockSpec((1, 1, D), per),          # wso/bso
        pl.BlockSpec((1, 1, D), per), pl.BlockSpec((1, 1, D), per),          # ln2
        pl.BlockSpec((1, 1, D), per), pl.BlockSpec((1, 1, D), per),          # ln3
        pl.BlockSpec((1, D, 2 * Dff), per), pl.BlockSpec((1, 1, 2 * Dff), per),
        pl.BlockSpec((1, Dff, D), per), pl.BlockSpec((1, 1, D), per),
        # shared prediction-head weights (constant: fetched once)
        pl.BlockSpec((D, D), cst), pl.BlockSpec((1, D), cst),                # class 1
        pl.BlockSpec((D, 1), cst), pl.BlockSpec((1, 1), cst),                # class 2
        pl.BlockSpec((D, D), cst), pl.BlockSpec((1, D), cst),                # param 1
        pl.BlockSpec((D, D // 2), cst), pl.BlockSpec((1, D // 2), cst),      # param 2
        pl.BlockSpec((D // 2, 4), cst), pl.BlockSpec((1, 4), cst),           # param 3
        pl.BlockSpec((D, 2 * D), cst), pl.BlockSpec((1, 2 * D), cst),        # mask 1
        pl.BlockSpec((2 * D, D), cst), pl.BlockSpec((1, D), cst),            # mask 2
    ]
    out_specs = [
        pl.BlockSpec((Nq, D), cst),            # final queries (resident)
        pl.BlockSpec((1, Nq, 8), per),         # stacked [class | params | pad]
        pl.BlockSpec((1, Nq, Nh), per),        # stacked hit assignment
    ]
    return pl.pallas_call(
        functools.partial(_decoder_stack_kernel, n_heads=n_heads, n_layers=L,
                          inv_sqrt_d=1.0 / math.sqrt(D)),
        out_shape=(jax.ShapeDtypeStruct((Nq, D), F32),
                   jax.ShapeDtypeStruct((L, Nq, 8), F32),
                   jax.ShapeDtypeStruct((L, Nq, Nh), F32)),
        grid=(L,),
        in_specs=in_specs,
        out_specs=out_specs,
        scratch_shapes=[pltpu.VMEM((Nq, Nh), jnp.float32)],   # mask proposals carry
        compiler_params=_ARB,
    )


def decoder_stack(object_queries, hit_emb_b, hit_features_b, key_bias,
                  dec, heads, n_heads):
    L = dec["wsa"].shape[0]
    Nq, D = object_queries.shape
    Nh = hit_emb_b.shape[0]
    Dff = dec["w3"].shape[1]
    return _decoder_stack_call(L, Nq, Nh, D, Dff, n_heads)(
        object_queries, hit_emb_b, hit_features_b, key_bias,
        dec["ln1g"], dec["ln1b"], dec["wsa"], dec["bsa"], dec["wso"], dec["bso"],
        dec["ln2g"], dec["ln2b"], dec["ln3g"], dec["ln3b"],
        dec["w12"], dec["b12"], dec["w3"], dec["b3"],
        heads["cw1"], heads["cb1"], heads["cw2"], heads["cb2"],
        heads["pw1"], heads["pb1"], heads["pw2"], heads["pb2"],
        heads["pw3"], heads["pb3"],
        heads["mw1"], heads["mb1"], heads["mw2"], heads["mb2"])


# ----------------------------------------------------------------------------
# Small fused kernels: linear and MLP (embedding / hit_proj / classifier)
# ----------------------------------------------------------------------------

def _linear_kernel(x_ref, w_ref, b_ref, o_ref):
    y = jnp.dot(x_ref[...].astype(BF16), w_ref[...],
                preferred_element_type=jnp.float32) + b_ref[...]
    o_ref[...] = y.astype(o_ref.dtype)


@functools.lru_cache(maxsize=None)
def _linear_call(M, K, N):
    return pl.pallas_call(
        _linear_kernel,
        out_shape=jax.ShapeDtypeStruct((M, N), F32),
        grid=(1,),
        in_specs=_specs((M, K), (K, N), (1, N)),
        out_specs=pl.BlockSpec((M, N), lambda i: (0, 0)),
        compiler_params=_ARB,
    )


def linear(x, w, b):
    M, K = x.shape
    N = w.shape[1]
    return _linear_call(M, K, N)(x, w, b)


def _make_mlp_kernel(n_layers):
    def kernel(*refs):
        x = refs[0][...].astype(jnp.float32)
        o_ref = refs[-1]
        for i in range(n_layers):
            w = refs[1 + 2 * i][...]
            b = refs[2 + 2 * i][...]
            x = jnp.dot(x.astype(BF16), w, preferred_element_type=jnp.float32) + b
            if i < n_layers - 1:
                x = jnp.maximum(x, 0.0)
        o_ref[...] = x.astype(o_ref.dtype)
    return kernel


@functools.lru_cache(maxsize=None)
def _mlp_call(M, dims):
    n_layers = len(dims) - 1
    shapes = [(M, dims[0])]
    for i in range(n_layers):
        shapes += [(dims[i], dims[i + 1]), (1, dims[i + 1])]
    return pl.pallas_call(
        _make_mlp_kernel(n_layers),
        out_shape=jax.ShapeDtypeStruct((M, dims[-1]), F32),
        grid=(1,),
        in_specs=_specs(*shapes),
        out_specs=pl.BlockSpec((M, dims[-1]), lambda i: (0, 0)),
        compiler_params=_ARB,
    )


def mlp_forward(layers, x):
    dims = (layers[0][0].shape[0],) + tuple(w.shape[1] for w, _ in layers)
    args = [x]
    for w, b in layers:
        args += [w, b]
    return _mlp_call(x.shape[0], dims)(*args)


# ----------------------------------------------------------------------------
# Parameter initialization (PyTorch-like uniform init; weights bf16, pre-stacked)
# ----------------------------------------------------------------------------

def init_linear_params(key, in_dim, out_dim):
    kw, kb = jax.random.split(key)
    bound = 1.0 / math.sqrt(in_dim)
    w = jax.random.uniform(kw, (in_dim, out_dim), F32, -bound, bound).astype(BF16)
    b = jax.random.uniform(kb, (1, out_dim), F32, -bound, bound)
    return w, b


def init_mlp(key, dims):
    ks = jax.random.split(key, len(dims) - 1)
    return [init_linear_params(ks[i], dims[i], dims[i + 1])
            for i in range(len(dims) - 1)]


def _init_encoder_layer(key, d, dff):
    ks = jax.random.split(key, 7)
    wq, bq = init_linear_params(ks[0], d, d)
    wk, bk = init_linear_params(ks[1], d, d)
    wv, bv = init_linear_params(ks[2], d, d)
    wo, bo = init_linear_params(ks[3], d, d)
    w1, b1 = init_linear_params(ks[4], d, dff)
    w2, b2 = init_linear_params(ks[5], d, dff)
    w3, b3 = init_linear_params(ks[6], dff, d)
    return dict(
        wqkv=jnp.concatenate([wq, wk, wv], 1), bqkv=jnp.concatenate([bq, bk, bv], 1),
        wo=wo, bo=bo,
        w12=jnp.concatenate([w1, w2], 1), b12=jnp.concatenate([b1, b2], 1),
        w3=w3, b3=b3,
        ln1g=jnp.ones((1, d), F32), ln1b=jnp.zeros((1, d), F32),
        ln2g=jnp.ones((1, d), F32), ln2b=jnp.zeros((1, d), F32))


def _init_decoder_layer(key, d, dff):
    # NOTE: the PyTorch ObjectDecoderLayer also creates `cross_attn` but never uses it
    # in forward(); no params are needed for it here.
    ks = jax.random.split(key, 5)
    wsa, bsa = init_linear_params(ks[0], d, 3 * d)
    wso, bso = init_linear_params(ks[1], d, d)
    w1, b1 = init_linear_params(ks[2], d, dff)
    w2, b2 = init_linear_params(ks[3], d, dff)
    w3, b3 = init_linear_params(ks[4], dff, d)
    return dict(
        wsa=wsa, bsa=bsa, wso=wso, bso=bso,
        w12=jnp.concatenate([w1, w2], 1), b12=jnp.concatenate([b1, b2], 1),
        w3=w3, b3=b3,
        ln1g=jnp.ones((1, d), F32), ln1b=jnp.zeros((1, d), F32),
        ln2g=jnp.ones((1, d), F32), ln2b=jnp.zeros((1, d), F32),
        ln3g=jnp.ones((1, d), F32), ln3b=jnp.zeros((1, d), F32))


def _stack_layers(layers):
    return {name: jnp.stack([l[name] for l in layers], 0) for name in layers[0]}


def init_encoder_stack(key, n_layers, d, dff):
    return _stack_layers([_init_encoder_layer(k, d, dff)
                          for k in jax.random.split(key, n_layers)])


def init_decoder_stack(key, n_layers, d, dff):
    return _stack_layers([_init_decoder_layer(k, d, dff)
                          for k in jax.random.split(key, n_layers)])


def init_heads(key, d):
    ks = jax.random.split(key, 7)
    cw1, cb1 = init_linear_params(ks[0], d, d)
    cw2, cb2 = init_linear_params(ks[1], d, 1)
    pw1, pb1 = init_linear_params(ks[2], d, d)
    pw2, pb2 = init_linear_params(ks[3], d, d // 2)
    pw3, pb3 = init_linear_params(ks[4], d // 2, 4)
    mw1, mb1 = init_linear_params(ks[5], d, 2 * d)
    mw2, mb2 = init_linear_params(ks[6], 2 * d, d)
    return dict(cw1=cw1, cb1=cb1, cw2=cw2, cb2=cb2,
                pw1=pw1, pb1=pb1, pw2=pw2, pb2=pb2, pw3=pw3, pb3=pb3,
                mw1=mw1, mb1=mb1, mw2=mw2, mb2=mb2)


def init_trackformer(key, cfg):
    d = cfg["d_model"]
    k_hf, k_tr = jax.random.split(key)

    ks = jax.random.split(k_hf, 3)
    hf_w, hf_b = init_linear_params(ks[0], cfg["input_dim"], d)
    hit_filter = {
        "embed_w": hf_w, "embed_b": hf_b,
        "enc": init_encoder_stack(ks[1], cfg["hit_filter_layers"], d, 2 * d),
        "classifier": init_mlp(ks[2], [d, d // 2, d // 4, 1]),
    }

    ks = jax.random.split(k_tr, 6)
    tr_w, tr_b = init_linear_params(ks[0], cfg["input_dim"], d)
    hp_w, hp_b = init_linear_params(ks[5], d, d)
    track = {
        "embed_w": tr_w, "embed_b": tr_b,
        "enc": init_encoder_stack(ks[1], cfg["track_encoder_layers"], d, 2 * d),
        "object_queries": jax.random.normal(ks[2], (cfg["n_queries"], d), F32),
        "dec": init_decoder_stack(ks[3], cfg["track_decoder_layers"], d, 2 * d),
        "heads": init_heads(ks[4], d),
        "hit_proj_w": hp_w, "hit_proj_b": hp_b,
    }
    return {"hit_filter": hit_filter, "track": track}


# ----------------------------------------------------------------------------
# Forward pass (hit filter + compaction + track reconstruction under ONE jit)
# ----------------------------------------------------------------------------

def positional_encoding(x, coords, valid):
    # The sinusoidal `pe` buffer in the PyTorch module is never used in forward();
    # only cyclic phi encoding and normalized r/z are written to channels 0..3.
    # min/max are taken over valid (non-padded) rows only, matching the unpadded model.
    r, phi, z = coords[:, 0], coords[:, 1], coords[:, 2]
    big = jnp.float32(1e30)
    r_min = jnp.min(jnp.where(valid, r, big))
    r_max = jnp.max(jnp.where(valid, r, -big))
    z_min = jnp.min(jnp.where(valid, z, big))
    z_max = jnp.max(jnp.where(valid, z, -big))
    r_norm = (r - r_min) / (r_max - r_min + 1e-8)
    z_norm = (z - z_min) / (z_max - z_min + 1e-8)
    pos = jnp.zeros_like(x)
    pos = pos.at[:, 0].set(jnp.sin(phi))
    pos = pos.at[:, 1].set(jnp.cos(phi))
    pos = pos.at[:, 2].set(r_norm)
    pos = pos.at[:, 3].set(z_norm)
    return x + pos


@functools.partial(jax.jit, static_argnames=("n_heads", "n_pad", "threshold"))
def _trackformer_core(params, hits, coords, *, n_heads, n_pad, threshold):
    N = hits.shape[0]

    # ---------------- hit filtering network ----------------
    hf = params["hit_filter"]
    x = linear(hits, hf["embed_w"], hf["embed_b"])
    x = positional_encoding(x, coords, jnp.ones((N,), dtype=bool))
    x = encoder_stack(x, jnp.zeros((1, N), F32), hf["enc"], n_heads)
    hit_scores = mlp_forward(hf["classifier"], x)[:, 0]

    # ---------------- on-device compaction into a fixed lane-dense bucket ----------
    hit_probs = jax.nn.sigmoid(hit_scores)
    keep = hit_probs > threshold
    n_filt = jnp.sum(keep.astype(jnp.int32))
    order = jnp.argsort(jnp.logical_not(keep).astype(jnp.int32), stable=True)
    hits_c = jnp.zeros((n_pad, hits.shape[1]), F32).at[:N].set(hits[order])
    coords_c = jnp.zeros((n_pad, 3), F32).at[:N].set(coords[order])
    valid = jnp.arange(n_pad) < n_filt

    # ---------------- track reconstruction network ----------------
    tr = params["track"]
    key_bias = jnp.where(valid, 0.0, NEG_BIG).astype(F32).reshape(1, n_pad)
    x = linear(hits_c, tr["embed_w"], tr["embed_b"])
    x = positional_encoding(x, coords_c, valid)
    hit_emb = encoder_stack(x, key_bias, tr["enc"], n_heads)
    # hit_proj(hit_embeddings) is identical on every decoder iteration -> compute once.
    hit_features = linear(hit_emb, tr["hit_proj_w"], tr["hit_proj_b"])

    _, clspar, asg = decoder_stack(
        tr["object_queries"], hit_emb.astype(BF16), hit_features.astype(BF16),
        key_bias, tr["dec"], tr["heads"], n_heads)

    return hit_scores, keep, n_filt, clspar, asg


def trackformer_forward(params, hits, coords, cfg):
    N = hits.shape[0]
    n_pad = max(128, ((N + 127) // 128) * 128)   # lane-dense key/assignment dimension
    hit_scores, keep, n_filt, clspar, asg = _trackformer_core(
        params, hits, coords, n_heads=cfg["n_heads"], n_pad=n_pad,
        threshold=cfg["filter_threshold"])

    n_filt = int(n_filt)   # single host sync (needed to size the returned arrays)
    if n_filt == 0:
        return {"hit_scores": hit_scores, "filtered_indices": keep,
                "track_logits": jnp.zeros((0,), F32),
                "hit_assignment": jnp.zeros((0, 0), F32),
                "track_properties": jnp.zeros((0, 4), F32),
                "intermediate_outputs": []}

    L = clspar.shape[0]
    intermediates = [{"track_logits": clspar[l, :, 0],
                      "track_properties": clspar[l, :, 1:5],
                      "hit_assignment": asg[l, :, :n_filt]} for l in range(L)]
    # Final heads in the reference use the same queries as the last intermediate
    # evaluation -> identical values; reuse them instead of recomputing.
    final = intermediates[-1]
    return {"hit_scores": hit_scores,
            "filtered_indices": keep,
            "track_logits": final["track_logits"],
            "hit_assignment": final["hit_assignment"],
            "track_properties": final["track_properties"],
            "intermediate_outputs": intermediates}


# ----------------------------------------------------------------------------
# Main
# ----------------------------------------------------------------------------

if __name__ == "__main__":
    cfg = dict(
        input_dim=8,
        d_model=64,
        n_heads=4,
        hit_filter_layers=2,
        track_encoder_layers=2,
        track_decoder_layers=2,
        n_queries=16,
        hit_filter_window=1024,
        track_window=512,
        filter_threshold=0.1,
    )

    key = jax.random.PRNGKey(0)
    pkey, dkey = jax.random.split(key)
    params = init_trackformer(pkey, cfg)

    N_hits = 24
    assert N_hits <= cfg["hit_filter_window"] and N_hits <= cfg["track_window"]
    k1, k2, k3, k4 = jax.random.split(dkey, 4)
    hits = jax.random.normal(k1, (N_hits, cfg["input_dim"]), F32)
    coords = jnp.stack([
        jax.random.uniform(k2, (N_hits,), F32, 0.5, 2.0),               # r
        jax.random.uniform(k3, (N_hits,), F32, -math.pi, math.pi),      # phi
        jax.random.uniform(k4, (N_hits,), F32, -1.0, 1.0),              # z
    ], axis=1)

    out = trackformer_forward(params, hits, coords, cfg)
    jax.block_until_ready(out)
    print("KERNEL_OK")
</pallas_src>

<mosaic_0001>
module attributes {stable_mosaic.version = 11 : i64} {
  func.func @_encoder_stack_kernel(%arg0: i32, %arg1: memref<24x64xf32, #tpu.memory_space<vmem>>, %arg2: memref<1x24xf32, #tpu.memory_space<vmem>>, %arg3: memref<1x1x64xf32, #tpu.memory_space<vmem>>, %arg4: memref<1x1x64xf32, #tpu.memory_space<vmem>>, %arg5: memref<1x64x192xbf16, #tpu.memory_space<vmem>>, %arg6: memref<1x1x192xf32, #tpu.memory_space<vmem>>, %arg7: memref<1x64x64xbf16, #tpu.memory_space<vmem>>, %arg8: memref<1x1x64xf32, #tpu.memory_space<vmem>>, %arg9: memref<1x1x64xf32, #tpu.memory_space<vmem>>, %arg10: memref<1x1x64xf32, #tpu.memory_space<vmem>>, %arg11: memref<1x64x256xbf16, #tpu.memory_space<vmem>>, %arg12: memref<1x1x256xf32, #tpu.memory_space<vmem>>, %arg13: memref<1x128x64xbf16, #tpu.memory_space<vmem>>, %arg14: memref<1x1x64xf32, #tpu.memory_space<vmem>>, %arg15: memref<24x64xf32, #tpu.memory_space<vmem>>) attributes {dimension_semantics = [#tpu.dimension_semantics<arbitrary>], iteration_bounds = array<i64: 2>, scalar_prefetch = 0 : i64, scratch_operands = 0 : i64, tpu.core_type = #tpu.core_type<tc>, window_params = [{pipeline_mode = #tpu.pipeline_mode<synchronous>, transform_indices = @transform_0, window_bounds = array<i64: 24, 64>}, {pipeline_mode = #tpu.pipeline_mode<synchronous>, transform_indices = @transform_1, window_bounds = array<i64: 1, 24>}, {transform_indices = @transform_2, window_bounds = array<i64: 1, 1, 64>}, {transform_indices = @transform_3, window_bounds = array<i64: 1, 1, 64>}, {transform_indices = @transform_4, window_bounds = array<i64: 1, 64, 192>}, {transform_indices = @transform_5, window_bounds = array<i64: 1, 1, 192>}, {transform_indices = @transform_6, window_bounds = array<i64: 1, 64, 64>}, {transform_indices = @transform_7, window_bounds = array<i64: 1, 1, 64>}, {transform_indices = @transform_8, window_bounds = array<i64: 1, 1, 64>}, {transform_indices = @transform_9, window_bounds = array<i64: 1, 1, 64>}, {transform_indices = @transform_10, window_bounds = array<i64: 1, 64, 256>}, {transform_indices = @transform_11, window_bounds = array<i64: 1, 1, 256>}, {transform_indices = @transform_12, window_bounds = array<i64: 1, 128, 64>}, {transform_indices = @transform_13, window_bounds = array<i64: 1, 1, 64>}, {pipeline_mode = #tpu.pipeline_mode<synchronous>, transform_indices = @transform_14, window_bounds = array<i64: 24, 64>}]} {
    %c0_i32 = arith.constant 0 : i32
    %0 = arith.cmpi eq, %arg0, %c0_i32 : i32
    %1 = arith.extui %0 : i1 to i32
    %c0_i32_0 = arith.constant 0 : i32
    %2 = arith.cmpi ne, %1, %c0_i32_0 : i32
    scf.if %2 {
      %c0_80 = arith.constant 0 : index
      %c0_81 = arith.constant 0 : index
      %198 = vector.load %arg1[%c0_80, %c0_81] : memref<24x64xf32, #tpu.memory_space<vmem>>, vector<24x64xf32>
      %c0_82 = arith.constant 0 : index
      %c0_83 = arith.constant 0 : index
      %199 = vector.load %arg15[%c0_82, %c0_83] : memref<24x64xf32, #tpu.memory_space<vmem>>, vector<24x64xf32>
      tpu.vector_store %arg15[%c0_82, %c0_83], %198 {strides = array<i32>} : memref<24x64xf32, #tpu.memory_space<vmem>>, vector<24x64xf32>,
    } else {
    }
    %c0 = arith.constant 0 : index
    %c0_1 = arith.constant 0 : index
    %3 = vector.load %arg15[%c0, %c0_1] : memref<24x64xf32, #tpu.memory_space<vmem>>, vector<24x64xf32>
    %c0_2 = arith.constant 0 : index
    %c0_3 = arith.constant 0 : index
    %c0_4 = arith.constant 0 : index
    %4 = vector.load %arg3[%c0_2, %c0_3, %c0_4] : memref<1x1x64xf32, #tpu.memory_space<vmem>>, vector<1x1x64xf32>
    %5 = vector.shape_cast %4 : vector<1x1x64xf32> to vector<1x64xf32>
    %c0_5 = arith.constant 0 : index
    %c0_6 = arith.constant 0 : index
    %c0_7 = arith.constant 0 : index
    %6 = vector.load %arg4[%c0_5, %c0_6, %c0_7] : memref<1x1x64xf32, #tpu.memory_space<vmem>>, vector<1x1x64xf32>
    %7 = vector.shape_cast %6 : vector<1x1x64xf32> to vector<1x64xf32>
    %cst = arith.constant dense<0.000000e+00> : vector<24xf32>
    %8 = vector.multi_reduction <add>, %3, %cst [1] : vector<24x64xf32> to vector<24xf32>
    %9 = vector.shape_cast %8 : vector<24xf32> to vector<24x1xf32>
    %cst_8 = arith.constant 6.400000e+01 : f32
    %10 = vector.broadcast %cst_8 : f32 to vector<24x1xf32>
    %11 = arith.divf %9, %10 : vector<24x1xf32>
    %12 = vector.broadcast %11 : vector<24x1xf32> to vector<24x64xf32>
    %13 = arith.subf %3, %12 : vector<24x64xf32>
    %14 = arith.mulf %13, %13 : vector<24x64xf32>
    %cst_9 = arith.constant dense<0.000000e+00> : vector<24xf32>
    %15 = vector.multi_reduction <add>, %14, %cst_9 [1] : vector<24x64xf32> to vector<24xf32>
    %16 = vector.shape_cast %15 : vector<24xf32> to vector<24x1xf32>
    %cst_10 = arith.constant 6.400000e+01 : f32
    %17 = vector.broadcast %cst_10 : f32 to vector<24x1xf32>
    %18 = arith.divf %16, %17 : vector<24x1xf32>
    %cst_11 = arith.constant 9.99999974E-6 : f32
    %19 = vector.broadcast %cst_11 : f32 to vector<24x1xf32>
    %20 = arith.addf %18, %19 : vector<24x1xf32>
    %21 = math.rsqrt %20 : vector<24x1xf32>
    %22 = vector.broadcast %21 : vector<24x1xf32> to vector<24x64xf32>
    %23 = arith.mulf %13, %22 : vector<24x64xf32>
    %24 = vector.broadcast %5 : vector<1x64xf32> to vector<24x64xf32>
    %25 = arith.mulf %23, %24 : vector<24x64xf32>
    %26 = vector.broadcast %7 : vector<1x64xf32> to vector<24x64xf32>
    %27 = arith.addf %25, %26 : vector<24x64xf32>
    %28 = arith.truncf %27 : vector<24x64xf32> to vector<24x64xbf16>
    %c0_12 = arith.constant 0 : index
    %c0_13 = arith.constant 0 : index
    %c0_14 = arith.constant 0 : index
    %29 = vector.load %arg5[%c0_12, %c0_13, %c0_14] : memref<1x64x192xbf16, #tpu.memory_space<vmem>>, vector<1x64x192xbf16>
    %30 = vector.shape_cast %29 : vector<1x64x192xbf16> to vector<64x192xbf16>
    %cst_15 = arith.constant dense<0.000000e+00> : vector<24x192xf32>
    %31 = tpu.matmul %28, %30, %cst_15 {dimension_numbers = #tpu.dot_dimension_numbers<[1], [0], [0], [1], [0, 0, 1, 1], [], []>} : vector<24x64xbf16>, vector<64x192xbf16>, vector<24x192xf32> -> vector<24x192xf32>
    %c0_16 = arith.constant 0 : index
    %c0_17 = arith.constant 0 : index
    %c0_18 = arith.constant 0 : index
    %32 = vector.load %arg6[%c0_16, %c0_17, %c0_18] : memref<1x1x192xf32, #tpu.memory_space<vmem>>, vector<1x1x192xf32>
    %33 = vector.shape_cast %32 : vector<1x1x192xf32> to vector<1x192xf32>
    %34 = vector.broadcast %33 : vector<1x192xf32> to vector<24x192xf32>
    %35 = arith.addf %31, %34 : vector<24x192xf32>
    %36 = vector.extract_strided_slice %35 {offsets = [0, 0], sizes = [24, 64], strides = [1, 1]} : vector<24x192xf32> to vector<24x64xf32>
    %37 = vector.extract_strided_slice %35 {offsets = [0, 64], sizes = [24, 64], strides = [1, 1]} : vector<24x192xf32> to vector<24x64xf32>
    %38 = vector.extract_strided_slice %35 {offsets = [0, 128], sizes = [24, 64], strides = [1, 1]} : vector<24x192xf32> to vector<24x64xf32>
    %c0_19 = arith.constant 0 : index
    %c0_20 = arith.constant 0 : index
    %c0_21 = arith.constant 0 : index
    %39 = vector.load %arg7[%c0_19, %c0_20, %c0_21] : memref<1x64x64xbf16, #tpu.memory_space<vmem>>, vector<1x64x64xbf16>
    %40 = vector.shape_cast %39 : vector<1x64x64xbf16> to vector<64x64xbf16>
    %c0_22 = arith.constant 0 : index
    %c0_23 = arith.constant 0 : index
    %41 = vector.load %arg2[%c0_22, %c0_23] : memref<1x24xf32, #tpu.memory_space<vmem>>, vector<1x24xf32>
    %42 = arith.truncf %36 : vector<24x64xf32> to vector<24x64xbf16>
    %43 = arith.truncf %37 : vector<24x64xf32> to vector<24x64xbf16>
    %44 = arith.truncf %38 : vector<24x64xf32> to vector<24x64xbf16>
    %cst_24 = arith.constant 0.000000e+00 : f32
    %45 = vector.broadcast %cst_24 : f32 to vector<24x64xf32>
    %46 = vector.extract_strided_slice %42 {offsets = [0, 0], sizes = [24, 16], strides = [1, 1]} : vector<24x64xbf16> to vector<24x16xbf16>
    %47 = vector.extract_strided_slice %43 {offsets = [0, 0], sizes = [24, 16], strides = [1, 1]} : vector<24x64xbf16> to vector<24x16xbf16>
    %cst_25 = arith.constant dense<0.000000e+00> : vector<24x24xf32>
    %48 = tpu.matmul %46, %47, %cst_25 {dimension_numbers = #tpu.dot_dimension_numbers<[1], [1], [0], [0], [0, 0, 1, 0], [], []>} : vector<24x16xbf16>, vector<24x16xbf16>, vector<24x24xf32> -> vector<24x24xf32>
    %cst_26 = arith.constant 2.500000e-01 : f32
    %49 = vector.broadcast %cst_26 : f32 to vector<24x24xf32>
    %50 = arith.mulf %48, %49 : vector<24x24xf32>
    %51 = vector.broadcast %41 : vector<1x24xf32> to vector<24x24xf32>
    %52 = arith.addf %50, %51 : vector<24x24xf32>
    %cst_27 = arith.constant dense<0xFF800000> : vector<24xf32>
    %53 = vector.multi_reduction <maximumf>, %52, %cst_27 [1] : vector<24x24xf32> to vector<24xf32>
    %54 = vector.shape_cast %53 : vector<24xf32> to vector<24x1xf32>
    %55 = vector.broadcast %54 : vector<24x1xf32> to vector<24x24xf32>
    %56 = arith.subf %52, %55 : vector<24x24xf32>
    %57 = math.exp %56 : vector<24x24xf32>
    %cst_28 = arith.constant dense<0.000000e+00> : vector<24xf32>
    %58 = vector.multi_reduction <add>, %57, %cst_28 [1] : vector<24x24xf32> to vector<24xf32>
    %59 = vector.shape_cast %58 : vector<24xf32> to vector<24x1xf32>
    %60 = tpu.reciprocal %59 {approx = true} : vector<24x1xf32> -> vector<24x1xf32>
    %61 = vector.broadcast %60 : vector<24x1xf32> to vector<24x24xf32>
    %62 = arith.mulf %57, %61 : vector<24x24xf32>
    %63 = arith.truncf %62 : vector<24x24xf32> to vector<24x24xbf16>
    %64 = vector.extract_strided_slice %44 {offsets = [0, 0], sizes = [24, 16], strides = [1, 1]} : vector<24x64xbf16> to vector<24x16xbf16>
    %cst_29 = arith.constant dense<0.000000e+00> : vector<24x16xf32>
    %65 = tpu.matmul %63, %64, %cst_29 {dimension_numbers = #tpu.dot_dimension_numbers<[1], [0], [0], [1], [0, 0, 1, 1], [], []>} : vector<24x24xbf16>, vector<24x16xbf16>, vector<24x16xf32> -> vector<24x16xf32>
    %66 = arith.truncf %65 : vector<24x16xf32> to vector<24x16xbf16>
    %67 = vector.extract_strided_slice %40 {offsets = [0, 0], sizes = [16, 64], strides = [1, 1]} : vector<64x64xbf16> to vector<16x64xbf16>
    %cst_30 = arith.constant dense<0.000000e+00> : vector<24x64xf32>
    %68 = tpu.matmul %66, %67, %cst_30 {dimension_numbers = #tpu.dot_dimension_numbers<[1], [0], [0], [1], [0, 0, 1, 1], [], []>} : vector<24x16xbf16>, vector<16x64xbf16>, vector<24x64xf32> -> vector<24x64xf32>
    %69 = arith.addf %45, %68 : vector<24x64xf32>
    %70 = vector.extract_strided_slice %42 {offsets = [0, 16], sizes = [24, 16], strides = [1, 1]} : vector<24x64xbf16> to vector<24x16xbf16>
    %71 = vector.extract_strided_slice %43 {offsets = [0, 16], sizes = [24, 16], strides = [1, 1]} : vector<24x64xbf16> to vector<24x16xbf16>
    %cst_31 = arith.constant dense<0.000000e+00> : vector<24x24xf32>
    %72 = tpu.matmul %70, %71, %cst_31 {dimension_numbers = #tpu.dot_dimension_numbers<[1], [1], [0], [0], [0, 0, 1, 0], [], []>} : vector<24x16xbf16>, vector<24x16xbf16>, vector<24x24xf32> -> vector<24x24xf32>
    %cst_32 = arith.constant 2.500000e-01 : f32
    %73 = vector.broadcast %cst_32 : f32 to vector<24x24xf32>
    %74 = arith.mulf %72, %73 : vector<24x24xf32>
    %75 = vector.broadcast %41 : vector<1x24xf32> to vector<24x24xf32>
    %76 = arith.addf %74, %75 : vector<24x24xf32>
    %cst_33 = arith.constant dense<0xFF800000> : vector<24xf32>
    %77 = vector.multi_reduction <maximumf>, %76, %cst_33 [1] : vector<24x24xf32> to vector<24xf32>
    %78 = vector.shape_cast %77 : vector<24xf32> to vector<24x1xf32>
    %79 = vector.broadcast %78 : vector<24x1xf32> to vector<24x24xf32>
    %80 = arith.subf %76, %79 : vector<24x24xf32>
    %81 = math.exp %80 : vector<24x24xf32>
    %cst_34 = arith.constant dense<0.000000e+00> : vector<24xf32>
    %82 = vector.multi_reduction <add>, %81, %cst_34 [1] : vector<24x24xf32> to vector<24xf32>
    %83 = vector.shape_cast %82 : vector<24xf32> to vector<24x1xf32>
    %84 = tpu.reciprocal %83 {approx = true} : vector<24x1xf32> -> vector<24x1xf32>
    %85 = vector.broadcast %84 : vector<24x1xf32> to vector<24x24xf32>
    %86 = arith.mulf %81, %85 : vector<24x24xf32>
    %87 = arith.truncf %86 : vector<24x24xf32> to vector<24x24xbf16>
    %88 = vector.extract_strided_slice %44 {offsets = [0, 16], sizes = [24, 16], strides = [1, 1]} : vector<24x64xbf16> to vector<24x16xbf16>
    %cst_35 = arith.constant dense<0.000000e+00> : vector<24x16xf32>
    %89 = tpu.matmul %87, %88, %cst_35 {dimension_numbers = #tpu.dot_dimension_numbers<[1], [0], [0], [1], [0, 0, 1, 1], [], []>} : vector<24x24xbf16>, vector<24x16xbf16>, vector<24x16xf32> -> vector<24x16xf32>
    %90 = arith.truncf %89 : vector<24x16xf32> to vector<24x16xbf16>
    %91 = vector.extract_strided_slice %40 {offsets = [16, 0], sizes = [16, 64], strides = [1, 1]} : vector<64x64xbf16> to vector<16x64xbf16>
    %cst_36 = arith.constant dense<0.000000e+00> : vector<24x64xf32>
    %92 = tpu.matmul %90, %91, %cst_36 {dimension_numbers = #tpu.dot_dimension_numbers<[1], [0], [0], [1], [0, 0, 1, 1], [], []>} : vector<24x16xbf16>, vector<16x64xbf16>, vector<24x64xf32> -> vector<24x64xf32>
    %93 = arith.addf %69, %92 : vector<24x64xf32>
    %94 = vector.extract_strided_slice %42 {offsets = [0, 32], sizes = [24, 16], strides = [1, 1]} : vector<24x64xbf16> to vector<24x16xbf16>
    %95 = vector.extract_strided_slice %43 {offsets = [0, 32], sizes = [24, 16], strides = [1, 1]} : vector<24x64xbf16> to vector<24x16xbf16>
    %cst_37 = arith.constant dense<0.000000e+00> : vector<24x24xf32>
    %96 = tpu.matmul %94, %95, %cst_37 {dimension_numbers = #tpu.dot_dimension_numbers<[1], [1], [0], [0], [0, 0, 1, 0], [], []>} : vector<24x16xbf16>, vector<24x16xbf16>, vector<24x24xf32> -> vector<24x24xf32>
    %cst_38 = arith.constant 2.500000e-01 : f32
    %97 = vector.broadcast %cst_38 : f32 to vector<24x24xf32>
    %98 = arith.mulf %96, %97 : vector<24x24xf32>
    %99 = vector.broadcast %41 : vector<1x24xf32> to vector<24x24xf32>
    %100 = arith.addf %98, %99 : vector<24x24xf32>
    %cst_39 = arith.constant dense<0xFF800000> : vector<24xf32>
    %101 = vector.multi_reduction <maximumf>, %100, %cst_39 [1] : vector<24x24xf32> to vector<24xf32>
    %102 = vector.shape_cast %101 : vector<24xf32> to vector<24x1xf32>
    %103 = vector.broadcast %102 : vector<24x1xf32> to vector<24x24xf32>
    %104 = arith.subf %100, %103 : vector<24x24xf32>
    %105 = math.exp %104 : vector<24x24xf32>
    %cst_40 = arith.constant dense<0.000000e+00> : vector<24xf32>
    %106 = vector.multi_reduction <add>, %105, %cst_40 [1] : vector<24x24xf32> to vector<24xf32>
    %107 = vector.shape_cast %106 : vector<24xf32> to vector<24x1xf32>
    %108 = tpu.reciprocal %107 {approx = true} : vector<24x1xf32> -> vector<24x1xf32>
    %109 = vector.broadcast %108 : vector<24x1xf32> to vector<24x24xf32>
    %110 = arith.mulf %105, %109 : vector<24x24xf32>
    %111 = arith.truncf %110 : vector<24x24xf32> to vector<24x24xbf16>
    %112 = vector.extract_strided_slice %44 {offsets = [0, 32], sizes = [24, 16], strides = [1, 1]} : vector<24x64xbf16> to vector<24x16xbf16>
    %cst_41 = arith.constant dense<0.000000e+00> : vector<24x16xf32>
    %113 = tpu.matmul %111, %112, %cst_41 {dimension_numbers = #tpu.dot_dimension_numbers<[1], [0], [0], [1], [0, 0, 1, 1], [], []>} : vector<24x24xbf16>, vector<24x16xbf16>, vector<24x16xf32> -> vector<24x16xf32>
    %114 = arith.truncf %113 : vector<24x16xf32> to vector<24x16xbf16>
    %115 = vector.extract_strided_slice %40 {offsets = [32, 0], sizes = [16, 64], strides = [1, 1]} : vector<64x64xbf16> to vector<16x64xbf16>
    %cst_42 = arith.constant dense<0.000000e+00> : vector<24x64xf32>
    %116 = tpu.matmul %114, %115, %cst_42 {dimension_numbers = #tpu.dot_dimension_numbers<[1], [0], [0], [1], [0, 0, 1, 1], [], []>} : vector<24x16xbf16>, vector<16x64xbf16>, vector<24x64xf32> -> vector<24x64xf32>
    %117 = arith.addf %93, %116 : vector<24x64xf32>
    %118 = vector.extract_strided_slice %42 {offsets = [0, 48], sizes = [24, 16], strides = [1, 1]} : vector<24x64xbf16> to vector<24x16xbf16>
    %119 = vector.extract_strided_slice %43 {offsets = [0, 48], sizes = [24, 16], strides = [1, 1]} : vector<24x64xbf16> to vector<24x16xbf16>
    %cst_43 = arith.constant dense<0.000000e+00> : vector<24x24xf32>
    %120 = tpu.matmul %118, %119, %cst_43 {dimension_numbers = #tpu.dot_dimension_numbers<[1], [1], [0], [0], [0, 0, 1, 0], [], []>} : vector<24x16xbf16>, vector<24x16xbf16>, vector<24x24xf32> -> vector<24x24xf32>
    %cst_44 = arith.constant 2.500000e-01 : f32
    %121 = vector.broadcast %cst_44 : f32 to vector<24x24xf32>
    %122 = arith.mulf %120, %121 : vector<24x24xf32>
    %123 = vector.broadcast %41 : vector<1x24xf32> to vector<24x24xf32>
    %124 = arith.addf %122, %123 : vector<24x24xf32>
    %cst_45 = arith.constant dense<0xFF800000> : vector<24xf32>
    %125 = vector.multi_reduction <maximumf>, %124, %cst_45 [1] : vector<24x24xf32> to vector<24xf32>
    %126 = vector.shape_cast %125 : vector<24xf32> to vector<24x1xf32>
    %127 = vector.broadcast %126 : vector<24x1xf32> to vector<24x24xf32>
    %128 = arith.subf %124, %127 : vector<24x24xf32>
    %129 = math.exp %128 : vector<24x24xf32>
    %cst_46 = arith.constant dense<0.000000e+00> : vector<24xf32>
    %130 = vector.multi_reduction <add>, %129, %cst_46 [1] : vector<24x24xf32> to vector<24xf32>
    %131 = vector.shape_cast %130 : vector<24xf32> to vector<24x1xf32>
    %132 = tpu.reciprocal %131 {approx = true} : vector<24x1xf32> -> vector<24x1xf32>
    %133 = vector.broadcast %132 : vector<24x1xf32> to vector<24x24xf32>
    %134 = arith.mulf %129, %133 : vector<24x24xf32>
    %135 = arith.truncf %134 : vector<24x24xf32> to vector<24x24xbf16>
    %136 = vector.extract_strided_slice %44 {offsets = [0, 48], sizes = [24, 16], strides = [1, 1]} : vector<24x64xbf16> to vector<24x16xbf16>
    %cst_47 = arith.constant dense<0.000000e+00> : vector<24x16xf32>
    %137 = tpu.matmul %135, %136, %cst_47 {dimension_numbers = #tpu.dot_dimension_numbers<[1], [0], [0], [1], [0, 0, 1, 1], [], []>} : vector<24x24xbf16>, vector<24x16xbf16>, vector<24x16xf32> -> vector<24x16xf32>
    %138 = arith.truncf %137 : vector<24x16xf32> to vector<24x16xbf16>
    %139 = vector.extract_strided_slice %40 {offsets = [48, 0], sizes = [16, 64], strides = [1, 1]} : vector<64x64xbf16> to vector<16x64xbf16>
    %cst_48 = arith.constant dense<0.000000e+00> : vector<24x64xf32>
    %140 = tpu.matmul %138, %139, %cst_48 {dimension_numbers = #tpu.dot_dimension_numbers<[1], [0], [0], [1], [0, 0, 1, 1], [], []>} : vector<24x16xbf16>, vector<16x64xbf16>, vector<24x64xf32> -> vector<24x64xf32>
    %141 = arith.addf %117, %140 : vector<24x64xf32>
    %c0_49 = arith.constant 0 : index
    %c0_50 = arith.constant 0 : index
    %c0_51 = arith.constant 0 : index
    %142 = vector.load %arg8[%c0_49, %c0_50, %c0_51] : memref<1x1x64xf32, #tpu.memory_space<vmem>>, vector<1x1x64xf32>
    %143 = vector.shape_cast %142 : vector<1x1x64xf32> to vector<1x64xf32>
    %144 = vector.broadcast %143 : vector<1x64xf32> to vector<24x64xf32>
    %145 = arith.addf %141, %144 : vector<24x64xf32>
    %146 = arith.addf %3, %145 : vector<24x64xf32>
    %c0_52 = arith.constant 0 : index
    %c0_53 = arith.constant 0 : index
    %c0_54 = arith.constant 0 : index
    %147 = vector.load %arg9[%c0_52, %c0_53, %c0_54] : memref<1x1x64xf32, #tpu.memory_space<vmem>>, vector<1x1x64xf32>
    %148 = vector.shape_cast %147 : vector<1x1x64xf32> to vector<1x64xf32>
    %c0_55 = arith.constant 0 : index
    %c0_56 = arith.constant 0 : index
    %c0_57 = arith.constant 0 : index
    %149 = vector.load %arg10[%c0_55, %c0_56, %c0_57] : memref<1x1x64xf32, #tpu.memory_space<vmem>>, vector<1x1x64xf32>
    %150 = vector.shape_cast %149 : vector<1x1x64xf32> to vector<1x64xf32>
    %cst_58 = arith.constant dense<0.000000e+00> : vector<24xf32>
    %151 = vector.multi_reduction <add>, %146, %cst_58 [1] : vector<24x64xf32> to vector<24xf32>
    %152 = vector.shape_cast %151 : vector<24xf32> to vector<24x1xf32>
    %cst_59 = arith.constant 6.400000e+01 : f32
    %153 = vector.broadcast %cst_59 : f32 to vector<24x1xf32>
    %154 = arith.divf %152, %153 : vector<24x1xf32>
    %155 = vector.broadcast %154 : vector<24x1xf32> to vector<24x64xf32>
    %156 = arith.subf %146, %155 : vector<24x64xf32>
    %157 = arith.mulf %156, %156 : vector<24x64xf32>
    %cst_60 = arith.constant dense<0.000000e+00> : vector<24xf32>
    %158 = vector.multi_reduction <add>, %157, %cst_60 [1] : vector<24x64xf32> to vector<24xf32>
    %159 = vector.shape_cast %158 : vector<24xf32> to vector<24x1xf32>
    %cst_61 = arith.constant 6.400000e+01 : f32
    %160 = vector.broadcast %cst_61 : f32 to vector<24x1xf32>
    %161 = arith.divf %159, %160 : vector<24x1xf32>
    %cst_62 = arith.constant 9.99999974E-6 : f32
    %162 = vector.broadcast %cst_62 : f32 to vector<24x1xf32>
    %163 = arith.addf %161, %162 : vector<24x1xf32>
    %164 = math.rsqrt %163 : vector<24x1xf32>
    %165 = vector.broadcast %164 : vector<24x1xf32> to vector<24x64xf32>
    %166 = arith.mulf %156, %165 : vector<24x64xf32>
    %167 = vector.broadcast %148 : vector<1x64xf32> to vector<24x64xf32>
    %168 = arith.mulf %166, %167 : vector<24x64xf32>
    %169 = vector.broadcast %150 : vector<1x64xf32> to vector<24x64xf32>
    %170 = arith.addf %168, %169 : vector<24x64xf32>
    %c0_63 = arith.constant 0 : index
    %c0_64 = arith.constant 0 : index
    %c0_65 = arith.constant 0 : index
    %171 = vector.load %arg11[%c0_63, %c0_64, %c0_65] : memref<1x64x256xbf16, #tpu.memory_space<vmem>>, vector<1x64x256xbf16>
    %172 = vector.shape_cast %171 : vector<1x64x256xbf16> to vector<64x256xbf16>
    %c0_66 = arith.constant 0 : index
    %c0_67 = arith.constant 0 : index
    %c0_68 = arith.constant 0 : index
    %173 = vector.load %arg12[%c0_66, %c0_67, %c0_68] : memref<1x1x256xf32, #tpu.memory_space<vmem>>, vector<1x1x256xf32>
    %174 = vector.shape_cast %173 : vector<1x1x256xf32> to vector<1x256xf32>
    %c0_69 = arith.constant 0 : index
    %c0_70 = arith.constant 0 : index
    %c0_71 = arith.constant 0 : index
    %175 = vector.load %arg13[%c0_69, %c0_70, %c0_71] : memref<1x128x64xbf16, #tpu.memory_space<vmem>>, vector<1x128x64xbf16>
    %176 = vector.shape_cast %175 : vector<1x128x64xbf16> to vector<128x64xbf16>
    %c0_72 = arith.constant 0 : index
    %c0_73 = arith.constant 0 : index
    %c0_74 = arith.constant 0 : index
    %177 = vector.load %arg14[%c0_72, %c0_73, %c0_74] : memref<1x1x64xf32, #tpu.memory_space<vmem>>, vector<1x1x64xf32>
    %178 = vector.shape_cast %177 : vector<1x1x64xf32> to vector<1x64xf32>
    %179 = arith.truncf %170 : vector<24x64xf32> to vector<24x64xbf16>
    %cst_75 = arith.constant dense<0.000000e+00> : vector<24x256xf32>
    %180 = tpu.matmul %179, %172, %cst_75 {dimension_numbers = #tpu.dot_dimension_numbers<[1], [0], [0], [1], [0, 0, 1, 1], [], []>} : vector<24x64xbf16>, vector<64x256xbf16>, vector<24x256xf32> -> vector<24x256xf32>
    %181 = vector.broadcast %174 : vector<1x256xf32> to vector<24x256xf32>
    %182 = arith.addf %180, %181 : vector<24x256xf32>
    %183 = vector.extract_strided_slice %182 {offsets = [0, 0], sizes = [24, 128], strides = [1, 1]} : vector<24x256xf32> to vector<24x128xf32>
    %184 = vector.extract_strided_slice %182 {offsets = [0, 128], sizes = [24, 128], strides = [1, 1]} : vector<24x256xf32> to vector<24x128xf32>
    %185 = arith.negf %183 : vector<24x128xf32>
    %186 = math.exp %185 : vector<24x128xf32>
    %cst_76 = arith.constant 1.000000e+00 : f32
    %187 = vector.broadcast %cst_76 : f32 to vector<24x128xf32>
    %188 = arith.addf %187, %186 : vector<24x128xf32>
    %189 = arith.divf %187, %188 : vector<24x128xf32>
    %190 = arith.mulf %183, %189 : vector<24x128xf32>
    %191 = arith.mulf %190, %184 : vector<24x128xf32>
    %192 = arith.truncf %191 : vector<24x128xf32> to vector<24x128xbf16>
    %cst_77 = arith.constant dense<0.000000e+00> : vector<24x64xf32>
    %193 = tpu.matmul %192, %176, %cst_77 {dimension_numbers = #tpu.dot_dimension_numbers<[1], [0], [0], [1], [0, 0, 1, 1], [], []>} : vector<24x128xbf16>, vector<128x64xbf16>, vector<24x64xf32> -> vector<24x64xf32>
    %194 = vector.broadcast %178 : vector<1x64xf32> to vector<24x64xf32>
    %195 = arith.addf %193, %194 : vector<24x64xf32>
    %196 = arith.addf %146, %195 : vector<24x64xf32>
    %c0_78 = arith.constant 0 : index
    %c0_79 = arith.constant 0 : index
    %197 = vector.load %arg15[%c0_78, %c0_79] : memref<24x64xf32, #tpu.memory_space<vmem>>, vector<24x64xf32>
    tpu.vector_store %arg15[%c0_78, %c0_79], %196 {strides = array<i32>} : memref<24x64xf32, #tpu.memory_space<vmem>>, vector<24x64xf32>,
    return
  }
  func.func @transform_0(%arg0: i32) -> (i32, i32) {
    %c0_i32 = arith.constant 0 : i32
    %c0_i32_0 = arith.constant 0 : i32
    %c0_i32_1 = arith.constant 0 : i32
    return %c0_i32, %c0_i32_0 : i32, i32
  }
  func.func @transform_1(%arg0: i32) -> (i32, i32) {
    %c0_i32 = arith.constant 0 : i32
    %c0_i32_0 = arith.constant 0 : i32
    %c0_i32_1 = arith.constant 0 : i32
    return %c0_i32, %c0_i32_0 : i32, i32
  }
  func.func @transform_2(%arg0: i32) -> (i32, i32, i32) {
    %c0_i32 = arith.constant 0 : i32
    %c0_i32_0 = arith.constant 0 : i32
    %c0_i32_1 = arith.constant 0 : i32
    return %arg0, %c0_i32, %c0_i32_0 : i32, i32, i32
  }
  func.func @transform_3(%arg0: i32) -> (i32, i32, i32) {
    %c0_i32 = arith.constant 0 : i32
    %c0_i32_0 = arith.constant 0 : i32
    %c0_i32_1 = arith.constant 0 : i32
    return %arg0, %c0_i32, %c0_i32_0 : i32, i32, i32
  }
  func.func @transform_4(%arg0: i32) -> (i32, i32, i32) {
    %c0_i32 = arith.constant 0 : i32
    %c0_i32_0 = arith.constant 0 : i32
    %c0_i32_1 = arith.constant 0 : i32
    return %arg0, %c0_i32, %c0_i32_0 : i32, i32, i32
  }
  func.func @transform_5(%arg0: i32) -> (i32, i32, i32) {
    %c0_i32 = arith.constant 0 : i32
    %c0_i32_0 = arith.constant 0 : i32
    %c0_i32_1 = arith.constant 0 : i32
    return %arg0, %c0_i32, %c0_i32_0 : i32, i32, i32
  }
  func.func @transform_6(%arg0: i32) -> (i32, i32, i32) {
    %c0_i32 = arith.constant 0 : i32
    %c0_i32_0 = arith.constant 0 : i32
    %c0_i32_1 = arith.constant 0 : i32
    return %arg0, %c0_i32, %c0_i32_0 : i32, i32, i32
  }
  func.func @transform_7(%arg0: i32) -> (i32, i32, i32) {
    %c0_i32 = arith.constant 0 : i32
    %c0_i32_0 = arith.constant 0 : i32
    %c0_i32_1 = arith.constant 0 : i32
    return %arg0, %c0_i32, %c0_i32_0 : i32, i32, i32
  }
  func.func @transform_8(%arg0: i32) -> (i32, i32, i32) {
    %c0_i32 = arith.constant 0 : i32
    %c0_i32_0 = arith.constant 0 : i32
    %c0_i32_1 = arith.constant 0 : i32
    return %arg0, %c0_i32, %c0_i32_0 : i32, i32, i32
  }
  func.func @transform_9(%arg0: i32) -> (i32, i32, i32) {
    %c0_i32 = arith.constant 0 : i32
    %c0_i32_0 = arith.constant 0 : i32
    %c0_i32_1 = arith.constant 0 : i32
    return %arg0, %c0_i32, %c0_i32_0 : i32, i32, i32
  }
  func.func @transform_10(%arg0: i32) -> (i32, i32, i32) {
    %c0_i32 = arith.constant 0 : i32
    %c0_i32_0 = arith.constant 0 : i32
    %c0_i32_1 = arith.constant 0 : i32
    return %arg0, %c0_i32, %c0_i32_0 : i32, i32, i32
  }
  func.func @transform_11(%arg0: i32) -> (i32, i32, i32) {
    %c0_i32 = arith.constant 0 : i32
    %c0_i32_0 = arith.constant 0 : i32
    %c0_i32_1 = arith.constant 0 : i32
    return %arg0, %c0_i32, %c0_i32_0 : i32, i32, i32
  }
  func.func @transform_12(%arg0: i32) -> (i32, i32, i32) {
    %c0_i32 = arith.constant 0 : i32
    %c0_i32_0 = arith.constant 0 : i32
    %c0_i32_1 = arith.constant 0 : i32
    return %arg0, %c0_i32, %c0_i32_0 : i32, i32, i32
  }
  func.func @transform_13(%arg0: i32) -> (i32, i32, i32) {
    %c0_i32 = arith.constant 0 : i32
    %c0_i32_0 = arith.constant 0 : i32
    %c0_i32_1 = arith.constant 0 : i32
    return %arg0, %c0_i32, %c0_i32_0 : i32, i32, i32
  }
  func.func @transform_14(%arg0: i32) -> (i32, i32) {
    %c0_i32 = arith.constant 0 : i32
    %c0_i32_0 = arith.constant 0 : i32
    %c0_i32_1 = arith.constant 0 : i32
    return %c0_i32, %c0_i32_0 : i32, i32
  }
}

module attributes {stable_mosaic.version = 11 : i64} {
  func.func @_linear_kernel(%arg0: i32, %arg1: memref<24x8xf32, #tpu.memory_space<vmem>>, %arg2: memref<8x64xbf16, #tpu.memory_space<vmem>>, %arg3: memref<1x64xf32, #tpu.memory_space<vmem>>, %arg4: memref<24x64xf32, #tpu.memory_space<vmem>>) attributes {dimension_semantics = [#tpu.dimension_semantics<arbitrary>], iteration_bounds = array<i64: 1>, scalar_prefetch = 0 : i64, scratch_operands = 0 : i64, tpu.core_type = #tpu.core_type<tc>, window_params = [{pipeline_mode = #tpu.pipeline_mode<synchronous>, transform_indices = @transform_0, window_bounds = array<i64: 24, 8>}, {pipeline_mode = #tpu.pipeline_mode<synchronous>, transform_indices = @transform_1, window_bounds = array<i64: 8, 64>}, {pipeline_mode = #tpu.pipeline_mode<synchronous>, transform_indices = @transform_2, window_bounds = array<i64: 1, 64>}, {pipeline_mode = #tpu.pipeline_mode<synchronous>, transform_indices = @transform_3, window_bounds = array<i64: 24, 64>}]} {
    %c0 = arith.constant 0 : index
    %c0_0 = arith.constant 0 : index
    %0 = vector.load %arg1[%c0, %c0_0] : memref<24x8xf32, #tpu.memory_space<vmem>>, vector<24x8xf32>
    %1 = arith.truncf %0 : vector<24x8xf32> to vector<24x8xbf16>
    %c0_1 = arith.constant 0 : index
    %c0_2 = arith.constant 0 : index
    %2 = vector.load %arg2[%c0_1, %c0_2] : memref<8x64xbf16, #tpu.memory_space<vmem>>, vector<8x64xbf16>
    %cst = arith.constant dense<0.000000e+00> : vector<24x64xf32>
    %3 = tpu.matmul %1, %2, %cst {dimension_numbers = #tpu.dot_dimension_numbers<[1], [0], [0], [1], [0, 0, 1, 1], [], []>} : vector<24x8xbf16>, vector<8x64xbf16>, vector<24x64xf32> -> vector<24x64xf32>
    %c0_3 = arith.constant 0 : index
    %c0_4 = arith.constant 0 : index
    %4 = vector.load %arg3[%c0_3, %c0_4] : memref<1x64xf32, #tpu.memory_space<vmem>>, vector<1x64xf32>
    %5 = vector.broadcast %4 : vector<1x64xf32> to vector<24x64xf32>
    %6 = arith.addf %3, %5 : vector<24x64xf32>
    %c0_5 = arith.constant 0 : index
    %c0_6 = arith.constant 0 : index
    %7 = vector.load %arg4[%c0_5, %c0_6] : memref<24x64xf32, #tpu.memory_space<vmem>>, vector<24x64xf32>
    tpu.vector_store %arg4[%c0_5, %c0_6], %6 {strides = array<i32>} : memref<24x64xf32, #tpu.memory_space<vmem>>, vector<24x64xf32>,
    return
  }
  func.func @transform_0(%arg0: i32) -> (i32, i32) {
    %c0_i32 = arith.constant 0 : i32
    %c0_i32_0 = arith.constant 0 : i32
    %c0_i32_1 = arith.constant 0 : i32
    return %c0_i32, %c0_i32_0 : i32, i32
  }
  func.func @transform_1(%arg0: i32) -> (i32, i32) {
    %c0_i32 = arith.constant 0 : i32
    %c0_i32_0 = arith.constant 0 : i32
    %c0_i32_1 = arith.constant 0 : i32
    return %c0_i32, %c0_i32_0 : i32, i32
  }
  func.func @transform_2(%arg0: i32) -> (i32, i32) {
    %c0_i32 = arith.constant 0 : i32
    %c0_i32_0 = arith.constant 0 : i32
    %c0_i32_1 = arith.constant 0 : i32
    return %c0_i32, %c0_i32_0 : i32, i32
  }
  func.func @transform_3(%arg0: i32) -> (i32, i32) {
    %c0_i32 = arith.constant 0 : i32
    %c0_i32_0 = arith.constant 0 : i32
    %c0_i32_1 = arith.constant 0 : i32
    return %c0_i32, %c0_i32_0 : i32, i32
  }
}

module attributes {stable_mosaic.version = 11 : i64} {
  func.func @kernel(%arg0: i32, %arg1: memref<24x64xf32, #tpu.memory_space<vmem>>, %arg2: memref<64x32xbf16, #tpu.memory_space<vmem>>, %arg3: memref<1x32xf32, #tpu.memory_space<vmem>>, %arg4: memref<32x16xbf16, #tpu.memory_space<vmem>>, %arg5: memref<1x16xf32, #tpu.memory_space<vmem>>, %arg6: memref<16x1xbf16, #tpu.memory_space<vmem>>, %arg7: memref<1x1xf32, #tpu.memory_space<vmem>>, %arg8: memref<24x1xf32, #tpu.memory_space<vmem>>) attributes {dimension_semantics = [#tpu.dimension_semantics<arbitrary>], iteration_bounds = array<i64: 1>, scalar_prefetch = 0 : i64, scratch_operands = 0 : i64, tpu.core_type = #tpu.core_type<tc>, window_params = [{pipeline_mode = #tpu.pipeline_mode<synchronous>, transform_indices = @transform_0, window_bounds = array<i64: 24, 64>}, {pipeline_mode = #tpu.pipeline_mode<synchronous>, transform_indices = @transform_1, window_bounds = array<i64: 64, 32>}, {pipeline_mode = #tpu.pipeline_mode<synchronous>, transform_indices = @transform_2, window_bounds = array<i64: 1, 32>}, {pipeline_mode = #tpu.pipeline_mode<synchronous>, transform_indices = @transform_3, window_bounds = array<i64: 32, 16>}, {pipeline_mode = #tpu.pipeline_mode<synchronous>, transform_indices = @transform_4, window_bounds = array<i64: 1, 16>}, {pipeline_mode = #tpu.pipeline_mode<synchronous>, transform_indices = @transform_5, window_bounds = array<i64: 16, 1>}, {pipeline_mode = #tpu.pipeline_mode<synchronous>, transform_indices = @transform_6, window_bounds = array<i64: 1, 1>}, {pipeline_mode = #tpu.pipeline_mode<synchronous>, transform_indices = @transform_7, window_bounds = array<i64: 24, 1>}]} {
    %c0 = arith.constant 0 : index
    %c0_0 = arith.constant 0 : index
    %0 = vector.load %arg1[%c0, %c0_0] : memref<24x64xf32, #tpu.memory_space<vmem>>, vector<24x64xf32>
    %c0_1 = arith.constant 0 : index
    %c0_2 = arith.constant 0 : index
    %1 = vector.load %arg2[%c0_1, %c0_2] : memref<64x32xbf16, #tpu.memory_space<vmem>>, vector<64x32xbf16>
    %c0_3 = arith.constant 0 : index
    %c0_4 = arith.constant 0 : index
    %2 = vector.load %arg3[%c0_3, %c0_4] : memref<1x32xf32, #tpu.memory_space<vmem>>, vector<1x32xf32>
    %3 = arith.truncf %0 : vector<24x64xf32> to vector<24x64xbf16>
    %cst = arith.constant dense<0.000000e+00> : vector<24x32xf32>
    %4 = tpu.matmul %3, %1, %cst {dimension_numbers = #tpu.dot_dimension_numbers<[1], [0], [0], [1], [0, 0, 1, 1], [], []>} : vector<24x64xbf16>, vector<64x32xbf16>, vector<24x32xf32> -> vector<24x32xf32>
    %5 = vector.broadcast %2 : vector<1x32xf32> to vector<24x32xf32>
    %6 = arith.addf %4, %5 : vector<24x32xf32>
    %cst_5 = arith.constant 0.000000e+00 : f32
    %7 = vector.broadcast %cst_5 : f32 to vector<24x32xf32>
    %8 = arith.maximumf %6, %7 : vector<24x32xf32>
    %c0_6 = arith.constant 0 : index
    %c0_7 = arith.constant 0 : index
    %9 = vector.load %arg4[%c0_6, %c0_7] : memref<32x16xbf16, #tpu.memory_space<vmem>>, vector<32x16xbf16>
    %c0_8 = arith.constant 0 : index
    %c0_9 = arith.constant 0 : index
    %10 = vector.load %arg5[%c0_8, %c0_9] : memref<1x16xf32, #tpu.memory_space<vmem>>, vector<1x16xf32>
    %11 = arith.truncf %8 : vector<24x32xf32> to vector<24x32xbf16>
    %cst_10 = arith.constant dense<0.000000e+00> : vector<24x16xf32>
    %12 = tpu.matmul %11, %9, %cst_10 {dimension_numbers = #tpu.dot_dimension_numbers<[1], [0], [0], [1], [0, 0, 1, 1], [], []>} : vector<24x32xbf16>, vector<32x16xbf16>, vector<24x16xf32> -> vector<24x16xf32>
    %13 = vector.broadcast %10 : vector<1x16xf32> to vector<24x16xf32>
    %14 = arith.addf %12, %13 : vector<24x16xf32>
    %cst_11 = arith.constant 0.000000e+00 : f32
    %15 = vector.broadcast %cst_11 : f32 to vector<24x16xf32>
    %16 = arith.maximumf %14, %15 : vector<24x16xf32>
    %c0_12 = arith.constant 0 : index
    %c0_13 = arith.constant 0 : index
    %17 = vector.load %arg6[%c0_12, %c0_13] : memref<16x1xbf16, #tpu.memory_space<vmem>>, vector<16x1xbf16>
    %c0_14 = arith.constant 0 : index
    %c0_15 = arith.constant 0 : index
    %18 = vector.load %arg7[%c0_14, %c0_15] : memref<1x1xf32, #tpu.memory_space<vmem>>, vector<1x1xf32>
    %19 = arith.truncf %16 : vector<24x16xf32> to vector<24x16xbf16>
    %cst_16 = arith.constant dense<0.000000e+00> : vector<24x1xf32>
    %20 = tpu.matmul %19, %17, %cst_16 {dimension_numbers = #tpu.dot_dimension_numbers<[1], [0], [0], [1], [0, 0, 1, 1], [], []>} : vector<24x16xbf16>, vector<16x1xbf16>, vector<24x1xf32> -> vector<24x1xf32>
    %21 = vector.broadcast %18 : vector<1x1xf32> to vector<24x1xf32>
    %22 = arith.addf %20, %21 : vector<24x1xf32>
    %c0_17 = arith.constant 0 : index
    %c0_18 = arith.constant 0 : index
    %23 = vector.load %arg8[%c0_17, %c0_18] : memref<24x1xf32, #tpu.memory_space<vmem>>, vector<24x1xf32>
    tpu.vector_store %arg8[%c0_17, %c0_18], %22 {strides = array<i32>} : memref<24x1xf32, #tpu.memory_space<vmem>>, vector<24x1xf32>,
    return
  }
  func.func @transform_0(%arg0: i32) -> (i32, i32) {
    %c0_i32 = arith.constant 0 : i32
    %c0_i32_0 = arith.constant 0 : i32
    %c0_i32_1 = arith.constant 0 : i32
    return %c0_i32, %c0_i32_0 : i32, i32
  }
  func.func @transform_1(%arg0: i32) -> (i32, i32) {
    %c0_i32 = arith.constant 0 : i32
    %c0_i32_0 = arith.constant 0 : i32
    %c0_i32_1 = arith.constant 0 : i32
    return %c0_i32, %c0_i32_0 : i32, i32
  }
  func.func @transform_2(%arg0: i32) -> (i32, i32) {
    %c0_i32 = arith.constant 0 : i32
    %c0_i32_0 = arith.constant 0 : i32
    %c0_i32_1 = arith.constant 0 : i32
    return %c0_i32, %c0_i32_0 : i32, i32
  }
  func.func @transform_3(%arg0: i32) -> (i32, i32) {
    %c0_i32 = arith.constant 0 : i32
    %c0_i32_0 = arith.constant 0 : i32
    %c0_i32_1 = arith.constant 0 : i32
    return %c0_i32, %c0_i32_0 : i32, i32
  }
  func.func @transform_4(%arg0: i32) -> (i32, i32) {
    %c0_i32 = arith.constant 0 : i32
    %c0_i32_0 = arith.constant 0 : i32
    %c0_i32_1 = arith.constant 0 : i32
    return %c0_i32, %c0_i32_0 : i32, i32
  }
  func.func @transform_5(%arg0: i32) -> (i32, i32) {
    %c0_i32 = arith.constant 0 : i32
    %c0_i32_0 = arith.constant 0 : i32
    %c0_i32_1 = arith.constant 0 : i32
    return %c0_i32, %c0_i32_0 : i32, i32
  }
  func.func @transform_6(%arg0: i32) -> (i32, i32) {
    %c0_i32 = arith.constant 0 : i32
    %c0_i32_0 = arith.constant 0 : i32
    %c0_i32_1 = arith.constant 0 : i32
    return %c0_i32, %c0_i32_0 : i32, i32
  }
  func.func @transform_7(%arg0: i32) -> (i32, i32) {
    %c0_i32 = arith.constant 0 : i32
    %c0_i32_0 = arith.constant 0 : i32
    %c0_i32_1 = arith.constant 0 : i32
    return %c0_i32, %c0_i32_0 : i32, i32
  }
}

module attributes {stable_mosaic.version = 11 : i64} {
  func.func @_linear_kernel(%arg0: i32, %arg1: memref<128x8xf32, #tpu.memory_space<vmem>>, %arg2: memref<8x64xbf16, #tpu.memory_space<vmem>>, %arg3: memref<1x64xf32, #tpu.memory_space<vmem>>, %arg4: memref<128x64xf32, #tpu.memory_space<vmem>>) attributes {dimension_semantics = [#tpu.dimension_semantics<arbitrary>], iteration_bounds = array<i64: 1>, scalar_prefetch = 0 : i64, scratch_operands = 0 : i64, tpu.core_type = #tpu.core_type<tc>, window_params = [{pipeline_mode = #tpu.pipeline_mode<synchronous>, transform_indices = @transform_0, window_bounds = array<i64: 128, 8>}, {pipeline_mode = #tpu.pipeline_mode<synchronous>, transform_indices = @transform_1, window_bounds = array<i64: 8, 64>}, {pipeline_mode = #tpu.pipeline_mode<synchronous>, transform_indices = @transform_2, window_bounds = array<i64: 1, 64>}, {pipeline_mode = #tpu.pipeline_mode<synchronous>, transform_indices = @transform_3, window_bounds = array<i64: 128, 64>}]} {
    %c0 = arith.constant 0 : index
    %c0_0 = arith.constant 0 : index
    %0 = vector.load %arg1[%c0, %c0_0] : memref<128x8xf32, #tpu.memory_space<vmem>>, vector<128x8xf32>
    %1 = arith.truncf %0 : vector<128x8xf32> to vector<128x8xbf16>
    %c0_1 = arith.constant 0 : index
    %c0_2 = arith.constant 0 : index
    %2 = vector.load %arg2[%c0_1, %c0_2] : memref<8x64xbf16, #tpu.memory_space<vmem>>, vector<8x64xbf16>
    %cst = arith.constant dense<0.000000e+00> : vector<128x64xf32>
    %3 = tpu.matmul %1, %2, %cst {dimension_numbers = #tpu.dot_dimension_numbers<[1], [0], [0], [1], [0, 0, 1, 1], [], []>} : vector<128x8xbf16>, vector<8x64xbf16>, vector<128x64xf32> -> vector<128x64xf32>
    %c0_3 = arith.constant 0 : index
    %c0_4 = arith.constant 0 : index
    %4 = vector.load %arg3[%c0_3, %c0_4] : memref<1x64xf32, #tpu.memory_space<vmem>>, vector<1x64xf32>
    %5 = vector.broadcast %4 : vector<1x64xf32> to vector<128x64xf32>
    %6 = arith.addf %3, %5 : vector<128x64xf32>
    %c0_5 = arith.constant 0 : index
    %c0_6 = arith.constant 0 : index
    %7 = vector.load %arg4[%c0_5, %c0_6] : memref<128x64xf32, #tpu.memory_space<vmem>>, vector<128x64xf32>
    tpu.vector_store %arg4[%c0_5, %c0_6], %6 {strides = array<i32>} : memref<128x64xf32, #tpu.memory_space<vmem>>, vector<128x64xf32>,
    return
  }
  func.func @transform_0(%arg0: i32) -> (i32, i32) {
    %c0_i32 = arith.constant 0 : i32
    %c0_i32_0 = arith.constant 0 : i32
    %c0_i32_1 = arith.constant 0 : i32
    return %c0_i32, %c0_i32_0 : i32, i32
  }
  func.func @transform_1(%arg0: i32) -> (i32, i32) {
    %c0_i32 = arith.constant 0 : i32
    %c0_i32_0 = arith.constant 0 : i32
    %c0_i32_1 = arith.constant 0 : i32
    return %c0_i32, %c0_i32_0 : i32, i32
  }
  func.func @transform_2(%arg0: i32) -> (i32, i32) {
    %c0_i32 = arith.constant 0 : i32
    %c0_i32_0 = arith.constant 0 : i32
    %c0_i32_1 = arith.constant 0 : i32
    return %c0_i32, %c0_i32_0 : i32, i32
  }
  func.func @transform_3(%arg0: i32) -> (i32, i32) {
    %c0_i32 = arith.constant 0 : i32
    %c0_i32_0 = arith.constant 0 : i32
    %c0_i32_1 = arith.constant 0 : i32
    return %c0_i32, %c0_i32_0 : i32, i32
  }
}

module attributes {stable_mosaic.version = 11 : i64} {
  func.func @_linear_kernel(%arg0: i32, %arg1: memref<128x64xf32, #tpu.memory_space<vmem>>, %arg2: memref<64x64xbf16, #tpu.memory_space<vmem>>, %arg3: memref<1x64xf32, #tpu.memory_space<vmem>>, %arg4: memref<128x64xf32, #tpu.memory_space<vmem>>) attributes {dimension_semantics = [#tpu.dimension_semantics<arbitrary>], iteration_bounds = array<i64: 1>, scalar_prefetch = 0 : i64, scratch_operands = 0 : i64, tpu.core_type = #tpu.core_type<tc>, window_params = [{pipeline_mode = #tpu.pipeline_mode<synchronous>, transform_indices = @transform_0, window_bounds = array<i64: 128, 64>}, {pipeline_mode = #tpu.pipeline_mode<synchronous>, transform_indices = @transform_1, window_bounds = array<i64: 64, 64>}, {pipeline_mode = #tpu.pipeline_mode<synchronous>, transform_indices = @transform_2, window_bounds = array<i64: 1, 64>}, {pipeline_mode = #tpu.pipeline_mode<synchronous>, transform_indices = @transform_3, window_bounds = array<i64: 128, 64>}]} {
    %c0 = arith.constant 0 : index
    %c0_0 = arith.constant 0 : index
    %0 = vector.load %arg1[%c0, %c0_0] : memref<128x64xf32, #tpu.memory_space<vmem>>, vector<128x64xf32>
    %1 = arith.truncf %0 : vector<128x64xf32> to vector<128x64xbf16>
    %c0_1 = arith.constant 0 : index
    %c0_2 = arith.constant 0 : index
    %2 = vector.load %arg2[%c0_1, %c0_2] : memref<64x64xbf16, #tpu.memory_space<vmem>>, vector<64x64xbf16>
    %cst = arith.constant dense<0.000000e+00> : vector<128x64xf32>
    %3 = tpu.matmul %1, %2, %cst {dimension_numbers = #tpu.dot_dimension_numbers<[1], [0], [0], [1], [0, 0, 1, 1], [], []>} : vector<128x64xbf16>, vector<64x64xbf16>, vector<128x64xf32> -> vector<128x64xf32>
    %c0_3 = arith.constant 0 : index
    %c0_4 = arith.constant 0 : index
    %4 = vector.load %arg3[%c0_3, %c0_4] : memref<1x64xf32, #tpu.memory_space<vmem>>, vector<1x64xf32>
    %5 = vector.broadcast %4 : vector<1x64xf32> to vector<128x64xf32>
    %6 = arith.addf %3, %5 : vector<128x64xf32>
    %c0_5 = arith.constant 0 : index
    %c0_6 = arith.constant 0 : index
    %7 = vector.load %arg4[%c0_5, %c0_6] : memref<128x64xf32, #tpu.memory_space<vmem>>, vector<128x64xf32>
    tpu.vector_store %arg4[%c0_5, %c0_6], %6 {strides = array<i32>} : memref<128x64xf32, #tpu.memory_space<vmem>>, vector<128x64xf32>,
    return
  }
  func.func @transform_0(%arg0: i32) -> (i32, i32) {
    %c0_i32 = arith.constant 0 : i32
    %c0_i32_0 = arith.constant 0 : i32
    %c0_i32_1 = arith.constant 0 : i32
    return %c0_i32, %c0_i32_0 : i32, i32
  }
  func.func @transform_1(%arg0: i32) -> (i32, i32) {
    %c0_i32 = arith.constant 0 : i32
    %c0_i32_0 = arith.constant 0 : i32
    %c0_i32_1 = arith.constant 0 : i32
    return %c0_i32, %c0_i32_0 : i32, i32
  }
  func.func @transform_2(%arg0: i32) -> (i32, i32) {
    %c0_i32 = arith.constant 0 : i32
    %c0_i32_0 = arith.constant 0 : i32
    %c0_i32_1 = arith.constant 0 : i32
    return %c0_i32, %c0_i32_0 : i32, i32
  }
  func.func @transform_3(%arg0: i32) -> (i32, i32) {
    %c0_i32 = arith.constant 0 : i32
    %c0_i32_0 = arith.constant 0 : i32
    %c0_i32_1 = arith.constant 0 : i32
    return %c0_i32, %c0_i32_0 : i32, i32
  }
}

module attributes {stable_mosaic.version = 11 : i64} {
  func.func @_encoder_stack_kernel(%arg0: i32, %arg1: memref<128x64xf32, #tpu.memory_space<vmem>>, %arg2: memref<1x128xf32, #tpu.memory_space<vmem>>, %arg3: memref<1x1x64xf32, #tpu.memory_space<vmem>>, %arg4: memref<1x1x64xf32, #tpu.memory_space<vmem>>, %arg5: memref<1x64x192xbf16, #tpu.memory_space<vmem>>, %arg6: memref<1x1x192xf32, #tpu.memory_space<vmem>>, %arg7: memref<1x64x64xbf16, #tpu.memory_space<vmem>>, %arg8: memref<1x1x64xf32, #tpu.memory_space<vmem>>, %arg9: memref<1x1x64xf32, #tpu.memory_space<vmem>>, %arg10: memref<1x1x64xf32, #tpu.memory_space<vmem>>, %arg11: memref<1x64x256xbf16, #tpu.memory_space<vmem>>, %arg12: memref<1x1x256xf32, #tpu.memory_space<vmem>>, %arg13: memref<1x128x64xbf16, #tpu.memory_space<vmem>>, %arg14: memref<1x1x64xf32, #tpu.memory_space<vmem>>, %arg15: memref<128x64xf32, #tpu.memory_space<vmem>>) attributes {dimension_semantics = [#tpu.dimension_semantics<arbitrary>], iteration_bounds = array<i64: 2>, scalar_prefetch = 0 : i64, scratch_operands = 0 : i64, tpu.core_type = #tpu.core_type<tc>, window_params = [{pipeline_mode = #tpu.pipeline_mode<synchronous>, transform_indices = @transform_0, window_bounds = array<i64: 128, 64>}, {pipeline_mode = #tpu.pipeline_mode<synchronous>, transform_indices = @transform_1, window_bounds = array<i64: 1, 128>}, {transform_indices = @transform_2, window_bounds = array<i64: 1, 1, 64>}, {transform_indices = @transform_3, window_bounds = array<i64: 1, 1, 64>}, {transform_indices = @transform_4, window_bounds = array<i64: 1, 64, 192>}, {transform_indices = @transform_5, window_bounds = array<i64: 1, 1, 192>}, {transform_indices = @transform_6, window_bounds = array<i64: 1, 64, 64>}, {transform_indices = @transform_7, window_bounds = array<i64: 1, 1, 64>}, {transform_indices = @transform_8, window_bounds = array<i64: 1, 1, 64>}, {transform_indices = @transform_9, window_bounds = array<i64: 1, 1, 64>}, {transform_indices = @transform_10, window_bounds = array<i64: 1, 64, 256>}, {transform_indices = @transform_11, window_bounds = array<i64: 1, 1, 256>}, {transform_indices = @transform_12, window_bounds = array<i64: 1, 128, 64>}, {transform_indices = @transform_13, window_bounds = array<i64: 1, 1, 64>}, {pipeline_mode = #tpu.pipeline_mode<synchronous>, transform_indices = @transform_14, window_bounds = array<i64: 128, 64>}]} {
    %c0_i32 = arith.constant 0 : i32
    %0 = arith.cmpi eq, %arg0, %c0_i32 : i32
    %1 = arith.extui %0 : i1 to i32
    %c0_i32_0 = arith.constant 0 : i32
    %2 = arith.cmpi ne, %1, %c0_i32_0 : i32
    scf.if %2 {
      %c0_80 = arith.constant 0 : index
      %c0_81 = arith.constant 0 : index
      %198 = vector.load %arg1[%c0_80, %c0_81] : memref<128x64xf32, #tpu.memory_space<vmem>>, vector<128x64xf32>
      %c0_82 = arith.constant 0 : index
      %c0_83 = arith.constant 0 : index
      %199 = vector.load %arg15[%c0_82, %c0_83] : memref<128x64xf32, #tpu.memory_space<vmem>>, vector<128x64xf32>
      tpu.vector_store %arg15[%c0_82, %c0_83], %198 {strides = array<i32>} : memref<128x64xf32, #tpu.memory_space<vmem>>, vector<128x64xf32>,
    } else {
    }
    %c0 = arith.constant 0 : index
    %c0_1 = arith.constant 0 : index
    %3 = vector.load %arg15[%c0, %c0_1] : memref<128x64xf32, #tpu.memory_space<vmem>>, vector<128x64xf32>
    %c0_2 = arith.constant 0 : index
    %c0_3 = arith.constant 0 : index
    %c0_4 = arith.constant 0 : index
    %4 = vector.load %arg3[%c0_2, %c0_3, %c0_4] : memref<1x1x64xf32, #tpu.memory_space<vmem>>, vector<1x1x64xf32>
    %5 = vector.shape_cast %4 : vector<1x1x64xf32> to vector<1x64xf32>
    %c0_5 = arith.constant 0 : index
    %c0_6 = arith.constant 0 : index
    %c0_7 = arith.constant 0 : index
    %6 = vector.load %arg4[%c0_5, %c0_6, %c0_7] : memref<1x1x64xf32, #tpu.memory_space<vmem>>, vector<1x1x64xf32>
    %7 = vector.shape_cast %6 : vector<1x1x64xf32> to vector<1x64xf32>
    %cst = arith.constant dense<0.000000e+00> : vector<128xf32>
    %8 = vector.multi_reduction <add>, %3, %cst [1] : vector<128x64xf32> to vector<128xf32>
    %9 = vector.shape_cast %8 : vector<128xf32> to vector<128x1xf32>
    %cst_8 = arith.constant 6.400000e+01 : f32
    %10 = vector.broadcast %cst_8 : f32 to vector<128x1xf32>
    %11 = arith.divf %9, %10 : vector<128x1xf32>
    %12 = vector.broadcast %11 : vector<128x1xf32> to vector<128x64xf32>
    %13 = arith.subf %3, %12 : vector<128x64xf32>
    %14 = arith.mulf %13, %13 : vector<128x64xf32>
    %cst_9 = arith.constant dense<0.000000e+00> : vector<128xf32>
    %15 = vector.multi_reduction <add>, %14, %cst_9 [1] : vector<128x64xf32> to vector<128xf32>
    %16 = vector.shape_cast %15 : vector<128xf32> to vector<128x1xf32>
    %cst_10 = arith.constant 6.400000e+01 : f32
    %17 = vector.broadcast %cst_10 : f32 to vector<128x1xf32>
    %18 = arith.divf %16, %17 : vector<128x1xf32>
    %cst_11 = arith.constant 9.99999974E-6 : f32
    %19 = vector.broadcast %cst_11 : f32 to vector<128x1xf32>
    %20 = arith.addf %18, %19 : vector<128x1xf32>
    %21 = math.rsqrt %20 : vector<128x1xf32>
    %22 = vector.broadcast %21 : vector<128x1xf32> to vector<128x64xf32>
    %23 = arith.mulf %13, %22 : vector<128x64xf32>
    %24 = vector.broadcast %5 : vector<1x64xf32> to vector<128x64xf32>
    %25 = arith.mulf %23, %24 : vector<128x64xf32>
    %26 = vector.broadcast %7 : vector<1x64xf32> to vector<128x64xf32>
    %27 = arith.addf %25, %26 : vector<128x64xf32>
    %28 = arith.truncf %27 : vector<128x64xf32> to vector<128x64xbf16>
    %c0_12 = arith.constant 0 : index
    %c0_13 = arith.constant 0 : index
    %c0_14 = arith.constant 0 : index
    %29 = vector.load %arg5[%c0_12, %c0_13, %c0_14] : memref<1x64x192xbf16, #tpu.memory_space<vmem>>, vector<1x64x192xbf16>
    %30 = vector.shape_cast %29 : vector<1x64x192xbf16> to vector<64x192xbf16>
    %cst_15 = arith.constant dense<0.000000e+00> : vector<128x192xf32>
    %31 = tpu.matmul %28, %30, %cst_15 {dimension_numbers = #tpu.dot_dimension_numbers<[1], [0], [0], [1], [0, 0, 1, 1], [], []>} : vector<128x64xbf16>, vector<64x192xbf16>, vector<128x192xf32> -> vector<128x192xf32>
    %c0_16 = arith.constant 0 : index
    %c0_17 = arith.constant 0 : index
    %c0_18 = arith.constant 0 : index
    %32 = vector.load %arg6[%c0_16, %c0_17, %c0_18] : memref<1x1x192xf32, #tpu.memory_space<vmem>>, vector<1x1x192xf32>
    %33 = vector.shape_cast %32 : vector<1x1x192xf32> to vector<1x192xf32>
    %34 = vector.broadcast %33 : vector<1x192xf32> to vector<128x192xf32>
    %35 = arith.addf %31, %34 : vector<128x192xf32>
    %36 = vector.extract_strided_slice %35 {offsets = [0, 0], sizes = [128, 64], strides = [1, 1]} : vector<128x192xf32> to vector<128x64xf32>
    %37 = vector.extract_strided_slice %35 {offsets = [0, 64], sizes = [128, 64], strides = [1, 1]} : vector<128x192xf32> to vector<128x64xf32>
    %38 = vector.extract_strided_slice %35 {offsets = [0, 128], sizes = [128, 64], strides = [1, 1]} : vector<128x192xf32> to vector<128x64xf32>
    %c0_19 = arith.constant 0 : index
    %c0_20 = arith.constant 0 : index
    %c0_21 = arith.constant 0 : index
    %39 = vector.load %arg7[%c0_19, %c0_20, %c0_21] : memref<1x64x64xbf16, #tpu.memory_space<vmem>>, vector<1x64x64xbf16>
    %40 = vector.shape_cast %39 : vector<1x64x64xbf16> to vector<64x64xbf16>
    %c0_22 = arith.constant 0 : index
    %c0_23 = arith.constant 0 : index
    %41 = vector.load %arg2[%c0_22, %c0_23] : memref<1x128xf32, #tpu.memory_space<vmem>>, vector<1x128xf32>
    %42 = arith.truncf %36 : vector<128x64xf32> to vector<128x64xbf16>
    %43 = arith.truncf %37 : vector<128x64xf32> to vector<128x64xbf16>
    %44 = arith.truncf %38 : vector<128x64xf32> to vector<128x64xbf16>
    %cst_24 = arith.constant 0.000000e+00 : f32
    %45 = vector.broadcast %cst_24 : f32 to vector<128x64xf32>
    %46 = vector.extract_strided_slice %42 {offsets = [0, 0], sizes = [128, 16], strides = [1, 1]} : vector<128x64xbf16> to vector<128x16xbf16>
    %47 = vector.extract_strided_slice %43 {offsets = [0, 0], sizes = [128, 16], strides = [1, 1]} : vector<128x64xbf16> to vector<128x16xbf16>
    %cst_25 = arith.constant dense<0.000000e+00> : vector<128x128xf32>
    %48 = tpu.matmul %46, %47, %cst_25 {dimension_numbers = #tpu.dot_dimension_numbers<[1], [1], [0], [0], [0, 0, 1, 0], [], []>} : vector<128x16xbf16>, vector<128x16xbf16>, vector<128x128xf32> -> vector<128x128xf32>
    %cst_26 = arith.constant 2.500000e-01 : f32
    %49 = vector.broadcast %cst_26 : f32 to vector<128x128xf32>
    %50 = arith.mulf %48, %49 : vector<128x128xf32>
    %51 = vector.broadcast %41 : vector<1x128xf32> to vector<128x128xf32>
    %52 = arith.addf %50, %51 : vector<128x128xf32>
    %cst_27 = arith.constant dense<0xFF800000> : vector<128xf32>
    %53 = vector.multi_reduction <maximumf>, %52, %cst_27 [1] : vector<128x128xf32> to vector<128xf32>
    %54 = vector.shape_cast %53 : vector<128xf32> to vector<128x1xf32>
    %55 = vector.broadcast %54 : vector<128x1xf32> to vector<128x128xf32>
    %56 = arith.subf %52, %55 : vector<128x128xf32>
    %57 = math.exp %56 : vector<128x128xf32>
    %cst_28 = arith.constant dense<0.000000e+00> : vector<128xf32>
    %58 = vector.multi_reduction <add>, %57, %cst_28 [1] : vector<128x128xf32> to vector<128xf32>
    %59 = vector.shape_cast %58 : vector<128xf32> to vector<128x1xf32>
    %60 = tpu.reciprocal %59 {approx = true} : vector<128x1xf32> -> vector<128x1xf32>
    %61 = vector.broadcast %60 : vector<128x1xf32> to vector<128x128xf32>
    %62 = arith.mulf %57, %61 : vector<128x128xf32>
    %63 = arith.truncf %62 : vector<128x128xf32> to vector<128x128xbf16>
    %64 = vector.extract_strided_slice %44 {offsets = [0, 0], sizes = [128, 16], strides = [1, 1]} : vector<128x64xbf16> to vector<128x16xbf16>
    %cst_29 = arith.constant dense<0.000000e+00> : vector<128x16xf32>
    %65 = tpu.matmul %63, %64, %cst_29 {dimension_numbers = #tpu.dot_dimension_numbers<[1], [0], [0], [1], [0, 0, 1, 1], [], []>} : vector<128x128xbf16>, vector<128x16xbf16>, vector<128x16xf32> -> vector<128x16xf32>
    %66 = arith.truncf %65 : vector<128x16xf32> to vector<128x16xbf16>
    %67 = vector.extract_strided_slice %40 {offsets = [0, 0], sizes = [16, 64], strides = [1, 1]} : vector<64x64xbf16> to vector<16x64xbf16>
    %cst_30 = arith.constant dense<0.000000e+00> : vector<128x64xf32>
    %68 = tpu.matmul %66, %67, %cst_30 {dimension_numbers = #tpu.dot_dimension_numbers<[1], [0], [0], [1], [0, 0, 1, 1], [], []>} : vector<128x16xbf16>, vector<16x64xbf16>, vector<128x64xf32> -> vector<128x64xf32>
    %69 = arith.addf %45, %68 : vector<128x64xf32>
    %70 = vector.extract_strided_slice %42 {offsets = [0, 16], sizes = [128, 16], strides = [1, 1]} : vector<128x64xbf16> to vector<128x16xbf16>
    %71 = vector.extract_strided_slice %43 {offsets = [0, 16], sizes = [128, 16], strides = [1, 1]} : vector<128x64xbf16> to vector<128x16xbf16>
    %cst_31 = arith.constant dense<0.000000e+00> : vector<128x128xf32>
    %72 = tpu.matmul %70, %71, %cst_31 {dimension_numbers = #tpu.dot_dimension_numbers<[1], [1], [0], [0], [0, 0, 1, 0], [], []>} : vector<128x16xbf16>, vector<128x16xbf16>, vector<128x128xf32> -> vector<128x128xf32>
    %cst_32 = arith.constant 2.500000e-01 : f32
    %73 = vector.broadcast %cst_32 : f32 to vector<128x128xf32>
    %74 = arith.mulf %72, %73 : vector<128x128xf32>
    %75 = vector.broadcast %41 : vector<1x128xf32> to vector<128x128xf32>
    %76 = arith.addf %74, %75 : vector<128x128xf32>
    %cst_33 = arith.constant dense<0xFF800000> : vector<128xf32>
    %77 = vector.multi_reduction <maximumf>, %76, %cst_33 [1] : vector<128x128xf32> to vector<128xf32>
    %78 = vector.shape_cast %77 : vector<128xf32> to vector<128x1xf32>
    %79 = vector.broadcast %78 : vector<128x1xf32> to vector<128x128xf32>
    %80 = arith.subf %76, %79 : vector<128x128xf32>
    %81 = math.exp %80 : vector<128x128xf32>
    %cst_34 = arith.constant dense<0.000000e+00> : vector<128xf32>
    %82 = vector.multi_reduction <add>, %81, %cst_34 [1] : vector<128x128xf32> to vector<128xf32>
    %83 = vector.shape_cast %82 : vector<128xf32> to vector<128x1xf32>
    %84 = tpu.reciprocal %83 {approx = true} : vector<128x1xf32> -> vector<128x1xf32>
    %85 = vector.broadcast %84 : vector<128x1xf32> to vector<128x128xf32>
    %86 = arith.mulf %81, %85 : vector<128x128xf32>
    %87 = arith.truncf %86 : vector<128x128xf32> to vector<128x128xbf16>
    %88 = vector.extract_strided_slice %44 {offsets = [0, 16], sizes = [128, 16], strides = [1, 1]} : vector<128x64xbf16> to vector<128x16xbf16>
    %cst_35 = arith.constant dense<0.000000e+00> : vector<128x16xf32>
    %89 = tpu.matmul %87, %88, %cst_35 {dimension_numbers = #tpu.dot_dimension_numbers<[1], [0], [0], [1], [0, 0, 1, 1], [], []>} : vector<128x128xbf16>, vector<128x16xbf16>, vector<128x16xf32> -> vector<128x16xf32>
    %90 = arith.truncf %89 : vector<128x16xf32> to vector<128x16xbf16>
    %91 = vector.extract_strided_slice %40 {offsets = [16, 0], sizes = [16, 64], strides = [1, 1]} : vector<64x64xbf16> to vector<16x64xbf16>
    %cst_36 = arith.constant dense<0.000000e+00> : vector<128x64xf32>
    %92 = tpu.matmul %90, %91, %cst_36 {dimension_numbers = #tpu.dot_dimension_numbers<[1], [0], [0], [1], [0, 0, 1, 1], [], []>} : vector<128x16xbf16>, vector<16x64xbf16>, vector<128x64xf32> -> vector<128x64xf32>
    %93 = arith.addf %69, %92 : vector<128x64xf32>
    %94 = vector.extract_strided_slice %42 {offsets = [0, 32], sizes = [128, 16], strides = [1, 1]} : vector<128x64xbf16> to vector<128x16xbf16>
    %95 = vector.extract_strided_slice %43 {offsets = [0, 32], sizes = [128, 16], strides = [1, 1]} : vector<128x64xbf16> to vector<128x16xbf16>
    %cst_37 = arith.constant dense<0.000000e+00> : vector<128x128xf32>
    %96 = tpu.matmul %94, %95, %cst_37 {dimension_numbers = #tpu.dot_dimension_numbers<[1], [1], [0], [0], [0, 0, 1, 0], [], []>} : vector<128x16xbf16>, vector<128x16xbf16>, vector<128x128xf32> -> vector<128x128xf32>
    %cst_38 = arith.constant 2.500000e-01 : f32
    %97 = vector.broadcast %cst_38 : f32 to vector<128x128xf32>
    %98 = arith.mulf %96, %97 : vector<128x128xf32>
    %99 = vector.broadcast %41 : vector<1x128xf32> to vector<128x128xf32>
    %100 = arith.addf %98, %99 : vector<128x128xf32>
    %cst_39 = arith.constant dense<0xFF800000> : vector<128xf32>
    %101 = vector.multi_reduction <maximumf>, %100, %cst_39 [1] : vector<128x128xf32> to vector<128xf32>
    %102 = vector.shape_cast %101 : vector<128xf32> to vector<128x1xf32>
    %103 = vector.broadcast %102 : vector<128x1xf32> to vector<128x128xf32>
    %104 = arith.subf %100, %103 : vector<128x128xf32>
    %105 = math.exp %104 : vector<128x128xf32>
    %cst_40 = arith.constant dense<0.000000e+00> : vector<128xf32>
    %106 = vector.multi_reduction <add>, %105, %cst_40 [1] : vector<128x128xf32> to vector<128xf32>
    %107 = vector.shape_cast %106 : vector<128xf32> to vector<128x1xf32>
    %108 = tpu.reciprocal %107 {approx = true} : vector<128x1xf32> -> vector<128x1xf32>
    %109 = vector.broadcast %108 : vector<128x1xf32> to vector<128x128xf32>
    %110 = arith.mulf %105, %109 : vector<128x128xf32>
    %111 = arith.truncf %110 : vector<128x128xf32> to vector<128x128xbf16>
    %112 = vector.extract_strided_slice %44 {offsets = [0, 32], sizes = [128, 16], strides = [1, 1]} : vector<128x64xbf16> to vector<128x16xbf16>
    %cst_41 = arith.constant dense<0.000000e+00> : vector<128x16xf32>
    %113 = tpu.matmul %111, %112, %cst_41 {dimension_numbers = #tpu.dot_dimension_numbers<[1], [0], [0], [1], [0, 0, 1, 1], [], []>} : vector<128x128xbf16>, vector<128x16xbf16>, vector<128x16xf32> -> vector<128x16xf32>
    %114 = arith.truncf %113 : vector<128x16xf32> to vector<128x16xbf16>
    %115 = vector.extract_strided_slice %40 {offsets = [32, 0], sizes = [16, 64], strides = [1, 1]} : vector<64x64xbf16> to vector<16x64xbf16>
    %cst_42 = arith.constant dense<0.000000e+00> : vector<128x64xf32>
    %116 = tpu.matmul %114, %115, %cst_42 {dimension_numbers = #tpu.dot_dimension_numbers<[1], [0], [0], [1], [0, 0, 1, 1], [], []>} : vector<128x16xbf16>, vector<16x64xbf16>, vector<128x64xf32> -> vector<128x64xf32>
    %117 = arith.addf %93, %116 : vector<128x64xf32>
    %118 = vector.extract_strided_slice %42 {offsets = [0, 48], sizes = [128, 16], strides = [1, 1]} : vector<128x64xbf16> to vector<128x16xbf16>
    %119 = vector.extract_strided_slice %43 {offsets = [0, 48], sizes = [128, 16], strides = [1, 1]} : vector<128x64xbf16> to vector<128x16xbf16>
    %cst_43 = arith.constant dense<0.000000e+00> : vector<128x128xf32>
    %120 = tpu.matmul %118, %119, %cst_43 {dimension_numbers = #tpu.dot_dimension_numbers<[1], [1], [0], [0], [0, 0, 1, 0], [], []>} : vector<128x16xbf16>, vector<128x16xbf16>, vector<128x128xf32> -> vector<128x128xf32>
    %cst_44 = arith.constant 2.500000e-01 : f32
    %121 = vector.broadcast %cst_44 : f32 to vector<128x128xf32>
    %122 = arith.mulf %120, %121 : vector<128x128xf32>
    %123 = vector.broadcast %41 : vector<1x128xf32> to vector<128x128xf32>
    %124 = arith.addf %122, %123 : vector<128x128xf32>
    %cst_45 = arith.constant dense<0xFF800000> : vector<128xf32>
    %125 = vector.multi_reduction <maximumf>, %124, %cst_45 [1] : vector<128x128xf32> to vector<128xf32>
    %126 = vector.shape_cast %125 : vector<128xf32> to vector<128x1xf32>
    %127 = vector.broadcast %126 : vector<128x1xf32> to vector<128x128xf32>
    %128 = arith.subf %124, %127 : vector<128x128xf32>
    %129 = math.exp %128 : vector<128x128xf32>
    %cst_46 = arith.constant dense<0.000000e+00> : vector<128xf32>
    %130 = vector.multi_reduction <add>, %129, %cst_46 [1] : vector<128x128xf32> to vector<128xf32>
    %131 = vector.shape_cast %130 : vector<128xf32> to vector<128x1xf32>
    %132 = tpu.reciprocal %131 {approx = true} : vector<128x1xf32> -> vector<128x1xf32>
    %133 = vector.broadcast %132 : vector<128x1xf32> to vector<128x128xf32>
    %134 = arith.mulf %129, %133 : vector<128x128xf32>
    %135 = arith.truncf %134 : vector<128x128xf32> to vector<128x128xbf16>
    %136 = vector.extract_strided_slice %44 {offsets = [0, 48], sizes = [128, 16], strides = [1, 1]} : vector<128x64xbf16> to vector<128x16xbf16>
    %cst_47 = arith.constant dense<0.000000e+00> : vector<128x16xf32>
    %137 = tpu.matmul %135, %136, %cst_47 {dimension_numbers = #tpu.dot_dimension_numbers<[1], [0], [0], [1], [0, 0, 1, 1], [], []>} : vector<128x128xbf16>, vector<128x16xbf16>, vector<128x16xf32> -> vector<128x16xf32>
    %138 = arith.truncf %137 : vector<128x16xf32> to vector<128x16xbf16>
    %139 = vector.extract_strided_slice %40 {offsets = [48, 0], sizes = [16, 64], strides = [1, 1]} : vector<64x64xbf16> to vector<16x64xbf16>
    %cst_48 = arith.constant dense<0.000000e+00> : vector<128x64xf32>
    %140 = tpu.matmul %138, %139, %cst_48 {dimension_numbers = #tpu.dot_dimension_numbers<[1], [0], [0], [1], [0, 0, 1, 1], [], []>} : vector<128x16xbf16>, vector<16x64xbf16>, vector<128x64xf32> -> vector<128x64xf32>
    %141 = arith.addf %117, %140 : vector<128x64xf32>
    %c0_49 = arith.constant 0 : index
    %c0_50 = arith.constant 0 : index
    %c0_51 = arith.constant 0 : index
    %142 = vector.load %arg8[%c0_49, %c0_50, %c0_51] : memref<1x1x64xf32, #tpu.memory_space<vmem>>, vector<1x1x64xf32>
    %143 = vector.shape_cast %142 : vector<1x1x64xf32> to vector<1x64xf32>
    %144 = vector.broadcast %143 : vector<1x64xf32> to vector<128x64xf32>
    %145 = arith.addf %141, %144 : vector<128x64xf32>
    %146 = arith.addf %3, %145 : vector<128x64xf32>
    %c0_52 = arith.constant 0 : index
    %c0_53 = arith.constant 0 : index
    %c0_54 = arith.constant 0 : index
    %147 = vector.load %arg9[%c0_52, %c0_53, %c0_54] : memref<1x1x64xf32, #tpu.memory_space<vmem>>, vector<1x1x64xf32>
    %148 = vector.shape_cast %147 : vector<1x1x64xf32> to vector<1x64xf32>
    %c0_55 = arith.constant 0 : index
    %c0_56 = arith.constant 0 : index
    %c0_57 = arith.constant 0 : index
    %149 = vector.load %arg10[%c0_55, %c0_56, %c0_57] : memref<1x1x64xf32, #tpu.memory_space<vmem>>, vector<1x1x64xf32>
    %150 = vector.shape_cast %149 : vector<1x1x64xf32> to vector<1x64xf32>
    %cst_58 = arith.constant dense<0.000000e+00> : vector<128xf32>
    %151 = vector.multi_reduction <add>, %146, %cst_58 [1] : vector<128x64xf32> to vector<128xf32>
    %152 = vector.shape_cast %151 : vector<128xf32> to vector<128x1xf32>
    %cst_59 = arith.constant 6.400000e+01 : f32
    %153 = vector.broadcast %cst_59 : f32 to vector<128x1xf32>
    %154 = arith.divf %152, %153 : vector<128x1xf32>
    %155 = vector.broadcast %154 : vector<128x1xf32> to vector<128x64xf32>
    %156 = arith.subf %146, %155 : vector<128x64xf32>
    %157 = arith.mulf %156, %156 : vector<128x64xf32>
    %cst_60 = arith.constant dense<0.000000e+00> : vector<128xf32>
    %158 = vector.multi_reduction <add>, %157, %cst_60 [1] : vector<128x64xf32> to vector<128xf32>
    %159 = vector.shape_cast %158 : vector<128xf32> to vector<128x1xf32>
    %cst_61 = arith.constant 6.400000e+01 : f32
    %160 = vector.broadcast %cst_61 : f32 to vector<128x1xf32>
    %161 = arith.divf %159, %160 : vector<128x1xf32>
    %cst_62 = arith.constant 9.99999974E-6 : f32
    %162 = vector.broadcast %cst_62 : f32 to vector<128x1xf32>
    %163 = arith.addf %161, %162 : vector<128x1xf32>
    %164 = math.rsqrt %163 : vector<128x1xf32>
    %165 = vector.broadcast %164 : vector<128x1xf32> to vector<128x64xf32>
    %166 = arith.mulf %156, %165 : vector<128x64xf32>
    %167 = vector.broadcast %148 : vector<1x64xf32> to vector<128x64xf32>
    %168 = arith.mulf %166, %167 : vector<128x64xf32>
    %169 = vector.broadcast %150 : vector<1x64xf32> to vector<128x64xf32>
    %170 = arith.addf %168, %169 : vector<128x64xf32>
    %c0_63 = arith.constant 0 : index
    %c0_64 = arith.constant 0 : index
    %c0_65 = arith.constant 0 : index
    %171 = vector.load %arg11[%c0_63, %c0_64, %c0_65] : memref<1x64x256xbf16, #tpu.memory_space<vmem>>, vector<1x64x256xbf16>
    %172 = vector.shape_cast %171 : vector<1x64x256xbf16> to vector<64x256xbf16>
    %c0_66 = arith.constant 0 : index
    %c0_67 = arith.constant 0 : index
    %c0_68 = arith.constant 0 : index
    %173 = vector.load %arg12[%c0_66, %c0_67, %c0_68] : memref<1x1x256xf32, #tpu.memory_space<vmem>>, vector<1x1x256xf32>
    %174 = vector.shape_cast %173 : vector<1x1x256xf32> to vector<1x256xf32>
    %c0_69 = arith.constant 0 : index
    %c0_70 = arith.constant 0 : index
    %c0_71 = arith.constant 0 : index
    %175 = vector.load %arg13[%c0_69, %c0_70, %c0_71] : memref<1x128x64xbf16, #tpu.memory_space<vmem>>, vector<1x128x64xbf16>
    %176 = vector.shape_cast %175 : vector<1x128x64xbf16> to vector<128x64xbf16>
    %c0_72 = arith.constant 0 : index
    %c0_73 = arith.constant 0 : index
    %c0_74 = arith.constant 0 : index
    %177 = vector.load %arg14[%c0_72, %c0_73, %c0_74] : memref<1x1x64xf32, #tpu.memory_space<vmem>>, vector<1x1x64xf32>
    %178 = vector.shape_cast %177 : vector<1x1x64xf32> to vector<1x64xf32>
    %179 = arith.truncf %170 : vector<128x64xf32> to vector<128x64xbf16>
    %cst_75 = arith.constant dense<0.000000e+00> : vector<128x256xf32>
    %180 = tpu.matmul %179, %172, %cst_75 {dimension_numbers = #tpu.dot_dimension_numbers<[1], [0], [0], [1], [0, 0, 1, 1], [], []>} : vector<128x64xbf16>, vector<64x256xbf16>, vector<128x256xf32> -> vector<128x256xf32>
    %181 = vector.broadcast %174 : vector<1x256xf32> to vector<128x256xf32>
    %182 = arith.addf %180, %181 : vector<128x256xf32>
    %183 = vector.extract_strided_slice %182 {offsets = [0, 0], sizes = [128, 128], strides = [1, 1]} : vector<128x256xf32> to vector<128x128xf32>
    %184 = vector.extract_strided_slice %182 {offsets = [0, 128], sizes = [128, 128], strides = [1, 1]} : vector<128x256xf32> to vector<128x128xf32>
    %185 = arith.negf %183 : vector<128x128xf32>
    %186 = math.exp %185 : vector<128x128xf32>
    %cst_76 = arith.constant 1.000000e+00 : f32
    %187 = vector.broadcast %cst_76 : f32 to vector<128x128xf32>
    %188 = arith.addf %187, %186 : vector<128x128xf32>
    %189 = arith.divf %187, %188 : vector<128x128xf32>
    %190 = arith.mulf %183, %189 : vector<128x128xf32>
    %191 = arith.mulf %190, %184 : vector<128x128xf32>
    %192 = arith.truncf %191 : vector<128x128xf32> to vector<128x128xbf16>
    %cst_77 = arith.constant dense<0.000000e+00> : vector<128x64xf32>
    %193 = tpu.matmul %192, %176, %cst_77 {dimension_numbers = #tpu.dot_dimension_numbers<[1], [0], [0], [1], [0, 0, 1, 1], [], []>} : vector<128x128xbf16>, vector<128x64xbf16>, vector<128x64xf32> -> vector<128x64xf32>
    %194 = vector.broadcast %178 : vector<1x64xf32> to vector<128x64xf32>
    %195 = arith.addf %193, %194 : vector<128x64xf32>
    %196 = arith.addf %146, %195 : vector<128x64xf32>
    %c0_78 = arith.constant 0 : index
    %c0_79 = arith.constant 0 : index
    %197 = vector.load %arg15[%c0_78, %c0_79] : memref<128x64xf32, #tpu.memory_space<vmem>>, vector<128x64xf32>
    tpu.vector_store %arg15[%c0_78, %c0_79], %196 {strides = array<i32>} : memref<128x64xf32, #tpu.memory_space<vmem>>, vector<128x64xf32>,
    return
  }
  func.func @transform_0(%arg0: i32) -> (i32, i32) {
    %c0_i32 = arith.constant 0 : i32
    %c0_i32_0 = arith.constant 0 : i32
    %c0_i32_1 = arith.constant 0 : i32
    return %c0_i32, %c0_i32_0 : i32, i32
  }
  func.func @transform_1(%arg0: i32) -> (i32, i32) {
    %c0_i32 = arith.constant 0 : i32
    %c0_i32_0 = arith.constant 0 : i32
    %c0_i32_1 = arith.constant 0 : i32
    return %c0_i32, %c0_i32_0 : i32, i32
  }
  func.func @transform_2(%arg0: i32) -> (i32, i32, i32) {
    %c0_i32 = arith.constant 0 : i32
    %c0_i32_0 = arith.constant 0 : i32
    %c0_i32_1 = arith.constant 0 : i32
    return %arg0, %c0_i32, %c0_i32_0 : i32, i32, i32
  }
  func.func @transform_3(%arg0: i32) -> (i32, i32, i32) {
    %c0_i32 = arith.constant 0 : i32
    %c0_i32_0 = arith.constant 0 : i32
    %c0_i32_1 = arith.constant 0 : i32
    return %arg0, %c0_i32, %c0_i32_0 : i32, i32, i32
  }
  func.func @transform_4(%arg0: i32) -> (i32, i32, i32) {
    %c0_i32 = arith.constant 0 : i32
    %c0_i32_0 = arith.constant 0 : i32
    %c0_i32_1 = arith.constant 0 : i32
    return %arg0, %c0_i32, %c0_i32_0 : i32, i32, i32
  }
  func.func @transform_5(%arg0: i32) -> (i32, i32, i32) {
    %c0_i32 = arith.constant 0 : i32
    %c0_i32_0 = arith.constant 0 : i32
    %c0_i32_1 = arith.constant 0 : i32
    return %arg0, %c0_i32, %c0_i32_0 : i32, i32, i32
  }
  func.func @transform_6(%arg0: i32) -> (i32, i32, i32) {
    %c0_i32 = arith.constant 0 : i32
    %c0_i32_0 = arith.constant 0 : i32
    %c0_i32_1 = arith.constant 0 : i32
    return %arg0, %c0_i32, %c0_i32_0 : i32, i32, i32
  }
  func.func @transform_7(%arg0: i32) -> (i32, i32, i32) {
    %c0_i32 = arith.constant 0 : i32
    %c0_i32_0 = arith.constant 0 : i32
    %c0_i32_1 = arith.constant 0 : i32
    return %arg0, %c0_i32, %c0_i32_0 : i32, i32, i32
  }
  func.func @transform_8(%arg0: i32) -> (i32, i32, i32) {
    %c0_i32 = arith.constant 0 : i32
    %c0_i32_0 = arith.constant 0 : i32
    %c0_i32_1 = arith.constant 0 : i32
    return %arg0, %c0_i32, %c0_i32_0 : i32, i32, i32
  }
  func.func @transform_9(%arg0: i32) -> (i32, i32, i32) {
    %c0_i32 = arith.constant 0 : i32
    %c0_i32_0 = arith.constant 0 : i32
    %c0_i32_1 = arith.constant 0 : i32
    return %arg0, %c0_i32, %c0_i32_0 : i32, i32, i32
  }
  func.func @transform_10(%arg0: i32) -> (i32, i32, i32) {
    %c0_i32 = arith.constant 0 : i32
    %c0_i32_0 = arith.constant 0 : i32
    %c0_i32_1 = arith.constant 0 : i32
    return %arg0, %c0_i32, %c0_i32_0 : i32, i32, i32
  }
  func.func @transform_11(%arg0: i32) -> (i32, i32, i32) {
    %c0_i32 = arith.constant 0 : i32
    %c0_i32_0 = arith.constant 0 : i32
    %c0_i32_1 = arith.constant 0 : i32
    return %arg0, %c0_i32, %c0_i32_0 : i32, i32, i32
  }
  func.func @transform_12(%arg0: i32) -> (i32, i32, i32) {
    %c0_i32 = arith.constant 0 : i32
    %c0_i32_0 = arith.constant 0 : i32
    %c0_i32_1 = arith.constant 0 : i32
    return %arg0, %c0_i32, %c0_i32_0 : i32, i32, i32
  }
  func.func @transform_13(%arg0: i32) -> (i32, i32, i32) {
    %c0_i32 = arith.constant 0 : i32
    %c0_i32_0 = arith.constant 0 : i32
    %c0_i32_1 = arith.constant 0 : i32
    return %arg0, %c0_i32, %c0_i32_0 : i32, i32, i32
  }
  func.func @transform_14(%arg0: i32) -> (i32, i32) {
    %c0_i32 = arith.constant 0 : i32
    %c0_i32_0 = arith.constant 0 : i32
    %c0_i32_1 = arith.constant 0 : i32
    return %c0_i32, %c0_i32_0 : i32, i32
  }
}

module attributes {stable_mosaic.version = 11 : i64} {
  func.func @_decoder_stack_kernel(%arg0: i32, %arg1: memref<16x64xf32, #tpu.memory_space<vmem>>, %arg2: memref<128x64xbf16, #tpu.memory_space<vmem>>, %arg3: memref<128x64xbf16, #tpu.memory_space<vmem>>, %arg4: memref<1x128xf32, #tpu.memory_space<vmem>>, %arg5: memref<1x1x64xf32, #tpu.memory_space<vmem>>, %arg6: memref<1x1x64xf32, #tpu.memory_space<vmem>>, %arg7: memref<1x64x192xbf16, #tpu.memory_space<vmem>>, %arg8: memref<1x1x192xf32, #tpu.memory_space<vmem>>, %arg9: memref<1x64x64xbf16, #tpu.memory_space<vmem>>, %arg10: memref<1x1x64xf32, #tpu.memory_space<vmem>>, %arg11: memref<1x1x64xf32, #tpu.memory_space<vmem>>, %arg12: memref<1x1x64xf32, #tpu.memory_space<vmem>>, %arg13: memref<1x1x64xf32, #tpu.memory_space<vmem>>, %arg14: memref<1x1x64xf32, #tpu.memory_space<vmem>>, %arg15: memref<1x64x256xbf16, #tpu.memory_space<vmem>>, %arg16: memref<1x1x256xf32, #tpu.memory_space<vmem>>, %arg17: memref<1x128x64xbf16, #tpu.memory_space<vmem>>, %arg18: memref<1x1x64xf32, #tpu.memory_space<vmem>>, %arg19: memref<64x64xbf16, #tpu.memory_space<vmem>>, %arg20: memref<1x64xf32, #tpu.memory_space<vmem>>, %arg21: memref<64x1xbf16, #tpu.memory_space<vmem>>, %arg22: memref<1x1xf32, #tpu.memory_space<vmem>>, %arg23: memref<64x64xbf16, #tpu.memory_space<vmem>>, %arg24: memref<1x64xf32, #tpu.memory_space<vmem>>, %arg25: memref<64x32xbf16, #tpu.memory_space<vmem>>, %arg26: memref<1x32xf32, #tpu.memory_space<vmem>>, %arg27: memref<32x4xbf16, #tpu.memory_space<vmem>>, %arg28: memref<1x4xf32, #tpu.memory_space<vmem>>, %arg29: memref<64x128xbf16, #tpu.memory_space<vmem>>, %arg30: memref<1x128xf32, #tpu.memory_space<vmem>>, %arg31: memref<128x64xbf16, #tpu.memory_space<vmem>>, %arg32: memref<1x64xf32, #tpu.memory_space<vmem>>, %arg33: memref<16x64xf32, #tpu.memory_space<vmem>>, %arg34: memref<1x16x8xf32, #tpu.memory_space<vmem>>, %arg35: memref<1x16x128xf32, #tpu.memory_space<vmem>>, %arg36: memref<16x128xf32, #tpu.memory_space<vmem>>) attributes {dimension_semantics = [#tpu.dimension_semantics<arbitrary>], iteration_bounds = array<i64: 2>, scalar_prefetch = 0 : i64, scratch_operands = 1 : i64, tpu.core_type = #tpu.core_type<tc>, window_params = [{pipeline_mode = #tpu.pipeline_mode<synchronous>, transform_indices = @transform_0, window_bounds = array<i64: 16, 64>}, {pipeline_mode = #tpu.pipeline_mode<synchronous>, transform_indices = @transform_1, window_bounds = array<i64: 128, 64>}, {pipeline_mode = #tpu.pipeline_mode<synchronous>, transform_indices = @transform_2, window_bounds = array<i64: 128, 64>}, {pipeline_mode = #tpu.pipeline_mode<synchronous>, transform_indices = @transform_3, window_bounds = array<i64: 1, 128>}, {transform_indices = @transform_4, window_bounds = array<i64: 1, 1, 64>}, {transform_indices = @transform_5, window_bounds = array<i64: 1, 1, 64>}, {transform_indices = @transform_6, window_bounds = array<i64: 1, 64, 192>}, {transform_indices = @transform_7, window_bounds = array<i64: 1, 1, 192>}, {transform_indices = @transform_8, window_bounds = array<i64: 1, 64, 64>}, {transform_indices = @transform_9, window_bounds = array<i64: 1, 1, 64>}, {transform_indices = @transform_10, window_bounds = array<i64: 1, 1, 64>}, {transform_indices = @transform_11, window_bounds = array<i64: 1, 1, 64>}, {transform_indices = @transform_12, window_bounds = array<i64: 1, 1, 64>}, {transform_indices = @transform_13, window_bounds = array<i64: 1, 1, 64>}, {transform_indices = @transform_14, window_bounds = array<i64: 1, 64, 256>}, {transform_indices = @transform_15, window_bounds = array<i64: 1, 1, 256>}, {transform_indices = @transform_16, window_bounds = array<i64: 1, 128, 64>}, {transform_indices = @transform_17, window_bounds = array<i64: 1, 1, 64>}, {pipeline_mode = #tpu.pipeline_mode<synchronous>, transform_indices = @transform_18, window_bounds = array<i64: 64, 64>}, {pipeline_mode = #tpu.pipeline_mode<synchronous>, transform_indices = @transform_19, window_bounds = array<i64: 1, 64>}, {pipeline_mode = #tpu.pipeline_mode<synchronous>, transform_indices = @transform_20, window_bounds = array<i64: 64, 1>}, {pipeline_mode = #tpu.pipeline_mode<synchronous>, transform_indices = @transform_21, window_bounds = array<i64: 1, 1>}, {pipeline_mode = #tpu.pipeline_mode<synchronous>, transform_indices = @transform_22, window_bounds = array<i64: 64, 64>}, {pipeline_mode = #tpu.pipeline_mode<synchronous>, transform_indices = @transform_23, window_bounds = array<i64: 1, 64>}, {pipeline_mode = #tpu.pipeline_mode<synchronous>, transform_indices = @transform_24, window_bounds = array<i64: 64, 32>}, {pipeline_mode = #tpu.pipeline_mode<synchronous>, transform_indices = @transform_25, window_bounds = array<i64: 1, 32>}, {pipeline_mode = #tpu.pipeline_mode<synchronous>, transform_indices = @transform_26, window_bounds = array<i64: 32, 4>}, {pipeline_mode = #tpu.pipeline_mode<synchronous>, transform_indices = @transform_27, window_bounds = array<i64: 1, 4>}, {pipeline_mode = #tpu.pipeline_mode<synchronous>, transform_indices = @transform_28, window_bounds = array<i64: 64, 128>}, {pipeline_mode = #tpu.pipeline_mode<synchronous>, transform_indices = @transform_29, window_bounds = array<i64: 1, 128>}, {pipeline_mode = #tpu.pipeline_mode<synchronous>, transform_indices = @transform_30, window_bounds = array<i64: 128, 64>}, {pipeline_mode = #tpu.pipeline_mode<synchronous>, transform_indices = @transform_31, window_bounds = array<i64: 1, 64>}, {pipeline_mode = #tpu.pipeline_mode<synchronous>, transform_indices = @transform_32, window_bounds = array<i64: 16, 64>}, {transform_indices = @transform_33, window_bounds = array<i64: 1, 16, 8>}, {transform_indices = @transform_34, window_bounds = array<i64: 1, 16, 128>}]} {
    %c0_i32 = arith.constant 0 : i32
    %0 = arith.cmpi eq, %arg0, %c0_i32 : i32
    %1 = arith.extui %0 : i1 to i32
    %c0_i32_0 = arith.constant 0 : i32
    %2 = arith.cmpi ne, %1, %c0_i32_0 : i32
    scf.if %2 {
      %c0_151 = arith.constant 0 : index
      %c0_152 = arith.constant 0 : index
      %301 = vector.load %arg1[%c0_151, %c0_152] : memref<16x64xf32, #tpu.memory_space<vmem>>, vector<16x64xf32>
      %c0_153 = arith.constant 0 : index
      %c0_154 = arith.constant 0 : index
      %302 = vector.load %arg33[%c0_153, %c0_154] : memref<16x64xf32, #tpu.memory_space<vmem>>, vector<16x64xf32>
      tpu.vector_store %arg33[%c0_153, %c0_154], %301 {strides = array<i32>} : memref<16x64xf32, #tpu.memory_space<vmem>>, vector<16x64xf32>,
      %cst_155 = arith.constant 1.000000e+00 : f32
      %303 = vector.broadcast %cst_155 : f32 to vector<16x128xf32>
      %c0_156 = arith.constant 0 : index
      %c0_157 = arith.constant 0 : index
      %304 = vector.load %arg36[%c0_156, %c0_157] : memref<16x128xf32, #tpu.memory_space<vmem>>, vector<16x128xf32>
      tpu.vector_store %arg36[%c0_156, %c0_157], %303 {strides = array<i32>} : memref<16x128xf32, #tpu.memory_space<vmem>>, vector<16x128xf32>,
    } else {
    }
    %c0 = arith.constant 0 : index
    %c0_1 = arith.constant 0 : index
    %3 = vector.load %arg33[%c0, %c0_1] : memref<16x64xf32, #tpu.memory_space<vmem>>, vector<16x64xf32>
    %c0_2 = arith.constant 0 : index
    %c0_3 = arith.constant 0 : index
    %4 = vector.load %arg2[%c0_2, %c0_3] : memref<128x64xbf16, #tpu.memory_space<vmem>>, vector<128x64xbf16>
    %c0_4 = arith.constant 0 : index
    %c0_5 = arith.constant 0 : index
    %5 = vector.load %arg3[%c0_4, %c0_5] : memref<128x64xbf16, #tpu.memory_space<vmem>>, vector<128x64xbf16>
    %c0_6 = arith.constant 0 : index
    %c0_7 = arith.constant 0 : index
    %6 = vector.load %arg4[%c0_6, %c0_7] : memref<1x128xf32, #tpu.memory_space<vmem>>, vector<1x128xf32>
    %c0_8 = arith.constant 0 : index
    %c0_9 = arith.constant 0 : index
    %c0_10 = arith.constant 0 : index
    %7 = vector.load %arg5[%c0_8, %c0_9, %c0_10] : memref<1x1x64xf32, #tpu.memory_space<vmem>>, vector<1x1x64xf32>
    %8 = vector.shape_cast %7 : vector<1x1x64xf32> to vector<1x64xf32>
    %c0_11 = arith.constant 0 : index
    %c0_12 = arith.constant 0 : index
    %c0_13 = arith.constant 0 : index
    %9 = vector.load %arg6[%c0_11, %c0_12, %c0_13] : memref<1x1x64xf32, #tpu.memory_space<vmem>>, vector<1x1x64xf32>
    %10 = vector.shape_cast %9 : vector<1x1x64xf32> to vector<1x64xf32>
    %cst = arith.constant dense<0.000000e+00> : vector<16xf32>
    %11 = vector.multi_reduction <add>, %3, %cst [1] : vector<16x64xf32> to vector<16xf32>
    %12 = vector.shape_cast %11 : vector<16xf32> to vector<16x1xf32>
    %cst_14 = arith.constant 6.400000e+01 : f32
    %13 = vector.broadcast %cst_14 : f32 to vector<16x1xf32>
    %14 = arith.divf %12, %13 : vector<16x1xf32>
    %15 = vector.broadcast %14 : vector<16x1xf32> to vector<16x64xf32>
    %16 = arith.subf %3, %15 : vector<16x64xf32>
    %17 = arith.mulf %16, %16 : vector<16x64xf32>
    %cst_15 = arith.constant dense<0.000000e+00> : vector<16xf32>
    %18 = vector.multi_reduction <add>, %17, %cst_15 [1] : vector<16x64xf32> to vector<16xf32>
    %19 = vector.shape_cast %18 : vector<16xf32> to vector<16x1xf32>
    %cst_16 = arith.constant 6.400000e+01 : f32
    %20 = vector.broadcast %cst_16 : f32 to vector<16x1xf32>
    %21 = arith.divf %19, %20 : vector<16x1xf32>
    %cst_17 = arith.constant 9.99999974E-6 : f32
    %22 = vector.broadcast %cst_17 : f32 to vector<16x1xf32>
    %23 = arith.addf %21, %22 : vector<16x1xf32>
    %24 = math.rsqrt %23 : vector<16x1xf32>
    %25 = vector.broadcast %24 : vector<16x1xf32> to vector<16x64xf32>
    %26 = arith.mulf %16, %25 : vector<16x64xf32>
    %27 = vector.broadcast %8 : vector<1x64xf32> to vector<16x64xf32>
    %28 = arith.mulf %26, %27 : vector<16x64xf32>
    %29 = vector.broadcast %10 : vector<1x64xf32> to vector<16x64xf32>
    %30 = arith.addf %28, %29 : vector<16x64xf32>
    %31 = arith.truncf %30 : vector<16x64xf32> to vector<16x64xbf16>
    %c0_18 = arith.constant 0 : index
    %c0_19 = arith.constant 0 : index
    %c0_20 = arith.constant 0 : index
    %32 = vector.load %arg7[%c0_18, %c0_19, %c0_20] : memref<1x64x192xbf16, #tpu.memory_space<vmem>>, vector<1x64x192xbf16>
    %33 = vector.shape_cast %32 : vector<1x64x192xbf16> to vector<64x192xbf16>
    %cst_21 = arith.constant dense<0.000000e+00> : vector<16x192xf32>
    %34 = tpu.matmul %31, %33, %cst_21 {dimension_numbers = #tpu.dot_dimension_numbers<[1], [0], [0], [1], [0, 0, 1, 1], [], []>} : vector<16x64xbf16>, vector<64x192xbf16>, vector<16x192xf32> -> vector<16x192xf32>
    %c0_22 = arith.constant 0 : index
    %c0_23 = arith.constant 0 : index
    %c0_24 = arith.constant 0 : index
    %35 = vector.load %arg8[%c0_22, %c0_23, %c0_24] : memref<1x1x192xf32, #tpu.memory_space<vmem>>, vector<1x1x192xf32>
    %36 = vector.shape_cast %35 : vector<1x1x192xf32> to vector<1x192xf32>
    %37 = vector.broadcast %36 : vector<1x192xf32> to vector<16x192xf32>
    %38 = arith.addf %34, %37 : vector<16x192xf32>
    %39 = vector.extract_strided_slice %38 {offsets = [0, 0], sizes = [16, 64], strides = [1, 1]} : vector<16x192xf32> to vector<16x64xf32>
    %40 = vector.extract_strided_slice %38 {offsets = [0, 64], sizes = [16, 64], strides = [1, 1]} : vector<16x192xf32> to vector<16x64xf32>
    %41 = vector.extract_strided_slice %38 {offsets = [0, 128], sizes = [16, 64], strides = [1, 1]} : vector<16x192xf32> to vector<16x64xf32>
    %c0_25 = arith.constant 0 : index
    %c0_26 = arith.constant 0 : index
    %c0_27 = arith.constant 0 : index
    %42 = vector.load %arg9[%c0_25, %c0_26, %c0_27] : memref<1x64x64xbf16, #tpu.memory_space<vmem>>, vector<1x64x64xbf16>
    %43 = vector.shape_cast %42 : vector<1x64x64xbf16> to vector<64x64xbf16>
    %44 = arith.truncf %39 : vector<16x64xf32> to vector<16x64xbf16>
    %45 = arith.truncf %40 : vector<16x64xf32> to vector<16x64xbf16>
    %46 = arith.truncf %41 : vector<16x64xf32> to vector<16x64xbf16>
    %cst_28 = arith.constant 0.000000e+00 : f32
    %47 = vector.broadcast %cst_28 : f32 to vector<16x64xf32>
    %48 = vector.extract_strided_slice %44 {offsets = [0, 0], sizes = [16, 16], strides = [1, 1]} : vector<16x64xbf16> to vector<16x16xbf16>
    %49 = vector.extract_strided_slice %45 {offsets = [0, 0], sizes = [16, 16], strides = [1, 1]} : vector<16x64xbf16> to vector<16x16xbf16>
    %cst_29 = arith.constant dense<0.000000e+00> : vector<16x16xf32>
    %50 = tpu.matmul %48, %49, %cst_29 {dimension_numbers = #tpu.dot_dimension_numbers<[1], [1], [0], [0], [0, 0, 1, 0], [], []>} : vector<16x16xbf16>, vector<16x16xbf16>, vector<16x16xf32> -> vector<16x16xf32>
    %cst_30 = arith.constant 2.500000e-01 : f32
    %51 = vector.broadcast %cst_30 : f32 to vector<16x16xf32>
    %52 = arith.mulf %50, %51 : vector<16x16xf32>
    %cst_31 = arith.constant dense<0xFF800000> : vector<16xf32>
    %53 = vector.multi_reduction <maximumf>, %52, %cst_31 [1] : vector<16x16xf32> to vector<16xf32>
    %54 = vector.shape_cast %53 : vector<16xf32> to vector<16x1xf32>
    %55 = vector.broadcast %54 : vector<16x1xf32> to vector<16x16xf32>
    %56 = arith.subf %52, %55 : vector<16x16xf32>
    %57 = math.exp %56 : vector<16x16xf32>
    %cst_32 = arith.constant dense<0.000000e+00> : vector<16xf32>
    %58 = vector.multi_reduction <add>, %57, %cst_32 [1] : vector<16x16xf32> to vector<16xf32>
    %59 = vector.shape_cast %58 : vector<16xf32> to vector<16x1xf32>
    %60 = tpu.reciprocal %59 {approx = true} : vector<16x1xf32> -> vector<16x1xf32>
    %61 = vector.broadcast %60 : vector<16x1xf32> to vector<16x16xf32>
    %62 = arith.mulf %57, %61 : vector<16x16xf32>
    %63 = arith.truncf %62 : vector<16x16xf32> to vector<16x16xbf16>
    %64 = vector.extract_strided_slice %46 {offsets = [0, 0], sizes = [16, 16], strides = [1, 1]} : vector<16x64xbf16> to vector<16x16xbf16>
    %cst_33 = arith.constant dense<0.000000e+00> : vector<16x16xf32>
    %65 = tpu.matmul %63, %64, %cst_33 {dimension_numbers = #tpu.dot_dimension_numbers<[1], [0], [0], [1], [0, 0, 1, 1], [], []>} : vector<16x16xbf16>, vector<16x16xbf16>, vector<16x16xf32> -> vector<16x16xf32>
    %66 = arith.truncf %65 : vector<16x16xf32> to vector<16x16xbf16>
    %67 = vector.extract_strided_slice %43 {offsets = [0, 0], sizes = [16, 64], strides = [1, 1]} : vector<64x64xbf16> to vector<16x64xbf16>
    %cst_34 = arith.constant dense<0.000000e+00> : vector<16x64xf32>
    %68 = tpu.matmul %66, %67, %cst_34 {dimension_numbers = #tpu.dot_dimension_numbers<[1], [0], [0], [1], [0, 0, 1, 1], [], []>} : vector<16x16xbf16>, vector<16x64xbf16>, vector<16x64xf32> -> vector<16x64xf32>
    %69 = arith.addf %47, %68 : vector<16x64xf32>
    %70 = vector.extract_strided_slice %44 {offsets = [0, 16], sizes = [16, 16], strides = [1, 1]} : vector<16x64xbf16> to vector<16x16xbf16>
    %71 = vector.extract_strided_slice %45 {offsets = [0, 16], sizes = [16, 16], strides = [1, 1]} : vector<16x64xbf16> to vector<16x16xbf16>
    %cst_35 = arith.constant dense<0.000000e+00> : vector<16x16xf32>
    %72 = tpu.matmul %70, %71, %cst_35 {dimension_numbers = #tpu.dot_dimension_numbers<[1], [1], [0], [0], [0, 0, 1, 0], [], []>} : vector<16x16xbf16>, vector<16x16xbf16>, vector<16x16xf32> -> vector<16x16xf32>
    %cst_36 = arith.constant 2.500000e-01 : f32
    %73 = vector.broadcast %cst_36 : f32 to vector<16x16xf32>
    %74 = arith.mulf %72, %73 : vector<16x16xf32>
    %cst_37 = arith.constant dense<0xFF800000> : vector<16xf32>
    %75 = vector.multi_reduction <maximumf>, %74, %cst_37 [1] : vector<16x16xf32> to vector<16xf32>
    %76 = vector.shape_cast %75 : vector<16xf32> to vector<16x1xf32>
    %77 = vector.broadcast %76 : vector<16x1xf32> to vector<16x16xf32>
    %78 = arith.subf %74, %77 : vector<16x16xf32>
    %79 = math.exp %78 : vector<16x16xf32>
    %cst_38 = arith.constant dense<0.000000e+00> : vector<16xf32>
    %80 = vector.multi_reduction <add>, %79, %cst_38 [1] : vector<16x16xf32> to vector<16xf32>
    %81 = vector.shape_cast %80 : vector<16xf32> to vector<16x1xf32>
    %82 = tpu.reciprocal %81 {approx = true} : vector<16x1xf32> -> vector<16x1xf32>
    %83 = vector.broadcast %82 : vector<16x1xf32> to vector<16x16xf32>
    %84 = arith.mulf %79, %83 : vector<16x16xf32>
    %85 = arith.truncf %84 : vector<16x16xf32> to vector<16x16xbf16>
    %86 = vector.extract_strided_slice %46 {offsets = [0, 16], sizes = [16, 16], strides = [1, 1]} : vector<16x64xbf16> to vector<16x16xbf16>
    %cst_39 = arith.constant dense<0.000000e+00> : vector<16x16xf32>
    %87 = tpu.matmul %85, %86, %cst_39 {dimension_numbers = #tpu.dot_dimension_numbers<[1], [0], [0], [1], [0, 0, 1, 1], [], []>} : vector<16x16xbf16>, vector<16x16xbf16>, vector<16x16xf32> -> vector<16x16xf32>
    %88 = arith.truncf %87 : vector<16x16xf32> to vector<16x16xbf16>
    %89 = vector.extract_strided_slice %43 {offsets = [16, 0], sizes = [16, 64], strides = [1, 1]} : vector<64x64xbf16> to vector<16x64xbf16>
    %cst_40 = arith.constant dense<0.000000e+00> : vector<16x64xf32>
    %90 = tpu.matmul %88, %89, %cst_40 {dimension_numbers = #tpu.dot_dimension_numbers<[1], [0], [0], [1], [0, 0, 1, 1], [], []>} : vector<16x16xbf16>, vector<16x64xbf16>, vector<16x64xf32> -> vector<16x64xf32>
    %91 = arith.addf %69, %90 : vector<16x64xf32>
    %92 = vector.extract_strided_slice %44 {offsets = [0, 32], sizes = [16, 16], strides = [1, 1]} : vector<16x64xbf16> to vector<16x16xbf16>
    %93 = vector.extract_strided_slice %45 {offsets = [0, 32], sizes = [16, 16], strides = [1, 1]} : vector<16x64xbf16> to vector<16x16xbf16>
    %cst_41 = arith.constant dense<0.000000e+00> : vector<16x16xf32>
    %94 = tpu.matmul %92, %93, %cst_41 {dimension_numbers = #tpu.dot_dimension_numbers<[1], [1], [0], [0], [0, 0, 1, 0], [], []>} : vector<16x16xbf16>, vector<16x16xbf16>, vector<16x16xf32> -> vector<16x16xf32>
    %cst_42 = arith.constant 2.500000e-01 : f32
    %95 = vector.broadcast %cst_42 : f32 to vector<16x16xf32>
    %96 = arith.mulf %94, %95 : vector<16x16xf32>
    %cst_43 = arith.constant dense<0xFF800000> : vector<16xf32>
    %97 = vector.multi_reduction <maximumf>, %96, %cst_43 [1] : vector<16x16xf32> to vector<16xf32>
    %98 = vector.shape_cast %97 : vector<16xf32> to vector<16x1xf32>
    %99 = vector.broadcast %98 : vector<16x1xf32> to vector<16x16xf32>
    %100 = arith.subf %96, %99 : vector<16x16xf32>
    %101 = math.exp %100 : vector<16x16xf32>
    %cst_44 = arith.constant dense<0.000000e+00> : vector<16xf32>
    %102 = vector.multi_reduction <add>, %101, %cst_44 [1] : vector<16x16xf32> to vector<16xf32>
    %103 = vector.shape_cast %102 : vector<16xf32> to vector<16x1xf32>
    %104 = tpu.reciprocal %103 {approx = true} : vector<16x1xf32> -> vector<16x1xf32>
    %105 = vector.broadcast %104 : vector<16x1xf32> to vector<16x16xf32>
    %106 = arith.mulf %101, %105 : vector<16x16xf32>
    %107 = arith.truncf %106 : vector<16x16xf32> to vector<16x16xbf16>
    %108 = vector.extract_strided_slice %46 {offsets = [0, 32], sizes = [16, 16], strides = [1, 1]} : vector<16x64xbf16> to vector<16x16xbf16>
    %cst_45 = arith.constant dense<0.000000e+00> : vector<16x16xf32>
    %109 = tpu.matmul %107, %108, %cst_45 {dimension_numbers = #tpu.dot_dimension_numbers<[1], [0], [0], [1], [0, 0, 1, 1], [], []>} : vector<16x16xbf16>, vector<16x16xbf16>, vector<16x16xf32> -> vector<16x16xf32>
    %110 = arith.truncf %109 : vector<16x16xf32> to vector<16x16xbf16>
    %111 = vector.extract_strided_slice %43 {offsets = [32, 0], sizes = [16, 64], strides = [1, 1]} : vector<64x64xbf16> to vector<16x64xbf16>
    %cst_46 = arith.constant dense<0.000000e+00> : vector<16x64xf32>
    %112 = tpu.matmul %110, %111, %cst_46 {dimension_numbers = #tpu.dot_dimension_numbers<[1], [0], [0], [1], [0, 0, 1, 1], [], []>} : vector<16x16xbf16>, vector<16x64xbf16>, vector<16x64xf32> -> vector<16x64xf32>
    %113 = arith.addf %91, %112 : vector<16x64xf32>
    %114 = vector.extract_strided_slice %44 {offsets = [0, 48], sizes = [16, 16], strides = [1, 1]} : vector<16x64xbf16> to vector<16x16xbf16>
    %115 = vector.extract_strided_slice %45 {offsets = [0, 48], sizes = [16, 16], strides = [1, 1]} : vector<16x64xbf16> to vector<16x16xbf16>
    %cst_47 = arith.constant dense<0.000000e+00> : vector<16x16xf32>
    %116 = tpu.matmul %114, %115, %cst_47 {dimension_numbers = #tpu.dot_dimension_numbers<[1], [1], [0], [0], [0, 0, 1, 0], [], []>} : vector<16x16xbf16>, vector<16x16xbf16>, vector<16x16xf32> -> vector<16x16xf32>
    %cst_48 = arith.constant 2.500000e-01 : f32
    %117 = vector.broadcast %cst_48 : f32 to vector<16x16xf32>
    %118 = arith.mulf %116, %117 : vector<16x16xf32>
    %cst_49 = arith.constant dense<0xFF800000> : vector<16xf32>
    %119 = vector.multi_reduction <maximumf>, %118, %cst_49 [1] : vector<16x16xf32> to vector<16xf32>
    %120 = vector.shape_cast %119 : vector<16xf32> to vector<16x1xf32>
    %121 = vector.broadcast %120 : vector<16x1xf32> to vector<16x16xf32>
    %122 = arith.subf %118, %121 : vector<16x16xf32>
    %123 = math.exp %122 : vector<16x16xf32>
    %cst_50 = arith.constant dense<0.000000e+00> : vector<16xf32>
    %124 = vector.multi_reduction <add>, %123, %cst_50 [1] : vector<16x16xf32> to vector<16xf32>
    %125 = vector.shape_cast %124 : vector<16xf32> to vector<16x1xf32>
    %126 = tpu.reciprocal %125 {approx = true} : vector<16x1xf32> -> vector<16x1xf32>
    %127 = vector.broadcast %126 : vector<16x1xf32> to vector<16x16xf32>
    %128 = arith.mulf %123, %127 : vector<16x16xf32>
    %129 = arith.truncf %128 : vector<16x16xf32> to vector<16x16xbf16>
    %130 = vector.extract_strided_slice %46 {offsets = [0, 48], sizes = [16, 16], strides = [1, 1]} : vector<16x64xbf16> to vector<16x16xbf16>
    %cst_51 = arith.constant dense<0.000000e+00> : vector<16x16xf32>
    %131 = tpu.matmul %129, %130, %cst_51 {dimension_numbers = #tpu.dot_dimension_numbers<[1], [0], [0], [1], [0, 0, 1, 1], [], []>} : vector<16x16xbf16>, vector<16x16xbf16>, vector<16x16xf32> -> vector<16x16xf32>
    %132 = arith.truncf %131 : vector<16x16xf32> to vector<16x16xbf16>
    %133 = vector.extract_strided_slice %43 {offsets = [48, 0], sizes = [16, 64], strides = [1, 1]} : vector<64x64xbf16> to vector<16x64xbf16>
    %cst_52 = arith.constant dense<0.000000e+00> : vector<16x64xf32>
    %134 = tpu.matmul %132, %133, %cst_52 {dimension_numbers = #tpu.dot_dimension_numbers<[1], [0], [0], [1], [0, 0, 1, 1], [], []>} : vector<16x16xbf16>, vector<16x64xbf16>, vector<16x64xf32> -> vector<16x64xf32>
    %135 = arith.addf %113, %134 : vector<16x64xf32>
    %c0_53 = arith.constant 0 : index
    %c0_54 = arith.constant 0 : index
    %c0_55 = arith.constant 0 : index
    %136 = vector.load %arg10[%c0_53, %c0_54, %c0_55] : memref<1x1x64xf32, #tpu.memory_space<vmem>>, vector<1x1x64xf32>
    %137 = vector.shape_cast %136 : vector<1x1x64xf32> to vector<1x64xf32>
    %138 = vector.broadcast %137 : vector<1x64xf32> to vector<16x64xf32>
    %139 = arith.addf %135, %138 : vector<16x64xf32>
    %140 = arith.addf %3, %139 : vector<16x64xf32>
    %c0_56 = arith.constant 0 : index
    %c0_57 = arith.constant 0 : index
    %c0_58 = arith.constant 0 : index
    %141 = vector.load %arg11[%c0_56, %c0_57, %c0_58] : memref<1x1x64xf32, #tpu.memory_space<vmem>>, vector<1x1x64xf32>
    %142 = vector.shape_cast %141 : vector<1x1x64xf32> to vector<1x64xf32>
    %c0_59 = arith.constant 0 : index
    %c0_60 = arith.constant 0 : index
    %c0_61 = arith.constant 0 : index
    %143 = vector.load %arg12[%c0_59, %c0_60, %c0_61] : memref<1x1x64xf32, #tpu.memory_space<vmem>>, vector<1x1x64xf32>
    %144 = vector.shape_cast %143 : vector<1x1x64xf32> to vector<1x64xf32>
    %cst_62 = arith.constant dense<0.000000e+00> : vector<16xf32>
    %145 = vector.multi_reduction <add>, %140, %cst_62 [1] : vector<16x64xf32> to vector<16xf32>
    %146 = vector.shape_cast %145 : vector<16xf32> to vector<16x1xf32>
    %cst_63 = arith.constant 6.400000e+01 : f32
    %147 = vector.broadcast %cst_63 : f32 to vector<16x1xf32>
    %148 = arith.divf %146, %147 : vector<16x1xf32>
    %149 = vector.broadcast %148 : vector<16x1xf32> to vector<16x64xf32>
    %150 = arith.subf %140, %149 : vector<16x64xf32>
    %151 = arith.mulf %150, %150 : vector<16x64xf32>
    %cst_64 = arith.constant dense<0.000000e+00> : vector<16xf32>
    %152 = vector.multi_reduction <add>, %151, %cst_64 [1] : vector<16x64xf32> to vector<16xf32>
    %153 = vector.shape_cast %152 : vector<16xf32> to vector<16x1xf32>
    %cst_65 = arith.constant 6.400000e+01 : f32
    %154 = vector.broadcast %cst_65 : f32 to vector<16x1xf32>
    %155 = arith.divf %153, %154 : vector<16x1xf32>
    %cst_66 = arith.constant 9.99999974E-6 : f32
    %156 = vector.broadcast %cst_66 : f32 to vector<16x1xf32>
    %157 = arith.addf %155, %156 : vector<16x1xf32>
    %158 = math.rsqrt %157 : vector<16x1xf32>
    %159 = vector.broadcast %158 : vector<16x1xf32> to vector<16x64xf32>
    %160 = arith.mulf %150, %159 : vector<16x64xf32>
    %161 = vector.broadcast %142 : vector<1x64xf32> to vector<16x64xf32>
    %162 = arith.mulf %160, %161 : vector<16x64xf32>
    %163 = vector.broadcast %144 : vector<1x64xf32> to vector<16x64xf32>
    %164 = arith.addf %162, %163 : vector<16x64xf32>
    %165 = arith.truncf %164 : vector<16x64xf32> to vector<16x64xbf16>
    %cst_67 = arith.constant dense<0.000000e+00> : vector<16x128xf32>
    %166 = tpu.matmul %165, %4, %cst_67 {dimension_numbers = #tpu.dot_dimension_numbers<[1], [1], [0], [0], [0, 0, 1, 0], [], []>} : vector<16x64xbf16>, vector<128x64xbf16>, vector<16x128xf32> -> vector<16x128xf32>
    %cst_68 = arith.constant 1.250000e-01 : f32
    %167 = vector.broadcast %cst_68 : f32 to vector<16x128xf32>
    %168 = arith.mulf %166, %167 : vector<16x128xf32>
    %169 = vector.broadcast %6 : vector<1x128xf32> to vector<16x128xf32>
    %170 = arith.addf %168, %169 : vector<16x128xf32>
    %c0_69 = arith.constant 0 : index
    %c0_70 = arith.constant 0 : index
    %171 = vector.load %arg36[%c0_69, %c0_70] : memref<16x128xf32, #tpu.memory_space<vmem>>, vector<16x128xf32>
    %cst_71 = arith.constant 1.000000e-30 : f32
    %172 = vector.broadcast %cst_71 : f32 to vector<16x128xf32>
    %173 = arith.maximumf %171, %172 : vector<16x128xf32>
    %174 = math.log %173 : vector<16x128xf32>
    %175 = arith.addf %170, %174 : vector<16x128xf32>
    %cst_72 = arith.constant dense<0xFF800000> : vector<16xf32>
    %176 = vector.multi_reduction <maximumf>, %175, %cst_72 [1] : vector<16x128xf32> to vector<16xf32>
    %177 = vector.shape_cast %176 : vector<16xf32> to vector<16x1xf32>
    %178 = vector.broadcast %177 : vector<16x1xf32> to vector<16x128xf32>
    %179 = arith.subf %175, %178 : vector<16x128xf32>
    %180 = math.exp %179 : vector<16x128xf32>
    %cst_73 = arith.constant dense<0.000000e+00> : vector<16xf32>
    %181 = vector.multi_reduction <add>, %180, %cst_73 [1] : vector<16x128xf32> to vector<16xf32>
    %182 = vector.shape_cast %181 : vector<16xf32> to vector<16x1xf32>
    %183 = tpu.reciprocal %182 {approx = true} : vector<16x1xf32> -> vector<16x1xf32>
    %184 = vector.broadcast %183 : vector<16x1xf32> to vector<16x128xf32>
    %185 = arith.mulf %180, %184 : vector<16x128xf32>
    %186 = arith.truncf %185 : vector<16x128xf32> to vector<16x128xbf16>
    %cst_74 = arith.constant dense<0.000000e+00> : vector<16x64xf32>
    %187 = tpu.matmul %186, %4, %cst_74 {dimension_numbers = #tpu.dot_dimension_numbers<[1], [0], [0], [1], [0, 0, 1, 1], [], []>} : vector<16x128xbf16>, vector<128x64xbf16>, vector<16x64xf32> -> vector<16x64xf32>
    %188 = arith.addf %140, %187 : vector<16x64xf32>
    %c0_75 = arith.constant 0 : index
    %c0_76 = arith.constant 0 : index
    %c0_77 = arith.constant 0 : index
    %189 = vector.load %arg13[%c0_75, %c0_76, %c0_77] : memref<1x1x64xf32, #tpu.memory_space<vmem>>, vector<1x1x64xf32>
    %190 = vector.shape_cast %189 : vector<1x1x64xf32> to vector<1x64xf32>
    %c0_78 = arith.constant 0 : index
    %c0_79 = arith.constant 0 : index
    %c0_80 = arith.constant 0 : index
    %191 = vector.load %arg14[%c0_78, %c0_79, %c0_80] : memref<1x1x64xf32, #tpu.memory_space<vmem>>, vector<1x1x64xf32>
    %192 = vector.shape_cast %191 : vector<1x1x64xf32> to vector<1x64xf32>
    %cst_81 = arith.constant dense<0.000000e+00> : vector<16xf32>
    %193 = vector.multi_reduction <add>, %188, %cst_81 [1] : vector<16x64xf32> to vector<16xf32>
    %194 = vector.shape_cast %193 : vector<16xf32> to vector<16x1xf32>
    %cst_82 = arith.constant 6.400000e+01 : f32
    %195 = vector.broadcast %cst_82 : f32 to vector<16x1xf32>
    %196 = arith.divf %194, %195 : vector<16x1xf32>
    %197 = vector.broadcast %196 : vector<16x1xf32> to vector<16x64xf32>
    %198 = arith.subf %188, %197 : vector<16x64xf32>
    %199 = arith.mulf %198, %198 : vector<16x64xf32>
    %cst_83 = arith.constant dense<0.000000e+00> : vector<16xf32>
    %200 = vector.multi_reduction <add>, %199, %cst_83 [1] : vector<16x64xf32> to vector<16xf32>
    %201 = vector.shape_cast %200 : vector<16xf32> to vector<16x1xf32>
    %cst_84 = arith.constant 6.400000e+01 : f32
    %202 = vector.broadcast %cst_84 : f32 to vector<16x1xf32>
    %203 = arith.divf %201, %202 : vector<16x1xf32>
    %cst_85 = arith.constant 9.99999974E-6 : f32
    %204 = vector.broadcast %cst_85 : f32 to vector<16x1xf32>
    %205 = arith.addf %203, %204 : vector<16x1xf32>
    %206 = math.rsqrt %205 : vector<16x1xf32>
    %207 = vector.broadcast %206 : vector<16x1xf32> to vector<16x64xf32>
    %208 = arith.mulf %198, %207 : vector<16x64xf32>
    %209 = vector.broadcast %190 : vector<1x64xf32> to vector<16x64xf32>
    %210 = arith.mulf %208, %209 : vector<16x64xf32>
    %211 = vector.broadcast %192 : vector<1x64xf32> to vector<16x64xf32>
    %212 = arith.addf %210, %211 : vector<16x64xf32>
    %c0_86 = arith.constant 0 : index
    %c0_87 = arith.constant 0 : index
    %c0_88 = arith.constant 0 : index
    %213 = vector.load %arg15[%c0_86, %c0_87, %c0_88] : memref<1x64x256xbf16, #tpu.memory_space<vmem>>, vector<1x64x256xbf16>
    %214 = vector.shape_cast %213 : vector<1x64x256xbf16> to vector<64x256xbf16>
    %c0_89 = arith.constant 0 : index
    %c0_90 = arith.constant 0 : index
    %c0_91 = arith.constant 0 : index
    %215 = vector.load %arg16[%c0_89, %c0_90, %c0_91] : memref<1x1x256xf32, #tpu.memory_space<vmem>>, vector<1x1x256xf32>
    %216 = vector.shape_cast %215 : vector<1x1x256xf32> to vector<1x256xf32>
    %c0_92 = arith.constant 0 : index
    %c0_93 = arith.constant 0 : index
    %c0_94 = arith.constant 0 : index
    %217 = vector.load %arg17[%c0_92, %c0_93, %c0_94] : memref<1x128x64xbf16, #tpu.memory_space<vmem>>, vector<1x128x64xbf16>
    %218 = vector.shape_cast %217 : vector<1x128x64xbf16> to vector<128x64xbf16>
    %c0_95 = arith.constant 0 : index
    %c0_96 = arith.constant 0 : index
    %c0_97 = arith.constant 0 : index
    %219 = vector.load %arg18[%c0_95, %c0_96, %c0_97] : memref<1x1x64xf32, #tpu.memory_space<vmem>>, vector<1x1x64xf32>
    %220 = vector.shape_cast %219 : vector<1x1x64xf32> to vector<1x64xf32>
    %221 = arith.truncf %212 : vector<16x64xf32> to vector<16x64xbf16>
    %cst_98 = arith.constant dense<0.000000e+00> : vector<16x256xf32>
    %222 = tpu.matmul %221, %214, %cst_98 {dimension_numbers = #tpu.dot_dimension_numbers<[1], [0], [0], [1], [0, 0, 1, 1], [], []>} : vector<16x64xbf16>, vector<64x256xbf16>, vector<16x256xf32> -> vector<16x256xf32>
    %223 = vector.broadcast %216 : vector<1x256xf32> to vector<16x256xf32>
    %224 = arith.addf %222, %223 : vector<16x256xf32>
    %225 = vector.extract_strided_slice %224 {offsets = [0, 0], sizes = [16, 128], strides = [1, 1]} : vector<16x256xf32> to vector<16x128xf32>
    %226 = vector.extract_strided_slice %224 {offsets = [0, 128], sizes = [16, 128], strides = [1, 1]} : vector<16x256xf32> to vector<16x128xf32>
    %227 = arith.negf %225 : vector<16x128xf32>
    %228 = math.exp %227 : vector<16x128xf32>
    %cst_99 = arith.constant 1.000000e+00 : f32
    %229 = vector.broadcast %cst_99 : f32 to vector<16x128xf32>
    %230 = arith.addf %229, %228 : vector<16x128xf32>
    %231 = arith.divf %229, %230 : vector<16x128xf32>
    %232 = arith.mulf %225, %231 : vector<16x128xf32>
    %233 = arith.mulf %232, %226 : vector<16x128xf32>
    %234 = arith.truncf %233 : vector<16x128xf32> to vector<16x128xbf16>
    %cst_100 = arith.constant dense<0.000000e+00> : vector<16x64xf32>
    %235 = tpu.matmul %234, %218, %cst_100 {dimension_numbers = #tpu.dot_dimension_numbers<[1], [0], [0], [1], [0, 0, 1, 1], [], []>} : vector<16x128xbf16>, vector<128x64xbf16>, vector<16x64xf32> -> vector<16x64xf32>
    %236 = vector.broadcast %220 : vector<1x64xf32> to vector<16x64xf32>
    %237 = arith.addf %235, %236 : vector<16x64xf32>
    %238 = arith.addf %188, %237 : vector<16x64xf32>
    %c0_101 = arith.constant 0 : index
    %c0_102 = arith.constant 0 : index
    %239 = vector.load %arg33[%c0_101, %c0_102] : memref<16x64xf32, #tpu.memory_space<vmem>>, vector<16x64xf32>
    tpu.vector_store %arg33[%c0_101, %c0_102], %238 {strides = array<i32>} : memref<16x64xf32, #tpu.memory_space<vmem>>, vector<16x64xf32>,
    %c1_i32 = arith.constant 1 : i32
    %240 = arith.cmpi slt, %arg0, %c1_i32 : i32
    %241 = arith.extui %240 : i1 to i32
    %c0_i32_103 = arith.constant 0 : i32
    %242 = arith.cmpi ne, %241, %c0_i32_103 : i32
    scf.if %242 {
      %301 = arith.truncf %238 : vector<16x64xf32> to vector<16x64xbf16>
      %cst_151 = arith.constant dense<0.000000e+00> : vector<16x128xf32>
      %302 = tpu.matmul %301, %4, %cst_151 {dimension_numbers = #tpu.dot_dimension_numbers<[1], [1], [0], [0], [0, 0, 1, 0], [], []>} : vector<16x64xbf16>, vector<128x64xbf16>, vector<16x128xf32> -> vector<16x128xf32>
      %303 = arith.negf %302 : vector<16x128xf32>
      %304 = math.exp %303 : vector<16x128xf32>
      %cst_152 = arith.constant 1.000000e+00 : f32
      %305 = vector.broadcast %cst_152 : f32 to vector<16x128xf32>
      %306 = arith.addf %305, %304 : vector<16x128xf32>
      %307 = arith.divf %305, %306 : vector<16x128xf32>
      %c0_153 = arith.constant 0 : index
      %c0_154 = arith.constant 0 : index
      %308 = vector.load %arg36[%c0_153, %c0_154] : memref<16x128xf32, #tpu.memory_space<vmem>>, vector<16x128xf32>
      tpu.vector_store %arg36[%c0_153, %c0_154], %307 {strides = array<i32>} : memref<16x128xf32, #tpu.memory_space<vmem>>, vector<16x128xf32>,
    } else {
    }
    %243 = arith.truncf %238 : vector<16x64xf32> to vector<16x64xbf16>
    %c0_104 = arith.constant 0 : index
    %c0_105 = arith.constant 0 : index
    %244 = vector.load %arg19[%c0_104, %c0_105] : memref<64x64xbf16, #tpu.memory_space<vmem>>, vector<64x64xbf16>
    %cst_106 = arith.constant dense<0.000000e+00> : vector<16x64xf32>
    %245 = tpu.matmul %243, %244, %cst_106 {dimension_numbers = #tpu.dot_dimension_numbers<[1], [0], [0], [1], [0, 0, 1, 1], [], []>} : vector<16x64xbf16>, vector<64x64xbf16>, vector<16x64xf32> -> vector<16x64xf32>
    %c0_107 = arith.constant 0 : index
    %c0_108 = arith.constant 0 : index
    %246 = vector.load %arg20[%c0_107, %c0_108] : memref<1x64xf32, #tpu.memory_space<vmem>>, vector<1x64xf32>
    %247 = vector.broadcast %246 : vector<1x64xf32> to vector<16x64xf32>
    %248 = arith.addf %245, %247 : vector<16x64xf32>
    %cst_109 = arith.constant 0.000000e+00 : f32
    %249 = vector.broadcast %cst_109 : f32 to vector<16x64xf32>
    %250 = arith.maximumf %248, %249 : vector<16x64xf32>
    %251 = arith.truncf %250 : vector<16x64xf32> to vector<16x64xbf16>
    %c0_110 = arith.constant 0 : index
    %c0_111 = arith.constant 0 : index
    %252 = vector.load %arg21[%c0_110, %c0_111] : memref<64x1xbf16, #tpu.memory_space<vmem>>, vector<64x1xbf16>
    %cst_112 = arith.constant dense<0.000000e+00> : vector<16x1xf32>
    %253 = tpu.matmul %251, %252, %cst_112 {dimension_numbers = #tpu.dot_dimension_numbers<[1], [0], [0], [1], [0, 0, 1, 1], [], []>} : vector<16x64xbf16>, vector<64x1xbf16>, vector<16x1xf32> -> vector<16x1xf32>
    %c0_113 = arith.constant 0 : index
    %c0_114 = arith.constant 0 : index
    %254 = vector.load %arg22[%c0_113, %c0_114] : memref<1x1xf32, #tpu.memory_space<vmem>>, vector<1x1xf32>
    %255 = vector.broadcast %254 : vector<1x1xf32> to vector<16x1xf32>
    %256 = arith.addf %253, %255 : vector<16x1xf32>
    %c0_115 = arith.constant 0 : index
    %c0_116 = arith.constant 0 : index
    %257 = vector.load %arg23[%c0_115, %c0_116] : memref<64x64xbf16, #tpu.memory_space<vmem>>, vector<64x64xbf16>
    %cst_117 = arith.constant dense<0.000000e+00> : vector<16x64xf32>
    %258 = tpu.matmul %243, %257, %cst_117 {dimension_numbers = #tpu.dot_dimension_numbers<[1], [0], [0], [1], [0, 0, 1, 1], [], []>} : vector<16x64xbf16>, vector<64x64xbf16>, vector<16x64xf32> -> vector<16x64xf32>
    %c0_118 = arith.constant 0 : index
    %c0_119 = arith.constant 0 : index
    %259 = vector.load %arg24[%c0_118, %c0_119] : memref<1x64xf32, #tpu.memory_space<vmem>>, vector<1x64xf32>
    %260 = vector.broadcast %259 : vector<1x64xf32> to vector<16x64xf32>
    %261 = arith.addf %258, %260 : vector<16x64xf32>
    %cst_120 = arith.constant 0.000000e+00 : f32
    %262 = vector.broadcast %cst_120 : f32 to vector<16x64xf32>
    %263 = arith.maximumf %261, %262 : vector<16x64xf32>
    %264 = arith.truncf %263 : vector<16x64xf32> to vector<16x64xbf16>
    %c0_121 = arith.constant 0 : index
    %c0_122 = arith.constant 0 : index
    %265 = vector.load %arg25[%c0_121, %c0_122] : memref<64x32xbf16, #tpu.memory_space<vmem>>, vector<64x32xbf16>
    %cst_123 = arith.constant dense<0.000000e+00> : vector<16x32xf32>
    %266 = tpu.matmul %264, %265, %cst_123 {dimension_numbers = #tpu.dot_dimension_numbers<[1], [0], [0], [1], [0, 0, 1, 1], [], []>} : vector<16x64xbf16>, vector<64x32xbf16>, vector<16x32xf32> -> vector<16x32xf32>
    %c0_124 = arith.constant 0 : index
    %c0_125 = arith.constant 0 : index
    %267 = vector.load %arg26[%c0_124, %c0_125] : memref<1x32xf32, #tpu.memory_space<vmem>>, vector<1x32xf32>
    %268 = vector.broadcast %267 : vector<1x32xf32> to vector<16x32xf32>
    %269 = arith.addf %266, %268 : vector<16x32xf32>
    %cst_126 = arith.constant 0.000000e+00 : f32
    %270 = vector.broadcast %cst_126 : f32 to vector<16x32xf32>
    %271 = arith.maximumf %269, %270 : vector<16x32xf32>
    %272 = arith.truncf %271 : vector<16x32xf32> to vector<16x32xbf16>
    %c0_127 = arith.constant 0 : index
    %c0_128 = arith.constant 0 : index
    %273 = vector.load %arg27[%c0_127, %c0_128] : memref<32x4xbf16, #tpu.memory_space<vmem>>, vector<32x4xbf16>
    %cst_129 = arith.constant dense<0.000000e+00> : vector<16x4xf32>
    %274 = tpu.matmul %272, %273, %cst_129 {dimension_numbers = #tpu.dot_dimension_numbers<[1], [0], [0], [1], [0, 0, 1, 1], [], []>} : vector<16x32xbf16>, vector<32x4xbf16>, vector<16x4xf32> -> vector<16x4xf32>
    %c0_130 = arith.constant 0 : index
    %c0_131 = arith.constant 0 : index
    %275 = vector.load %arg28[%c0_130, %c0_131] : memref<1x4xf32, #tpu.memory_space<vmem>>, vector<1x4xf32>
    %276 = vector.broadcast %275 : vector<1x4xf32> to vector<16x4xf32>
    %277 = arith.addf %274, %276 : vector<16x4xf32>
    %c0_132 = arith.constant 0 : index
    %c0_133 = arith.constant 0 : index
    %278 = vector.load %arg29[%c0_132, %c0_133] : memref<64x128xbf16, #tpu.memory_space<vmem>>, vector<64x128xbf16>
    %cst_134 = arith.constant dense<0.000000e+00> : vector<16x128xf32>
    %279 = tpu.matmul %243, %278, %cst_134 {dimension_numbers = #tpu.dot_dimension_numbers<[1], [0], [0], [1], [0, 0, 1, 1], [], []>} : vector<16x64xbf16>, vector<64x128xbf16>, vector<16x128xf32> -> vector<16x128xf32>
    %c0_135 = arith.constant 0 : index
    %c0_136 = arith.constant 0 : index
    %280 = vector.load %arg30[%c0_135, %c0_136] : memref<1x128xf32, #tpu.memory_space<vmem>>, vector<1x128xf32>
    %281 = vector.broadcast %280 : vector<1x128xf32> to vector<16x128xf32>
    %282 = arith.addf %279, %281 : vector<16x128xf32>
    %cst_137 = arith.constant 0.000000e+00 : f32
    %283 = vector.broadcast %cst_137 : f32 to vector<16x128xf32>
    %284 = arith.maximumf %282, %283 : vector<16x128xf32>
    %285 = arith.truncf %284 : vector<16x128xf32> to vector<16x128xbf16>
    %c0_138 = arith.constant 0 : index
    %c0_139 = arith.constant 0 : index
    %286 = vector.load %arg31[%c0_138, %c0_139] : memref<128x64xbf16, #tpu.memory_space<vmem>>, vector<128x64xbf16>
    %cst_140 = arith.constant dense<0.000000e+00> : vector<16x64xf32>
    %287 = tpu.matmul %285, %286, %cst_140 {dimension_numbers = #tpu.dot_dimension_numbers<[1], [0], [0], [1], [0, 0, 1, 1], [], []>} : vector<16x128xbf16>, vector<128x64xbf16>, vector<16x64xf32> -> vector<16x64xf32>
    %c0_141 = arith.constant 0 : index
    %c0_142 = arith.constant 0 : index
    %288 = vector.load %arg32[%c0_141, %c0_142] : memref<1x64xf32, #tpu.memory_space<vmem>>, vector<1x64xf32>
    %289 = vector.broadcast %288 : vector<1x64xf32> to vector<16x64xf32>
    %290 = arith.addf %287, %289 : vector<16x64xf32>
    %291 = arith.truncf %290 : vector<16x64xf32> to vector<16x64xbf16>
    %cst_143 = arith.constant dense<0.000000e+00> : vector<16x128xf32>
    %292 = tpu.matmul %291, %5, %cst_143 {dimension_numbers = #tpu.dot_dimension_numbers<[1], [1], [0], [0], [0, 0, 1, 0], [], []>} : vector<16x64xbf16>, vector<128x64xbf16>, vector<16x128xf32> -> vector<16x128xf32>
    %cst_144 = arith.constant 0.000000e+00 : f32
    %293 = vector.broadcast %cst_144 : f32 to vector<16x3xf32>
    %294 = tpu.concatenate %256, %277, %293 in 1 : vector<16x1xf32>, vector<16x4xf32>, vector<16x3xf32> -> vector<16x8xf32>
    %c0_145 = arith.constant 0 : index
    %c0_146 = arith.constant 0 : index
    %c0_147 = arith.constant 0 : index
    %295 = vector.load %arg34[%c0_145, %c0_146, %c0_147] : memref<1x16x8xf32, #tpu.memory_space<vmem>>, vector<1x16x8xf32>
    %296 = vector.shape_cast %295 : vector<1x16x8xf32> to vector<16x8xf32>
    %297 = vector.shape_cast %294 : vector<16x8xf32> to vector<1x16x8xf32>
    tpu.vector_store %arg34[%c0_145, %c0_146, %c0_147], %297 {strides = array<i32>} : memref<1x16x8xf32, #tpu.memory_space<vmem>>, vector<1x16x8xf32>,
    %c0_148 = arith.constant 0 : index
    %c0_149 = arith.constant 0 : index
    %c0_150 = arith.constant 0 : index
    %298 = vector.load %arg35[%c0_148, %c0_149, %c0_150] : memref<1x16x128xf32, #tpu.memory_space<vmem>>, vector<1x16x128xf32>
    %299 = vector.shape_cast %298 : vector<1x16x128xf32> to vector<16x128xf32>
    %300 = vector.shape_cast %292 : vector<16x128xf32> to vector<1x16x128xf32>
    tpu.vector_store %arg35[%c0_148, %c0_149, %c0_150], %300 {strides = array<i32>} : memref<1x16x128xf32, #tpu.memory_space<vmem>>, vector<1x16x128xf32>,
    return
  }
  func.func @transform_0(%arg0: i32) -> (i32, i32) {
    %c0_i32 = arith.constant 0 : i32
    %c0_i32_0 = arith.constant 0 : i32
    %c0_i32_1 = arith.constant 0 : i32
    return %c0_i32, %c0_i32_0 : i32, i32
  }
  func.func @transform_1(%arg0: i32) -> (i32, i32) {
    %c0_i32 = arith.constant 0 : i32
    %c0_i32_0 = arith.constant 0 : i32
    %c0_i32_1 = arith.constant 0 : i32
    return %c0_i32, %c0_i32_0 : i32, i32
  }
  func.func @transform_2(%arg0: i32) -> (i32, i32) {
    %c0_i32 = arith.constant 0 : i32
    %c0_i32_0 = arith.constant 0 : i32
    %c0_i32_1 = arith.constant 0 : i32
    return %c0_i32, %c0_i32_0 : i32, i32
  }
  func.func @transform_3(%arg0: i32) -> (i32, i32) {
    %c0_i32 = arith.constant 0 : i32
    %c0_i32_0 = arith.constant 0 : i32
    %c0_i32_1 = arith.constant 0 : i32
    return %c0_i32, %c0_i32_0 : i32, i32
  }
  func.func @transform_4(%arg0: i32) -> (i32, i32, i32) {
    %c0_i32 = arith.constant 0 : i32
    %c0_i32_0 = arith.constant 0 : i32
    %c0_i32_1 = arith.constant 0 : i32
    return %arg0, %c0_i32, %c0_i32_0 : i32, i32, i32
  }
  func.func @transform_5(%arg0: i32) -> (i32, i32, i32) {
    %c0_i32 = arith.constant 0 : i32
    %c0_i32_0 = arith.constant 0 : i32
    %c0_i32_1 = arith.constant 0 : i32
    return %arg0, %c0_i32, %c0_i32_0 : i32, i32, i32
  }
  func.func @transform_6(%arg0: i32) -> (i32, i32, i32) {
    %c0_i32 = arith.constant 0 : i32
    %c0_i32_0 = arith.constant 0 : i32
    %c0_i32_1 = arith.constant 0 : i32
    return %arg0, %c0_i32, %c0_i32_0 : i32, i32, i32
  }
  func.func @transform_7(%arg0: i32) -> (i32, i32, i32) {
    %c0_i32 = arith.constant 0 : i32
    %c0_i32_0 = arith.constant 0 : i32
    %c0_i32_1 = arith.constant 0 : i32
    return %arg0, %c0_i32, %c0_i32_0 : i32, i32, i32
  }
  func.func @transform_8(%arg0: i32) -> (i32, i32, i32) {
    %c0_i32 = arith.constant 0 : i32
    %c0_i32_0 = arith.constant 0 : i32
    %c0_i32_1 = arith.constant 0 : i32
    return %arg0, %c0_i32, %c0_i32_0 : i32, i32, i32
  }
  func.func @transform_9(%arg0: i32) -> (i32, i32, i32) {
    %c0_i32 = arith.constant 0 : i32
    %c0_i32_0 = arith.constant 0 : i32
    %c0_i32_1 = arith.constant 0 : i32
    return %arg0, %c0_i32, %c0_i32_0 : i32, i32, i32
  }
  func.func @transform_10(%arg0: i32) -> (i32, i32, i32) {
    %c0_i32 = arith.constant 0 : i32
    %c0_i32_0 = arith.constant 0 : i32
    %c0_i32_1 = arith.constant 0 : i32
    return %arg0, %c0_i32, %c0_i32_0 : i32, i32, i32
  }
  func.func @transform_11(%arg0: i32) -> (i32, i32, i32) {
    %c0_i32 = arith.constant 0 : i32
    %c0_i32_0 = arith.constant 0 : i32
    %c0_i32_1 = arith.constant 0 : i32
    return %arg0, %c0_i32, %c0_i32_0 : i32, i32, i32
  }
  func.func @transform_12(%arg0: i32) -> (i32, i32, i32) {
    %c0_i32 = arith.constant 0 : i32
    %c0_i32_0 = arith.constant 0 : i32
    %c0_i32_1 = arith.constant 0 : i32
    return %arg0, %c0_i32, %c0_i32_0 : i32, i32, i32
  }
  func.func @transform_13(%arg0: i32) -> (i32, i32, i32) {
    %c0_i32 = arith.constant 0 : i32
    %c0_i32_0 = arith.constant 0 : i32
    %c0_i32_1 = arith.constant 0 : i32
    return %arg0, %c0_i32, %c0_i32_0 : i32, i32, i32
  }
  func.func @transform_14(%arg0: i32) -> (i32, i32, i32) {
    %c0_i32 = arith.constant 0 : i32
    %c0_i32_0 = arith.constant 0 : i32
    %c0_i32_1 = arith.constant 0 : i32
    return %arg0, %c0_i32, %c0_i32_0 : i32, i32, i32
  }
  func.func @transform_15(%arg0: i32) -> (i32, i32, i32) {
    %c0_i32 = arith.constant 0 : i32
    %c0_i32_0 = arith.constant 0 : i32
    %c0_i32_1 = arith.constant 0 : i32
    return %arg0, %c0_i32, %c0_i32_0 : i32, i32, i32
  }
  func.func @transform_16(%arg0: i32) -> (i32, i32, i32) {
    %c0_i32 = arith.constant 0 : i32
    %c0_i32_0 = arith.constant 0 : i32
    %c0_i32_1 = arith.constant 0 : i32
    return %arg0, %c0_i32, %c0_i32_0 : i32, i32, i32
  }
  func.func @transform_17(%arg0: i32) -> (i32, i32, i32) {
    %c0_i32 = arith.constant 0 : i32
    %c0_i32_0 = arith.constant 0 : i32
    %c0_i32_1 = arith.constant 0 : i32
    return %arg0, %c0_i32, %c0_i32_0 : i32, i32, i32
  }
  func.func @transform_18(%arg0: i32) -> (i32, i32) {
    %c0_i32 = arith.constant 0 : i32
    %c0_i32_0 = arith.constant 0 : i32
    %c0_i32_1 = arith.constant 0 : i32
    return %c0_i32, %c0_i32_0 : i32, i32
  }
  func.func @transform_19(%arg0: i32) -> (i32, i32) {
    %c0_i32 = arith.constant 0 : i32
    %c0_i32_0 = arith.constant 0 : i32
    %c0_i32_1 = arith.constant 0 : i32
    return %c0_i32, %c0_i32_0 : i32, i32
  }
  func.func @transform_20(%arg0: i32) -> (i32, i32) {
    %c0_i32 = arith.constant 0 : i32
    %c0_i32_0 = arith.constant 0 : i32
    %c0_i32_1 = arith.constant 0 : i32
    return %c0_i32, %c0_i32_0 : i32, i32
  }
  func.func @transform_21(%arg0: i32) -> (i32, i32) {
    %c0_i32 = arith.constant 0 : i32
    %c0_i32_0 = arith.constant 0 : i32
    %c0_i32_1 = arith.constant 0 : i32
    return %c0_i32, %c0_i32_0 : i32, i32
  }
  func.func @transform_22(%arg0: i32) -> (i32, i32) {
    %c0_i32 = arith.constant 0 : i32
    %c0_i32_0 = arith.constant 0 : i32
    %c0_i32_1 = arith.constant 0 : i32
    return %c0_i32, %c0_i32_0 : i32, i32
  }
  func.func @transform_23(%arg0: i32) -> (i32, i32) {
    %c0_i32 = arith.constant 0 : i32
    %c0_i32_0 = arith.constant 0 : i32
    %c0_i32_1 = arith.constant 0 : i32
    return %c0_i32, %c0_i32_0 : i32, i32
  }
  func.func @transform_24(%arg0: i32) -> (i32, i32) {
    %c0_i32 = arith.constant 0 : i32
    %c0_i32_0 = arith.constant 0 : i32
    %c0_i32_1 = arith.constant 0 : i32
    return %c0_i32, %c0_i32_0 : i32, i32
  }
  func.func @transform_25(%arg0: i32) -> (i32, i32) {
    %c0_i32 = arith.constant 0 : i32
    %c0_i32_0 = arith.constant 0 : i32
    %c0_i32_1 = arith.constant 0 : i32
    return %c0_i32, %c0_i32_0 : i32, i32
  }
  func.func @transform_26(%arg0: i32) -> (i32, i32) {
    %c0_i32 = arith.constant 0 : i32
    %c0_i32_0 = arith.constant 0 : i32
    %c0_i32_1 = arith.constant 0 : i32
    return %c0_i32, %c0_i32_0 : i32, i32
  }
  func.func @transform_27(%arg0: i32) -> (i32, i32) {
    %c0_i32 = arith.constant 0 : i32
    %c0_i32_0 = arith.constant 0 : i32
    %c0_i32_1 = arith.constant 0 : i32
    return %c0_i32, %c0_i32_0 : i32, i32
  }
  func.func @transform_28(%arg0: i32) -> (i32, i32) {
    %c0_i32 = arith.constant 0 : i32
    %c0_i32_0 = arith.constant 0 : i32
    %c0_i32_1 = arith.constant 0 : i32
    return %c0_i32, %c0_i32_0 : i32, i32
  }
  func.func @transform_29(%arg0: i32) -> (i32, i32) {
    %c0_i32 = arith.constant 0 : i32
    %c0_i32_0 = arith.constant 0 : i32
    %c0_i32_1 = arith.constant 0 : i32
    return %c0_i32, %c0_i32_0 : i32, i32
  }
  func.func @transform_30(%arg0: i32) -> (i32, i32) {
    %c0_i32 = arith.constant 0 : i32
    %c0_i32_0 = arith.constant 0 : i32
    %c0_i32_1 = arith.constant 0 : i32
    return %c0_i32, %c0_i32_0 : i32, i32
  }
  func.func @transform_31(%arg0: i32) -> (i32, i32) {
    %c0_i32 = arith.constant 0 : i32
    %c0_i32_0 = arith.constant 0 : i32
    %c0_i32_1 = arith.constant 0 : i32
    return %c0_i32, %c0_i32_0 : i32, i32
  }
  func.func @transform_32(%arg0: i32) -> (i32, i32) {
    %c0_i32 = arith.constant 0 : i32
    %c0_i32_0 = arith.constant 0 : i32
    %c0_i32_1 = arith.constant 0 : i32
    return %c0_i32, %c0_i32_0 : i32, i32
  }
  func.func @transform_33(%arg0: i32) -> (i32, i32, i32) {
    %c0_i32 = arith.constant 0 : i32
    %c0_i32_0 = arith.constant 0 : i32
    %c0_i32_1 = arith.constant 0 : i32
    return %arg0, %c0_i32, %c0_i32_0 : i32, i32, i32
  }
  func.func @transform_34(%arg0: i32) -> (i32, i32, i32) {
    %c0_i32 = arith.constant 0 : i32
    %c0_i32_0 = arith.constant 0 : i32
    %c0_i32_1 = arith.constant 0 : i32
    return %arg0, %c0_i32, %c0_i32_0 : i32, i32, i32
  }
}

</mosaic_0001>

<bundles_post_ra>
// kernel: _trackformer_core.7
= control target key start
LH: loop header
LB: loop body
LE: loop exit
PB: predicated region body
PF: predicated region fallthrough
CT: control target
= control target key end

     0   :  { %vm35_vm0 = vcmask 1043456   ;;  %vm28_vm1 = vcmask 64512   ;;  %vm87_vm2 = vcmask 523264   ;;  %s152_s1 = inlined_call_operand.vmem [shape: bf16[8,64], index: 1, kind: input, shape index: {}]   ;;  %s153_s0 = inlined_call_operand.vmem [shape: f32[24,8], index: 0, kind: input, shape index: {}]   ;;  %s154_s2 = inlined_call_operand.vmem [shape: f32[1,64], index: 2, kind: input, shape index: {}]   ;;  %s155_s3 = inlined_call_operand.vmem [shape: f32[24,64], index: 3, kind: output, shape index: {}]  }
   0x1   :  { %v20_v0 = vld [vmem:[%s152_s1] sm:$0xf]  ;;  %v16_v2 = vld [vmem:[%s153_s0 + $0x8] sm:$0xff]  ;;  %v17_v4 = vld [vmem:[%s153_s0 + $0x10] sm:$0xff] }
   0x2   :  { %v15_v1 = vld [vmem:[%s153_s0] sm:$0xff]  ;;  %107 = vmatprep.subr.msk.bf16.mxu0 %vm35_vm0, %v20_v0  ;;  %v37_v3 = vsel %vm35_vm0, %v20_v0, 0  ;;  %v19_v6 = vpack.c.bf16 %v17_v4, %v17_v4 }
   0x3   :  { %v18_v5 = vpack.c.bf16 %v16_v2, %v15_v1  ;;  %102 = vmatpush3.bf16.msra.mxu0 %v37_v3  ;;  %v95_v7 = vld [vmem:[%s154_s2] ss:$0 sm:$0xff] }
   0x5   :  { %103 = vmatprep.mubr.msk.bf16.mxu0 %vm28_vm1, %v18_v5 }
   0x6   :  { %104 = vmatmul.mubr.msk.bf16.vlgmr.msra.gmra.mrb[0].mxu0 %vm28_vm1, %v19_v6 }
  0xd9   :  { %v105_v8 = vpop.f32.mrb[0].mxu0 }
  0xda   :  { %v82_v9 = vadd.f32 %v105_v8, %v95_v7  ;;  %v73_v10 = vpop.f32.mrb[1].mxu0 }
  0xdb   :  { %v74_v11 = vadd.f32 %v95_v7, %v73_v10  ;;  %v106_v12 = vpop.f32.mrb[2].mxu0 }
  0xdc   :  { %90 = vst.msk [vmem:[%s155_s3 + $0x10] sm:$0xff] %vm87_vm2, %v82_v9  ;;  %v76_v13 = vpop.f32.mrb[3].mxu0 }
  0xdd   :  { %88 = vst.msk [vmem:[%s155_s3] sm:$0xff] %vm87_vm2, %v74_v11  ;;  %v77_v14 = vadd.f32 %v95_v7, %v76_v13 }
  0xdf   :  { %89 = vst.msk [vmem:[%s155_s3 + $0x8] sm:$0xff] %vm87_vm2, %v77_v14 }

// kernel: _trackformer_core.9
= control target key start
LH: loop header
LB: loop body
LE: loop exit
PB: predicated region body
PF: predicated region fallthrough
CT: control target
= control target key end

     0   :  { %vm73_vm0 = vcmask 523264   ;;  %vm156_vm1 = vcmask 261120   ;;  %vm231_vm2 = vcmask 130048   ;;  %vm286_vm3 = vcmask 7168   ;;  %s444_s1 = inlined_call_operand.vmem [shape: bf16[64,32], index: 1, kind: input, shape index: {}]   ;;  %s445_s0 = inlined_call_operand.vmem [shape: f32[24,64], index: 0, kind: input, shape index: {}]   ;;  %s446_s3 = inlined_call_operand.vmem [shape: bf16[32,16], index: 3, kind: input, shape index: {}]   ;;  %s447_s2 = inlined_call_operand.vmem [shape: f32[1,32], index: 2, kind: input, shape index: {}]   ;;  %s448_s5 = inlined_call_operand.vmem [shape: bf16[16,1], index: 5, kind: input, shape index: {}]   ;;  %s449_s6 = inlined_call_operand.<no memory space> [shape: f32[1,1], index: 6, kind: input, shape index: {}]   ;;  %s450_s4 = inlined_call_operand.vmem [shape: f32[1,16], index: 4, kind: input, shape index: {}]   ;;  %s451_s7 = inlined_call_operand.vmem [shape: f32[24,1], index: 7, kind: output, shape index: {}]  }
   0x1   :  { %v349_v0 = vld [vmem:[%s444_s1] sm:$0xff]   ;;  %v350_v1 = vld [vmem:[%s444_s1 + $0x8] sm:$0xff]   ;;  %v351_v2 = vld [vmem:[%s444_s1 + $0x10] sm:$0xff]   ;;  %v12_v25 = vstv %s449_s6 }
   0x2   :  { %323 = vmatprep.subr.bf16.mxu0 %v349_v0  ;;  %v29_v3 = vld [vmem:[%s445_s0] sm:$0xff]  ;;  %v30_v4 = vld [vmem:[%s445_s0 + $0x8] sm:$0xff]  ;;  %v352_v6 = vld [vmem:[%s444_s1 + $0x18] sm:$0xff]   ;;  %13 = vst [vmem:[#allocation2] sm:$0x1] %v12_v25 }
   0x3   :  { %324 = vmatpush3.bf16.msra.mxu0 %v349_v0  ;;  %v41_v5 = vpack.c.bf16 %v30_v4, %v29_v3  ;;  %v31_v7 = vld [vmem:[%s445_s0 + $0x10] sm:$0xff]  ;;  %v353_v9 = vld [vmem:[%s446_s3] sm:$0xff]   ;;  %v354_v10 = vld [vmem:[%s446_s3 + $0x8] sm:$0xff]  }
   0x4   :  { %325 = vmatprep.subr.bf16.mxu0 %v350_v1  ;;  %v42_v8 = vpack.c.bf16 %v31_v7, %v31_v7  ;;  %335 = vmatprep.subr.bf16.mxu1 %v353_v9  ;;  %v294_v11 = vld [vmem:[%s447_s2] ss:$0 sm:$0xff] }
   0x5   :  { %331 = vmatprep.mubr.msk.bf16.mxu0 %vm73_vm0, %v41_v5  ;;  %336 = vmatpush3.bf16.msra.mxu1 %v353_v9  ;;  %v355_v24 = vld [vmem:[%s448_s5] sm:$0xff]  }
   0x6   :  { %337 = vmatprep.subr.bf16.mxu1 %v354_v10  ;;  %v301_v26 = vld [vmem:[%s450_s4] ss:$0 sm:$0xff] }
   0x7   :  { %326 = vmatpush3.bf16.msra.mxu0 %v350_v1 }
   0x8   :  { %327 = vmatprep.subr.bf16.mxu0 %v351_v2 }
   0x9   :  { %338 = vmatpush3.bf16.msra.mxu1 %v354_v10  ;;  %v306_v39 = vld [vmem:[#allocation2] ss:$0 sm:$0xff] }
   0xa   :  { %343 = vmatprep.subr.bf16.mxu1 %v355_v24 }
   0xb   :  { %328 = vmatpush3.bf16.msra.mxu0 %v351_v2 }
   0xc   :  { %329 = vmatprep.subr.bf16.mxu0 %v352_v6 }
   0xf   :  { %330 = vmatpush3.bf16.msra.mxu0 %v352_v6 }
  0x12   :  { %332 = vmatmul.mubr.msk.bf16.vlgmr.msra.gmra.mrb[0].mxu0 %vm73_vm0, %v42_v8 }
  0xe5   :  { %v333_v12 = vpop.f32.mrb[0].mxu0 }
  0xe6   :  { %v123_v13 = vadd.f32 %v333_v12, %v294_v11  ;;  %v114_v14 = vpop.f32.mrb[1].mxu0 }
  0xe7   :  { %v115_v15 = vadd.f32 %v294_v11, %v114_v14  ;;  %v334_v16 = vpop.f32.mrb[2].mxu0 }
  0xe8   :  { %v117_v17 = vpop.f32.mrb[3].mxu0  ;;  %v130_v19 = vmax.f32 %v123_v13, 0.0 }
  0xe9   :  { %v118_v18 = vadd.f32 %v294_v11, %v117_v17  ;;  %v128_v20 = vmax.f32 %v115_v15, 0.0 }
  0xea   :  { %v137_v23 = vpack.c.bf16 %v130_v19, %v130_v19 }
  0xeb   :  { %v129_v21 = vmax.f32 %v118_v18, 0.0 }
  0xed   :  { %v136_v22 = vpack.c.bf16 %v129_v21, %v128_v20 }
  0xef   :  { %339 = vmatprep.mubr.msk.bf16.mxu1 %vm156_vm1, %v136_v22 }
  0xf0   :  { %340 = vmatmul.mubr.msk.bf16.vlgmr.msra.gmra.mrb[0].mxu1 %vm156_vm1, %v137_v23 }
  0xf1   :  { %344 = vmatpush3.bf16.msra.mxu1 %v355_v24 }
 0x1c3   :  { %v341_v27 = vpop.f32.mrb[0].mxu1 }
 0x1c4   :  { %v206_v28 = vadd.f32 %v341_v27, %v301_v26  ;;  %v197_v29 = vpop.f32.mrb[1].mxu1 }
 0x1c5   :  { %v198_v30 = vadd.f32 %v301_v26, %v197_v29  ;;  %v342_v31 = vpop.f32.mrb[2].mxu1 }
 0x1c6   :  { %v200_v32 = vpop.f32.mrb[3].mxu1  ;;  %v213_v34 = vmax.f32 %v206_v28, 0.0 }
 0x1c7   :  { %v201_v33 = vadd.f32 %v301_v26, %v200_v32  ;;  %v211_v35 = vmax.f32 %v198_v30, 0.0 }
 0x1c8   :  { %v218_v38 = vpack.c.bf16 %v213_v34, %v213_v34 }
 0x1c9   :  { %v212_v36 = vmax.f32 %v201_v33, 0.0 }
 0x1cb   :  { %v217_v37 = vpack.c.bf16 %v212_v36, %v211_v35 }
 0x1cd   :  { %345 = vmatprep.mubr.msk.bf16.mxu1 %vm231_vm2, %v217_v37 }
 0x1ce   :  { %346 = vmatmul.mubr.msk.bf16.vlgmr.msra.gmra.mrb[4].mxu1 %vm231_vm2, %v218_v38 }
 0x2a1   :  { %v347_v40 = vpop.f32.mrb[4].mxu1 }
 0x2a2   :  { %v281_v41 = vadd.f32 %v347_v40, %v306_v39  ;;  %v272_v42 = vpop.f32.mrb[5].mxu1 }
 0x2a3   :  { %v273_v43 = vadd.f32 %v306_v39, %v272_v42  ;;  %v348_v44 = vpop.f32.mrb[6].mxu1 }
 0x2a4   :  { %289 = vst.msk [vmem:[%s451_s7 + $0x10] sm:$0xff] %vm286_vm3, %v281_v41  ;;  %v275_v45 = vpop.f32.mrb[7].mxu1 }
 0x2a5   :  { %287 = vst.msk [vmem:[%s451_s7] sm:$0xff] %vm286_vm3, %v273_v43  ;;  %v276_v46 = vadd.f32 %v306_v39, %v275_v45 }
 0x2a7   :  { %288 = vst.msk [vmem:[%s451_s7 + $0x8] sm:$0xff] %vm286_vm3, %v276_v46 }

// kernel: _trackformer_core.8
= control target key start
LH: loop header
LB: loop body
LE: loop exit
PB: predicated region body
PF: predicated region fallthrough
CT: control target
= control target key end

     0   :  { %s2744_s29 = smov 0   ;;  %s3117_s0 = inlined_call_operand.vmem [shape: f32[24,64], index: 0, kind: input, shape index: {}]   ;;  %s3118_s1 = inlined_call_operand.vmem [shape: f32[1,24], index: 1, kind: input, shape index: {}]   ;;  %s3119_s2 = inlined_call_operand.vmem [shape: f32[2,1,64], index: 2, kind: input, shape index: {}]   ;;  %s3120_s3 = inlined_call_operand.vmem [shape: f32[2,1,64], index: 3, kind: input, shape index: {}]   ;;  %s3121_s4 = inlined_call_operand.vmem [shape: bf16[2,64,192], index: 4, kind: input, shape index: {}]   ;;  %s3122_s5 = inlined_call_operand.vmem [shape: f32[2,1,192], index: 5, kind: input, shape index: {}]   ;;  %s3123_s6 = inlined_call_operand.vmem [shape: bf16[2,64,64], index: 6, kind: input, shape index: {}]   ;;  %s3124_s7 = inlined_call_operand.vmem [shape: f32[2,1,64], index: 7, kind: input, shape index: {}]   ;;  %s3125_s8 = inlined_call_operand.vmem [shape: f32[2,1,64], index: 8, kind: input, shape index: {}]   ;;  %s3126_s9 = inlined_call_operand.vmem [shape: f32[2,1,64], index: 9, kind: input, shape index: {}]   ;;  %s3127_s10 = inlined_call_operand.vmem [shape: bf16[2,64,256], index: 10, kind: input, shape index: {}]   ;;  %s3128_s11 = inlined_call_operand.vmem [shape: f32[2,1,256], index: 11, kind: input, shape index: {}]   ;;  %s3129_s12 = inlined_call_operand.vmem [shape: bf16[2,128,64], index: 12, kind: input, shape index: {}]   ;;  %s3130_s13 = inlined_call_operand.vmem [shape: f32[2,1,64], index: 13, kind: input, shape index: {}]   ;;  %s3131_s14 = inlined_call_operand.vmem [shape: f32[24,64], index: 14, kind: output, shape index: {}]  }
   0x1   :  { %3133 = sst [smem:[#allocation4_spill]] %s3118_s1 }
   0x2   :  { %3134 = sst [smem:[#allocation5_spill]] %s3119_s2 }
   0x3   :  { %3135 = sst [smem:[#allocation6_spill]] %s3120_s3 }
   0x4   :  { %3136 = sst [smem:[#allocation7_spill]] %s3121_s4 }
   0x5   :  { %3137 = sst [smem:[#allocation8_spill]] %s3122_s5 }
   0x6 LB: > { %3138 = sst [smem:[#allocation2_spill]] %s2659_s29  ;;  %s2265_s30 = sadd.s32 4294967295, %s2659_s29   ;;  %s2659_s29 = sphi %s2744_s29, %s24_s29  }
   0x7   : > { %p2268_p0 = scmp.ge.s32.totalorder %s2659_s29, 1  ;;  %p503_p1 = scmp.lt.s32.totalorder %s2659_s29, 3 }
   0x9   : > { %p504_p2 = pnand %p2268_p0, %p503_p1 }
   0xb   : > { %507 = sbr.rel (%p504_p2) target bundleno = 3490 (0xda2), region = 76 }
  0x12   : > { %p585_p3 = scmp.lt.s32.totalorder %s2265_s30, 1  ;;  %s3141_s4 = sld [smem:[#allocation7_spill]] }
  0x13   : > { %s3142_s5 = sld [smem:[#allocation8_spill]]  ;;  %p2279_p4 = scmp.ne.s32.totalorder %s2265_s30, 0 }
  0x14   : > { %s2752_s15 = scalar_select %p585_p3, %s2265_s30, 1 }
  0x15   : > { %v636_v0 = vld [vmem:[%s3117_s0] sm:$0xff] (!%p2279_p4)  ;;  %vm639_vm0 = vcmask (!%p2279_p4), 523264   ;;  %v637_v1 = vld [vmem:[%s3117_s0 + $0x8] sm:$0xff] (!%p2279_p4)  ;;  %v638_v2 = vld [vmem:[%s3117_s0 + $0x10] sm:$0xff] (!%p2279_p4) }
  0x16   : > { %s2348_s22 = sshll.u32 %s2752_s15, 6  ;;  %s2271_s23 = sshll.u32 %s2752_s15, 1  ;;  %640 = vst.msk [vmem:[%s3131_s14] sm:$0xff] (!%p2279_p4), %vm639_vm0, %v636_v0  ;;  %641 = vst.msk [vmem:[%s3131_s14 + $0x8] sm:$0xff] (!%p2279_p4), %vm639_vm0, %v637_v1 }
  0x17   : > { %s2349_s17 = sshll.u32 %s2752_s15, 5  ;;  %s610_s24 = scalar_lea.vmem %s3125_s8, %s2752_s15  ;;  %642 = vst.msk [vmem:[%s3131_s14 + $0x10] sm:$0xff] (!%p2279_p4), %vm639_vm0, %v638_v2 }
  0x18   : > { %s2767_s26 = scalar_lea.vmem %s3141_s4, %s2348_s22  ;;  %s2782_s20 = scalar_lea.vmem %s3123_s6, %s2349_s17 }
  0x19   : > { %s2772_s16 = scalar_lea.vmem %s3142_s5, %s2271_s23  ;;  %s613_s27 = scalar_lea.vmem %s3126_s9, %s2752_s15 }
  0x1a   : > { %3143 = sst [smem:[#allocation3_spill]] %s2772_s16  ;;  %s2795_s16 = scalar_lea.vmem %s3127_s10, %s2348_s22 }
  0x1b   : > { %s2800_s18 = scalar_lea.vmem %s3128_s11, %s2271_s23  ;;  %s2805_s19 = scalar_lea.vmem %s3129_s12, %s2348_s22 }
  0x1c   : > { %s630_s4 = scalar_lea.vmem %s3130_s13, %s2752_s15  ;;  %635 = sbr.rel (%p2279_p4) target bundleno = 35 (0x23), region = 80 }
  0x23 PF: > { %v643_v3 = vld [vmem:[%s3131_s14] sm:$0xff]  ;;  %vm648_vm1 = vcmask 523264   ;;  %v645_v4 = vld [vmem:[%s3131_s14 + $0x10] sm:$0xff]  ;;  %v644_v5 = vld [vmem:[%s3131_s14 + $0x8] sm:$0xff]  ;;  %v2661_v32 = vmov 0   ;;  %s3144_s2 = sld [smem:[#allocation5_spill]]  ;;  %v719_v58 = vlaneseq }
  0x24   : > { %v649_v6 = vsel %vm648_vm1, %v643_v3, 0.0  ;;  %v655_v7 = vsel %vm648_vm1, %v645_v4, 0.0  ;;  %v652_v8 = vsel %vm648_vm1, %v644_v5, 0.0  ;;  %v2542_v24 = vld [vmem:[%s2767_s26 + $0x4] ss:$8 sps:$4 sm:$0xff]   ;;  %807 = vmatprep.mubr.bf16.mxu0 %v2661_v32  ;;  %s3146_s21 = sld [smem:[#allocation6_spill]] }
  0x25   : > { %650 = vadd.xlane.f32.xlu0 %v649_v6  ;;  %656 = vadd.xlane.f32.xlu1 %v655_v7  ;;  %v2544_v25 = vld [vmem:[%s2767_s26] ss:$8 sps:$4 sm:$0xff]   ;;  %v2545_v26 = vld [vmem:[%s2767_s26 + $0x14] ss:$8 sps:$4 sm:$0xff]   ;;  %v2547_v27 = vld [vmem:[%s2767_s26 + $0x10] ss:$8 sps:$4 sm:$0xff]  }
  0x26   : > { %775 = vmatprep.subr.bf16.mxu0 %v2542_v24  ;;  %v2548_v28 = vld [vmem:[%s2767_s26 + $0x24] ss:$8 sps:$4 sm:$0xff]   ;;  %v2550_v29 = vld [vmem:[%s2767_s26 + $0x20] ss:$8 sps:$4 sm:$0xff]   ;;  %v2551_v30 = vld [vmem:[%s2767_s26 + $0x34] ss:$8 sps:$4 sm:$0xff]  }
  0x27   : > { %776 = vmatpush1.bf16.msra.mxu0 %v2544_v25  ;;  %v2553_v31 = vld [vmem:[%s2767_s26 + $0x30] ss:$8 sps:$4 sm:$0xff]   ;;  %s3148_s5 = sld [smem:[#allocation3_spill]]  ;;  %v2866_v59 = vshrl.u32 %v719_v58, 7  ;;  %vm845_vm2 = vcmask 130048   ;;  %s2662_s28 = smov 64  }
  0x28   : > { %777 = vmatprep.subr.bf16.mxu0 %v2545_v26  ;;  %s2663_s1 = smov 112   ;;  %s2664_s23 = smov 48   ;;  %vm960_vm3 = vcmask 1043456   ;;  %vm918_vm4 = vcmask 195584  }
  0x29   : > { %653 = vadd.xlane.f32.xlu0 %v652_v8  ;;  %s3145_s17 = scalar_lea.vmem %s3144_s2, %s2752_s15  ;;  %v721_v60 = vsub.s32 0, %v2866_v59  ;;  %v725_v62 = vsub.s32 1, %v2866_v59  ;;  %s3149_s22 = sld [smem:[#allocation4_spill]]  ;;  %v2337_v59 = vld [vmem:[%s630_s4] ss:$0 sm:$0xff] }
  0x2a   : > { %v2280_v44 = vld [vmem:[%s3145_s17] ss:$0 sm:$0xff]  ;;  %s3147_s25 = scalar_lea.vmem %s3146_s21, %s2752_s15  ;;  %s2665_s2 = smov 32  }
  0x2b   : > { %778 = vmatpush1.bf16.msra.mxu0 %v2547_v27  ;;  %v2281_v49 = vld [vmem:[%s3147_s25] ss:$0 sm:$0xff]  ;;  %s2666_s17 = smov 96   ;;  %s2667_s30 = smov 16  }
  0x2c   : > { %779 = vmatprep.subr.bf16.mxu0 %v2548_v28  ;;  %s2668_s3 = smov 80   ;;  %s3150_s25 = scalar_lea.vmem %s3124_s7, %s2752_s15 }
  0x2d   : > { %v717_v61 = vld [vmem:[%s3148_s5] sm:$0x3] }
  0x2e   : > { %v722_v63 = vrot.slane %v717_v61, %v721_v60  ;;  %v726_v1 = vrot.slane %v717_v61, %v725_v62 }
  0x2f   : > { %780 = vmatpush1.bf16.msra.mxu0 %v2550_v29 }
  0x30   : > { %781 = vmatprep.subr.bf16.mxu0 %v2551_v30 }
  0x33   : > { %782 = vmatpush1.bf16.msra.mxu0 %v2553_v31 }
  0xb2   : > { %v651_v9 = vpop.xlane.xlu0 %650  ;;  %v657_v10 = vpop.xlane.xlu1 %656 }
  0xb3   : > { %v659_v11 = vmul.f32 0.015625, %v651_v9  ;;  %v661_v12 = vmul.f32 0.015625, %v657_v10 }
  0xb5   : > { %v662_v13 = vsub.f32 %v643_v3, %v659_v11  ;;  %v664_v14 = vsub.f32 %v645_v4, %v661_v12 }
  0xb6   : > { %v654_v15 = vpop.xlane.xlu0 %653 }
  0xb7   : > { %v660_v16 = vmul.f32 0.015625, %v654_v15  ;;  %v665_v17 = vmul.f32 %v662_v13, %v662_v13  ;;  %v667_v18 = vmul.f32 %v664_v14, %v664_v14 }
  0xb9   : > { %v663_v19 = vsub.f32 %v644_v5, %v660_v16  ;;  %v668_v20 = vsel %vm648_vm1, %v665_v17, 0.0  ;;  %v674_v21 = vsel %vm648_vm1, %v667_v18, 0.0 }
  0xba   : > { %669 = vadd.xlane.f32.xlu1 %v668_v20 }
  0xbb   : > { %v666_v22 = vmul.f32 %v663_v19, %v663_v19 }
  0xbd   : > { %v671_v23 = vsel %vm648_vm1, %v666_v22, 0.0 }
  0xbe   : > { %675 = vadd.xlane.f32.xlu1 %v674_v21  ;;  %672 = vadd.xlane.f32.xlu0 %v671_v23 }
 0x147   : > { %v670_v33 = vpop.xlane.xlu1 %669 }
 0x148   : > { %v677_v34 = vmul.f32 0.015625, %v670_v33  ;;  %v2914_v33 = vld [vmem:[%s3149_s22] ss:$0 sm:$0xff] }
 0x14a   : > { %v680_v35 = vadd.f32 1e-05, %v677_v34 }
 0x14b   : > { %v676_v36 = vpop.xlane.xlu1 %675  ;;  %v673_v37 = vpop.xlane.xlu0 %672 }
 0x14c   : > { %2578 = vrsqrt.f32 %v680_v35  ;;  %v679_v38 = vmul.f32 0.015625, %v676_v36  ;;  %v678_v39 = vmul.f32 0.015625, %v673_v37 }
 0x14e   : > { %v682_v40 = vadd.f32 1e-05, %v679_v38  ;;  %v681_v41 = vadd.f32 1e-05, %v678_v39 }
 0x150   : > { %2580 = vrsqrt.f32 %v682_v40 }
 0x151   : > { %2582 = vrsqrt.f32 %v681_v41 }
 0x156   : > { %v2579_v42 = vpop.eup %2578 }
 0x157   : > { %v686_v43 = vmul.f32 %v2579_v42, %v662_v13 }
 0x159   : > { %v695_v48 = vmul.f32 %v2280_v44, %v686_v43 }
 0x15a   : > { %v2581_v45 = vpop.eup %2580 }
 0x15b   : > { %v2583_v46 = vpop.eup %2582  ;;  %v688_v51 = vmul.f32 %v2581_v45, %v664_v14  ;;  %v704_v52 = vadd.f32 %v2281_v49, %v695_v48 }
 0x15c   : > { %v687_v47 = vmul.f32 %v2583_v46, %v663_v19 }
 0x15d   : > { %v697_v55 = vmul.f32 %v2280_v44, %v688_v51 }
 0x15e   : > { %v696_v50 = vmul.f32 %v2280_v44, %v687_v47 }
 0x15f   : > { %v706_v56 = vadd.f32 %v2281_v49, %v697_v55 }
 0x160   : > { %v705_v53 = vadd.f32 %v2281_v49, %v696_v50 }
 0x161   : > { %v708_v57 = vpack.c.bf16 %v706_v56, %v706_v56 }
 0x162   : > { %v707_v54 = vpack.c.bf16 %v705_v53, %v704_v52 }
 0x164   : > { %2290 = vmatmul.mubr.msk.bf16.vlgmr.msra.gmra.mrb[0].mxu0 %vm648_vm1, %v707_v54 }
 0x165   : > { %817 = vmatprep.mubr.bf16.mxu0 %v2661_v32 }
 0x16c   : > { %2291 = vmatmul.mubr.msk.bf16.gmra.mrb[4].mxu0 %vm648_vm1, %v708_v57 }
 0x237   : > { %v809_v0 = vpop.f32.mrb[0].mxu0 }
 0x238   : > { %v811_v2 = vpop.f32.mrb[1].mxu0  ;;  %v810_v4 = vadd.f32 %v809_v0, %v722_v63 }
 0x239   : > { %v813_v3 = vpop.f32.mrb[2].mxu0  ;;  %v812_v7 = vadd.f32 %v811_v2, %v726_v1 }
 0x23a   : > { %v814_v5 = vadd.f32 %v813_v3, %v722_v63  ;;  %v815_v6 = vpop.f32.mrb[3].mxu0 }
 0x23b   : > { %v816_v8 = vadd.f32 %v815_v6, %v726_v1 }
 0x23c   : > { %v2875_v9 = vpack.c.bf16 %v814_v5, %v810_v4 }
 0x23d   : > { %v2877_v10 = vpack.c.bf16 %v816_v8, %v812_v7 }
 0x23e   : > { %841 = vrot.lane.b32.xlu0 %v2875_v9, %s2662_s28  ;;  %2410 = vmatprep.mubr.msk.bf16.mxu1 %vm845_vm2, %v2875_v9 }
 0x23f   : > { %v819_v11 = vpop.f32.mrb[4].mxu0 }
 0x240   : > { %v820_v12 = vadd.f32 %v819_v11, %v722_v63  ;;  %v821_v13 = vpop.f32.mrb[5].mxu0 }
 0x241   : > { %v823_v14 = vpop.f32.mrb[6].mxu0  ;;  %v822_v24 = vadd.f32 %v821_v13, %v726_v1 }
 0x242   : > { %v2882_v15 = vpack.c.bf16 %v820_v12, %v820_v12  ;;  %v824_v16 = vpop.f32.mrb[7].mxu0  ;;  %1014 = vrot.lane.b32.xlu0 %v2875_v9, %s2663_s1 }
 0x243   : > { %v2900_v26 = vpack.c.bf16 %v822_v24, %v822_v24 }
 0x244   : > { %843 = vrot.lane.b32.xlu1 %v2882_v15, %s2662_s28 }
 0x245   : > { %v962_v28 = vsel %vm960_vm3, %v2900_v26, 0 }
 0x248   : > { %1018 = vrot.lane.b32.xlu1 %v2875_v9, %s2664_s23 }
 0x24c   : > { %1020 = vrot.lane.b32.xlu1 %v2882_v15, %s2664_s23 }
 0x250   : > { %1016 = vrot.lane.b32.xlu1 %v2882_v15, %s2663_s1 }
 0x2b0   : > { %v842_v17 = vpop.permute.xlu0 %841 }
 0x2b1   : > { %2514 = vmatprep.subr.msk.bf16.mxu1 %vm845_vm2, %v842_v17  ;;  %v853_v18 = vsel %vm845_vm2, %v842_v17, 0 }
 0x2b2   : > { %2407 = vmatpush3.bf16.xpose.msra.mxu1 %v853_v18 }
 0x2b4   : > { %v1015_v19 = vpop.permute.xlu0 %1014 }
 0x2b5   : > { %2426 = vmatprep.mubr.msk.bf16.mxu0 %vm845_vm2, %v1015_v19 }
 0x2b6   : > { %v844_v20 = vpop.permute.xlu1 %843 }
 0x2b7   : > { %2515 = vmatprep.subr.msk.bf16.mxu1 %vm845_vm2, %v844_v20  ;;  %v856_v21 = vsel %vm845_vm2, %v844_v20, 0 }
 0x2ba   : > { %v1019_v22 = vpop.permute.xlu1 %1018  ;;  %2409 = vmatpush3.bf16.xpose.msra.mxu1 %v856_v21 }
 0x2bb   : > { %v1029_v23 = vsel %vm845_vm2, %v1019_v22, 0  ;;  %2414 = vmatprep.subr.bf16.mxu1 %v2877_v10  ;;  %2517 = vmatprep.subr.msk.bf16.mxu0 %vm845_vm2, %v1019_v22 }
 0x2bc   : > { %2423 = vmatpush3.bf16.xpose.msra.mxu0 %v1029_v23 }
 0x2be   : > { %v1021_v25 = vpop.permute.xlu1 %1020 }
 0x2bf   : > { %2518 = vmatprep.subr.msk.bf16.mxu0 %vm845_vm2, %v1021_v25  ;;  %v1032_v27 = vsel %vm845_vm2, %v1021_v25, 0 }
 0x2c1   : > { %2411 = vmatmul.mubr.msk.bf16.vlgmr.msra.gmra.mrb[0].mxu1 %vm845_vm2, %v2882_v15 }
 0x2c2   : > { %2415 = vmatpush3.bf16.msra.mxu1 %v2877_v10  ;;  %v1017_v29 = vpop.permute.xlu1 %1016 }
 0x2c3   : > { %2516 = vmatprep.subr.msk.bf16.mxu1 %vm960_vm3, %v2900_v26 }
 0x2c4   : > { %2425 = vmatpush3.bf16.xpose.msra.mxu0 %v1032_v27 }
 0x2c6   : > { %2417 = vmatpush3.bf16.msra.mxu1 %v962_v28 }
 0x2cb   : > { %2427 = vmatmul.mubr.msk.bf16.vlgmr.msra.gmra.mrb[8].mxu0 %vm845_vm2, %v1017_v29 }
 0x394   : > { %v2412_v30 = vpop.f32.mrb[0].mxu1 }
 0x395   : > { %v892_v31 = vpop.f32.mrb[1].mxu1  ;;  %v908_v34 = vmul.f32 0.25, %v2412_v30 }
 0x396   : > { %v906_v35 = vmul.f32 0.25, %v892_v31  ;;  %v2413_v36 = vpop.f32.mrb[2].mxu1  ;;  %v2554_v31 = vld [vmem:[%s2782_s20 + $0x8] sm:$0xff]  }
 0x397   : > { %v895_v37 = vpop.f32.mrb[3].mxu1  ;;  %v917_v42 = vadd.f32 %v2914_v33, %v908_v34  ;;  %2438 = vmatprep.subr.bf16.mxu0 %v2554_v31 }
 0x398   : > { %v907_v38 = vmul.f32 0.25, %v895_v37  ;;  %v915_v39 = vadd.f32 %v2914_v33, %v906_v35  ;;  %2439 = vmatpush3.bf16.msra.mxu0 %v2554_v31 }
 0x399   : > { %v925_v45 = vsel %vm918_vm4, %v917_v42, -inf }
 0x39a   : > { %v919_v40 = vsel %vm918_vm4, %v915_v39, -inf  ;;  %v916_v41 = vadd.f32 %v2914_v33, %v907_v38 }
 0x39b   : > { %920 = vmax.xlane.f32.xlu0 %v919_v40 }
 0x39c   : > { %v922_v43 = vsel %vm918_vm4, %v916_v41, -inf }
 0x39d   : > { %923 = vmax.xlane.f32.xlu1 %v922_v43 }
 0x39e   : > { %v2428_v44 = vpop.f32.mrb[8].mxu0 }
 0x39f   : > { %v1084_v46 = vmul.f32 0.25, %v2428_v44  ;;  %v1068_v47 = vpop.f32.mrb[9].mxu0  ;;  %926 = vmax.xlane.f32.xlu0 %v925_v45 }
 0x3a0   : > { %v1082_v48 = vmul.f32 0.25, %v1068_v47  ;;  %v2429_v49 = vpop.f32.mrb[10].mxu0 }
 0x3a1   : > { %v1071_v50 = vpop.f32.mrb[11].mxu0  ;;  %v1087_v51 = vadd.f32 %v2914_v33, %v1084_v46 }
 0x3a2   : > { %v1083_v52 = vmul.f32 0.25, %v1071_v50  ;;  %v1085_v53 = vadd.f32 %v2914_v33, %v1082_v48 }
 0x3a3   : > { %v1094_v54 = vsel %vm918_vm4, %v1087_v51, -inf }
 0x3a4   : > { %1095 = vmax.xlane.f32.xlu1 %v1094_v54  ;;  %v1088_v55 = vsel %vm918_vm4, %v1085_v53, -inf  ;;  %v1086_v56 = vadd.f32 %v2914_v33, %v1083_v52 }
 0x3a5   : > { %1089 = vmax.xlane.f32.xlu0 %v1088_v55 }
 0x3a6   : > { %v1091_v57 = vsel %vm918_vm4, %v1086_v56, -inf }
 0x3a9   : > { %1092 = vmax.xlane.f32.xlu0 %v1091_v57 }
 0x428   : > { %v921_v58 = vpop.xlane.xlu0 %920 }
 0x429   : > { %v928_v61 = vsub.f32 %v915_v39, %v921_v58  ;;  %v2555_v58 = vld [vmem:[%s2782_s20] sm:$0xff]  }
 0x42a   : > { %v924_v0 = vpop.xlane.xlu1 %923 }
 0x42b   : > { %v931_v2 = vmul.f32 1.442695, %v928_v61  ;;  %v929_v8 = vsub.f32 %v916_v41, %v924_v0 }
 0x42c   : > { %v927_v63 = vpop.xlane.xlu0 %926 }
 0x42d   : > { %v930_v1 = vsub.f32 %v917_v42, %v927_v63  ;;  %v933_v16 = vmul.f32 1.442695, %v929_v8 }
 0x42f   : > { %v935_v3 = vmul.f32 1.442695, %v930_v1 }
 0x431   : > { %2584 = vpow2.f32 %v935_v3  ;;  %v1096_v4 = vpop.xlane.xlu1 %1095 }
 0x432   : > { %v1099_v5 = vsub.f32 %v1087_v51, %v1096_v4  ;;  %v1090_v6 = vpop.xlane.xlu0 %1089  ;;  %2586 = vpow2.f32 %v931_v2 }
 0x433   : > { %v1097_v7 = vsub.f32 %v1085_v53, %v1090_v6 }
 0x434   : > { %v1104_v11 = vmul.f32 1.442695, %v1099_v5 }
 0x435   : > { %v1100_v12 = vmul.f32 1.442695, %v1097_v7 }
 0x436   : > { %2588 = vpow2.f32 %v1104_v11  ;;  %v1093_v13 = vpop.xlane.xlu0 %1092 }
 0x437   : > { %v1098_v14 = vsub.f32 %v1086_v56, %v1093_v13  ;;  %2590 = vpow2.f32 %v1100_v12 }
 0x439   : > { %v1102_v17 = vmul.f32 1.442695, %v1098_v14 }
 0x43b   : > { %v2585_v18 = vpop.eup %2584  ;;  %2592 = vpow2.f32 %v1102_v17 }
 0x43c   : > { %2594 = vpow2.f32 %v933_v16  ;;  %v943_v19 = vsel %vm918_vm4, %v2585_v18, 0.0  ;;  %v2587_v20 = vpop.eup %2586 }
 0x43d   : > { %944 = vadd.xlane.f32.xlu0 %v943_v19  ;;  %v937_v22 = vsel %vm918_vm4, %v2587_v20, 0.0 }
 0x440   : > { %v2929_v21 = vpop.eup %2588 }
 0x441   : > { %938 = vadd.xlane.f32.xlu0 %v937_v22  ;;  %v1112_v23 = vsel %vm918_vm4, %v2929_v21, 0.0  ;;  %v2591_v24 = vpop.eup %2590 }
 0x442   : > { %1113 = vadd.xlane.f32.xlu1 %v1112_v23  ;;  %v1106_v27 = vsel %vm918_vm4, %v2591_v24, 0.0 }
 0x445   : > { %v2593_v25 = vpop.eup %2592 }
 0x446   : > { %v2595_v28 = vpop.eup %2594  ;;  %1107 = vadd.xlane.f32.xlu1 %v1106_v27  ;;  %v1109_v29 = vsel %vm918_vm4, %v2593_v25, 0.0 }
 0x447   : > { %1110 = vadd.xlane.f32.xlu0 %v1109_v29  ;;  %v940_v30 = vsel %vm918_vm4, %v2595_v28, 0.0 }
 0x44a   : > { %941 = vadd.xlane.f32.xlu1 %v940_v30 }
 0x45b   : > { %1127 = vrot.lane.b32.xlu1 %v2900_v26, %s2663_s1 }
 0x45d   : > { %1125 = vrot.lane.b32.xlu0 %v2877_v10, %s2663_s1 }
 0x45f   : > { %1313 = vrot.lane.b32.xlu1 %v2875_v9, %s2665_s2 }
 0x461   : > { %1309 = vrot.lane.b32.xlu0 %v2875_v9, %s2666_s17 }
 0x463   : > { %1315 = vrot.lane.b32.xlu1 %v2882_v15, %s2665_s2 }
 0x465   : > { %1549 = vrot.lane.b32.xlu0 %v2875_v9, %s2667_s30 }
 0x467   : > { %1311 = vrot.lane.b32.xlu1 %v2882_v15, %s2666_s17 }
 0x469   : > { %1545 = vrot.lane.b32.xlu0 %v2875_v9, %s2668_s3 }
 0x46b   : > { %1551 = vrot.lane.b32.xlu1 %v2882_v15, %s2667_s30 }
 0x46f   : > { %1547 = vrot.lane.b32.xlu1 %v2882_v15, %s2668_s3 }
 0x4ca   : > { %v945_v34 = vpop.xlane.xlu0 %944 }
 0x4cb   : > { %2596 = vrcp.f32 %v945_v34 }
 0x4ce   : > { %v939_v36 = vpop.xlane.xlu0 %938 }
 0x4cf   : > { %v1114_v35 = vpop.xlane.xlu1 %1113  ;;  %2598 = vrcp.f32 %v939_v36 }
 0x4d3   : > { %v1108_v37 = vpop.xlane.xlu1 %1107 }
 0x4d4   : > { %v1111_v38 = vpop.xlane.xlu0 %1110  ;;  %2600 = vrcp.f32 %v1108_v37 }
 0x4d5   : > { %2602 = vrcp.f32 %v1111_v38  ;;  %v2597_v9 = vpop.eup %2596 }
 0x4d6   : > { %v951_v46 = vmul.f32 %v2597_v9, %v2585_v18 }
 0x4d7   : > { %v942_v39 = vpop.xlane.xlu1 %941 }
 0x4d8   : > { %2604 = vrcp.f32 %v942_v39  ;;  %v1126_v40 = vpop.permute.xlu0 %1125  ;;  %v953_v52 = vpack.c.bf16 %v951_v46, %v951_v46 }
 0x4d9   : > { %2430 = vmatprep.subr.bf16.mxu1 %v1126_v40  ;;  %2606 = vrcp.f32 %v1114_v35  ;;  %v2599_v42 = vpop.eup %2598 }
 0x4da   : > { %v949_v47 = vmul.f32 %v2599_v42, %v2587_v20 }
 0x4db   : > { %v1128_v41 = vpop.permute.xlu1 %1127 }
 0x4dc   : > { %v1137_v56 = vsel %vm960_vm3, %v1128_v41, 0  ;;  %v1310_v12 = vpop.permute.xlu0 %1309 }
 0x4de   : > { %v2601_v43 = vpop.eup %2600 }
 0x4df   : > { %v1314_v44 = vpop.permute.xlu1 %1313  ;;  %v2603_v15 = vpop.eup %2602  ;;  %v1118_v49 = vmul.f32 %v2601_v43, %v2591_v24 }
 0x4e0   : > { %2520 = vmatprep.subr.msk.bf16.mxu0 %vm845_vm2, %v1314_v44  ;;  %v1119_v50 = vmul.f32 %v2603_v15, %v2593_v25  ;;  %v1324_v13 = vsel %vm845_vm2, %v1314_v44, 0  ;;  %v1550_v17 = vpop.permute.xlu0 %1549 }
 0x4e1   : > { %v1560_v19 = vsel %vm845_vm2, %v1550_v17, 0 }
 0x4e2   : > { %v2605_v45 = vpop.eup %2604  ;;  %v1121_v54 = vpack.c.bf16 %v1119_v50, %v1118_v49 }
 0x4e3   : > { %v950_v48 = vmul.f32 %v2605_v45, %v2595_v28  ;;  %v2607_v53 = vpop.eup %2606  ;;  %v1316_v14 = vpop.permute.xlu1 %1315 }
 0x4e4   : > { %v1120_v55 = vmul.f32 %v2607_v53, %v2929_v21  ;;  %v1327_v16 = vsel %vm845_vm2, %v1316_v14, 0  ;;  %v1546_v20 = vpop.permute.xlu0 %1545 }
 0x4e5   : > { %v952_v51 = vpack.c.bf16 %v950_v48, %v949_v47 }
 0x4e6   : > { %v1122_v57 = vpack.c.bf16 %v1120_v55, %v1120_v55 }
 0x4e7   : > { %2418 = vmatprep.mubr.msk.bf16.mxu1 %vm918_vm4, %v952_v51  ;;  %v1312_v18 = vpop.permute.xlu1 %1311 }
 0x4e8   : > { %2419 = vmatmul.mubr.msk.bf16.vlgmr.msra.gmra.mrb[4].mxu1 %vm918_vm4, %v953_v52 }
 0x4e9   : > { %2431 = vmatpush3.bf16.msra.mxu1 %v1126_v40  ;;  %2434 = vmatprep.mubr.msk.bf16.mxu1 %vm918_vm4, %v1121_v54 }
 0x4ea   : > { %2519 = vmatprep.subr.msk.bf16.mxu1 %vm960_vm3, %v1128_v41 }
 0x4eb   : > { %v1552_v21 = vpop.permute.xlu1 %1551 }
 0x4ec   : > { %v1563_v22 = vsel %vm845_vm2, %v1552_v21, 0 }
 0x4ed   : > { %2433 = vmatpush3.bf16.msra.mxu1 %v1137_v56 }
 0x4ee   : > { %2444 = vmatprep.subr.bf16.mxu1 %v2555_v58 }
 0x4ef   : > { %v1548_v23 = vpop.permute.xlu1 %1547 }
 0x4f0   : > { %2435 = vmatmul.mubr.msk.bf16.vlgmr.msra.gmra.mrb[8].mxu1 %vm918_vm4, %v1122_v57 }
 0x4f1   : > { %2445 = vmatpush3.bf16.msra.mxu1 %v2555_v58 }
 0x5bb   : > { %v2420_v61 = vpop.f32.mrb[4].mxu1 }
 0x5bc   : > { %v998_v63 = vpop.f32.mrb[5].mxu1  ;;  %v1013_v3 = vpack.c.bf16 %v2420_v61, %v2420_v61 }
 0x5bd   : > { %v2421_v0 = vpop.f32.mrb[6].mxu1 }
 0x5be   : > { %v1001_v1 = vpop.f32.mrb[7].mxu1 }
 0x5bf   : > { %v1012_v2 = vpack.c.bf16 %v1001_v1, %v998_v63 }
 0x5c1   : > { %2446 = vmatprep.mubr.msk.bf16.mxu1 %vm845_vm2, %v1012_v2 }
 0x5c2   : > { %2447 = vmatmul.mubr.msk.bf16.vlgmr.msra.gmra.mrb[12].mxu1 %vm845_vm2, %v1013_v3 }
 0x5c3   : > { %v2436_v4 = vpop.f32.mrb[8].mxu1 }
 0x5c4   : > { %v1173_v5 = vpop.f32.mrb[9].mxu1  ;;  %v1188_v11 = vpack.c.bf16 %v2436_v4, %v2436_v4 }
 0x5c5   : > { %v2437_v6 = vpop.f32.mrb[10].mxu1 }
 0x5c6   : > { %v1176_v7 = vpop.f32.mrb[11].mxu1 }
 0x5c7   : > { %v1187_v8 = vpack.c.bf16 %v1176_v7, %v1173_v5 }
 0x5c9   : > { %2440 = vmatprep.mubr.msk.bf16.mxu0 %vm845_vm2, %v1187_v8 }
 0x5ca   : > { %2441 = vmatmul.mubr.msk.bf16.vlgmr.msra.gmra.mrb[12].mxu0 %vm845_vm2, %v1188_v11 }
 0x5cb   : > { %2451 = vmatpush3.bf16.xpose.msra.mxu0 %v1324_v13  ;;  %2454 = vmatprep.mubr.msk.bf16.mxu0 %vm845_vm2, %v1310_v12 }
 0x5cc   : > { %2521 = vmatprep.subr.msk.bf16.mxu0 %vm845_vm2, %v1316_v14 }
 0x5d3   : > { %2453 = vmatpush3.bf16.xpose.msra.mxu0 %v1327_v16 }
 0x5d4   : > { %2523 = vmatprep.subr.msk.bf16.mxu0 %vm845_vm2, %v1550_v17 }
 0x5da   : > { %2455 = vmatmul.mubr.msk.bf16.vlgmr.msra.gmra.mrb[16].mxu0 %vm845_vm2, %v1312_v18 }
 0x5db   : > { %2473 = vmatpush3.bf16.xpose.msra.mxu0 %v1560_v19  ;;  %2476 = vmatprep.mubr.msk.bf16.mxu0 %vm845_vm2, %v1546_v20 }
 0x5dc   : > { %2524 = vmatprep.subr.msk.bf16.mxu0 %vm845_vm2, %v1552_v21 }
 0x5e3   : > { %2475 = vmatpush3.bf16.xpose.msra.mxu0 %v1563_v22 }
 0x5ea   : > { %2477 = vmatmul.mubr.msk.bf16.vlgmr.msra.gmra.mrb[20].mxu0 %vm845_vm2, %v1548_v23 }
 0x5eb   : > { %1970 = vmatprep.mubr.bf16.mxu0 %v2661_v32 }
 0x695   : > { %v2448_v24 = vpop.f32.mrb[12].mxu1 }
 0x696   : > { %v1295_v25 = vpop.f32.mrb[13].mxu1 }
 0x697   : > { %v2449_v27 = vpop.f32.mrb[14].mxu1 }
 0x698   : > { %v1298_v28 = vpop.f32.mrb[15].mxu1 }
 0x69d   : > { %v2442_v29 = vpop.f32.mrb[12].mxu0 }
 0x69e   : > { %v2979_v30 = vadd.f32 %v2448_v24, %v2442_v29  ;;  %v1235_v31 = vpop.f32.mrb[13].mxu0 }
 0x69f   : > { %v2981_v34 = vadd.f32 %v1295_v25, %v1235_v31  ;;  %v2443_v35 = vpop.f32.mrb[14].mxu0 }
 0x6a0   : > { %v1238_v36 = vpop.f32.mrb[15].mxu0 }
 0x6a1   : > { %v2983_v37 = vadd.f32 %v1298_v28, %v1238_v36 }
 0x6ad   : > { %v2456_v38 = vpop.f32.mrb[16].mxu0 }
 0x6ae   : > { %v1363_v39 = vpop.f32.mrb[17].mxu0  ;;  %v1379_v40 = vmul.f32 0.25, %v2456_v38 }
 0x6af   : > { %v1377_v41 = vmul.f32 0.25, %v1363_v39  ;;  %v2457_v9 = vpop.f32.mrb[18].mxu0 }
 0x6b0   : > { %v1366_v42 = vpop.f32.mrb[19].mxu0  ;;  %v1382_v46 = vadd.f32 %v2914_v33, %v1379_v40 }
 0x6b1   : > { %v1378_v43 = vmul.f32 0.25, %v1366_v42  ;;  %v1380_v44 = vadd.f32 %v2914_v33, %v1377_v41 }
 0x6b2   : > { %v1389_v48 = vsel %vm918_vm4, %v1382_v46, -inf }
 0x6b3   : > { %v1383_v15 = vsel %vm918_vm4, %v1380_v44, -inf  ;;  %v1381_v45 = vadd.f32 %v2914_v33, %v1378_v43 }
 0x6b4   : > { %1384 = vmax.xlane.f32.xlu0 %v1383_v15 }
 0x6b5   : > { %v1386_v47 = vsel %vm918_vm4, %v1381_v45, -inf }
 0x6b6   : > { %1387 = vmax.xlane.f32.xlu1 %v1386_v47 }
 0x6b8   : > { %1390 = vmax.xlane.f32.xlu0 %v1389_v48 }
 0x6bd   : > { %v2478_v49 = vpop.f32.mrb[20].mxu0 }
 0x6be   : > { %v1599_v50 = vpop.f32.mrb[21].mxu0  ;;  %v1615_v11 = vmul.f32 0.25, %v2478_v49 }
 0x6bf   : > { %v2479_v51 = vpop.f32.mrb[22].mxu0  ;;  %v1613_v7 = vmul.f32 0.25, %v1599_v50 }
 0x6c0   : > { %v1602_v52 = vpop.f32.mrb[23].mxu0  ;;  %v1618_v17 = vadd.f32 %v2914_v33, %v1615_v11  ;;  %v2556_v51 = vld [vmem:[%s2782_s20 + $0x10] sm:$0xff]   ;;  %v2557_v11 = vld [vmem:[%s2782_s20 + $0x18] sm:$0xff]  }
 0x6c1   : > { %v1614_v8 = vmul.f32 0.25, %v1602_v52  ;;  %v1616_v12 = vadd.f32 %v2914_v33, %v1613_v7 }
 0x6c2   : > { %v1625_v18 = vsel %vm918_vm4, %v1618_v17, -inf }
 0x6c3   : > { %v1617_v13 = vadd.f32 %v2914_v33, %v1614_v8  ;;  %v1619_v14 = vsel %vm918_vm4, %v1616_v12, -inf }
 0x6c5   : > { %v1622_v16 = vsel %vm918_vm4, %v1617_v13, -inf }
 0x741   : > { %v1385_v53 = vpop.xlane.xlu0 %1384 }
 0x742   : > { %v1392_v54 = vsub.f32 %v1380_v44, %v1385_v53 }
 0x743   : > { %v1388_v55 = vpop.xlane.xlu1 %1387 }
 0x744   : > { %v1395_v56 = vmul.f32 1.442695, %v1392_v54  ;;  %v1393_v57 = vsub.f32 %v1381_v45, %v1388_v55 }
 0x745   : > { %v1391_v58 = vpop.xlane.xlu0 %1390 }
 0x746   : > { %2608 = vpow2.f32 %v1395_v56  ;;  %v1397_v61 = vmul.f32 1.442695, %v1393_v57  ;;  %v1394_v63 = vsub.f32 %v1382_v46, %v1391_v58 }
 0x748   : > { %2610 = vpow2.f32 %v1397_v61  ;;  %v1399_v0 = vmul.f32 1.442695, %v1394_v63 }
 0x74a   : > { %2612 = vpow2.f32 %v1399_v0 }
 0x750   : > { %v2609_v1 = vpop.eup %2608 }
 0x751   : > { %v1401_v2 = vsel %vm918_vm4, %v2609_v1, 0.0 }
 0x752   : > { %v2611_v3 = vpop.eup %2610  ;;  %1402 = vadd.xlane.f32.xlu0 %v1401_v2 }
 0x753   : > { %v1404_v6 = vsel %vm918_vm4, %v2611_v3, 0.0 }
 0x754   : > { %v2613_v4 = vpop.eup %2612 }
 0x755   : > { %v1407_v5 = vsel %vm918_vm4, %v2613_v4, 0.0 }
 0x756   : > { %1408 = vadd.xlane.f32.xlu1 %v1407_v5  ;;  %1405 = vadd.xlane.f32.xlu0 %v1404_v6 }
 0x767   : > { %1420 = vrot.lane.b32.xlu1 %v2900_v26, %s2666_s17 }
 0x76c   : > { %1418 = vrot.lane.b32.xlu0 %v2877_v10, %s2666_s17 }
 0x78b   : > { %1620 = vmax.xlane.f32.xlu1 %v1619_v14  ;;  %1623 = vmax.xlane.f32.xlu0 %v1622_v16 }
 0x78f   : > { %1626 = vmax.xlane.f32.xlu0 %v1625_v18 }
 0x7df   : > { %v1403_v19 = vpop.xlane.xlu0 %1402 }
 0x7e0   : > { %2614 = vrcp.f32 %v1403_v19 }
 0x7e3   : > { %v1406_v20 = vpop.xlane.xlu0 %1405  ;;  %v1409_v21 = vpop.xlane.xlu1 %1408 }
 0x7e4   : > { %2616 = vrcp.f32 %v1406_v20 }
 0x7e5   : > { %2618 = vrcp.f32 %v1409_v21 }
 0x7e7   : > { %v1419_v22 = vpop.permute.xlu0 %1418  ;;  %v1421_v23 = vpop.permute.xlu1 %1420 }
 0x7e8   : > { %2458 = vmatprep.subr.bf16.mxu1 %v1419_v22  ;;  %v1430_v33 = vsel %vm960_vm3, %v1421_v23, 0 }
 0x7e9   : > { %2459 = vmatpush3.bf16.msra.mxu1 %v1419_v22 }
 0x7ea   : > { %2522 = vmatprep.subr.msk.bf16.mxu1 %vm960_vm3, %v1421_v23  ;;  %v2615_v24 = vpop.eup %2614 }
 0x7eb   : > { %v1413_v28 = vmul.f32 %v2615_v24, %v2609_v1 }
 0x7ed   : > { %2461 = vmatpush3.bf16.msra.mxu1 %v1430_v33 }
 0x7ee   : > { %v2617_v25 = vpop.eup %2616  ;;  %2466 = vmatprep.subr.bf16.mxu1 %v2556_v51 }
 0x7ef   : > { %v2619_v27 = vpop.eup %2618  ;;  %v1414_v29 = vmul.f32 %v2617_v25, %v2611_v3 }
 0x7f0   : > { %v1415_v31 = vmul.f32 %v2619_v27, %v2613_v4 }
 0x7f1   : > { %v1416_v35 = vpack.c.bf16 %v1414_v29, %v1413_v28 }
 0x7f2   : > { %v1417_v36 = vpack.c.bf16 %v1415_v31, %v1415_v31 }
 0x7f3   : > { %2462 = vmatprep.mubr.msk.bf16.mxu1 %vm918_vm4, %v1416_v35 }
 0x7f4   : > { %2463 = vmatmul.mubr.msk.bf16.vlgmr.msra.gmra.mrb[16].mxu1 %vm918_vm4, %v1417_v36 }
 0x7f5   : > { %2467 = vmatpush3.bf16.msra.mxu1 %v2556_v51 }
 0x818   : > { %v1624_v38 = vpop.xlane.xlu0 %1623  ;;  %v1621_v39 = vpop.xlane.xlu1 %1620 }
 0x819   : > { %v1629_v40 = vsub.f32 %v1617_v13, %v1624_v38  ;;  %v1628_v9 = vsub.f32 %v1616_v12, %v1621_v39  ;;  %v2650_v38 = vld [vmem:[%s3131_s14] sm:$0xff] }
 0x81b   : > { %v1633_v41 = vmul.f32 1.442695, %v1629_v40  ;;  %v1631_v44 = vmul.f32 1.442695, %v1628_v9 }
 0x81c   : > { %v1627_v42 = vpop.xlane.xlu0 %1626 }
 0x81d   : > { %2620 = vpow2.f32 %v1633_v41  ;;  %v1630_v43 = vsub.f32 %v1618_v17, %v1627_v42  ;;  %v2651_v41 = vld [vmem:[%s3131_s14 + $0x8] sm:$0xff] }
 0x81f   : > { %v1635_v15 = vmul.f32 1.442695, %v1630_v43  ;;  %v2652_v43 = vld [vmem:[%s3131_s14 + $0x10] sm:$0xff] }
 0x821   : > { %2622 = vpow2.f32 %v1635_v15 }
 0x822   : > { %2624 = vpow2.f32 %v1631_v44 }
 0x827   : > { %v2621_v45 = vpop.eup %2620 }
 0x828   : > { %v1640_v46 = vsel %vm918_vm4, %v2621_v45, 0.0 }
 0x829   : > { %1641 = vadd.xlane.f32.xlu0 %v1640_v46 }
 0x82b   : > { %v2623_v47 = vpop.eup %2622 }
 0x82c   : > { %v1643_v48 = vsel %vm918_vm4, %v2623_v47, 0.0  ;;  %v2625_v49 = vpop.eup %2624 }
 0x82d   : > { %1644 = vadd.xlane.f32.xlu1 %v1643_v48  ;;  %v1637_v50 = vsel %vm918_vm4, %v2625_v49, 0.0 }
 0x831   : > { %1638 = vadd.xlane.f32.xlu1 %v1637_v50 }
 0x83f   : > { %1654 = vrot.lane.b32.xlu0 %v2877_v10, %s2668_s3 }
 0x842   : > { %1656 = vrot.lane.b32.xlu1 %v2900_v26, %s2668_s3 }
 0x8b6   : > { %v1642_v52 = vpop.xlane.xlu0 %1641 }
 0x8b7   : > { %2626 = vrcp.f32 %v1642_v52 }
 0x8ba   : > { %v1655_v53 = vpop.permute.xlu0 %1654  ;;  %v1645_v54 = vpop.xlane.xlu1 %1644 }
 0x8bb   : > { %2480 = vmatprep.subr.bf16.mxu1 %v1655_v53 }
 0x8be   : > { %v1639_v55 = vpop.xlane.xlu1 %1638 }
 0x8bf   : > { %2628 = vrcp.f32 %v1639_v55 }
 0x8c0   : > { %2630 = vrcp.f32 %v1645_v54 }
 0x8c1   : > { %v2627_v56 = vpop.eup %2626 }
 0x8c2   : > { %v1650_v2 = vmul.f32 %v2627_v56, %v2621_v45  ;;  %v1657_v5 = vpop.permute.xlu1 %1656 }
 0x8c3   : > { %v1666_v7 = vsel %vm960_vm3, %v1657_v5, 0 }
 0x8c7   : > { %v2464_v57 = vpop.f32.mrb[16].mxu1 }
 0x8c8   : > { %v1466_v58 = vpop.f32.mrb[17].mxu1  ;;  %v1481_v3 = vpack.c.bf16 %v2464_v57, %v2464_v57 }
 0x8c9   : > { %v2629_v61 = vpop.eup %2628  ;;  %v2465_v63 = vpop.f32.mrb[18].mxu1 }
 0x8ca   : > { %v1469_v0 = vpop.f32.mrb[19].mxu1  ;;  %v1649_v1 = vmul.f32 %v2629_v61, %v2625_v49  ;;  %v2631_v4 = vpop.eup %2630 }
 0x8cb   : > { %v1480_v10 = vpack.c.bf16 %v1469_v0, %v1466_v58  ;;  %v1651_v6 = vmul.f32 %v2631_v4, %v2623_v47  ;;  %v2560_v0 = vld [vmem:[%s2795_s16 + $0x4] ss:$8 sps:$4 sm:$0xff]   ;;  %v2569_v4 = vld [vmem:[%s2795_s16 + $0x34] ss:$8 sps:$4 sm:$0xff]  }
 0x8cc   : > { %v1652_v26 = vpack.c.bf16 %v1650_v2, %v1649_v1  ;;  %v2558_v1 = vld [vmem:[%s2795_s16] ss:$8 sps:$4 sm:$0xff]   ;;  %1938 = vmatprep.subr.bf16.mxu0 %v2560_v0  ;;  %v2563_v2 = vld [vmem:[%s2795_s16 + $0x14] ss:$8 sps:$4 sm:$0xff]  }
 0x8cd   : > { %2468 = vmatprep.mubr.msk.bf16.mxu1 %vm845_vm2, %v1480_v10  ;;  %v1653_v8 = vpack.c.bf16 %v1651_v6, %v1651_v6  ;;  %1939 = vmatpush1.bf16.msra.mxu0 %v2558_v1  ;;  %v2561_v10 = vld [vmem:[%s2795_s16 + $0x10] ss:$8 sps:$4 sm:$0xff]  }
 0x8ce   : > { %2469 = vmatmul.mubr.msk.bf16.vlgmr.msra.gmra.mrb[20].mxu1 %vm845_vm2, %v1481_v3  ;;  %1940 = vmatprep.subr.bf16.mxu0 %v2563_v2  ;;  %v2566_v3 = vld [vmem:[%s2795_s16 + $0x24] ss:$8 sps:$4 sm:$0xff]  }
 0x8cf   : > { %2481 = vmatpush3.bf16.msra.mxu1 %v1655_v53  ;;  %2484 = vmatprep.mubr.msk.bf16.mxu1 %vm918_vm4, %v1652_v26  ;;  %v2564_v26 = vld [vmem:[%s2795_s16 + $0x20] ss:$8 sps:$4 sm:$0xff]  }
 0x8d0   : > { %2525 = vmatprep.subr.msk.bf16.mxu1 %vm960_vm3, %v1657_v5  ;;  %v2567_v5 = vld [vmem:[%s2795_s16 + $0x30] ss:$8 sps:$4 sm:$0xff]  }
 0x8d1   : > { %1941 = vmatpush1.bf16.msra.mxu0 %v2561_v10 }
 0x8d2   : > { %1942 = vmatprep.subr.bf16.mxu0 %v2566_v3 }
 0x8d3   : > { %2483 = vmatpush3.bf16.msra.mxu1 %v1666_v7 }
 0x8d4   : > { %2488 = vmatprep.subr.bf16.mxu1 %v2557_v11 }
 0x8d5   : > { %1943 = vmatpush1.bf16.msra.mxu0 %v2564_v26 }
 0x8d6   : > { %2485 = vmatmul.mubr.msk.bf16.vlgmr.msra.gmra.mrb[24].mxu1 %vm918_vm4, %v1653_v8  ;;  %1944 = vmatprep.subr.bf16.mxu0 %v2569_v4 }
 0x8d7   : > { %2489 = vmatpush3.bf16.msra.mxu1 %v2557_v11 }
 0x8d9   : > { %1945 = vmatpush1.bf16.msra.mxu0 %v2567_v5 }
 0x9a1   : > { %v2470_v12 = vpop.f32.mrb[20].mxu1 }
 0x9a2   : > { %v1544_v13 = vadd.f32 %v2470_v12, %v2979_v30  ;;  %v1528_v14 = vpop.f32.mrb[21].mxu1 }
 0x9a3   : > { %v1542_v16 = vadd.f32 %v1528_v14, %v2981_v34  ;;  %v2471_v17 = vpop.f32.mrb[22].mxu1  ;;  %v2321_v34 = vld [vmem:[%s3150_s25] ss:$0 sm:$0xff] }
 0x9a4   : > { %v1531_v18 = vpop.f32.mrb[23].mxu1 }
 0x9a5   : > { %v1543_v19 = vadd.f32 %v1531_v18, %v2983_v37 }
 0x9a9   : > { %v2486_v20 = vpop.f32.mrb[24].mxu1 }
 0x9aa   : > { %v1702_v21 = vpop.f32.mrb[25].mxu1  ;;  %v1717_v33 = vpack.c.bf16 %v2486_v20, %v2486_v20 }
 0x9ab   : > { %v2487_v22 = vpop.f32.mrb[26].mxu1 }
 0x9ac   : > { %v1705_v23 = vpop.f32.mrb[27].mxu1 }
 0x9ad   : > { %v1716_v24 = vpack.c.bf16 %v1705_v23, %v1702_v21 }
 0x9af   : > { %2490 = vmatprep.mubr.msk.bf16.mxu1 %vm845_vm2, %v1716_v24  ;;  %v2323_v24 = vld [vmem:[%s613_s27] ss:$0 sm:$0xff] }
 0x9b0   : > { %2491 = vmatmul.mubr.msk.bf16.vlgmr.msra.gmra.mrb[28].mxu1 %vm845_vm2, %v1717_v33 }
 0xa83   : > { %v2492_v25 = vpop.f32.mrb[28].mxu1 }
 0xa84   : > { %v1780_v30 = vadd.f32 %v2492_v25, %v1544_v13  ;;  %v1764_v27 = vpop.f32.mrb[29].mxu1 }
 0xa85   : > { %v1778_v28 = vadd.f32 %v1764_v27, %v1542_v16  ;;  %v2493_v37 = vpop.f32.mrb[30].mxu1 }
 0xa86   : > { %v1767_v29 = vpop.f32.mrb[31].mxu1  ;;  %v1790_v36 = vadd.f32 %v2321_v34, %v1780_v30 }
 0xa87   : > { %v1788_v31 = vadd.f32 %v2321_v34, %v1778_v28  ;;  %v1779_v35 = vadd.f32 %v1767_v29, %v1543_v19  ;;  %v2322_v19 = vld [vmem:[%s610_s24] ss:$0 sm:$0xff] }
 0xa88   : > { %v3048_v44 = vadd.f32 %v2652_v43, %v1790_v36  ;;  %v2571_v36 = vld [vmem:[%s2805_s19 + $0x8] sm:$0xff]   ;;  %v2577_v43 = vld [vmem:[%s2805_s19 + $0x38] sm:$0xff]  }
 0xa89   : > { %v3036_v39 = vadd.f32 %v2650_v38, %v1788_v31  ;;  %v1789_v40 = vadd.f32 %v2321_v34, %v1779_v35  ;;  %v2570_v35 = vld [vmem:[%s2805_s19] sm:$0xff]   ;;  %v2572_v38 = vld [vmem:[%s2805_s19 + $0x10] sm:$0xff]  }
 0xa8a   : > { %v1802_v45 = vsel %vm648_vm1, %v3048_v44, 0.0  ;;  %2494 = vmatprep.subr.bf16.mxu1 %v2570_v35 }
 0xa8b   : > { %v3041_v9 = vadd.f32 %v2651_v41, %v1789_v40  ;;  %v1796_v42 = vsel %vm648_vm1, %v3036_v39, 0.0  ;;  %2495 = vmatpush3.bf16.msra.mxu1 %v2570_v35  ;;  %v2573_v40 = vld [vmem:[%s2805_s19 + $0x18] sm:$0xff]   ;;  %v2575_v41 = vld [vmem:[%s2805_s19 + $0x28] sm:$0xff]  }
 0xa8c   : > { %1797 = vadd.xlane.f32.xlu1 %v1796_v42  ;;  %2496 = vmatprep.subr.bf16.mxu1 %v2571_v36  ;;  %v2576_v42 = vld [vmem:[%s2805_s19 + $0x30] sm:$0xff]  }
 0xa8d   : > { %v1799_v15 = vsel %vm648_vm1, %v3041_v9, 0.0 }
 0xa8e   : > { %1800 = vadd.xlane.f32.xlu0 %v1799_v15  ;;  %v1861_v15 = vld [vmem:[%s2800_s18] sm:$0x3] }
 0xa8f   : > { %2497 = vmatpush3.bf16.msra.mxu1 %v2571_v36  ;;  %v1889_v3 = vrot.slane %v1861_v15, %v725_v62 }
 0xa90   : > { %2498 = vmatprep.subr.bf16.mxu1 %v2572_v38 }
 0xa92   : > { %1803 = vadd.xlane.f32.xlu0 %v1802_v45  ;;  %v1885_v45 = vrot.slane %v1861_v15, %v721_v60 }
 0xa93   : > { %2499 = vmatpush3.bf16.msra.mxu1 %v2572_v38 }
 0xa94   : > { %2500 = vmatprep.subr.bf16.mxu1 %v2573_v40 }
 0xa97   : > { %2501 = vmatpush3.bf16.msra.mxu1 %v2573_v40 }
 0xb19   : > { %v1798_v46 = vpop.xlane.xlu1 %1797 }
 0xb1a   : > { %v1805_v47 = vmul.f32 0.015625, %v1798_v46 }
 0xb1b   : > { %v1801_v48 = vpop.xlane.xlu0 %1800 }
 0xb1c   : > { %v1808_v49 = vsub.f32 %v3036_v39, %v1805_v47  ;;  %v1806_v50 = vmul.f32 0.015625, %v1801_v48 }
 0xb1e   : > { %v1809_v51 = vsub.f32 %v3041_v9, %v1806_v50  ;;  %v1811_v52 = vmul.f32 %v1808_v49, %v1808_v49 }
 0xb1f   : > { %v1804_v53 = vpop.xlane.xlu0 %1803 }
 0xb20   : > { %v1807_v54 = vmul.f32 0.015625, %v1804_v53  ;;  %v1814_v55 = vsel %vm648_vm1, %v1811_v52, 0.0  ;;  %v1812_v56 = vmul.f32 %v1809_v51, %v1809_v51 }
 0xb21   : > { %1815 = vadd.xlane.f32.xlu1 %v1814_v55 }
 0xb22   : > { %v1810_v57 = vsub.f32 %v3048_v44, %v1807_v54  ;;  %v1817_v58 = vsel %vm648_vm1, %v1812_v56, 0.0 }
 0xb23   : > { %1818 = vadd.xlane.f32.xlu0 %v1817_v58 }
 0xb24   : > { %v1813_v61 = vmul.f32 %v1810_v57, %v1810_v57 }
 0xb26   : > { %v1820_v63 = vsel %vm648_vm1, %v1813_v61, 0.0 }
 0xb27   : > { %1821 = vadd.xlane.f32.xlu1 %v1820_v63 }
 0xbae   : > { %v1816_v6 = vpop.xlane.xlu1 %1815 }
 0xbaf   : > { %v1823_v7 = vmul.f32 0.015625, %v1816_v6 }
 0xbb0   : > { %v1819_v8 = vpop.xlane.xlu0 %1818 }
 0xbb1   : > { %v1826_v11 = vadd.f32 1e-05, %v1823_v7  ;;  %v1824_v12 = vmul.f32 0.015625, %v1819_v8 }
 0xbb3   : > { %2632 = vrsqrt.f32 %v1826_v11  ;;  %v1827_v13 = vadd.f32 1e-05, %v1824_v12 }
 0xbb4   : > { %v1822_v14 = vpop.xlane.xlu1 %1821 }
 0xbb5   : > { %2634 = vrsqrt.f32 %v1827_v13  ;;  %v1825_v16 = vmul.f32 0.015625, %v1822_v14 }
 0xbb7   : > { %v1828_v17 = vadd.f32 1e-05, %v1825_v16 }
 0xbb9   : > { %2636 = vrsqrt.f32 %v1828_v17 }
 0xbbd   : > { %v2633_v18 = vpop.eup %2632 }
 0xbbe   : > { %v1832_v20 = vmul.f32 %v2633_v18, %v1808_v49 }
 0xbbf   : > { %v2635_v21 = vpop.eup %2634 }
 0xbc0   : > { %v1841_v22 = vmul.f32 %v2322_v19, %v1832_v20  ;;  %v1833_v23 = vmul.f32 %v2635_v21, %v1809_v51 }
 0xbc2   : > { %v1842_v33 = vmul.f32 %v2322_v19, %v1833_v23  ;;  %v1850_v34 = vadd.f32 %v2323_v24, %v1841_v22 }
 0xbc3   : > { %v2637_v25 = vpop.eup %2636 }
 0xbc4   : > { %v1834_v30 = vmul.f32 %v2637_v25, %v1810_v57  ;;  %v1851_v27 = vadd.f32 %v2323_v24, %v1842_v33 }
 0xbc6   : > { %v1879_v28 = vpack.c.bf16 %v1851_v27, %v1850_v34  ;;  %v1843_v37 = vmul.f32 %v2322_v19, %v1834_v30 }
 0xbc8   : > { %2332 = vmatmul.mubr.msk.bf16.vlgmr.msra.gmra.mrb[24].mxu0 %vm648_vm1, %v1879_v28  ;;  %v1852_v29 = vadd.f32 %v2323_v24, %v1843_v37 }
 0xbc9   : > { %1980 = vmatprep.mubr.bf16.mxu0 %v2661_v32  ;;  %v2574_v32 = vld [vmem:[%s2805_s19 + $0x20] sm:$0xff]  }
 0xbca   : > { %v1880_v31 = vpack.c.bf16 %v1852_v29, %v1852_v29  ;;  %2502 = vmatprep.subr.bf16.mxu1 %v2574_v32 }
 0xbcb   : > { %2503 = vmatpush3.bf16.msra.mxu1 %v2574_v32 }
 0xbcc   : > { %2504 = vmatprep.subr.bf16.mxu1 %v2575_v41 }
 0xbcf   : > { %2505 = vmatpush3.bf16.msra.mxu1 %v2575_v41 }
 0xbd0   : > { %2333 = vmatmul.mubr.msk.bf16.gmra.mrb[28].mxu0 %vm648_vm1, %v1880_v31  ;;  %2506 = vmatprep.subr.bf16.mxu1 %v2576_v42 }
 0xbd3   : > { %2507 = vmatpush3.bf16.msra.mxu1 %v2576_v42 }
 0xbd4   : > { %2508 = vmatprep.subr.bf16.mxu1 %v2577_v43 }
 0xbd7   : > { %2509 = vmatpush3.bf16.msra.mxu1 %v2577_v43 }
 0xc9b   : > { %v1972_v46 = vpop.f32.mrb[24].mxu0 }
 0xc9c   : > { %v1973_v47 = vadd.f32 %v1972_v46, %v1885_v45  ;;  %v1974_v48 = vpop.f32.mrb[25].mxu0 }
 0xc9d   : > { %v1976_v49 = vpop.f32.mrb[26].mxu0  ;;  %v1975_v5 = vadd.f32 %v1974_v48, %v1889_v3 }
 0xc9e   : > { %v2334_v50 = vmul.f32 -1.442695, %v1973_v47  ;;  %v1977_v51 = vadd.f32 %v1976_v49, %v1885_v45  ;;  %v1978_v52 = vpop.f32.mrb[27].mxu0 }
 0xc9f   : > { %v1979_v11 = vadd.f32 %v1978_v52, %v1889_v3 }
 0xca0   : > { %2638 = vpow2.f32 %v2334_v50  ;;  %v2335_v53 = vmul.f32 -1.442695, %v1977_v51 }
 0xca2   : > { %2640 = vpow2.f32 %v2335_v53 }
 0xca3   : > { %v1982_v54 = vpop.f32.mrb[28].mxu0 }
 0xca4   : > { %v1983_v55 = vadd.f32 %v1982_v54, %v1885_v45  ;;  %v1984_v56 = vpop.f32.mrb[29].mxu0 }
 0xca5   : > { %v1986_v57 = vpop.f32.mrb[30].mxu0  ;;  %v1985_v17 = vadd.f32 %v1984_v56, %v1889_v3 }
 0xca6   : > { %v2336_v58 = vmul.f32 -1.442695, %v1983_v55  ;;  %v1987_v61 = vpop.f32.mrb[31].mxu0 }
 0xca8   : > { %2642 = vpow2.f32 %v2336_v58 }
 0xcaa   : > { %v2639_v63 = vpop.eup %2638 }
 0xcab   : > { %v1998_v0 = vadd.f32 1.0, %v2639_v63 }
 0xcac   : > { %v2641_v60 = vpop.eup %2640 }
 0xcad   : > { %2644 = vrcp.f32 %v1998_v0  ;;  %v1999_v1 = vadd.f32 1.0, %v2641_v60 }
 0xcaf   : > { %2646 = vrcp.f32 %v1999_v1 }
 0xcb2   : > { %v2643_v2 = vpop.eup %2642 }
 0xcb3   : > { %v2000_v10 = vadd.f32 1.0, %v2643_v2 }
 0xcb5   : > { %2648 = vrcp.f32 %v2000_v10 }
 0xcb7   : > { %v2645_v26 = vpop.eup %2644 }
 0xcb8   : > { %v2007_v4 = vmul.f32 %v2645_v26, %v1973_v47 }
 0xcb9   : > { %v2647_v6 = vpop.eup %2646 }
 0xcba   : > { %v2010_v7 = vmul.f32 %v2007_v4, %v1975_v5  ;;  %v2008_v8 = vmul.f32 %v2647_v6, %v1977_v51 }
 0xcbc   : > { %v2011_v12 = vmul.f32 %v2008_v8, %v1979_v11 }
 0xcbe   : > { %v2013_v13 = vpack.c.bf16 %v2011_v12, %v2010_v7 }
 0xcbf   : > { %v2649_v14 = vpop.eup %2648 }
 0xcc0   : > { %v2009_v16 = vmul.f32 %v2649_v14, %v1983_v55  ;;  %2510 = vmatprep.mubr.bf16.mxu1 %v2013_v13 }
 0xcc2   : > { %v2012_v18 = vmul.f32 %v2009_v16, %v1985_v17 }
 0xcc4   : > { %v2014_v19 = vpack.c.bf16 %v2012_v18, %v2012_v18 }
 0xcc6   : > { %2511 = vmatmul.mubr.bf16.vlgmr.msra.gmra.mrb[32].mxu1 %v2014_v19 }
 0xd99   : > { %v2512_v62 = vpop.f32.mrb[32].mxu1 }
 0xd9a   : > { %v2112_v20 = vadd.f32 %v2512_v62, %v2337_v59  ;;  %v2103_v21 = vpop.f32.mrb[33].mxu1 }
 0xd9b   : > { %v2104_v22 = vadd.f32 %v2337_v59, %v2103_v21  ;;  %v2513_v23 = vpop.f32.mrb[34].mxu1 }
 0xd9c   : > { %v2119_v24 = vadd.f32 %v2112_v20, %v3048_v44  ;;  %v2106_v33 = vpop.f32.mrb[35].mxu1 }
 0xd9d   : > { %v2117_v25 = vadd.f32 %v2104_v22, %v3036_v39  ;;  %v2107_v30 = vadd.f32 %v2337_v59, %v2106_v33 }
 0xd9e   : > { %2122 = vst.msk [vmem:[%s3131_s14 + $0x10] sm:$0xff] %vm648_vm1, %v2119_v24 }
 0xd9f   : > { %2120 = vst.msk [vmem:[%s3131_s14] sm:$0xff] %vm648_vm1, %v2117_v25  ;;  %v2118_v34 = vadd.f32 %v2107_v30, %v3041_v9 }
 0xda1   : > { %2121 = vst.msk [vmem:[%s3131_s14 + $0x8] sm:$0xff] %vm648_vm1, %v2118_v34 }
 0xda2 PF: > { %s3151_s20 = sld [smem:[#allocation2_spill]] }
 0xda8   : > { %s24_s29 = sadd.s32 1, %s3151_s20  }
 0xda9   : > { %p21_p5 = scmp.ge.s32.totalorder %s24_s29, 4  }
 0xdab   :  { %23 = sbr.rel (!%p21_p5) target bundleno = 6 (0x6), region = 139 }

// kernel: _trackformer_core.10
= control target key start
LH: loop header
LB: loop body
LE: loop exit
PB: predicated region body
PF: predicated region fallthrough
CT: control target
= control target key end

     0   :  { %vm72_vm0 = vcmask 1043456   ;;  %vm47_vm1 = vcmask 64512   ;;  %vm173_vm2 = vcmask 523264   ;;  %s380_s1 = inlined_call_operand.vmem [shape: bf16[8,64], index: 1, kind: input, shape index: {}]   ;;  %s381_s0 = inlined_call_operand.vmem [shape: f32[128,8], index: 0, kind: input, shape index: {}]   ;;  %s382_s2 = inlined_call_operand.vmem [shape: f32[1,64], index: 2, kind: input, shape index: {}]   ;;  %s383_s3 = inlined_call_operand.vmem [shape: f32[128,64], index: 3, kind: output, shape index: {}]  }
   0x1   :  { %v39_v0 = vld [vmem:[%s380_s1] sm:$0xf]  ;;  %v16_v2 = vld [vmem:[%s381_s0 + $0x8] sm:$0xff]  ;;  %v17_v7 = vld [vmem:[%s381_s0 + $0x10] sm:$0xff] }
   0x2   :  { %v15_v1 = vld [vmem:[%s381_s0] sm:$0xff]  ;;  %232 = vmatprep.subr.msk.bf16.mxu0 %vm72_vm0, %v39_v0  ;;  %233 = vmatprep.subr.msk.bf16.mxu1 %vm72_vm0, %v39_v0  ;;  %v74_v3 = vsel %vm72_vm0, %v39_v0, 0  ;;  %v24_v6 = vld [vmem:[%s381_s0 + $0x48] sm:$0xff]  ;;  %v18_v9 = vld [vmem:[%s381_s0 + $0x18] sm:$0xff] }
   0x3   :  { %v31_v4 = vpack.c.bf16 %v16_v2, %v15_v1  ;;  %v23_v5 = vld [vmem:[%s381_s0 + $0x40] sm:$0xff]  ;;  %213 = vmatpush3.bf16.msra.mxu0 %v74_v3  ;;  %231 = vmatpush3.bf16.msra.mxu1 %v74_v3  ;;  %v25_v10 = vld [vmem:[%s381_s0 + $0x50] sm:$0xff]  ;;  %v26_v11 = vld [vmem:[%s381_s0 + $0x58] sm:$0xff]  ;;  %v32_v12 = vpack.c.bf16 %v18_v9, %v17_v7 }
   0x4   :  { %v35_v8 = vpack.c.bf16 %v24_v6, %v23_v5  ;;  %v36_v13 = vpack.c.bf16 %v26_v11, %v25_v10  ;;  %v19_v14 = vld [vmem:[%s381_s0 + $0x20] sm:$0xff]  ;;  %v20_v15 = vld [vmem:[%s381_s0 + $0x28] sm:$0xff]  ;;  %v21_v20 = vld [vmem:[%s381_s0 + $0x30] sm:$0xff] }
   0x5   :  { %214 = vmatprep.mubr.msk.bf16.mxu0 %vm47_vm1, %v31_v4  ;;  %v27_v16 = vld [vmem:[%s381_s0 + $0x60] sm:$0xff]  ;;  %v33_v17 = vpack.c.bf16 %v20_v15, %v19_v14  ;;  %v28_v18 = vld [vmem:[%s381_s0 + $0x68] sm:$0xff]  ;;  %v22_v21 = vld [vmem:[%s381_s0 + $0x38] sm:$0xff] }
   0x6   :  { %222 = vmatprep.mubr.msk.bf16.mxu1 %vm47_vm1, %v35_v8  ;;  %215 = vmatmul.mubr.msk.bf16.vlgmr.msra.gmra.mrb[0].mxu0 %vm47_vm1, %v32_v12  ;;  %v37_v19 = vpack.c.bf16 %v28_v18, %v27_v16  ;;  %v29_v22 = vld [vmem:[%s381_s0 + $0x70] sm:$0xff]  ;;  %v30_v23 = vld [vmem:[%s381_s0 + $0x78] sm:$0xff]  ;;  %v34_v24 = vpack.c.bf16 %v22_v21, %v21_v20  ;;  %v194_v26 = vld [vmem:[%s382_s2] ss:$0 sm:$0xff] }
   0x7   :  { %223 = vmatmul.mubr.msk.bf16.vlgmr.msra.gmra.mrb[0].mxu1 %vm47_vm1, %v36_v13  ;;  %218 = vmatprep.mubr.msk.bf16.mxu0 %vm47_vm1, %v33_v17  ;;  %v38_v25 = vpack.c.bf16 %v30_v23, %v29_v22 }
   0x8   :  { %226 = vmatprep.mubr.msk.bf16.mxu1 %vm47_vm1, %v37_v19 }
   0xe   :  { %219 = vmatmul.mubr.msk.bf16.gmra.mrb[4].mxu0 %vm47_vm1, %v34_v24 }
   0xf   :  { %227 = vmatmul.mubr.msk.bf16.gmra.mrb[4].mxu1 %vm47_vm1, %v38_v25 }
  0xd9   :  { %v216_v27 = vpop.f32.mrb[0].mxu0 }
  0xda   :  { %v224_v28 = vpop.f32.mrb[0].mxu1  ;;  %v119_v29 = vadd.f32 %v216_v27, %v194_v26  ;;  %v110_v31 = vpop.f32.mrb[1].mxu0 }
  0xdb   :  { %v151_v30 = vadd.f32 %v224_v28, %v194_v26  ;;  %v142_v32 = vpop.f32.mrb[1].mxu1  ;;  %v111_v33 = vadd.f32 %v194_v26, %v110_v31  ;;  %v217_v35 = vpop.f32.mrb[2].mxu0 }
  0xdc   :  { %v143_v34 = vadd.f32 %v194_v26, %v142_v32  ;;  %v225_v36 = vpop.f32.mrb[2].mxu1  ;;  %176 = vst.msk [vmem:[%s383_s3 + $0x10] sm:$0xff] %vm173_vm2, %v119_v29  ;;  %v122_v37 = vadd.f32 %v217_v35, %v194_v26  ;;  %v113_v39 = vpop.f32.mrb[3].mxu0 }
  0xdd   :  { %184 = vst.msk [vmem:[%s383_s3 + $0x50] sm:$0xff] %vm173_vm2, %v151_v30  ;;  %v154_v38 = vadd.f32 %v225_v36, %v194_v26  ;;  %v145_v40 = vpop.f32.mrb[3].mxu1  ;;  %174 = vst.msk [vmem:[%s383_s3] sm:$0xff] %vm173_vm2, %v111_v33  ;;  %v114_v41 = vadd.f32 %v194_v26, %v113_v39 }
  0xde   :  { %182 = vst.msk [vmem:[%s383_s3 + $0x40] sm:$0xff] %vm173_vm2, %v143_v34  ;;  %v146_v42 = vadd.f32 %v194_v26, %v145_v40  ;;  %177 = vst.msk [vmem:[%s383_s3 + $0x18] sm:$0xff] %vm173_vm2, %v122_v37 }
  0xdf   :  { %185 = vst.msk [vmem:[%s383_s3 + $0x58] sm:$0xff] %vm173_vm2, %v154_v38  ;;  %175 = vst.msk [vmem:[%s383_s3 + $0x8] sm:$0xff] %vm173_vm2, %v114_v41 }
  0xe0   :  { %183 = vst.msk [vmem:[%s383_s3 + $0x48] sm:$0xff] %vm173_vm2, %v146_v42 }
  0xe1   :  { %v220_v43 = vpop.f32.mrb[4].mxu0 }
  0xe2   :  { %v228_v44 = vpop.f32.mrb[4].mxu1  ;;  %v135_v45 = vadd.f32 %v220_v43, %v194_v26  ;;  %v126_v47 = vpop.f32.mrb[5].mxu0 }
  0xe3   :  { %v167_v46 = vadd.f32 %v228_v44, %v194_v26  ;;  %v158_v48 = vpop.f32.mrb[5].mxu1  ;;  %v127_v49 = vadd.f32 %v194_v26, %v126_v47  ;;  %v221_v51 = vpop.f32.mrb[6].mxu0 }
  0xe4   :  { %v159_v50 = vadd.f32 %v194_v26, %v158_v48  ;;  %v229_v52 = vpop.f32.mrb[6].mxu1  ;;  %180 = vst.msk [vmem:[%s383_s3 + $0x30] sm:$0xff] %vm173_vm2, %v135_v45  ;;  %v138_v53 = vadd.f32 %v221_v51, %v194_v26  ;;  %v129_v55 = vpop.f32.mrb[7].mxu0 }
  0xe5   :  { %188 = vst.msk [vmem:[%s383_s3 + $0x70] sm:$0xff] %vm173_vm2, %v167_v46  ;;  %v170_v54 = vadd.f32 %v229_v52, %v194_v26  ;;  %v161_v56 = vpop.f32.mrb[7].mxu1  ;;  %178 = vst.msk [vmem:[%s383_s3 + $0x20] sm:$0xff] %vm173_vm2, %v127_v49  ;;  %v130_v57 = vadd.f32 %v194_v26, %v129_v55 }
  0xe6   :  { %186 = vst.msk [vmem:[%s383_s3 + $0x60] sm:$0xff] %vm173_vm2, %v159_v50  ;;  %v162_v58 = vadd.f32 %v194_v26, %v161_v56  ;;  %181 = vst.msk [vmem:[%s383_s3 + $0x38] sm:$0xff] %vm173_vm2, %v138_v53 }
  0xe7   :  { %189 = vst.msk [vmem:[%s383_s3 + $0x78] sm:$0xff] %vm173_vm2, %v170_v54  ;;  %179 = vst.msk [vmem:[%s383_s3 + $0x28] sm:$0xff] %vm173_vm2, %v130_v57 }
  0xe8   :  { %187 = vst.msk [vmem:[%s383_s3 + $0x68] sm:$0xff] %vm173_vm2, %v162_v58 }

// kernel: _trackformer_core.12
= control target key start
LH: loop header
LB: loop body
LE: loop exit
PB: predicated region body
PF: predicated region fallthrough
CT: control target
= control target key end

     0   :  { %vm78_vm0 = vcmask 523264   ;;  %s436_s1 = inlined_call_operand.vmem [shape: bf16[64,64], index: 1, kind: input, shape index: {}]   ;;  %s437_s0 = inlined_call_operand.vmem [shape: f32[128,64], index: 0, kind: input, shape index: {}]   ;;  %s438_s2 = inlined_call_operand.vmem [shape: f32[1,64], index: 2, kind: input, shape index: {}]   ;;  %s439_s3 = inlined_call_operand.vmem [shape: f32[128,64], index: 3, kind: output, shape index: {}]  }
   0x1   :  { %v277_v0 = vld [vmem:[%s436_s1] sm:$0xff]   ;;  %v278_v1 = vld [vmem:[%s436_s1 + $0x8] sm:$0xff]   ;;  %v279_v2 = vld [vmem:[%s436_s1 + $0x10] sm:$0xff]  }
   0x2   :  { %245 = vmatprep.subr.bf16.mxu0 %v277_v0  ;;  %269 = vmatprep.subr.bf16.mxu1 %v277_v0  ;;  %v15_v3 = vld [vmem:[%s437_s0] sm:$0xff]  ;;  %v16_v4 = vld [vmem:[%s437_s0 + $0x8] sm:$0xff]  ;;  %v280_v9 = vld [vmem:[%s436_s1 + $0x18] sm:$0xff]  }
   0x3   :  { %246 = vmatpush3.bf16.msra.mxu0 %v277_v0  ;;  %273 = vmatpush3.bf16.msra.mxu1 %v277_v0  ;;  %v23_v5 = vld [vmem:[%s437_s0 + $0x40] sm:$0xff]  ;;  %v31_v6 = vpack.c.bf16 %v16_v4, %v15_v3  ;;  %v24_v7 = vld [vmem:[%s437_s0 + $0x48] sm:$0xff]  ;;  %v17_v10 = vld [vmem:[%s437_s0 + $0x10] sm:$0xff] }
   0x4   :  { %247 = vmatprep.subr.bf16.mxu0 %v278_v1  ;;  %270 = vmatprep.subr.bf16.mxu1 %v278_v1  ;;  %v35_v8 = vpack.c.bf16 %v24_v7, %v23_v5  ;;  %v18_v11 = vld [vmem:[%s437_s0 + $0x18] sm:$0xff]  ;;  %v25_v12 = vld [vmem:[%s437_s0 + $0x50] sm:$0xff]  ;;  %v19_v14 = vld [vmem:[%s437_s0 + $0x20] sm:$0xff] }
   0x5   :  { %253 = vmatprep.mubr.msk.bf16.mxu0 %vm78_vm0, %v31_v6  ;;  %v26_v13 = vld [vmem:[%s437_s0 + $0x58] sm:$0xff]  ;;  %v20_v15 = vld [vmem:[%s437_s0 + $0x28] sm:$0xff]  ;;  %v27_v16 = vld [vmem:[%s437_s0 + $0x60] sm:$0xff]  ;;  %v32_v18 = vpack.c.bf16 %v18_v11, %v17_v10 }
   0x6   :  { %261 = vmatprep.mubr.msk.bf16.mxu1 %vm78_vm0, %v35_v8  ;;  %v28_v17 = vld [vmem:[%s437_s0 + $0x68] sm:$0xff]  ;;  %v36_v19 = vpack.c.bf16 %v26_v13, %v25_v12  ;;  %v33_v20 = vpack.c.bf16 %v20_v15, %v19_v14  ;;  %v21_v22 = vld [vmem:[%s437_s0 + $0x30] sm:$0xff]  ;;  %v22_v23 = vld [vmem:[%s437_s0 + $0x38] sm:$0xff] }
   0x7   :  { %248 = vmatpush3.bf16.msra.mxu0 %v278_v1  ;;  %274 = vmatpush3.bf16.msra.mxu1 %v278_v1  ;;  %v37_v21 = vpack.c.bf16 %v28_v17, %v27_v16  ;;  %v29_v24 = vld [vmem:[%s437_s0 + $0x70] sm:$0xff]  ;;  %v30_v25 = vld [vmem:[%s437_s0 + $0x78] sm:$0xff]  ;;  %v34_v26 = vpack.c.bf16 %v22_v23, %v21_v22  ;;  %v220_v28 = vld [vmem:[%s438_s2] ss:$0 sm:$0xff] }
   0x8   :  { %249 = vmatprep.subr.bf16.mxu0 %v279_v2  ;;  %271 = vmatprep.subr.bf16.mxu1 %v279_v2  ;;  %v38_v27 = vpack.c.bf16 %v30_v25, %v29_v24 }
   0xb   :  { %250 = vmatpush3.bf16.msra.mxu0 %v279_v2  ;;  %275 = vmatpush3.bf16.msra.mxu1 %v279_v2 }
   0xc   :  { %251 = vmatprep.subr.bf16.mxu0 %v280_v9  ;;  %272 = vmatprep.subr.bf16.mxu1 %v280_v9 }
   0xf   :  { %252 = vmatpush3.bf16.msra.mxu0 %v280_v9  ;;  %276 = vmatpush3.bf16.msra.mxu1 %v280_v9 }
  0x12   :  { %254 = vmatmul.mubr.msk.bf16.vlgmr.msra.gmra.mrb[0].mxu0 %vm78_vm0, %v32_v18  ;;  %262 = vmatmul.mubr.msk.bf16.vlgmr.msra.gmra.mrb[0].mxu1 %vm78_vm0, %v36_v19 }
  0x13   :  { %257 = vmatprep.mubr.msk.bf16.mxu0 %vm78_vm0, %v33_v20  ;;  %265 = vmatprep.mubr.msk.bf16.mxu1 %vm78_vm0, %v37_v21 }
  0x1a   :  { %258 = vmatmul.mubr.msk.bf16.gmra.mrb[4].mxu0 %vm78_vm0, %v34_v26  ;;  %266 = vmatmul.mubr.msk.bf16.gmra.mrb[4].mxu1 %vm78_vm0, %v38_v27 }
  0xe5   :  { %v255_v29 = vpop.f32.mrb[0].mxu0  ;;  %v263_v30 = vpop.f32.mrb[0].mxu1 }
  0xe6   :  { %v146_v31 = vadd.f32 %v255_v29, %v220_v28  ;;  %v178_v32 = vadd.f32 %v263_v30, %v220_v28  ;;  %v137_v33 = vpop.f32.mrb[1].mxu0  ;;  %v169_v34 = vpop.f32.mrb[1].mxu1 }
  0xe7   :  { %v138_v35 = vadd.f32 %v220_v28, %v137_v33  ;;  %v170_v36 = vadd.f32 %v220_v28, %v169_v34  ;;  %v256_v37 = vpop.f32.mrb[2].mxu0  ;;  %v264_v38 = vpop.f32.mrb[2].mxu1 }
  0xe8   :  { %202 = vst.msk [vmem:[%s439_s3 + $0x10] sm:$0xff] %vm78_vm0, %v146_v31  ;;  %210 = vst.msk [vmem:[%s439_s3 + $0x50] sm:$0xff] %vm78_vm0, %v178_v32  ;;  %v149_v39 = vadd.f32 %v256_v37, %v220_v28  ;;  %v181_v40 = vadd.f32 %v264_v38, %v220_v28  ;;  %v140_v41 = vpop.f32.mrb[3].mxu0  ;;  %v172_v42 = vpop.f32.mrb[3].mxu1 }
  0xe9   :  { %200 = vst.msk [vmem:[%s439_s3] sm:$0xff] %vm78_vm0, %v138_v35  ;;  %208 = vst.msk [vmem:[%s439_s3 + $0x40] sm:$0xff] %vm78_vm0, %v170_v36  ;;  %v141_v43 = vadd.f32 %v220_v28, %v140_v41  ;;  %v173_v44 = vadd.f32 %v220_v28, %v172_v42 }
  0xea   :  { %203 = vst.msk [vmem:[%s439_s3 + $0x18] sm:$0xff] %vm78_vm0, %v149_v39  ;;  %211 = vst.msk [vmem:[%s439_s3 + $0x58] sm:$0xff] %vm78_vm0, %v181_v40 }
  0xeb   :  { %201 = vst.msk [vmem:[%s439_s3 + $0x8] sm:$0xff] %vm78_vm0, %v141_v43  ;;  %209 = vst.msk [vmem:[%s439_s3 + $0x48] sm:$0xff] %vm78_vm0, %v173_v44 }
  0xed   :  { %v259_v45 = vpop.f32.mrb[4].mxu0  ;;  %v267_v46 = vpop.f32.mrb[4].mxu1 }
  0xee   :  { %v162_v47 = vadd.f32 %v259_v45, %v220_v28  ;;  %v194_v48 = vadd.f32 %v267_v46, %v220_v28  ;;  %v153_v49 = vpop.f32.mrb[5].mxu0  ;;  %v185_v50 = vpop.f32.mrb[5].mxu1 }
  0xef   :  { %v154_v51 = vadd.f32 %v220_v28, %v153_v49  ;;  %v186_v52 = vadd.f32 %v220_v28, %v185_v50  ;;  %v260_v53 = vpop.f32.mrb[6].mxu0  ;;  %v268_v54 = vpop.f32.mrb[6].mxu1 }
  0xf0   :  { %206 = vst.msk [vmem:[%s439_s3 + $0x30] sm:$0xff] %vm78_vm0, %v162_v47  ;;  %214 = vst.msk [vmem:[%s439_s3 + $0x70] sm:$0xff] %vm78_vm0, %v194_v48  ;;  %v165_v55 = vadd.f32 %v260_v53, %v220_v28  ;;  %v197_v56 = vadd.f32 %v268_v54, %v220_v28  ;;  %v156_v57 = vpop.f32.mrb[7].mxu0  ;;  %v188_v58 = vpop.f32.mrb[7].mxu1 }
  0xf1   :  { %204 = vst.msk [vmem:[%s439_s3 + $0x20] sm:$0xff] %vm78_vm0, %v154_v51  ;;  %212 = vst.msk [vmem:[%s439_s3 + $0x60] sm:$0xff] %vm78_vm0, %v186_v52  ;;  %v157_v59 = vadd.f32 %v220_v28, %v156_v57  ;;  %v189_v60 = vadd.f32 %v220_v28, %v188_v58 }
  0xf2   :  { %207 = vst.msk [vmem:[%s439_s3 + $0x38] sm:$0xff] %vm78_vm0, %v165_v55  ;;  %215 = vst.msk [vmem:[%s439_s3 + $0x78] sm:$0xff] %vm78_vm0, %v197_v56 }
  0xf3   :  { %205 = vst.msk [vmem:[%s439_s3 + $0x28] sm:$0xff] %vm78_vm0, %v157_v59  ;;  %213 = vst.msk [vmem:[%s439_s3 + $0x68] sm:$0xff] %vm78_vm0, %v189_v60 }

// kernel: _trackformer_core.11
= control target key start
LH: loop header
LB: loop body
LE: loop exit
PB: predicated region body
PF: predicated region fallthrough
CT: control target
= control target key end

     0   :  { %s5962_s29 = smov 0   ;;  %s8065_s0 = inlined_call_operand.vmem [shape: f32[128,64], index: 0, kind: input, shape index: {}]   ;;  %s8066_s1 = inlined_call_operand.vmem [shape: f32[1,128], index: 1, kind: input, shape index: {}]   ;;  %s8067_s2 = inlined_call_operand.vmem [shape: f32[2,1,64], index: 2, kind: input, shape index: {}]   ;;  %s8068_s3 = inlined_call_operand.vmem [shape: f32[2,1,64], index: 3, kind: input, shape index: {}]   ;;  %s8069_s4 = inlined_call_operand.vmem [shape: bf16[2,64,192], index: 4, kind: input, shape index: {}]   ;;  %s8070_s5 = inlined_call_operand.vmem [shape: f32[2,1,192], index: 5, kind: input, shape index: {}]   ;;  %s8071_s6 = inlined_call_operand.vmem [shape: bf16[2,64,64], index: 6, kind: input, shape index: {}]   ;;  %s8072_s7 = inlined_call_operand.vmem [shape: f32[2,1,64], index: 7, kind: input, shape index: {}]   ;;  %s8073_s8 = inlined_call_operand.vmem [shape: f32[2,1,64], index: 8, kind: input, shape index: {}]   ;;  %s8074_s9 = inlined_call_operand.vmem [shape: f32[2,1,64], index: 9, kind: input, shape index: {}]   ;;  %s8075_s10 = inlined_call_operand.vmem [shape: bf16[2,64,256], index: 10, kind: input, shape index: {}]   ;;  %s8076_s11 = inlined_call_operand.vmem [shape: f32[2,1,256], index: 11, kind: input, shape index: {}]   ;;  %s8077_s12 = inlined_call_operand.vmem [shape: bf16[2,128,64], index: 12, kind: input, shape index: {}]   ;;  %s8078_s13 = inlined_call_operand.vmem [shape: f32[2,1,64], index: 13, kind: input, shape index: {}]   ;;  %s8079_s14 = inlined_call_operand.vmem [shape: f32[128,64], index: 14, kind: output, shape index: {}]  }
   0x1   :  { %8112 = sst [smem:[#allocation35_spill]] %s8066_s1 }
   0x2   :  { %8113 = sst [smem:[#allocation36_spill]] %s8067_s2 }
   0x3   :  { %8114 = sst [smem:[#allocation37_spill]] %s8068_s3 }
   0x4   :  { %8115 = sst [smem:[#allocation38_spill]] %s8069_s4 }
   0x5   :  { %8116 = sst [smem:[#allocation39_spill]] %s8070_s5 }
   0x6 LB: > { %8117 = sst [smem:[#allocation2_spill]] %s5877_s29  ;;  %s4630_s30 = sadd.s32 4294967295, %s5877_s29   ;;  %s5877_s29 = sphi %s5962_s29, %s24_s29  }
   0x7   : > { %p4633_p0 = scmp.ge.s32.totalorder %s5877_s29, 1  ;;  %p503_p1 = scmp.lt.s32.totalorder %s5877_s29, 3 }
   0x9   : > { %p504_p2 = pnand %p4633_p0, %p503_p1 }
   0xb   : > { %507 = sbr.rel (%p504_p2) target bundleno = 3296 (0xce0), region = 76 }
  0x12   : > { %p585_p3 = scmp.lt.s32.totalorder %s4630_s30, 1  ;;  %s8120_s4 = sld [smem:[#allocation38_spill]] }
  0x13   : > { %s8121_s5 = sld [smem:[#allocation39_spill]]  ;;  %p4644_p4 = scmp.ne.s32.totalorder %s4630_s30, 0 }
  0x14   : > { %s5970_s15 = scalar_select %p585_p3, %s4630_s30, 1 }
  0x15   : > { %v636_v0 = vld [vmem:[%s8065_s0] sm:$0xff] (!%p4644_p4)  ;;  %vm652_vm0 = vcmask (!%p4644_p4), 523264   ;;  %v637_v1 = vld [vmem:[%s8065_s0 + $0x8] sm:$0xff] (!%p4644_p4)  ;;  %v638_v2 = vld [vmem:[%s8065_s0 + $0x10] sm:$0xff] (!%p4644_p4) }
  0x16   : > { %s4778_s22 = sshll.u32 %s5970_s15, 6  ;;  %s4636_s23 = sshll.u32 %s5970_s15, 1  ;;  %653 = vst.msk [vmem:[%s8079_s14] sm:$0xff] (!%p4644_p4), %vm652_vm0, %v636_v0  ;;  %654 = vst.msk [vmem:[%s8079_s14 + $0x8] sm:$0xff] (!%p4644_p4), %vm652_vm0, %v637_v1  ;;  %v639_v3 = vld [vmem:[%s8065_s0 + $0x18] sm:$0xff] (!%p4644_p4)  ;;  %v640_v4 = vld [vmem:[%s8065_s0 + $0x20] sm:$0xff] (!%p4644_p4) }
  0x17   : > { %s4779_s17 = sshll.u32 %s5970_s15, 5  ;;  %s610_s24 = scalar_lea.vmem %s8073_s8, %s5970_s15  ;;  %655 = vst.msk [vmem:[%s8079_s14 + $0x10] sm:$0xff] (!%p4644_p4), %vm652_vm0, %v638_v2  ;;  %v641_v5 = vld [vmem:[%s8065_s0 + $0x28] sm:$0xff] (!%p4644_p4)  ;;  %656 = vst.msk [vmem:[%s8079_s14 + $0x18] sm:$0xff] (!%p4644_p4), %vm652_vm0, %v639_v3  ;;  %v642_v6 = vld [vmem:[%s8065_s0 + $0x30] sm:$0xff] (!%p4644_p4) }
  0x18   : > { %s5985_s26 = scalar_lea.vmem %s8120_s4, %s4778_s22  ;;  %s6000_s20 = scalar_lea.vmem %s8071_s6, %s4779_s17  ;;  %657 = vst.msk [vmem:[%s8079_s14 + $0x20] sm:$0xff] (!%p4644_p4), %vm652_vm0, %v640_v4  ;;  %658 = vst.msk [vmem:[%s8079_s14 + $0x28] sm:$0xff] (!%p4644_p4), %vm652_vm0, %v641_v5  ;;  %v643_v7 = vld [vmem:[%s8065_s0 + $0x38] sm:$0xff] (!%p4644_p4)  ;;  %v644_v8 = vld [vmem:[%s8065_s0 + $0x40] sm:$0xff] (!%p4644_p4) }
  0x19   : > { %s5990_s16 = scalar_lea.vmem %s8121_s5, %s4636_s23  ;;  %s613_s27 = scalar_lea.vmem %s8074_s9, %s5970_s15  ;;  %659 = vst.msk [vmem:[%s8079_s14 + $0x30] sm:$0xff] (!%p4644_p4), %vm652_vm0, %v642_v6  ;;  %660 = vst.msk [vmem:[%s8079_s14 + $0x38] sm:$0xff] (!%p4644_p4), %vm652_vm0, %v643_v7  ;;  %v645_v9 = vld [vmem:[%s8065_s0 + $0x48] sm:$0xff] (!%p4644_p4)  ;;  %v646_v10 = vld [vmem:[%s8065_s0 + $0x50] sm:$0xff] (!%p4644_p4) }
  0x1a   : > { %8122 = sst [smem:[#allocation3_spill]] %s5990_s16  ;;  %s6013_s16 = scalar_lea.vmem %s8075_s10, %s4778_s22  ;;  %661 = vst.msk [vmem:[%s8079_s14 + $0x40] sm:$0xff] (!%p4644_p4), %vm652_vm0, %v644_v8  ;;  %v647_v11 = vld [vmem:[%s8065_s0 + $0x58] sm:$0xff] (!%p4644_p4)  ;;  %662 = vst.msk [vmem:[%s8079_s14 + $0x48] sm:$0xff] (!%p4644_p4), %vm652_vm0, %v645_v9  ;;  %v648_v12 = vld [vmem:[%s8065_s0 + $0x60] sm:$0xff] (!%p4644_p4) }
  0x1b   : > { %s6018_s18 = scalar_lea.vmem %s8076_s11, %s4636_s23  ;;  %s6023_s19 = scalar_lea.vmem %s8077_s12, %s4778_s22  ;;  %663 = vst.msk [vmem:[%s8079_s14 + $0x50] sm:$0xff] (!%p4644_p4), %vm652_vm0, %v646_v10  ;;  %664 = vst.msk [vmem:[%s8079_s14 + $0x58] sm:$0xff] (!%p4644_p4), %vm652_vm0, %v647_v11  ;;  %v649_v13 = vld [vmem:[%s8065_s0 + $0x68] sm:$0xff] (!%p4644_p4)  ;;  %v650_v14 = vld [vmem:[%s8065_s0 + $0x70] sm:$0xff] (!%p4644_p4) }
  0x1c   : > { %s630_s4 = scalar_lea.vmem %s8078_s13, %s5970_s15  ;;  %635 = sbr.rel (%p4644_p4) target bundleno = 35 (0x23), region = 80  ;;  %665 = vst.msk [vmem:[%s8079_s14 + $0x60] sm:$0xff] (!%p4644_p4), %vm652_vm0, %v648_v12  ;;  %666 = vst.msk [vmem:[%s8079_s14 + $0x68] sm:$0xff] (!%p4644_p4), %vm652_vm0, %v649_v13  ;;  %v651_v15 = vld [vmem:[%s8065_s0 + $0x78] sm:$0xff] (!%p4644_p4) }
  0x1d   : > { %667 = vst.msk [vmem:[%s8079_s14 + $0x70] sm:$0xff] (!%p4644_p4), %vm652_vm0, %v650_v14  ;;  %668 = vst.msk [vmem:[%s8079_s14 + $0x78] sm:$0xff] (!%p4644_p4), %vm652_vm0, %v651_v15 }
  0x23 PF: > { %v669_v16 = vld [vmem:[%s8079_s14] sm:$0xff]  ;;  %vm687_vm1 = vcmask 523264   ;;  %v671_v17 = vld [vmem:[%s8079_s14 + $0x10] sm:$0xff]  ;;  %v670_v18 = vld [vmem:[%s8079_s14 + $0x8] sm:$0xff]  ;;  %s8123_s5 = sld [smem:[#allocation36_spill]]  ;;  %s8125_s29 = sld [smem:[#allocation37_spill]] }
  0x24   : > { %v688_v19 = vsel %vm687_vm1, %v669_v16, 0.0  ;;  %v694_v20 = vsel %vm687_vm1, %v671_v17, 0.0  ;;  %v672_v21 = vld [vmem:[%s8079_s14 + $0x18] sm:$0xff]  ;;  %v691_v22 = vsel %vm687_vm1, %v670_v18, 0.0  ;;  %v673_v24 = vld [vmem:[%s8079_s14 + $0x20] sm:$0xff]  ;;  %v674_v25 = vld [vmem:[%s8079_s14 + $0x28] sm:$0xff] }
  0x25   : > { %689 = vadd.xlane.f32.xlu0 %v688_v19  ;;  %695 = vadd.xlane.f32.xlu1 %v694_v20  ;;  %v697_v23 = vsel %vm687_vm1, %v672_v21, 0.0  ;;  %v6166_v26 = vld [vmem:[%s8079_s14 + $0x30] sm:$0xff]  ;;  %v6171_v27 = vld [vmem:[%s8079_s14 + $0x38] sm:$0xff]  ;;  %v700_v28 = vsel %vm687_vm1, %v673_v24, 0.0  ;;  %v703_v29 = vsel %vm687_vm1, %v674_v25, 0.0  ;;  %v6178_v30 = vld [vmem:[%s8079_s14 + $0x40] sm:$0xff] }
  0x26   : > { %v6183_v31 = vld [vmem:[%s8079_s14 + $0x48] sm:$0xff]  ;;  %v706_v32 = vsel %vm687_vm1, %v6166_v26, 0.0  ;;  %v709_v33 = vsel %vm687_vm1, %v6171_v27, 0.0  ;;  %v712_v34 = vsel %vm687_vm1, %v6178_v30, 0.0  ;;  %v6196_v36 = vld [vmem:[%s8079_s14 + $0x50] sm:$0xff]  ;;  %v6201_v37 = vld [vmem:[%s8079_s14 + $0x58] sm:$0xff] }
  0x27   : > { %v715_v35 = vsel %vm687_vm1, %v6183_v31, 0.0  ;;  %v718_v38 = vsel %vm687_vm1, %v6196_v36, 0.0  ;;  %v721_v39 = vsel %vm687_vm1, %v6201_v37, 0.0  ;;  %v6210_v40 = vld [vmem:[%s8079_s14 + $0x60] sm:$0xff]  ;;  %v6215_v41 = vld [vmem:[%s8079_s14 + $0x68] sm:$0xff]  ;;  %v6224_v44 = vld [vmem:[%s8079_s14 + $0x70] sm:$0xff] }
  0x28   : > { %v724_v42 = vsel %vm687_vm1, %v6210_v40, 0.0  ;;  %v727_v43 = vsel %vm687_vm1, %v6215_v41, 0.0  ;;  %v6229_v45 = vld [vmem:[%s8079_s14 + $0x78] sm:$0xff]  ;;  %v730_v46 = vsel %vm687_vm1, %v6224_v44, 0.0  ;;  %s8127_s2 = sld [smem:[#allocation3_spill]]  ;;  %vm1195_vm2 = vcmask 130048  }
  0x29   : > { %692 = vadd.xlane.f32.xlu0 %v691_v22  ;;  %698 = vadd.xlane.f32.xlu1 %v697_v23  ;;  %v733_v47 = vsel %vm687_vm1, %v6229_v45, 0.0  ;;  %s8124_s28 = scalar_lea.vmem %s8123_s5, %s5970_s15  ;;  %s8126_s22 = scalar_lea.vmem %s8125_s29, %s5970_s15 }
  0x2a   : > { %s5880_s30 = smov 64   ;;  %s5881_s17 = smov 48  }
  0x2b   : > { %s5882_s3 = smov 112   ;;  %s5883_s21 = smov 32  }
  0x2c   : > { %s5885_s25 = smov 16   ;;  %s8144_s1 = sld [smem:[#allocation35_spill]] }
  0x2d   : > { %701 = vadd.xlane.f32.xlu0 %v700_v28  ;;  %704 = vadd.xlane.f32.xlu1 %v703_v29  ;;  %s5886_s23 = smov 80  }
  0x31   : > { %707 = vadd.xlane.f32.xlu0 %v706_v32  ;;  %710 = vadd.xlane.f32.xlu1 %v709_v33 }
  0x35   : > { %713 = vadd.xlane.f32.xlu0 %v712_v34  ;;  %716 = vadd.xlane.f32.xlu1 %v715_v35 }
  0x39   : > { %719 = vadd.xlane.f32.xlu0 %v718_v38  ;;  %722 = vadd.xlane.f32.xlu1 %v721_v39 }
  0x3d   : > { %725 = vadd.xlane.f32.xlu0 %v724_v42  ;;  %728 = vadd.xlane.f32.xlu1 %v727_v43 }
  0x41   : > { %731 = vadd.xlane.f32.xlu0 %v730_v46  ;;  %734 = vadd.xlane.f32.xlu1 %v733_v47 }
  0xb2   : > { %v690_v48 = vpop.xlane.xlu0 %689  ;;  %v696_v49 = vpop.xlane.xlu1 %695 }
  0xb3   : > { %v737_v50 = vmul.f32 0.015625, %v690_v48  ;;  %v739_v51 = vmul.f32 0.015625, %v696_v49 }
  0xb5   : > { %v6235_v52 = vsub.f32 %v669_v16, %v737_v50  ;;  %v6237_v53 = vsub.f32 %v671_v17, %v739_v51 }
  0xb6   : > { %v693_v54 = vpop.xlane.xlu0 %692  ;;  %v699_v55 = vpop.xlane.xlu1 %698 }
  0xb7   : > { %v738_v56 = vmul.f32 0.015625, %v693_v54  ;;  %v740_v57 = vmul.f32 0.015625, %v699_v55  ;;  %v769_v58 = vmul.f32 %v6235_v52, %v6235_v52  ;;  %v771_v59 = vmul.f32 %v6237_v53, %v6237_v53 }
  0xb9   : > { %v6243_v60 = vsub.f32 %v670_v18, %v738_v56  ;;  %v6245_v61 = vsub.f32 %v672_v21, %v740_v57  ;;  %v785_v62 = vsel %vm687_vm1, %v769_v58, 0.0  ;;  %v791_v1 = vsel %vm687_vm1, %v771_v59, 0.0 }
  0xba   : > { %786 = vadd.xlane.f32.xlu0 %v785_v62  ;;  %v702_v63 = vpop.xlane.xlu0 %701  ;;  %v705_v0 = vpop.xlane.xlu1 %704 }
  0xbb   : > { %v741_v2 = vmul.f32 0.015625, %v702_v63  ;;  %v742_v3 = vmul.f32 0.015625, %v705_v0  ;;  %v770_v4 = vmul.f32 %v6243_v60, %v6243_v60  ;;  %v772_v5 = vmul.f32 %v6245_v61, %v6245_v61 }
  0xbd   : > { %v6253_v6 = vsub.f32 %v673_v24, %v741_v2  ;;  %v6255_v7 = vsub.f32 %v674_v25, %v742_v3  ;;  %v788_v8 = vsel %vm687_vm1, %v770_v4, 0.0  ;;  %v794_v11 = vsel %vm687_vm1, %v772_v5, 0.0  ;;  %v5436_v4 = vld [vmem:[%s5985_s26] ss:$8 sps:$4 sm:$0xff]   ;;  %v5437_v5 = vld [vmem:[%s5985_s26 + $0x14] ss:$8 sps:$4 sm:$0xff]  }
  0xbe   : > { %792 = vadd.xlane.f32.xlu0 %v791_v1  ;;  %789 = vadd.xlane.f32.xlu1 %v788_v8  ;;  %v708_v9 = vpop.xlane.xlu0 %707  ;;  %v711_v10 = vpop.xlane.xlu1 %710  ;;  %v5434_v1 = vld [vmem:[%s5985_s26 + $0x4] ss:$8 sps:$4 sm:$0xff]  }
  0xbf   : > { %v743_v12 = vmul.f32 0.015625, %v708_v9  ;;  %v744_v13 = vmul.f32 0.015625, %v711_v10  ;;  %v773_v14 = vmul.f32 %v6253_v6, %v6253_v6  ;;  %v774_v15 = vmul.f32 %v6255_v7, %v6255_v7  ;;  %1033 = vmatprep.subr.bf16.mxu0 %v5434_v1  ;;  %v5439_v9 = vld [vmem:[%s5985_s26 + $0x10] ss:$8 sps:$4 sm:$0xff]   ;;  %v5440_v10 = vld [vmem:[%s5985_s26 + $0x24] ss:$8 sps:$4 sm:$0xff]  }
  0xc0   : > { %1034 = vmatpush1.bf16.msra.mxu0 %v5436_v4 }
  0xc1   : > { %v6264_v16 = vsub.f32 %v6166_v26, %v743_v12  ;;  %v6267_v17 = vsub.f32 %v6171_v27, %v744_v13  ;;  %v797_v18 = vsel %vm687_vm1, %v773_v14, 0.0  ;;  %v800_v21 = vsel %vm687_vm1, %v774_v15, 0.0  ;;  %1035 = vmatprep.subr.bf16.mxu0 %v5437_v5  ;;  %v5443_v12 = vld [vmem:[%s5985_s26 + $0x34] ss:$8 sps:$4 sm:$0xff]   ;;  %v5445_v13 = vld [vmem:[%s5985_s26 + $0x30] ss:$8 sps:$4 sm:$0xff]  }
  0xc2   : > { %795 = vadd.xlane.f32.xlu1 %v794_v11  ;;  %798 = vadd.xlane.f32.xlu0 %v797_v18  ;;  %v714_v19 = vpop.xlane.xlu0 %713  ;;  %v717_v20 = vpop.xlane.xlu1 %716  ;;  %v5442_v11 = vld [vmem:[%s5985_s26 + $0x20] ss:$8 sps:$4 sm:$0xff]   ;;  %v8084_v14 = vmov 0   ;;  %s5884_s26 = smov 96  }
  0xc3   : > { %v745_v22 = vmul.f32 0.015625, %v714_v19  ;;  %v746_v23 = vmul.f32 0.015625, %v717_v20  ;;  %v775_v24 = vmul.f32 %v6264_v16, %v6264_v16  ;;  %v776_v25 = vmul.f32 %v6267_v17, %v6267_v17  ;;  %1065 = vmatprep.mubr.bf16.mxu0 %v8084_v14 }
  0xc4   : > { %1036 = vmatpush1.bf16.msra.mxu0 %v5439_v9 }
  0xc5   : > { %v6276_v26 = vsub.f32 %v6178_v30, %v745_v22  ;;  %v6279_v27 = vsub.f32 %v6183_v31, %v746_v23  ;;  %v803_v28 = vsel %vm687_vm1, %v775_v24, 0.0  ;;  %v806_v33 = vsel %vm687_vm1, %v776_v25, 0.0  ;;  %1037 = vmatprep.subr.bf16.mxu0 %v5440_v10 }
  0xc6   : > { %801 = vadd.xlane.f32.xlu1 %v800_v21  ;;  %804 = vadd.xlane.f32.xlu0 %v803_v28  ;;  %v720_v29 = vpop.xlane.xlu0 %719  ;;  %v723_v32 = vpop.xlane.xlu1 %722 }
  0xc7   : > { %v747_v34 = vmul.f32 0.015625, %v720_v29  ;;  %v748_v35 = vmul.f32 0.015625, %v723_v32  ;;  %v777_v38 = vmul.f32 %v6276_v26, %v6276_v26  ;;  %v778_v30 = vmul.f32 %v6279_v27, %v6279_v27 }
  0xc8   : > { %1038 = vmatpush1.bf16.msra.mxu0 %v5442_v11 }
  0xc9   : > { %v6288_v39 = vsub.f32 %v6196_v36, %v747_v34  ;;  %v6291_v31 = vsub.f32 %v6201_v37, %v748_v35  ;;  %v809_v42 = vsel %vm687_vm1, %v777_v38, 0.0  ;;  %v812_v47 = vsel %vm687_vm1, %v778_v30, 0.0  ;;  %1039 = vmatprep.subr.bf16.mxu0 %v5443_v12 }
  0xca   : > { %807 = vadd.xlane.f32.xlu1 %v806_v33  ;;  %810 = vadd.xlane.f32.xlu0 %v809_v42  ;;  %v726_v43 = vpop.xlane.xlu0 %725  ;;  %v729_v46 = vpop.xlane.xlu1 %728 }
  0xcb   : > { %v749_v48 = vmul.f32 0.015625, %v726_v43  ;;  %v750_v49 = vmul.f32 0.015625, %v729_v46  ;;  %v779_v50 = vmul.f32 %v6288_v39, %v6288_v39  ;;  %v780_v36 = vmul.f32 %v6291_v31, %v6291_v31 }
  0xcc   : > { %1040 = vmatpush1.bf16.msra.mxu0 %v5445_v13 }
  0xcd   : > { %v6300_v51 = vsub.f32 %v6210_v40, %v749_v48  ;;  %v6303_v37 = vsub.f32 %v6215_v41, %v750_v49  ;;  %v815_v54 = vsel %vm687_vm1, %v779_v50, 0.0  ;;  %v818_v57 = vsel %vm687_vm1, %v780_v36, 0.0  ;;  %v6340_v50 = vld [vmem:[%s8124_s28] ss:$0 sm:$0xff] }
  0xce   : > { %813 = vadd.xlane.f32.xlu1 %v812_v47  ;;  %816 = vadd.xlane.f32.xlu0 %v815_v54  ;;  %v732_v55 = vpop.xlane.xlu0 %731  ;;  %v735_v56 = vpop.xlane.xlu1 %734 }
  0xcf   : > { %v751_v58 = vmul.f32 0.015625, %v732_v55  ;;  %v752_v59 = vmul.f32 0.015625, %v735_v56  ;;  %v781_v62 = vmul.f32 %v6300_v51, %v6300_v51  ;;  %v782_v40 = vmul.f32 %v6303_v37, %v6303_v37 }
  0xd1   : > { %v6312_v41 = vsub.f32 %v6224_v44, %v751_v58  ;;  %v6315_v63 = vsub.f32 %v6229_v45, %v752_v59  ;;  %v821_v0 = vsel %vm687_vm1, %v781_v62, 0.0  ;;  %v824_v2 = vsel %vm687_vm1, %v782_v40, 0.0 }
  0xd2   : > { %819 = vadd.xlane.f32.xlu1 %v818_v57  ;;  %822 = vadd.xlane.f32.xlu0 %v821_v0 }
  0xd3   : > { %v783_v3 = vmul.f32 %v6312_v41, %v6312_v41  ;;  %v784_v44 = vmul.f32 %v6315_v63, %v6315_v63 }
  0xd5   : > { %v827_v45 = vsel %vm687_vm1, %v783_v3, 0.0  ;;  %v830_v8 = vsel %vm687_vm1, %v784_v44, 0.0 }
  0xd6   : > { %825 = vadd.xlane.f32.xlu1 %v824_v2  ;;  %828 = vadd.xlane.f32.xlu0 %v827_v45 }
  0xda   : > { %831 = vadd.xlane.f32.xlu1 %v830_v8 }
 0x147   : > { %v787_v15 = vpop.xlane.xlu0 %786 }
 0x148   : > { %v833_v18 = vmul.f32 0.015625, %v787_v15 }
 0x14a   : > { %v849_v19 = vadd.f32 1e-05, %v833_v18 }
 0x14b   : > { %v790_v20 = vpop.xlane.xlu1 %789  ;;  %v793_v21 = vpop.xlane.xlu0 %792 }
 0x14c   : > { %5470 = vrsqrt.f32 %v849_v19  ;;  %v834_v22 = vmul.f32 0.015625, %v790_v20  ;;  %v835_v23 = vmul.f32 0.015625, %v793_v21 }
 0x14e   : > { %v850_v24 = vadd.f32 1e-05, %v834_v22  ;;  %v851_v25 = vadd.f32 1e-05, %v835_v23 }
 0x14f   : > { %v796_v28 = vpop.xlane.xlu1 %795  ;;  %v799_v29 = vpop.xlane.xlu0 %798 }
 0x150   : > { %5472 = vrsqrt.f32 %v850_v24  ;;  %v836_v32 = vmul.f32 0.015625, %v796_v28  ;;  %v837_v34 = vmul.f32 0.015625, %v799_v29 }
 0x151   : > { %5474 = vrsqrt.f32 %v851_v25 }
 0x152   : > { %v852_v33 = vadd.f32 1e-05, %v836_v32  ;;  %v853_v42 = vadd.f32 1e-05, %v837_v34 }
 0x153   : > { %v802_v35 = vpop.xlane.xlu1 %801  ;;  %v805_v46 = vpop.xlane.xlu0 %804 }
 0x154   : > { %5476 = vrsqrt.f32 %v852_v33  ;;  %v838_v38 = vmul.f32 0.015625, %v802_v35  ;;  %v839_v54 = vmul.f32 0.015625, %v805_v46 }
 0x156   : > { %v5471_v30 = vpop.eup %5470  ;;  %v854_v43 = vadd.f32 1e-05, %v838_v38  ;;  %v855_v0 = vadd.f32 1e-05, %v839_v54 }
 0x157   : > { %v808_v47 = vpop.xlane.xlu1 %807  ;;  %v881_v48 = vmul.f32 %v5471_v30, %v6235_v52  ;;  %v6349_v52 = vld [vmem:[%s8126_s22] ss:$0 sm:$0xff]  ;;  %v811_v1 = vpop.xlane.xlu0 %810 }
 0x158   : > { %5478 = vrsqrt.f32 %v854_v43  ;;  %v840_v49 = vmul.f32 0.015625, %v808_v47  ;;  %v841_v9 = vmul.f32 0.015625, %v811_v1 }
 0x159   : > { %5480 = vrsqrt.f32 %v853_v42  ;;  %v903_v56 = vmul.f32 %v6340_v50, %v881_v48 }
 0x15a   : > { %v5473_v36 = vpop.eup %5472  ;;  %v856_v58 = vadd.f32 1e-05, %v840_v49  ;;  %v857_v15 = vadd.f32 1e-05, %v841_v9 }
 0x15b   : > { %v882_v55 = vmul.f32 %v5473_v36, %v6243_v60  ;;  %v5475_v57 = vpop.eup %5474  ;;  %v814_v59 = vpop.xlane.xlu1 %813  ;;  %v925_v2 = vadd.f32 %v6349_v52, %v903_v56 }
 0x15c   : > { %v883_v3 = vmul.f32 %v5475_v57, %v6237_v53  ;;  %5482 = vrsqrt.f32 %v856_v58  ;;  %v842_v4 = vmul.f32 0.015625, %v814_v59  ;;  %v817_v18 = vpop.xlane.xlu0 %816 }
 0x15d   : > { %v904_v62 = vmul.f32 %v6340_v50, %v882_v55  ;;  %5484 = vrsqrt.f32 %v855_v0  ;;  %v843_v25 = vmul.f32 0.015625, %v817_v18 }
 0x15e   : > { %v5477_v40 = vpop.eup %5476  ;;  %v905_v10 = vmul.f32 %v6340_v50, %v883_v3  ;;  %v858_v12 = vadd.f32 1e-05, %v842_v4 }
 0x15f   : > { %v926_v60 = vadd.f32 %v6349_v52, %v904_v62  ;;  %v884_v44 = vmul.f32 %v5477_v40, %v6245_v61  ;;  %v820_v13 = vpop.xlane.xlu1 %819  ;;  %v859_v34 = vadd.f32 1e-05, %v843_v25 }
 0x160   : > { %v927_v19 = vadd.f32 %v6349_v52, %v905_v10  ;;  %5486 = vrsqrt.f32 %v858_v12  ;;  %v844_v21 = vmul.f32 0.015625, %v820_v13  ;;  %v823_v35 = vpop.xlane.xlu0 %822 }
 0x161   : > { %v941_v45 = vpack.c.bf16 %v926_v60, %v925_v2  ;;  %v906_v5 = vmul.f32 %v6340_v50, %v884_v44  ;;  %5488 = vrsqrt.f32 %v857_v15  ;;  %v845_v48 = vmul.f32 0.015625, %v823_v35 }
 0x162   : > { %v5479_v8 = vpop.eup %5478 }
 0x163   : > { %4655 = vmatmul.mubr.msk.bf16.vlgmr.msra.gmra.mrb[0].mxu0 %vm687_vm1, %v941_v45  ;;  %v5481_v11 = vpop.eup %5480  ;;  %v928_v53 = vadd.f32 %v6349_v52, %v906_v5  ;;  %v886_v61 = vmul.f32 %v5479_v8, %v6255_v7  ;;  %v860_v7 = vadd.f32 1e-05, %v844_v21  ;;  %v826_v32 = vpop.xlane.xlu1 %825  ;;  %v861_v56 = vadd.f32 1e-05, %v845_v48 }
 0x164   : > { %1075 = vmatprep.mubr.bf16.mxu0 %v8084_v14  ;;  %v885_v20 = vmul.f32 %v5481_v11, %v6253_v6  ;;  %v846_v42 = vmul.f32 0.015625, %v826_v32  ;;  %v829_v57 = vpop.xlane.xlu0 %828 }
 0x165   : > { %v942_v22 = vpack.c.bf16 %v928_v53, %v927_v19  ;;  %v908_v23 = vmul.f32 %v6340_v50, %v886_v61  ;;  %5490 = vrsqrt.f32 %v860_v7  ;;  %v847_v2 = vmul.f32 0.015625, %v829_v57 }
 0x166   : > { %v5483_v24 = vpop.eup %5482  ;;  %v907_v28 = vmul.f32 %v6340_v50, %v885_v20  ;;  %5492 = vrsqrt.f32 %v859_v34 }
 0x167   : > { %v5485_v29 = vpop.eup %5484  ;;  %v930_v33 = vadd.f32 %v6349_v52, %v908_v23  ;;  %v888_v6 = vmul.f32 %v5483_v24, %v6267_v17  ;;  %v862_v17 = vadd.f32 1e-05, %v846_v42  ;;  %v832_v54 = vpop.xlane.xlu1 %831  ;;  %v863_v4 = vadd.f32 1e-05, %v847_v2 }
 0x168   : > { %v929_v38 = vadd.f32 %v6349_v52, %v907_v28  ;;  %v887_v30 = vmul.f32 %v5485_v29, %v6264_v16  ;;  %v848_v62 = vmul.f32 0.015625, %v832_v54 }
 0x169   : > { %v910_v46 = vmul.f32 %v6340_v50, %v888_v6  ;;  %5494 = vrsqrt.f32 %v862_v17 }
 0x16a   : > { %v943_v43 = vpack.c.bf16 %v930_v33, %v929_v38  ;;  %v5487_v47 = vpop.eup %5486  ;;  %v909_v49 = vmul.f32 %v6340_v50, %v887_v30  ;;  %5496 = vrsqrt.f32 %v861_v56  ;;  %v957_v33 = vld [vmem:[%s8127_s2] sm:$0x3] }
 0x16b   : > { %4656 = vmatmul.mubr.msk.bf16.gmra.mrb[4].mxu0 %vm687_vm1, %v942_v22  ;;  %v5489_v36 = vpop.eup %5488  ;;  %v932_v55 = vadd.f32 %v6349_v52, %v910_v46  ;;  %v890_v16 = vmul.f32 %v5487_v47, %v6279_v27  ;;  %v864_v27 = vadd.f32 1e-05, %v848_v62 }
 0x16c   : > { %1085 = vmatprep.mubr.bf16.mxu0 %v8084_v14  ;;  %v931_v58 = vadd.f32 %v6349_v52, %v909_v49  ;;  %v889_v59 = vmul.f32 %v5489_v36, %v6276_v26 }
 0x16d   : > { %v912_v0 = vmul.f32 %v6340_v50, %v890_v16  ;;  %5498 = vrsqrt.f32 %v864_v27 }
 0x16e   : > { %v944_v40 = vpack.c.bf16 %v932_v55, %v931_v58  ;;  %v911_v60 = vmul.f32 %v6340_v50, %v889_v59  ;;  %5500 = vrsqrt.f32 %v863_v4 }
 0x16f   : > { %v5491_v1 = vpop.eup %5490  ;;  %v934_v44 = vadd.f32 %v6349_v52, %v912_v0 }
 0x170   : > { %v5493_v3 = vpop.eup %5492  ;;  %v892_v26 = vmul.f32 %v5491_v1, %v6291_v31  ;;  %v933_v45 = vadd.f32 %v6349_v52, %v911_v60 }
 0x171   : > { %v891_v5 = vmul.f32 %v5493_v3, %v6288_v39 }
 0x172   : > { %v945_v8 = vpack.c.bf16 %v934_v44, %v933_v45  ;;  %v914_v9 = vmul.f32 %v6340_v50, %v892_v26 }
 0x173   : > { %4657 = vmatmul.mubr.msk.bf16.gmra.mrb[8].mxu0 %vm687_vm1, %v943_v43  ;;  %v5495_v10 = vpop.eup %5494  ;;  %v913_v11 = vmul.f32 %v6340_v50, %v891_v5 }
 0x174   : > { %1095 = vmatprep.mubr.bf16.mxu0 %v8084_v14  ;;  %v5497_v12 = vpop.eup %5496  ;;  %v936_v31 = vadd.f32 %v6349_v52, %v914_v9  ;;  %v894_v13 = vmul.f32 %v5495_v10, %v6303_v37 }
 0x175   : > { %v935_v53 = vadd.f32 %v6349_v52, %v913_v11  ;;  %v893_v39 = vmul.f32 %v5497_v12, %v6300_v51 }
 0x176   : > { %v916_v15 = vmul.f32 %v6340_v50, %v894_v13 }
 0x177   : > { %v946_v61 = vpack.c.bf16 %v936_v31, %v935_v53  ;;  %v5499_v18 = vpop.eup %5498  ;;  %v915_v19 = vmul.f32 %v6340_v50, %v893_v39 }
 0x178   : > { %v5501_v20 = vpop.eup %5500  ;;  %v938_v21 = vadd.f32 %v6349_v52, %v916_v15  ;;  %v896_v37 = vmul.f32 %v5499_v18, %v6315_v63  ;;  %v959_v63 = vlaneseq }
 0x179   : > { %v937_v22 = vadd.f32 %v6349_v52, %v915_v19  ;;  %v895_v51 = vmul.f32 %v5501_v20, %v6312_v41 }
 0x17a   : > { %v918_v24 = vmul.f32 %v6340_v50, %v896_v37  ;;  %v6411_v32 = vshrl.u32 %v959_v63, 7 }
 0x17b   : > { %4658 = vmatmul.mubr.msk.bf16.gmra.mrb[12].mxu0 %vm687_vm1, %v944_v40  ;;  %v947_v23 = vpack.c.bf16 %v938_v21, %v937_v22  ;;  %v917_v25 = vmul.f32 %v6340_v50, %v895_v51 }
 0x17c   : > { %1105 = vmatprep.mubr.bf16.mxu0 %v8084_v14  ;;  %v940_v28 = vadd.f32 %v6349_v52, %v918_v24  ;;  %8128 = vst [vmem:[#allocation4_spill] sm:$0xff] %v6411_v32  ;;  %v8083_v41 = vsub.s32 0, %v6411_v32  ;;  %v8082_v6 = vsub.s32 1, %v6411_v32 }
 0x17d   : > { %v939_v29 = vadd.f32 %v6349_v52, %v917_v25 }
 0x17e   : > { %v6418_v50 = vrot.slane %v957_v33, %v8083_v41  ;;  %v6422_v35 = vrot.slane %v957_v33, %v8082_v6 }
 0x17f   : > { %v948_v7 = vpack.c.bf16 %v940_v28, %v939_v29 }
 0x183   : > { %4659 = vmatmul.mubr.msk.bf16.gmra.mrb[16].mxu0 %vm687_vm1, %v945_v8 }
 0x184   : > { %1115 = vmatprep.mubr.bf16.mxu0 %v8084_v14 }
 0x18b   : > { %4660 = vmatmul.mubr.msk.bf16.gmra.mrb[20].mxu0 %vm687_vm1, %v946_v61 }
 0x18c   : > { %1125 = vmatprep.mubr.bf16.mxu0 %v8084_v14 }
 0x193   : > { %4661 = vmatmul.mubr.msk.bf16.gmra.mrb[24].mxu0 %vm687_vm1, %v947_v23 }
 0x194   : > { %1135 = vmatprep.mubr.bf16.mxu0 %v8084_v14 }
 0x19b   : > { %4662 = vmatmul.mubr.msk.bf16.gmra.mrb[28].mxu0 %vm687_vm1, %v948_v7 }
 0x236   : > { %v1067_v34 = vpop.f32.mrb[0].mxu0 }
 0x237   : > { %v1069_v52 = vpop.f32.mrb[1].mxu0  ;;  %v1068_v30 = vadd.f32 %v1067_v34, %v6418_v50 }
 0x238   : > { %v1071_v38 = vpop.f32.mrb[2].mxu0  ;;  %v1070_v46 = vadd.f32 %v1069_v52, %v6422_v35 }
 0x239   : > { %v1072_v42 = vadd.f32 %v1071_v38, %v6418_v50  ;;  %v1073_v43 = vpop.f32.mrb[3].mxu0 }
 0x23a   : > { %v1074_v47 = vadd.f32 %v1073_v43, %v6422_v35 }
 0x23b   : > { %v6428_v48 = vpack.c.bf16 %v1072_v42, %v1068_v30 }
 0x23c   : > { %v6430_v49 = vpack.c.bf16 %v1074_v47, %v1070_v46 }
 0x23d   : > { %1179 = vrot.lane.b32.xlu0 %v6428_v48, %s5880_s30  ;;  %4978 = vmatprep.mubr.msk.bf16.mxu1 %vm1195_vm2, %v6428_v48 }
 0x23e   : > { %8129 = vst [vmem:[#allocation5_spill] sm:$0xff] %v6430_v49  ;;  %v1077_v36 = vpop.f32.mrb[4].mxu0  ;;  %4994 = vmatprep.subr.bf16.mxu0 %v6430_v49 }
 0x23f   : > { %v1079_v17 = vpop.f32.mrb[5].mxu0  ;;  %4995 = vmatpush3.bf16.msra.mxu0 %v6430_v49  ;;  %v1078_v55 = vadd.f32 %v1077_v36, %v6418_v50 }
 0x240   : > { %v1081_v54 = vpop.f32.mrb[6].mxu0  ;;  %v1080_v57 = vadd.f32 %v1079_v17, %v6422_v35 }
 0x241   : > { %v1082_v16 = vadd.f32 %v1081_v54, %v6418_v50  ;;  %v1083_v56 = vpop.f32.mrb[7].mxu0 }
 0x242   : > { %v1084_v58 = vadd.f32 %v1083_v56, %v6422_v35 }
 0x243   : > { %v6442_v59 = vpack.c.bf16 %v1082_v16, %v1078_v55 }
 0x244   : > { %v6444_v62 = vpack.c.bf16 %v1084_v58, %v1080_v57 }
 0x245   : > { %1181 = vrot.lane.b32.xlu1 %v6442_v59, %s5880_s30 }
 0x246   : > { %8130 = vst [vmem:[#allocation6_spill] sm:$0xff] %v6444_v62  ;;  %v1087_v40 = vpop.f32.mrb[8].mxu0  ;;  %4996 = vmatprep.subr.bf16.mxu0 %v6444_v62 }
 0x247   : > { %v1089_v0 = vpop.f32.mrb[9].mxu0  ;;  %4997 = vmatpush3.bf16.msra.mxu0 %v6444_v62  ;;  %v1088_v2 = vadd.f32 %v1087_v40, %v6418_v50 }
 0x248   : > { %v1091_v1 = vpop.f32.mrb[10].mxu0  ;;  %v1090_v27 = vadd.f32 %v1089_v0, %v6422_v35 }
 0x249   : > { %v1092_v60 = vadd.f32 %v1091_v1, %v6418_v50  ;;  %v1093_v3 = vpop.f32.mrb[11].mxu0 }
 0x24a   : > { %v1094_v44 = vadd.f32 %v1093_v3, %v6422_v35 }
 0x24b   : > { %v6454_v26 = vpack.c.bf16 %v1092_v60, %v1088_v2 }
 0x24c   : > { %v6456_v4 = vpack.c.bf16 %v1094_v44, %v1090_v27 }
 0x24d   : > { %1183 = vrot.lane.b32.xlu1 %v6454_v26, %s5880_s30 }
 0x24e   : > { %8131 = vst [vmem:[#allocation7_spill] sm:$0xff] %v6456_v4  ;;  %v1097_v45 = vpop.f32.mrb[12].mxu0  ;;  %4998 = vmatprep.subr.bf16.mxu0 %v6456_v4 }
 0x24f   : > { %v1099_v5 = vpop.f32.mrb[13].mxu0  ;;  %4999 = vmatpush3.bf16.msra.mxu0 %v6456_v4  ;;  %v1098_v9 = vadd.f32 %v1097_v45, %v6418_v50 }
 0x250   : > { %v1101_v8 = vpop.f32.mrb[14].mxu0  ;;  %v1100_v12 = vadd.f32 %v1099_v5, %v6422_v35 }
 0x251   : > { %v1102_v10 = vadd.f32 %v1101_v8, %v6418_v50  ;;  %v1103_v11 = vpop.f32.mrb[15].mxu0 }
 0x252   : > { %v1104_v31 = vadd.f32 %v1103_v11, %v6422_v35 }
 0x253   : > { %v6466_v13 = vpack.c.bf16 %v1102_v10, %v1098_v9 }
 0x254   : > { %v6468_v53 = vpack.c.bf16 %v1104_v31, %v1100_v12 }
 0x255   : > { %1185 = vrot.lane.b32.xlu1 %v6466_v13, %s5880_s30 }
 0x256   : > { %8132 = vst [vmem:[#allocation8_spill] sm:$0xff] %v6468_v53  ;;  %v1107_v39 = vpop.f32.mrb[16].mxu0  ;;  %5000 = vmatprep.subr.bf16.mxu0 %v6468_v53 }
 0x257   : > { %v1109_v61 = vpop.f32.mrb[17].mxu0  ;;  %5001 = vmatpush3.bf16.msra.mxu0 %v6468_v53  ;;  %v1108_v18 = vadd.f32 %v1107_v39, %v6418_v50 }
 0x258   : > { %v1111_v15 = vpop.f32.mrb[18].mxu0  ;;  %v1110_v21 = vadd.f32 %v1109_v61, %v6422_v35 }
 0x259   : > { %v1112_v19 = vadd.f32 %v1111_v15, %v6418_v50  ;;  %v1113_v20 = vpop.f32.mrb[19].mxu0 }
 0x25a   : > { %v1114_v37 = vadd.f32 %v1113_v20, %v6422_v35 }
 0x25b   : > { %v6478_v22 = vpack.c.bf16 %v1112_v19, %v1108_v18 }
 0x25c   : > { %v6480_v51 = vpack.c.bf16 %v1114_v37, %v1110_v21 }
 0x25d   : > { %8133 = vst [vmem:[#allocation9_spill] sm:$0xff] %v6478_v22  ;;  %1187 = vrot.lane.b32.xlu0 %v6478_v22, %s5880_s30 }
 0x25e   : > { %8134 = vst [vmem:[#allocation10_spill] sm:$0xff] %v6480_v51  ;;  %v1117_v23 = vpop.f32.mrb[20].mxu0  ;;  %5002 = vmatprep.subr.bf16.mxu0 %v6480_v51 }
 0x25f   : > { %v1119_v24 = vpop.f32.mrb[21].mxu0  ;;  %5003 = vmatpush3.bf16.msra.mxu0 %v6480_v51  ;;  %v1118_v28 = vadd.f32 %v1117_v23, %v6418_v50 }
 0x260   : > { %v1121_v25 = vpop.f32.mrb[22].mxu0  ;;  %v1120_v63 = vadd.f32 %v1119_v24, %v6422_v35 }
 0x261   : > { %v1122_v29 = vadd.f32 %v1121_v25, %v6418_v50  ;;  %v1123_v7 = vpop.f32.mrb[23].mxu0 }
 0x262   : > { %v1124_v33 = vadd.f32 %v1123_v7, %v6422_v35 }
 0x263   : > { %v6490_v34 = vpack.c.bf16 %v1122_v29, %v1118_v28 }
 0x264   : > { %v6492_v52 = vpack.c.bf16 %v1124_v33, %v1120_v63 }
 0x265   : > { %1189 = vrot.lane.b32.xlu1 %v6490_v34, %s5880_s30 }
 0x266   : > { %8135 = vst [vmem:[#allocation11_spill] sm:$0xff] %v6492_v52  ;;  %v1127_v38 = vpop.f32.mrb[24].mxu0  ;;  %5004 = vmatprep.subr.bf16.mxu0 %v6492_v52 }
 0x267   : > { %v1129_v30 = vpop.f32.mrb[25].mxu0  ;;  %5005 = vmatpush3.bf16.msra.mxu0 %v6492_v52  ;;  %v1128_v43 = vadd.f32 %v1127_v38, %v6418_v50 }
 0x268   : > { %v1131_v42 = vpop.f32.mrb[26].mxu0  ;;  %v1130_v36 = vadd.f32 %v1129_v30, %v6422_v35 }
 0x269   : > { %v1132_v46 = vadd.f32 %v1131_v42, %v6418_v50  ;;  %v1133_v47 = vpop.f32.mrb[27].mxu0 }
 0x26a   : > { %v1134_v17 = vadd.f32 %v1133_v47, %v6422_v35 }
 0x26b   : > { %v6502_v54 = vpack.c.bf16 %v1132_v46, %v1128_v43 }
 0x26c   : > { %v6504_v55 = vpack.c.bf16 %v1134_v17, %v1130_v36 }
 0x26d   : > { %1191 = vrot.lane.b32.xlu0 %v6502_v54, %s5880_s30 }
 0x26e   : > { %8136 = vst [vmem:[#allocation12_spill] sm:$0xff] %v6504_v55  ;;  %v1137_v16 = vpop.f32.mrb[28].mxu0  ;;  %5006 = vmatprep.subr.bf16.mxu0 %v6504_v55 }
 0x26f   : > { %v1139_v56 = vpop.f32.mrb[29].mxu0  ;;  %5007 = vmatpush3.bf16.msra.mxu0 %v6504_v55  ;;  %v1138_v58 = vadd.f32 %v1137_v16, %v6418_v50 }
 0x270   : > { %v1141_v57 = vpop.f32.mrb[30].mxu0  ;;  %v1140_v1 = vadd.f32 %v1139_v56, %v6422_v35 }
 0x271   : > { %v1142_v40 = vadd.f32 %v1141_v57, %v6418_v50  ;;  %1652 = vrot.lane.b32.xlu0 %v6428_v48, %s5881_s17  ;;  %v1143_v0 = vpop.f32.mrb[31].mxu0 }
 0x272   : > { %v1144_v2 = vadd.f32 %v1143_v0, %v6422_v35 }
 0x273   : > { %v6515_v60 = vpack.c.bf16 %v1142_v40, %v1138_v58 }
 0x274   : > { %v6517_v3 = vpack.c.bf16 %v1144_v2, %v1140_v1 }
 0x275   : > { %1656 = vrot.lane.b32.xlu0 %v6454_v26, %s5881_s17  ;;  %1193 = vrot.lane.b32.xlu1 %v6515_v60, %s5880_s30  ;;  %s8198_s30 = scalar_lea.vmem %s8072_s7, %s5970_s15 }
 0x276   : > { %8137 = vst [vmem:[#allocation13_spill] sm:$0xff] %v6517_v3  ;;  %5008 = vmatprep.subr.bf16.mxu0 %v6517_v3 }
 0x277   : > { %5009 = vmatpush3.bf16.msra.mxu0 %v6517_v3 }
 0x279   : > { %1660 = vrot.lane.b32.xlu0 %v6478_v22, %s5881_s17  ;;  %1654 = vrot.lane.b32.xlu1 %v6442_v59, %s5881_s17 }
 0x27d   : > { %1664 = vrot.lane.b32.xlu0 %v6502_v54, %s5881_s17  ;;  %1658 = vrot.lane.b32.xlu1 %v6466_v13, %s5881_s17 }
 0x281   : > { %1636 = vrot.lane.b32.xlu0 %v6428_v48, %s5882_s3  ;;  %1662 = vrot.lane.b32.xlu1 %v6490_v34, %s5881_s17 }
 0x285   : > { %1640 = vrot.lane.b32.xlu0 %v6454_v26, %s5882_s3  ;;  %1666 = vrot.lane.b32.xlu1 %v6515_v60, %s5881_s17 }
 0x289   : > { %1644 = vrot.lane.b32.xlu0 %v6478_v22, %s5882_s3  ;;  %1638 = vrot.lane.b32.xlu1 %v6442_v59, %s5882_s3 }
 0x28d   : > { %1648 = vrot.lane.b32.xlu0 %v6502_v54, %s5882_s3  ;;  %1642 = vrot.lane.b32.xlu1 %v6466_v13, %s5882_s3 }
 0x291   : > { %2404 = vrot.lane.b32.xlu0 %v6428_v48, %s5883_s21  ;;  %1646 = vrot.lane.b32.xlu1 %v6490_v34, %s5882_s3 }
 0x295   : > { %2408 = vrot.lane.b32.xlu0 %v6454_v26, %s5883_s21  ;;  %1650 = vrot.lane.b32.xlu1 %v6515_v60, %s5882_s3 }
 0x299   : > { %2412 = vrot.lane.b32.xlu0 %v6478_v22, %s5883_s21  ;;  %2406 = vrot.lane.b32.xlu1 %v6442_v59, %s5883_s21 }
 0x29d   : > { %2416 = vrot.lane.b32.xlu0 %v6502_v54, %s5883_s21  ;;  %2410 = vrot.lane.b32.xlu1 %v6466_v13, %s5883_s21 }
 0x2a1   : > { %2392 = vrot.lane.b32.xlu0 %v6454_v26, %s5884_s26  ;;  %2414 = vrot.lane.b32.xlu1 %v6490_v34, %s5883_s21 }
 0x2a5   : > { %2394 = vrot.lane.b32.xlu0 %v6466_v13, %s5884_s26  ;;  %2388 = vrot.lane.b32.xlu1 %v6428_v48, %s5884_s26 }
 0x2a9   : > { %2400 = vrot.lane.b32.xlu0 %v6502_v54, %s5884_s26  ;;  %2390 = vrot.lane.b32.xlu1 %v6442_v59, %s5884_s26 }
 0x2ad   : > { %2005 = vrot.lane.b32.xlu0 %v6430_v49, %s5882_s3  ;;  %2396 = vrot.lane.b32.xlu1 %v6478_v22, %s5884_s26 }
 0x2af   : > { %v1180_v50 = vpop.permute.xlu0 %1179 }
 0x2b0   : > { %5386 = vmatprep.subr.msk.bf16.mxu1 %vm1195_vm2, %v1180_v50  ;;  %v1221_v35 = vsel %vm1195_vm2, %v1180_v50, 0 }
 0x2b1   : > { %2009 = vrot.lane.b32.xlu0 %v6456_v4, %s5882_s3  ;;  %2398 = vrot.lane.b32.xlu1 %v6490_v34, %s5884_s26 }
 0x2b2   : > { %4963 = vmatpush3.bf16.xpose.msra.mxu1 %v1221_v35 }
 0x2b5   : > { %2011 = vrot.lane.b32.xlu0 %v6468_v53, %s5882_s3  ;;  %2007 = vrot.lane.b32.xlu1 %v6444_v62, %s5882_s3 }
 0x2b7   : > { %v1182_v27 = vpop.permute.xlu1 %1181 }
 0x2b8   : > { %5387 = vmatprep.subr.msk.bf16.mxu1 %vm1195_vm2, %v1182_v27  ;;  %v1224_v44 = vsel %vm1195_vm2, %v1182_v27, 0 }
 0x2b9   : > { %2017 = vrot.lane.b32.xlu0 %v6504_v55, %s5882_s3  ;;  %2013 = vrot.lane.b32.xlu1 %v6480_v51, %s5882_s3 }
 0x2ba   : > { %4965 = vmatpush3.bf16.xpose.msra.mxu1 %v1224_v44 }
 0x2bd   : > { %3037 = vrot.lane.b32.xlu0 %v6428_v48, %s5885_s25  ;;  %2015 = vrot.lane.b32.xlu1 %v6492_v52, %s5882_s3 }
 0x2bf   : > { %v1184_v45 = vpop.permute.xlu1 %1183 }
 0x2c0   : > { %5388 = vmatprep.subr.msk.bf16.mxu1 %vm1195_vm2, %v1184_v45  ;;  %v1227_v5 = vsel %vm1195_vm2, %v1184_v45, 0 }
 0x2c1   : > { %2418 = vrot.lane.b32.xlu0 %v6515_v60, %s5883_s21  ;;  %3039 = vrot.lane.b32.xlu1 %v6442_v59, %s5885_s25 }
 0x2c2   : > { %4967 = vmatpush3.bf16.xpose.msra.mxu1 %v1227_v5 }
 0x2c5   : > { %2402 = vrot.lane.b32.xlu0 %v6515_v60, %s5884_s26  ;;  %3041 = vrot.lane.b32.xlu1 %v6454_v26, %s5885_s25 }
 0x2c7   : > { %v1186_v8 = vpop.permute.xlu1 %1185 }
 0x2c8   : > { %5389 = vmatprep.subr.msk.bf16.mxu1 %vm1195_vm2, %v1186_v8  ;;  %v1230_v9 = vsel %vm1195_vm2, %v1186_v8, 0 }
 0x2c9   : > { %2019 = vrot.lane.b32.xlu1 %v6517_v3, %s5882_s3 }
 0x2ca   : > { %4969 = vmatpush3.bf16.xpose.msra.mxu1 %v1230_v9 }
 0x2cf   : > { %v1188_v10 = vpop.permute.xlu0 %1187 }
 0x2d0   : > { %5390 = vmatprep.subr.msk.bf16.mxu1 %vm1195_vm2, %v1188_v10  ;;  %v1233_v11 = vsel %vm1195_vm2, %v1188_v10, 0 }
 0x2d2   : > { %4971 = vmatpush3.bf16.xpose.msra.mxu1 %v1233_v11 }
 0x2d7   : > { %v1190_v12 = vpop.permute.xlu1 %1189 }
 0x2d8   : > { %5391 = vmatprep.subr.msk.bf16.mxu1 %vm1195_vm2, %v1190_v12  ;;  %v1236_v31 = vsel %vm1195_vm2, %v1190_v12, 0 }
 0x2da   : > { %4973 = vmatpush3.bf16.xpose.msra.mxu1 %v1236_v31 }
 0x2df   : > { %v1192_v39 = vpop.permute.xlu0 %1191 }
 0x2e0   : > { %5392 = vmatprep.subr.msk.bf16.mxu1 %vm1195_vm2, %v1192_v39  ;;  %v1239_v61 = vsel %vm1195_vm2, %v1192_v39, 0 }
 0x2e2   : > { %4975 = vmatpush3.bf16.xpose.msra.mxu1 %v1239_v61 }
 0x2e3   : > { %v1653_v15 = vpop.permute.xlu0 %1652 }
 0x2e4   : > { %v1693_v23 = vsel %vm1195_vm2, %v1653_v15, 0 }
 0x2e7   : > { %v1194_v18 = vpop.permute.xlu1 %1193  ;;  %v1657_v19 = vpop.permute.xlu0 %1656 }
 0x2e8   : > { %5393 = vmatprep.subr.msk.bf16.mxu1 %vm1195_vm2, %v1194_v18  ;;  %v1242_v20 = vsel %vm1195_vm2, %v1194_v18, 0  ;;  %v1699_v33 = vsel %vm1195_vm2, %v1657_v19, 0 }
 0x2ea   : > { %4977 = vmatpush3.bf16.xpose.msra.mxu1 %v1242_v20 }
 0x2eb   : > { %5394 = vmatprep.subr.msk.bf16.mxu1 %vm1195_vm2, %v1653_v15  ;;  %v1661_v21 = vpop.permute.xlu0 %1660  ;;  %v1655_v24 = vpop.permute.xlu1 %1654 }
 0x2ec   : > { %v1696_v29 = vsel %vm1195_vm2, %v1655_v24, 0  ;;  %v1705_v17 = vsel %vm1195_vm2, %v1661_v21, 0 }
 0x2ef   : > { %v1665_v37 = vpop.permute.xlu0 %1664  ;;  %v1659_v38 = vpop.permute.xlu1 %1658 }
 0x2f0   : > { %v1702_v43 = vsel %vm1195_vm2, %v1659_v38, 0  ;;  %v1711_v50 = vsel %vm1195_vm2, %v1665_v37, 0 }
 0x2f1   : > { %4979 = vmatmul.mubr.msk.bf16.vlgmr.msra.gmra.mrb[0].mxu1 %vm1195_vm2, %v6442_v59 }
 0x2f2   : > { %4982 = vmatprep.mubr.msk.bf16.mxu1 %vm1195_vm2, %v6454_v26  ;;  %5027 = vmatpush3.bf16.xpose.msra.mxu1 %v1693_v23 }
 0x2f3   : > { %5395 = vmatprep.subr.msk.bf16.mxu1 %vm1195_vm2, %v1655_v24  ;;  %v1637_v25 = vpop.permute.xlu0 %1636  ;;  %v1663_v47 = vpop.permute.xlu1 %1662 }
 0x2f4   : > { %v1708_v58 = vsel %vm1195_vm2, %v1663_v47, 0 }
 0x2f7   : > { %v1641_v28 = vpop.permute.xlu0 %1640  ;;  %v1667_v56 = vpop.permute.xlu1 %1666 }
 0x2f8   : > { %v1714_v27 = vsel %vm1195_vm2, %v1667_v56, 0 }
 0x2f9   : > { %4983 = vmatmul.mubr.msk.bf16.gmra.mrb[4].mxu1 %vm1195_vm2, %v6466_v13 }
 0x2fa   : > { %4986 = vmatprep.mubr.msk.bf16.mxu1 %vm1195_vm2, %v6478_v22  ;;  %5029 = vmatpush3.bf16.xpose.msra.mxu1 %v1696_v29 }
 0x2fb   : > { %5396 = vmatprep.subr.msk.bf16.mxu1 %vm1195_vm2, %v1657_v19  ;;  %v1645_v7 = vpop.permute.xlu0 %1644  ;;  %v1639_v40 = vpop.permute.xlu1 %1638 }
 0x2ff   : > { %v1649_v63 = vpop.permute.xlu0 %1648  ;;  %v1643_v2 = vpop.permute.xlu1 %1642 }
 0x301   : > { %4987 = vmatmul.mubr.msk.bf16.gmra.mrb[8].mxu1 %vm1195_vm2, %v6490_v34 }
 0x302   : > { %4990 = vmatprep.mubr.msk.bf16.mxu1 %vm1195_vm2, %v6502_v54  ;;  %5031 = vmatpush3.bf16.xpose.msra.mxu1 %v1699_v33 }
 0x303   : > { %5397 = vmatprep.subr.msk.bf16.mxu1 %vm1195_vm2, %v1659_v38  ;;  %v2405_v30 = vpop.permute.xlu0 %2404  ;;  %v1647_v35 = vpop.permute.xlu1 %1646 }
 0x304   : > { %v2445_v45 = vsel %vm1195_vm2, %v2405_v30, 0 }
 0x307   : > { %v2409_v42 = vpop.permute.xlu0 %2408  ;;  %v1651_v44 = vpop.permute.xlu1 %1650 }
 0x308   : > { %v2451_v10 = vsel %vm1195_vm2, %v2409_v42, 0 }
 0x309   : > { %4991 = vmatmul.mubr.msk.bf16.gmra.mrb[12].mxu1 %vm1195_vm2, %v6515_v60 }
 0x30a   : > { %5033 = vmatpush3.bf16.xpose.msra.mxu1 %v1702_v43  ;;  %5042 = vmatprep.mubr.msk.bf16.mxu1 %vm1195_vm2, %v1637_v25 }
 0x30b   : > { %5398 = vmatprep.subr.msk.bf16.mxu1 %vm1195_vm2, %v1661_v21  ;;  %v2413_v46 = vpop.permute.xlu0 %2412  ;;  %v2407_v5 = vpop.permute.xlu1 %2406 }
 0x30c   : > { %v2448_v8 = vsel %vm1195_vm2, %v2407_v5, 0  ;;  %v2457_v18 = vsel %vm1195_vm2, %v2413_v46, 0 }
 0x30f   : > { %v2417_v36 = vpop.permute.xlu0 %2416  ;;  %v2411_v9 = vpop.permute.xlu1 %2410 }
 0x310   : > { %v2454_v31 = vsel %vm1195_vm2, %v2411_v9, 0  ;;  %v2463_v25 = vsel %vm1195_vm2, %v2417_v36, 0 }
 0x312   : > { %5035 = vmatpush3.bf16.xpose.msra.mxu1 %v1705_v17 }
 0x313   : > { %5399 = vmatprep.subr.msk.bf16.mxu1 %vm1195_vm2, %v1663_v47  ;;  %v6642_v16 = vpop.permute.xlu0 %2392  ;;  %v2415_v11 = vpop.permute.xlu1 %2414 }
 0x314   : > { %v2460_v21 = vsel %vm1195_vm2, %v2415_v11, 0 }
 0x317   : > { %v6644_v57 = vpop.permute.xlu0 %2394  ;;  %v2389_v12 = vpop.permute.xlu1 %2388 }
 0x31a   : > { %5037 = vmatpush3.bf16.xpose.msra.mxu1 %v1708_v58 }
 0x31b   : > { %5400 = vmatprep.subr.msk.bf16.mxu1 %vm1195_vm2, %v1665_v37  ;;  %v6648_v0 = vpop.permute.xlu0 %2400  ;;  %v2391_v61 = vpop.permute.xlu1 %2390 }
 0x31f   : > { %v6650_v1 = vpop.permute.xlu0 %2005  ;;  %v2397_v19 = vpop.permute.xlu1 %2396 }
 0x320   : > { %5058 = vmatprep.subr.bf16.mxu0 %v6650_v1 }
 0x322   : > { %5039 = vmatpush3.bf16.xpose.msra.mxu1 %v1711_v50 }
 0x323   : > { %5401 = vmatprep.subr.msk.bf16.mxu1 %vm1195_vm2, %v1667_v56  ;;  %v6671_v39 = vpop.permute.xlu0 %2009  ;;  %v2399_v37 = vpop.permute.xlu1 %2398 }
 0x324   : > { %8138 = vst [vmem:[#allocation14_spill] sm:$0xff] %v6671_v39 }
 0x327   : > { %v6675_v15 = vpop.permute.xlu0 %2011  ;;  %v6683_v24 = vpop.permute.xlu1 %2007 }
 0x328   : > { %8139 = vst [vmem:[#allocation15_spill] sm:$0xff] %v6675_v15  ;;  %8141 = vst [vmem:[#allocation17_spill] sm:$0xff] %v6683_v24 }
 0x32a   : > { %5041 = vmatpush3.bf16.xpose.msra.mxu1 %v1714_v27 }
 0x32b   : > { %5402 = vmatprep.subr.msk.bf16.mxu1 %vm1195_vm2, %v2405_v30  ;;  %v6679_v20 = vpop.permute.xlu0 %2017  ;;  %v6687_v29 = vpop.permute.xlu1 %2013 }
 0x32c   : > { %8140 = vst [vmem:[#allocation16_spill] sm:$0xff] %v6679_v20  ;;  %8142 = vst [vmem:[#allocation18_spill] sm:$0xff] %v6687_v29 }
 0x32f   : > { %v3038_v23 = vpop.permute.xlu0 %3037 }
 0x330   : > { %v3078_v33 = vsel %vm1195_vm2, %v3038_v23, 0 }
 0x331   : > { %5043 = vmatmul.mubr.msk.bf16.vlgmr.msra.gmra.mrb[16].mxu1 %vm1195_vm2, %v1639_v40 }
 0x332   : > { %5046 = vmatprep.mubr.msk.bf16.mxu1 %vm1195_vm2, %v1641_v28  ;;  %5127 = vmatpush3.bf16.xpose.msra.mxu1 %v2445_v45 }
 0x333   : > { %5403 = vmatprep.subr.msk.bf16.mxu1 %vm1195_vm2, %v2407_v5  ;;  %v2419_v28 = vpop.permute.xlu0 %2418 }
 0x339   : > { %5047 = vmatmul.mubr.msk.bf16.gmra.mrb[20].mxu1 %vm1195_vm2, %v1643_v2 }
 0x33a   : > { %5050 = vmatprep.mubr.msk.bf16.mxu1 %vm1195_vm2, %v1645_v7  ;;  %5129 = vmatpush3.bf16.xpose.msra.mxu1 %v2448_v8  ;;  %v2466_v7 = vsel %vm1195_vm2, %v2419_v28, 0 }
 0x33b   : > { %5404 = vmatprep.subr.msk.bf16.mxu1 %vm1195_vm2, %v2409_v42 }
 0x341   : > { %5051 = vmatmul.mubr.msk.bf16.gmra.mrb[24].mxu1 %vm1195_vm2, %v1647_v35 }
 0x342   : > { %5054 = vmatprep.mubr.msk.bf16.mxu1 %vm1195_vm2, %v1649_v63  ;;  %5131 = vmatpush3.bf16.xpose.msra.mxu1 %v2451_v10  ;;  %v6691_v63 = vpop.permute.xlu1 %2015 }
 0x343   : > { %5405 = vmatprep.subr.msk.bf16.mxu1 %vm1195_vm2, %v2411_v9  ;;  %8143 = vst [vmem:[#allocation19_spill] sm:$0xff] %v6691_v63 }
 0x346   : > { %v3040_v38 = vpop.permute.xlu1 %3039 }
 0x347   : > { %v3081_v30 = vsel %vm1195_vm2, %v3040_v38, 0 }
 0x349   : > { %5055 = vmatmul.mubr.msk.bf16.gmra.mrb[28].mxu1 %vm1195_vm2, %v1651_v44 }
 0x34a   : > { %5133 = vmatpush3.bf16.xpose.msra.mxu1 %v2454_v31  ;;  %5142 = vmatprep.mubr.msk.bf16.mxu1 %vm1195_vm2, %v2389_v12  ;;  %v3042_v42 = vpop.permute.xlu1 %3041 }
 0x34b   : > { %5406 = vmatprep.subr.msk.bf16.mxu1 %vm1195_vm2, %v2413_v46  ;;  %v3084_v43 = vsel %vm1195_vm2, %v3042_v42, 0  ;;  %v2403_v46 = vpop.permute.xlu0 %2402 }
 0x34e   : > { %v6859_v52 = vpop.permute.xlu1 %2019 }
 0x34f   : > { %8152 = vst [vmem:[#allocation27_spill] sm:$0xff] %v6859_v52 }
 0x352   : > { %5135 = vmatpush3.bf16.xpose.msra.mxu1 %v2457_v18 }
 0x353   : > { %5407 = vmatprep.subr.msk.bf16.mxu1 %vm1195_vm2, %v2415_v11 }
 0x35a   : > { %5137 = vmatpush3.bf16.xpose.msra.mxu1 %v2460_v21 }
 0x35b   : > { %5408 = vmatprep.subr.msk.bf16.mxu1 %vm1195_vm2, %v2417_v36  ;;  %v6711_v36 = vld [vmem:[%s8144_s1] ss:$0 sm:$0xff] }
 0x362   : > { %5139 = vmatpush3.bf16.xpose.msra.mxu1 %v2463_v25 }
 0x363   : > { %5409 = vmatprep.subr.msk.bf16.mxu1 %vm1195_vm2, %v2419_v28 }
 0x36a   : > { %5141 = vmatpush3.bf16.xpose.msra.mxu1 %v2466_v7 }
 0x36b   : > { %5410 = vmatprep.subr.msk.bf16.mxu1 %vm1195_vm2, %v3038_v23 }
 0x371   : > { %5143 = vmatmul.mubr.msk.bf16.vlgmr.msra.gmra.mrb[32].mxu1 %vm1195_vm2, %v2391_v61 }
 0x372   : > { %5146 = vmatprep.mubr.msk.bf16.mxu1 %vm1195_vm2, %v6642_v16  ;;  %5209 = vmatpush3.bf16.xpose.msra.mxu1 %v3078_v33 }
 0x373   : > { %5411 = vmatprep.subr.msk.bf16.mxu1 %vm1195_vm2, %v3040_v38 }
 0x379   : > { %5147 = vmatmul.mubr.msk.bf16.gmra.mrb[36].mxu1 %vm1195_vm2, %v6644_v57 }
 0x37a   : > { %5150 = vmatprep.mubr.msk.bf16.mxu1 %vm1195_vm2, %v2397_v19  ;;  %5211 = vmatpush3.bf16.xpose.msra.mxu1 %v3081_v30 }
 0x37b   : > { %5412 = vmatprep.subr.msk.bf16.mxu1 %vm1195_vm2, %v3042_v42 }
 0x381   : > { %5151 = vmatmul.mubr.msk.bf16.gmra.mrb[40].mxu1 %vm1195_vm2, %v2399_v37 }
 0x382   : > { %5154 = vmatprep.mubr.msk.bf16.mxu1 %vm1195_vm2, %v6648_v0  ;;  %5213 = vmatpush3.bf16.xpose.msra.mxu1 %v3084_v43 }
 0x389   : > { %5155 = vmatmul.mubr.msk.bf16.gmra.mrb[44].mxu1 %vm1195_vm2, %v2403_v46 }
 0x3c4   : > { %v4980_v47 = vpop.f32.mrb[0].mxu1 }
 0x3c5   : > { %v1343_v17 = vmul.f32 0.25, %v4980_v47  ;;  %v1278_v16 = vpop.f32.mrb[1].mxu1 }
 0x3c6   : > { %v4981_v56 = vpop.f32.mrb[2].mxu1  ;;  %v1341_v57 = vmul.f32 0.25, %v1278_v16 }
 0x3c7   : > { %v1281_v58 = vpop.f32.mrb[3].mxu1  ;;  %v6714_v40 = vadd.f32 %v6711_v36, %v1343_v17  ;;  %v1344_v50 = vmul.f32 0.25, %v4981_v56 }
 0x3c8   : > { %v1342_v2 = vmul.f32 0.25, %v1281_v58  ;;  %v6721_v35 = vadd.f32 %v6711_v36, %v1341_v57 }
 0x3c9   : > { %1383 = vmax.xlane.f32.xlu0 %v6714_v40  ;;  %v6726_v10 = vadd.f32 %v6711_v36, %v1344_v50 }
 0x3ca   : > { %v6718_v0 = vadd.f32 %v6711_v36, %v1342_v2 }
 0x3cc   : > { %1381 = vmax.xlane.f32.xlu1 %v6718_v0  ;;  %v4984_v27 = vpop.f32.mrb[4].mxu1 }
 0x3cd   : > { %v1347_v44 = vmul.f32 0.25, %v4984_v27  ;;  %1379 = vmax.xlane.f32.xlu0 %v6721_v35  ;;  %v1294_v45 = vpop.f32.mrb[5].mxu1 }
 0x3ce   : > { %v4985_v5 = vpop.f32.mrb[6].mxu1  ;;  %v1345_v8 = vmul.f32 0.25, %v1294_v45 }
 0x3cf   : > { %v1297_v9 = vpop.f32.mrb[7].mxu1  ;;  %v6729_v11 = vadd.f32 %v6711_v36, %v1347_v44  ;;  %v1348_v12 = vmul.f32 0.25, %v4985_v5 }
 0x3d0   : > { %v6734_v31 = vadd.f32 %v6711_v36, %v1345_v8  ;;  %v1346_v37 = vmul.f32 0.25, %v1297_v9 }
 0x3d1   : > { %1385 = vmax.xlane.f32.xlu0 %v6726_v10  ;;  %1391 = vmax.xlane.f32.xlu1 %v6729_v11  ;;  %v6738_v28 = vadd.f32 %v6711_v36, %v1348_v12 }
 0x3d2   : > { %v6746_v30 = vadd.f32 %v6711_v36, %v1346_v37 }
 0x3d4   : > { %v4988_v61 = vpop.f32.mrb[8].mxu1 }
 0x3d5   : > { %v1351_v18 = vmul.f32 0.25, %v4988_v61  ;;  %1387 = vmax.xlane.f32.xlu1 %v6734_v31  ;;  %v1310_v19 = vpop.f32.mrb[9].mxu1 }
 0x3d6   : > { %v4989_v21 = vpop.f32.mrb[10].mxu1  ;;  %v1349_v23 = vmul.f32 0.25, %v1310_v19 }
 0x3d7   : > { %v1313_v25 = vpop.f32.mrb[11].mxu1  ;;  %v6741_v7 = vadd.f32 %v6711_v36, %v1351_v18  ;;  %v1352_v33 = vmul.f32 0.25, %v4989_v21 }
 0x3d8   : > { %v1350_v38 = vmul.f32 0.25, %v1313_v25  ;;  %v6749_v42 = vadd.f32 %v6711_v36, %v1349_v23 }
 0x3d9   : > { %1393 = vmax.xlane.f32.xlu1 %v6738_v28  ;;  %1399 = vmax.xlane.f32.xlu0 %v6741_v7  ;;  %v6754_v56 = vadd.f32 %v6711_v36, %v1352_v33 }
 0x3da   : > { %v6757_v57 = vadd.f32 %v6711_v36, %v1350_v38 }
 0x3dc   : > { %v4992_v43 = vpop.f32.mrb[12].mxu1 }
 0x3dd   : > { %1389 = vmax.xlane.f32.xlu1 %v6746_v30  ;;  %1395 = vmax.xlane.f32.xlu0 %v6749_v42  ;;  %v1326_v46 = vpop.f32.mrb[13].mxu1  ;;  %v1355_v17 = vmul.f32 0.25, %v4992_v43 }
 0x3de   : > { %v4993_v47 = vpop.f32.mrb[14].mxu1  ;;  %v1353_v58 = vmul.f32 0.25, %v1326_v46 }
 0x3df   : > { %v1329_v16 = vpop.f32.mrb[15].mxu1  ;;  %v6762_v2 = vadd.f32 %v6711_v36, %v1355_v17  ;;  %v1356_v27 = vmul.f32 0.25, %v4993_v47 }
 0x3e0   : > { %v6766_v50 = vadd.f32 %v6711_v36, %v1353_v58  ;;  %v1354_v45 = vmul.f32 0.25, %v1329_v16 }
 0x3e1   : > { %1401 = vmax.xlane.f32.xlu0 %v6754_v56  ;;  %1397 = vmax.xlane.f32.xlu1 %v6757_v57  ;;  %v6770_v44 = vadd.f32 %v6711_v36, %v1356_v27 }
 0x3e2   : > { %v6774_v5 = vadd.f32 %v6711_v36, %v1354_v45 }
 0x3e5   : > { %1407 = vmax.xlane.f32.xlu1 %v6762_v2 }
 0x3e9   : > { %1403 = vmax.xlane.f32.xlu1 %v6766_v50 }
 0x3ed   : > { %1409 = vmax.xlane.f32.xlu1 %v6770_v44 }
 0x3f1   : > { %1405 = vmax.xlane.f32.xlu1 %v6774_v5 }
 0x404   : > { %v5044_v8 = vpop.f32.mrb[16].mxu1 }
 0x405   : > { %v1815_v9 = vmul.f32 0.25, %v5044_v8  ;;  %v1750_v12 = vpop.f32.mrb[17].mxu1 }
 0x406   : > { %v5045_v61 = vpop.f32.mrb[18].mxu1  ;;  %v1813_v19 = vmul.f32 0.25, %v1750_v12 }
 0x407   : > { %v6778_v18 = vadd.f32 %v6711_v36, %v1815_v9  ;;  %v1753_v21 = vpop.f32.mrb[19].mxu1  ;;  %v1816_v33 = vmul.f32 0.25, %v5045_v61 }
 0x408   : > { %v1814_v37 = vmul.f32 0.25, %v1753_v21  ;;  %v6785_v25 = vadd.f32 %v6711_v36, %v1813_v19 }
 0x409   : > { %1849 = vmax.xlane.f32.xlu1 %v6778_v18  ;;  %v6790_v17 = vadd.f32 %v6711_v36, %v1816_v33 }
 0x40a   : > { %v6782_v23 = vadd.f32 %v6711_v36, %v1814_v37 }
 0x40c   : > { %1847 = vmax.xlane.f32.xlu0 %v6782_v23  ;;  %v5048_v38 = vpop.f32.mrb[20].mxu1 }
 0x40d   : > { %v1819_v43 = vmul.f32 0.25, %v5048_v38  ;;  %1845 = vmax.xlane.f32.xlu1 %v6785_v25  ;;  %v1766_v46 = vpop.f32.mrb[21].mxu1 }
 0x40e   : > { %v5049_v47 = vpop.f32.mrb[22].mxu1  ;;  %v1817_v16 = vmul.f32 0.25, %v1766_v46 }
 0x40f   : > { %v1769_v58 = vpop.f32.mrb[23].mxu1  ;;  %v6793_v27 = vadd.f32 %v6711_v36, %v1819_v43  ;;  %v1820_v12 = vmul.f32 0.25, %v5049_v47 }
 0x410   : > { %v1818_v45 = vmul.f32 0.25, %v1769_v58  ;;  %v6801_v9 = vadd.f32 %v6711_v36, %v1817_v16 }
 0x411   : > { %1851 = vmax.xlane.f32.xlu1 %v6790_v17  ;;  %1857 = vmax.xlane.f32.xlu0 %v6793_v27  ;;  %v6806_v33 = vadd.f32 %v6711_v36, %v1820_v12 }
 0x412   : > { %v6798_v8 = vadd.f32 %v6711_v36, %v1818_v45 }
 0x414   : > { %v5052_v61 = vpop.f32.mrb[24].mxu1 }
 0x415   : > { %v1823_v19 = vmul.f32 0.25, %v5052_v61  ;;  %1853 = vmax.xlane.f32.xlu0 %v6801_v9  ;;  %1855 = vmax.xlane.f32.xlu1 %v6798_v8  ;;  %v1782_v21 = vpop.f32.mrb[25].mxu1 }
 0x416   : > { %v5053_v37 = vpop.f32.mrb[26].mxu1  ;;  %v1821_v43 = vmul.f32 0.25, %v1782_v21 }
 0x417   : > { %v6809_v38 = vadd.f32 %v6711_v36, %v1823_v19  ;;  %v1785_v46 = vpop.f32.mrb[27].mxu1  ;;  %v1824_v45 = vmul.f32 0.25, %v5053_v37 }
 0x418   : > { %v1822_v58 = vmul.f32 0.25, %v1785_v46  ;;  %v6817_v16 = vadd.f32 %v6711_v36, %v1821_v43 }
 0x419   : > { %1859 = vmax.xlane.f32.xlu0 %v6806_v33  ;;  %1865 = vmax.xlane.f32.xlu1 %v6809_v38  ;;  %v6822_v46 = vadd.f32 %v6711_v36, %v1824_v45 }
 0x41a   : > { %v6814_v47 = vadd.f32 %v6711_v36, %v1822_v58 }
 0x41c   : > { %v5056_v61 = vpop.f32.mrb[28].mxu1 }
 0x41d   : > { %v1827_v12 = vmul.f32 0.25, %v5056_v61  ;;  %1861 = vmax.xlane.f32.xlu1 %v6817_v16  ;;  %1863 = vmax.xlane.f32.xlu0 %v6814_v47  ;;  %v1798_v19 = vpop.f32.mrb[29].mxu1 }
 0x41e   : > { %v5057_v21 = vpop.f32.mrb[30].mxu1  ;;  %v1825_v58 = vmul.f32 0.25, %v1798_v19 }
 0x41f   : > { %v6825_v6 = vadd.f32 %v6711_v36, %v1827_v12  ;;  %v1801_v41 = vpop.f32.mrb[31].mxu1  ;;  %v1828_v61 = vmul.f32 0.25, %v5057_v21 }
 0x420   : > { %v1826_v14 = vmul.f32 0.25, %v1801_v41  ;;  %v6833_v43 = vadd.f32 %v6711_v36, %v1825_v58 }
 0x421   : > { %1867 = vmax.xlane.f32.xlu1 %v6822_v46  ;;  %1873 = vmax.xlane.f32.xlu0 %v6825_v6  ;;  %v6838_v45 = vadd.f32 %v6711_v36, %v1828_v61 }
 0x422   : > { %v6830_v37 = vadd.f32 %v6711_v36, %v1826_v14 }
 0x425   : > { %1869 = vmax.xlane.f32.xlu0 %v6833_v43  ;;  %1871 = vmax.xlane.f32.xlu1 %v6830_v37 }
 0x429   : > { %1875 = vmax.xlane.f32.xlu0 %v6838_v45 }
 0x444   : > { %v6841_v41 = vpop.f32.mrb[32].mxu1 }
 0x445   : > { %v6843_v12 = vpop.f32.mrb[33].mxu1 }
 0x446   : > { %8145 = vst [vmem:[#allocation20_spill] sm:$0xff] %v6843_v12  ;;  %v6845_v19 = vpop.f32.mrb[34].mxu1 }
 0x447   : > { %8146 = vst [vmem:[#allocation21_spill] sm:$0xff] %v6845_v19  ;;  %v6847_v14 = vpop.f32.mrb[35].mxu1 }
 0x44c   : > { %v6849_v58 = vpop.f32.mrb[36].mxu1 }
 0x44d   : > { %8147 = vst [vmem:[#allocation22_spill] sm:$0xff] %v6849_v58  ;;  %v6851_v21 = vpop.f32.mrb[37].mxu1 }
 0x44e   : > { %8148 = vst [vmem:[#allocation23_spill] sm:$0xff] %v6851_v21  ;;  %v6853_v32 = vpop.f32.mrb[38].mxu1 }
 0x44f   : > { %8149 = vst [vmem:[#allocation24_spill] sm:$0xff] %v6853_v32  ;;  %v6855_v3 = vpop.f32.mrb[39].mxu1 }
 0x450   : > { %8150 = vst [vmem:[#allocation25_spill] sm:$0xff] %v6855_v3 }
 0x454   : > { %v6857_v61 = vpop.f32.mrb[40].mxu1 }
 0x455   : > { %8151 = vst [vmem:[#allocation26_spill] sm:$0xff] %v6857_v61  ;;  %v6861_v51 = vpop.f32.mrb[41].mxu1 }
 0x456   : > { %8153 = vst [vmem:[#allocation28_spill] sm:$0xff] %v6861_v51  ;;  %v6863_v62 = vpop.f32.mrb[42].mxu1  ;;  %v1384_v55 = vpop.xlane.xlu0 %1383 }
 0x457   : > { %8154 = vst [vmem:[#allocation29_spill] sm:$0xff] %v6863_v62  ;;  %v1413_v53 = vsub.f32 %v6714_v40, %v1384_v55  ;;  %v6866_v4 = vpop.f32.mrb[43].mxu1 }
 0x458   : > { %8155 = vst [vmem:[#allocation30_spill] sm:$0xff] %v6866_v4 }
 0x459   : > { %v1431_v49 = vmul.f32 1.442695, %v1413_v53  ;;  %v1382_v58 = vpop.xlane.xlu1 %1381 }
 0x45a   : > { %v1412_v21 = vsub.f32 %v6718_v0, %v1382_v58  ;;  %v1380_v32 = vpop.xlane.xlu0 %1379 }
 0x45b   : > { %5502 = vpow2.f32 %v1431_v49  ;;  %v1411_v3 = vsub.f32 %v6721_v35, %v1380_v32 }
 0x45c   : > { %v1429_v61 = vmul.f32 1.442695, %v1412_v21  ;;  %v6870_v20 = vpop.f32.mrb[44].mxu1 }
 0x45d   : > { %8156 = vst [vmem:[#allocation31_spill] sm:$0xff] %v6870_v20  ;;  %v1427_v52 = vmul.f32 1.442695, %v1411_v3  ;;  %v6872_v51 = vpop.f32.mrb[45].mxu1 }
 0x45e   : > { %8157 = vst [vmem:[#allocation32_spill] sm:$0xff] %v6872_v51  ;;  %5504 = vpow2.f32 %v1429_v61  ;;  %v6874_v62 = vpop.f32.mrb[46].mxu1  ;;  %v1386_v55 = vpop.xlane.xlu0 %1385 }
 0x45f   : > { %8158 = vst [vmem:[#allocation33_spill] sm:$0xff] %v6874_v62  ;;  %5506 = vpow2.f32 %v1427_v52  ;;  %v6876_v40 = vpop.f32.mrb[47].mxu1  ;;  %v1414_v53 = vsub.f32 %v6726_v10, %v1386_v55  ;;  %v1392_v0 = vpop.xlane.xlu1 %1391 }
 0x460   : > { %8159 = vst [vmem:[#allocation34_spill] sm:$0xff] %v6876_v40  ;;  %v1417_v19 = vsub.f32 %v6729_v11, %v1392_v0 }
 0x461   : > { %v1433_v58 = vmul.f32 1.442695, %v1414_v53 }
 0x462   : > { %v1439_v15 = vmul.f32 1.442695, %v1417_v19 }
 0x463   : > { %5508 = vpow2.f32 %v1433_v58  ;;  %v1388_v3 = vpop.xlane.xlu1 %1387 }
 0x465   : > { %v6879_v49 = vpop.eup %5502 }
 0x466   : > { %1463 = vadd.xlane.f32.xlu1 %v6879_v49  ;;  %v1400_v58 = vpop.xlane.xlu0 %1399 }
 0x467   : > { %v1394_v21 = vpop.xlane.xlu1 %1393  ;;  %v1421_v62 = vsub.f32 %v6741_v7, %v1400_v58 }
 0x468   : > { %v6882_v32 = vpop.eup %5504 }
 0x469   : > { %v6884_v35 = vpop.eup %5506  ;;  %1461 = vadd.xlane.f32.xlu0 %v6882_v32  ;;  %v1447_v20 = vmul.f32 1.442695, %v1421_v62 }
 0x46a   : > { %1459 = vadd.xlane.f32.xlu1 %v6884_v35  ;;  %v1396_v40 = vpop.xlane.xlu0 %1395 }
 0x46b   : > { %v1390_v10 = vpop.xlane.xlu1 %1389  ;;  %5510 = vpow2.f32 %v1447_v20 }
 0x46d   : > { %v6888_v52 = vpop.eup %5508 }
 0x46e   : > { %1465 = vadd.xlane.f32.xlu1 %v6888_v52  ;;  %v1402_v39 = vpop.xlane.xlu0 %1401 }
 0x46f   : > { %v6891_v61 = vpop.xlane.xlu1 %1397 }
 0x473   : > { %v1408_v55 = vpop.xlane.xlu1 %1407 }
 0x474   : > { %v1425_v4 = vsub.f32 %v6762_v2, %v1408_v55  ;;  %v1418_v2 = vsub.f32 %v6738_v28, %v1394_v21 }
 0x476   : > { %v1455_v12 = vmul.f32 1.442695, %v1425_v4  ;;  %v6913_v4 = vpop.eup %5510  ;;  %v1441_v20 = vmul.f32 1.442695, %v1418_v2  ;;  %v1420_v2 = vsub.f32 %v6757_v57, %v6891_v61 }
 0x477   : > { %v1404_v53 = vpop.xlane.xlu1 %1403 }
 0x478   : > { %v1423_v29 = vsub.f32 %v6766_v50, %v1404_v53  ;;  %5512 = vpow2.f32 %v1455_v12  ;;  %v1419_v12 = vsub.f32 %v6749_v42, %v1396_v40  ;;  %v1422_v53 = vsub.f32 %v6754_v56, %v1402_v39 }
 0x479   : > { %5514 = vpow2.f32 %v1439_v15 }
 0x47a   : > { %v1451_v7 = vmul.f32 1.442695, %v1423_v29 }
 0x47b   : > { %v6898_v51 = vpop.xlane.xlu1 %1409 }
 0x47c   : > { %5516 = vpow2.f32 %v1451_v7 }
 0x47f   : > { %3043 = vrot.lane.b32.xlu0 %v6466_v13, %s5885_s25  ;;  %3045 = vrot.lane.b32.xlu1 %v6478_v22, %s5885_s25  ;;  %v6902_v63 = vpop.xlane.xlu1 %1405  ;;  %v1415_v22 = vsub.f32 %v6734_v31, %v1388_v3  ;;  %v1416_v31 = vsub.f32 %v6746_v30, %v1390_v10  ;;  %v1443_v10 = vmul.f32 1.442695, %v1419_v12 }
 0x481   : > { %v1435_v62 = vmul.f32 1.442695, %v1415_v22  ;;  %v1437_v28 = vmul.f32 1.442695, %v1416_v31 }
 0x482   : > { %v6920_v15 = vpop.eup %5512 }
 0x483   : > { %5518 = vpow2.f32 %v1435_v62  ;;  %v6926_v30 = vpop.eup %5514 }
 0x484   : > { %5520 = vpow2.f32 %v1441_v20  ;;  %v1449_v20 = vmul.f32 1.442695, %v1422_v53 }
 0x496   : > { %v6906_v24 = vpop.xlane.xlu1 %1849 }
 0x499   : > { %v6909_v55 = vpop.xlane.xlu0 %1847 }
 0x49a   : > { %v6911_v11 = vpop.xlane.xlu1 %1845 }
 0x49e   : > { %v6916_v50 = vpop.xlane.xlu1 %1851  ;;  %1479 = vadd.xlane.f32.xlu0 %v6913_v4  ;;  %v1858_v29 = vpop.xlane.xlu0 %1857 }
 0x49f   : > { %v1883_v22 = vsub.f32 %v6793_v27, %v1858_v29  ;;  %v6930_v27 = vpop.eup %5516 }
 0x4a0   : > { %v6934_v7 = vpop.eup %5518 }
 0x4a1   : > { %v1905_v19 = vmul.f32 1.442695, %v1883_v22  ;;  %v6943_v29 = vpop.eup %5520 }
 0x4a2   : > { %v6923_v0 = vpop.xlane.xlu1 %1855  ;;  %1487 = vadd.xlane.f32.xlu0 %v6920_v15  ;;  %v1854_v3 = vpop.xlane.xlu0 %1853 }
 0x4a3   : > { %v1881_v21 = vsub.f32 %v6801_v9, %v1854_v3  ;;  %5522 = vpow2.f32 %v1905_v19  ;;  %1471 = vadd.xlane.f32.xlu1 %v6926_v30 }
 0x4a4   : > { %5524 = vpow2.f32 %v1437_v28  ;;  %v1426_v28 = vsub.f32 %v6770_v44, %v6898_v51  ;;  %v1424_v51 = vsub.f32 %v6774_v5, %v6902_v63 }
 0x4a5   : > { %v1901_v42 = vmul.f32 1.442695, %v1881_v21 }
 0x4a6   : > { %v1866_v40 = vpop.xlane.xlu1 %1865  ;;  %1483 = vadd.xlane.f32.xlu0 %v6930_v27  ;;  %v1860_v58 = vpop.xlane.xlu0 %1859  ;;  %v1457_v21 = vmul.f32 1.442695, %v1426_v28 }
 0x4a7   : > { %v1884_v62 = vsub.f32 %v6806_v33, %v1860_v58  ;;  %5526 = vpow2.f32 %v1901_v42  ;;  %v1887_v9 = vsub.f32 %v6809_v38, %v1866_v40  ;;  %1467 = vadd.xlane.f32.xlu1 %v6934_v7  ;;  %v1445_v38 = vmul.f32 1.442695, %v1420_v2 }
 0x4a8   : > { %5528 = vpow2.f32 %v1443_v10  ;;  %v1879_v40 = vsub.f32 %v6778_v18, %v6906_v24  ;;  %v1877_v24 = vsub.f32 %v6785_v25, %v6911_v11  ;;  %v1878_v25 = vsub.f32 %v6782_v23, %v6909_v55 }
 0x4a9   : > { %v1907_v39 = vmul.f32 1.442695, %v1884_v62  ;;  %v1913_v22 = vmul.f32 1.442695, %v1887_v9 }
 0x4aa   : > { %v1862_v56 = vpop.xlane.xlu1 %1861  ;;  %v6941_v31 = vpop.xlane.xlu0 %1863 }
 0x4ab   : > { %5530 = vpow2.f32 %v1907_v39  ;;  %v1885_v33 = vsub.f32 %v6817_v16, %v1862_v56  ;;  %1473 = vadd.xlane.f32.xlu1 %v6943_v29  ;;  %v1886_v55 = vsub.f32 %v6814_v47, %v6941_v31 }
 0x4ac   : > { %5532 = vpow2.f32 %v1449_v20  ;;  %v1897_v20 = vmul.f32 1.442695, %v1879_v40 }
 0x4ad   : > { %v6949_v12 = vpop.eup %5522  ;;  %5534 = vpow2.f32 %v1913_v22  ;;  %v1909_v3 = vmul.f32 1.442695, %v1885_v33 }
 0x4ae   : > { %v1868_v57 = vpop.xlane.xlu1 %1867  ;;  %v6951_v61 = vpop.xlane.xlu0 %1873  ;;  %1937 = vadd.xlane.f32.xlu0 %v6949_v12  ;;  %5536 = vpow2.f32 %v1445_v38 }
 0x4af   : > { %v6953_v19 = vpop.eup %5524  ;;  %v1888_v16 = vsub.f32 %v6822_v46, %v1868_v57  ;;  %5538 = vpow2.f32 %v1909_v3  ;;  %v1453_v46 = vmul.f32 1.442695, %v1424_v51  ;;  %v1882_v3 = vsub.f32 %v6798_v8, %v6923_v0 }
 0x4b0   : > { %1469 = vadd.xlane.f32.xlu1 %v6953_v19  ;;  %5540 = vpow2.f32 %v1457_v21  ;;  %v1911_v8 = vmul.f32 1.442695, %v1886_v55  ;;  %v1891_v0 = vsub.f32 %v6825_v6, %v6951_v61 }
 0x4b1   : > { %v6960_v44 = vpop.eup %5526  ;;  %v1915_v42 = vmul.f32 1.442695, %v1888_v16  ;;  %v1903_v23 = vmul.f32 1.442695, %v1882_v3 }
 0x4b2   : > { %v6962_v10 = vpop.xlane.xlu0 %1869  ;;  %v6964_v53 = vpop.eup %5528  ;;  %1933 = vadd.xlane.f32.xlu0 %v6960_v44 }
 0x4b3   : > { %v1872_v58 = vpop.xlane.xlu1 %1871  ;;  %5542 = vpow2.f32 %v1915_v42  ;;  %v1889_v47 = vsub.f32 %v6833_v43, %v6962_v10 }
 0x4b4   : > { %1475 = vadd.xlane.f32.xlu1 %v6964_v53  ;;  %v1890_v2 = vsub.f32 %v6830_v37, %v1872_v58  ;;  %5544 = vpow2.f32 %v1453_v46  ;;  %v1893_v37 = vmul.f32 1.442695, %v1877_v24  ;;  %v1921_v46 = vmul.f32 1.442695, %v1891_v0  ;;  %v8165_v0 = vld [vmem:[#allocation19_spill] sm:$0xff] }
 0x4b5   : > { %v6970_v62 = vpop.eup %5530  ;;  %v1917_v40 = vmul.f32 1.442695, %v1889_v47  ;;  %v8166_v47 = vld [vmem:[#allocation21_spill] sm:$0xff] }
 0x4b6   : > { %v1876_v63 = vpop.xlane.xlu0 %1875  ;;  %v6972_v5 = vpop.eup %5532  ;;  %1939 = vadd.xlane.f32.xlu0 %v6970_v62  ;;  %v1919_v22 = vmul.f32 1.442695, %v1890_v2 }
 0x4b7   : > { %v1892_v9 = vsub.f32 %v6838_v45, %v1876_v63  ;;  %v6980_v39 = vpop.eup %5534  ;;  %v1880_v45 = vsub.f32 %v6790_v17, %v6916_v50  ;;  %v1895_v50 = vmul.f32 1.442695, %v1878_v25 }
 0x4b8   : > { %1481 = vadd.xlane.f32.xlu1 %v6972_v5  ;;  %v6982_v56 = vpop.eup %5536 }
 0x4b9   : > { %v1923_v18 = vmul.f32 1.442695, %v1892_v9  ;;  %v6988_v33 = vpop.eup %5538  ;;  %v1899_v11 = vmul.f32 1.442695, %v1880_v45 }
 0x4ba   : > { %1945 = vadd.xlane.f32.xlu0 %v6980_v39  ;;  %v6990_v38 = vpop.eup %5540 }
 0x4bb   : > { %5546 = vpow2.f32 %v1923_v18 }
 0x4bc   : > { %1477 = vadd.xlane.f32.xlu1 %v6982_v56  ;;  %5548 = vpow2.f32 %v1897_v20 }
 0x4bd   : > { %5550 = vpow2.f32 %v1919_v22  ;;  %v6996_v28 = vpop.eup %5542 }
 0x4be   : > { %1941 = vadd.xlane.f32.xlu0 %v6988_v33  ;;  %5552 = vpow2.f32 %v1893_v37  ;;  %v6998_v57 = vpop.eup %5544 }
 0x4bf   : > { %5554 = vpow2.f32 %v1899_v11  ;;  %v2566_v11 = vmul.f32 0.25, %v6847_v14  ;;  %v8160_v14 = vld [vmem:[#allocation17_spill] sm:$0xff] }
 0x4c0   : > { %1489 = vadd.xlane.f32.xlu1 %v6990_v38  ;;  %5556 = vpow2.f32 %v1895_v50 }
 0x4c1   : > { %5558 = vpow2.f32 %v1903_v23  ;;  %v2567_v23 = vmul.f32 0.25, %v6841_v41  ;;  %v7065_v55 = vadd.f32 %v6711_v36, %v2566_v11  ;;  %v8162_v41 = vld [vmem:[#allocation15_spill] sm:$0xff] }
 0x4c2   : > { %1947 = vadd.xlane.f32.xlu0 %v6996_v28  ;;  %5560 = vpow2.f32 %v1911_v8 }
 0x4c3   : > { %5562 = vpow2.f32 %v1921_v46 }
 0x4c4   : > { %1485 = vadd.xlane.f32.xlu1 %v6998_v57  ;;  %5564 = vpow2.f32 %v1917_v40  ;;  %v2568_v40 = vmul.f32 0.25, %v8166_v47 }
 0x4c5   : > { %v7002_v17 = vpop.eup %5546 }
 0x4c6   : > { %v7006_v16 = vpop.eup %5548  ;;  %1955 = vadd.xlane.f32.xlu0 %v7002_v17 }
 0x4c7   : > { %v7012_v21 = vpop.eup %5550 }
 0x4c8   : > { %1929 = vadd.xlane.f32.xlu1 %v7006_v16  ;;  %v7014_v51 = vpop.eup %5552 }
 0x4c9   : > { %v7020_v42 = vpop.eup %5554 }
 0x4ca   : > { %1951 = vadd.xlane.f32.xlu0 %v7012_v21  ;;  %v7025_v31 = vpop.eup %5556 }
 0x4cb   : > { %v7028_v58 = vpop.eup %5558 }
 0x4cc   : > { %1925 = vadd.xlane.f32.xlu1 %v7014_v51  ;;  %v7031_v6 = vpop.eup %5560 }
 0x4cd   : > { %v7034_v61 = vpop.eup %5562 }
 0x4ce   : > { %v7039_v43 = vpop.eup %5564 }
 0x4d0   : > { %1931 = vadd.xlane.f32.xlu1 %v7020_v42 }
 0x4d4   : > { %1927 = vadd.xlane.f32.xlu1 %v7025_v31 }
 0x4d8   : > { %1935 = vadd.xlane.f32.xlu1 %v7028_v58 }
 0x4dc   : > { %1943 = vadd.xlane.f32.xlu1 %v7031_v6 }
 0x4e0   : > { %1953 = vadd.xlane.f32.xlu1 %v7034_v61  ;;  %3047 = vrot.lane.b32.xlu0 %v6490_v34, %s5885_s25 }
 0x4e4   : > { %1949 = vadd.xlane.f32.xlu1 %v7039_v43  ;;  %3051 = vrot.lane.b32.xlu0 %v6515_v60, %s5885_s25 }
 0x4e8   : > { %3023 = vrot.lane.b32.xlu0 %v6442_v59, %s5886_s23 }
 0x4ec   : > { %3027 = vrot.lane.b32.xlu0 %v6466_v13, %s5886_s23 }
 0x4f3   : > { %v1464_v10 = vpop.xlane.xlu1 %1463 }
 0x4f5   : > { %3049 = vrot.lane.b32.xlu1 %v6502_v54, %s5885_s25 }
 0x4f6   : > { %v1462_v63 = vpop.xlane.xlu0 %1461 }
 0x4f7   : > { %5566 = vrcp.f32 %v1462_v63  ;;  %v1460_v9 = vpop.xlane.xlu1 %1459  ;;  %v7091_v63 = vadd.f32 %v6711_v36, %v2568_v40 }
 0x4f8   : > { %5568 = vrcp.f32 %v1460_v9  ;;  %v8168_v9 = vld [vmem:[#allocation27_spill] sm:$0xff] }
 0x4f9   : > { %3021 = vrot.lane.b32.xlu1 %v6428_v48, %s5886_s23  ;;  %5570 = vrcp.f32 %v1464_v10  ;;  %v8167_v10 = vld [vmem:[#allocation16_spill] sm:$0xff] }
 0x4fa   : > { %v3044_v2 = vpop.permute.xlu0 %3043 }
 0x4fb   : > { %5413 = vmatprep.subr.msk.bf16.mxu1 %vm1195_vm2, %v3044_v2  ;;  %v3087_v59 = vsel %vm1195_vm2, %v3044_v2, 0  ;;  %v1466_v20 = vpop.xlane.xlu1 %1465  ;;  %v8169_v2 = vld [vmem:[#allocation9_spill] sm:$0xff] }
 0x4fc   : > { %5215 = vmatpush3.bf16.xpose.msra.mxu1 %v3087_v59  ;;  %5572 = vrcp.f32 %v1466_v20 }
 0x4fd   : > { %3025 = vrot.lane.b32.xlu1 %v6454_v26, %s5886_s23 }
 0x4ff   : > { %v3046_v13 = vpop.permute.xlu1 %3045 }
 0x500   : > { %5414 = vmatprep.subr.msk.bf16.mxu1 %vm1195_vm2, %v3046_v13  ;;  %v3090_v48 = vsel %vm1195_vm2, %v3046_v13, 0 }
 0x501   : > { %v5567_v24 = vpop.eup %5566 }
 0x502   : > { %v5569_v18 = vpop.eup %5568  ;;  %v1508_v22 = vmul.f32 %v5567_v24, %v6882_v32 }
 0x503   : > { %v1507_v37 = vmul.f32 %v5569_v18, %v6884_v35  ;;  %v5571_v45 = vpop.eup %5570  ;;  %v7070_v35 = vadd.f32 %v6711_v36, %v2567_v23 }
 0x504   : > { %5217 = vmatpush3.bf16.xpose.msra.mxu1 %v3090_v48  ;;  %v1509_v26 = vmul.f32 %v5571_v45, %v6879_v49  ;;  %v8161_v49 = vld [vmem:[#allocation14_spill] sm:$0xff]  ;;  %v8170_v45 = vld [vmem:[#allocation25_spill] sm:$0xff] }
 0x505   : > { %v1523_v25 = vpack.c.bf16 %v1508_v22, %v1507_v37 }
 0x506   : > { %v5573_v50 = vpop.eup %5572 }
 0x507   : > { %5010 = vmatprep.mubr.bf16.mxu0 %v1523_v25  ;;  %v1510_v3 = vmul.f32 %v5573_v50, %v6888_v52  ;;  %v8163_v52 = vld [vmem:[#allocation18_spill] sm:$0xff]  ;;  %v2570_v25 = vmul.f32 0.25, %v8170_v45 }
 0x509   : > { %v1524_v32 = vpack.c.bf16 %v1510_v3, %v1509_v26  ;;  %v8171_v26 = vld [vmem:[#allocation22_spill] sm:$0xff]  ;;  %v7108_v23 = vadd.f32 %v6711_v36, %v2570_v25 }
 0x50a   : > { %v2571_v3 = vmul.f32 0.25, %v8171_v26 }
 0x50b   : > { %2599 = vmax.xlane.f32.xlu0 %v7065_v55  ;;  %5011 = vmatmul.mubr.bf16.vlgmr.msra.gmra.mrb[32].mxu0 %v1524_v32 }
 0x50c   : > { %5059 = vmatpush3.bf16.msra.mxu0 %v6650_v1  ;;  %v8164_v1 = vld [vmem:[#allocation20_spill] sm:$0xff] }
 0x50d   : > { %5060 = vmatprep.subr.bf16.mxu0 %v8160_v14  ;;  %v2565_v8 = vmul.f32 0.25, %v8164_v1  ;;  %v8172_v1 = vld [vmem:[#allocation28_spill] sm:$0xff] }
 0x50f   : > { %2601 = vmax.xlane.f32.xlu0 %v7070_v35  ;;  %v7084_v46 = vadd.f32 %v6711_v36, %v2565_v8  ;;  %v2573_v8 = vmul.f32 0.25, %v8172_v1 }
 0x510   : > { %5061 = vmatpush3.bf16.msra.mxu0 %v8160_v14 }
 0x511   : > { %5062 = vmatprep.subr.bf16.mxu0 %v8161_v49 }
 0x514   : > { %5063 = vmatpush3.bf16.msra.mxu0 %v8161_v49 }
 0x515   : > { %5064 = vmatprep.subr.bf16.mxu0 %v8162_v41 }
 0x518   : > { %5065 = vmatpush3.bf16.msra.mxu0 %v8162_v41 }
 0x519   : > { %5066 = vmatprep.subr.bf16.mxu0 %v8163_v52 }
 0x51c   : > { %5067 = vmatpush3.bf16.msra.mxu0 %v8163_v52  ;;  %v7114_v52 = vadd.f32 %v6711_v36, %v2571_v3 }
 0x51d   : > { %5068 = vmatprep.subr.bf16.mxu0 %v8165_v0 }
 0x520   : > { %5069 = vmatpush3.bf16.msra.mxu0 %v8165_v0 }
 0x521   : > { %2597 = vmax.xlane.f32.xlu1 %v7084_v46  ;;  %5070 = vmatprep.subr.bf16.mxu0 %v8167_v10 }
 0x524   : > { %5071 = vmatpush3.bf16.msra.mxu0 %v8167_v10 }
 0x525   : > { %2603 = vmax.xlane.f32.xlu1 %v7091_v63  ;;  %5072 = vmatprep.subr.bf16.mxu0 %v8168_v9 }
 0x526   : > { %3029 = vrot.lane.b32.xlu0 %v8169_v2, %s5886_s23 }
 0x528   : > { %5073 = vmatpush3.bf16.msra.mxu0 %v8168_v9 }
 0x52b   : > { %v1480_v59 = vpop.xlane.xlu0 %1479 }
 0x52f   : > { %v1488_v13 = vpop.xlane.xlu0 %1487 }
 0x530   : > { %v1472_v20 = vpop.xlane.xlu1 %1471 }
 0x533   : > { %v1484_v18 = vpop.xlane.xlu0 %1483 }
 0x534   : > { %v1468_v24 = vpop.xlane.xlu1 %1467 }
 0x536   : > { %3031 = vrot.lane.b32.xlu1 %v6490_v34, %s5886_s23 }
 0x538   : > { %v1474_v22 = vpop.xlane.xlu1 %1473 }
 0x539   : > { %5574 = vrcp.f32 %v1474_v22 }
 0x53a   : > { %5576 = vrcp.f32 %v1468_v24  ;;  %v8173_v24 = vld [vmem:[#allocation26_spill] sm:$0xff] }
 0x53b   : > { %v7101_v48 = vpop.xlane.xlu0 %1937  ;;  %5578 = vrcp.f32 %v1472_v20  ;;  %v2575_v22 = vmul.f32 0.25, %v8173_v24 }
 0x53d   : > { %v1470_v37 = vpop.xlane.xlu1 %1469 }
 0x53e   : > { %5580 = vrcp.f32 %v1470_v37  ;;  %v7126_v37 = vadd.f32 %v6711_v36, %v2573_v8 }
 0x53f   : > { %v7104_v11 = vpop.xlane.xlu0 %1933 }
 0x541   : > { %v1476_v50 = vpop.xlane.xlu1 %1475 }
 0x543   : > { %v7110_v34 = vpop.xlane.xlu0 %1939  ;;  %v5575_v32 = vpop.eup %5574 }
 0x544   : > { %v5577_v49 = vpop.eup %5576  ;;  %v1514_v40 = vmul.f32 %v5575_v32, %v6943_v29 }
 0x545   : > { %v1482_v14 = vpop.xlane.xlu1 %1481  ;;  %2607 = vmax.xlane.f32.xlu0 %v7108_v23  ;;  %v5579_v41 = vpop.eup %5578  ;;  %v1511_v9 = vmul.f32 %v5577_v49, %v6934_v7  ;;  %v7132_v7 = vadd.f32 %v6711_v36, %v2575_v22 }
 0x546   : > { %5582 = vrcp.f32 %v1482_v14  ;;  %v1513_v20 = vmul.f32 %v5579_v41, %v6926_v30  ;;  %v8174_v14 = vld [vmem:[#allocation23_spill] sm:$0xff] }
 0x547   : > { %5584 = vrcp.f32 %v1476_v50  ;;  %v7117_v47 = vpop.xlane.xlu0 %1945  ;;  %v2569_v49 = vmul.f32 0.25, %v8174_v14 }
 0x548   : > { %v5581_v0 = vpop.eup %5580  ;;  %5586 = vrcp.f32 %v1480_v59  ;;  %v1526_v29 = vpack.c.bf16 %v1514_v40, %v1513_v20 }
 0x549   : > { %v1478_v10 = vpop.xlane.xlu1 %1477  ;;  %2609 = vmax.xlane.f32.xlu0 %v7114_v52  ;;  %v1512_v2 = vmul.f32 %v5581_v0, %v6953_v19 }
 0x54a   : > { %5588 = vrcp.f32 %v1478_v10  ;;  %v7145_v10 = vadd.f32 %v6711_v36, %v2569_v49 }
 0x54b   : > { %v1525_v45 = vpack.c.bf16 %v1512_v2, %v1511_v9  ;;  %v7128_v25 = vpop.xlane.xlu0 %1941  ;;  %v8175_v9 = vld [vmem:[#allocation24_spill] sm:$0xff] }
 0x54c   : > { %v2572_v2 = vmul.f32 0.25, %v8175_v9 }
 0x54d   : > { %v1490_v59 = vpop.xlane.xlu1 %1489  ;;  %2613 = vmax.xlane.f32.xlu0 %v7126_v37  ;;  %5014 = vmatprep.mubr.bf16.mxu0 %v1525_v45 }
 0x54e   : > { %5015 = vmatmul.mubr.bf16.gmra.mrb[36].mxu0 %v1526_v29  ;;  %5590 = vrcp.f32 %v1490_v59 }
 0x54f   : > { %5592 = vrcp.f32 %v1484_v18  ;;  %v7134_v30 = vpop.xlane.xlu0 %1947 }
 0x550   : > { %v5583_v19 = vpop.eup %5582  ;;  %5594 = vrcp.f32 %v1488_v13 }
 0x551   : > { %v1486_v50 = vpop.xlane.xlu1 %1485  ;;  %2617 = vmax.xlane.f32.xlu0 %v7132_v7  ;;  %v5585_v26 = vpop.eup %5584  ;;  %v1518_v1 = vmul.f32 %v5583_v19, %v6972_v5 }
 0x552   : > { %5596 = vrcp.f32 %v1486_v50  ;;  %v5587_v3 = vpop.eup %5586  ;;  %v1515_v18 = vmul.f32 %v5585_v26, %v6964_v53 }
 0x553   : > { %v7138_v41 = vpop.xlane.xlu0 %1955  ;;  %v1517_v13 = vmul.f32 %v5587_v3, %v6913_v4  ;;  %v8176_v4 = vld [vmem:[#allocation30_spill] sm:$0xff] }
 0x554   : > { %v5589_v32 = vpop.eup %5588  ;;  %v2574_v59 = vmul.f32 0.25, %v8176_v4 }
 0x555   : > { %v1930_v8 = vpop.xlane.xlu1 %1929  ;;  %v1516_v0 = vmul.f32 %v5589_v32, %v6982_v56  ;;  %v1528_v24 = vpack.c.bf16 %v1518_v1, %v1517_v13  ;;  %v7150_v56 = vadd.f32 %v6711_v36, %v2572_v2 }
 0x557   : > { %v1527_v40 = vpack.c.bf16 %v1516_v0, %v1515_v18  ;;  %v1952_v20 = vpop.xlane.xlu0 %1951  ;;  %v8177_v18 = vld [vmem:[#allocation29_spill] sm:$0xff] }
 0x558   : > { %v5591_v22 = vpop.eup %5590  ;;  %v2576_v0 = vmul.f32 0.25, %v8177_v18  ;;  %v8178_v18 = vld [vmem:[#allocation34_spill] sm:$0xff] }
 0x559   : > { %v1926_v45 = vpop.xlane.xlu1 %1925  ;;  %5018 = vmatprep.mubr.bf16.mxu0 %v1527_v40  ;;  %v5593_v29 = vpop.eup %5592  ;;  %v1522_v50 = vmul.f32 %v5591_v22, %v6990_v38  ;;  %v7162_v38 = vadd.f32 %v6711_v36, %v2574_v59 }
 0x55a   : > { %2605 = vmax.xlane.f32.xlu1 %v7145_v10  ;;  %5019 = vmatmul.mubr.bf16.gmra.mrb[40].mxu0 %v1528_v24  ;;  %v5595_v53 = vpop.eup %5594  ;;  %v1519_v32 = vmul.f32 %v5593_v29, %v6930_v27  ;;  %v7166_v27 = vadd.f32 %v6711_v36, %v2576_v0  ;;  %v2578_v0 = vmul.f32 0.25, %v8178_v18 }
 0x55b   : > { %v3048_v19 = vpop.permute.xlu0 %3047  ;;  %v1521_v49 = vmul.f32 %v5595_v53, %v6920_v15 }
 0x55c   : > { %v5597_v5 = vpop.eup %5596  ;;  %5415 = vmatprep.subr.msk.bf16.mxu1 %vm1195_vm2, %v3048_v19  ;;  %v3093_v3 = vsel %vm1195_vm2, %v3048_v19, 0 }
 0x55d   : > { %v1932_v26 = vpop.xlane.xlu1 %1931  ;;  %v1520_v14 = vmul.f32 %v5597_v5, %v6998_v57  ;;  %5219 = vmatpush3.bf16.xpose.msra.mxu1 %v3093_v3  ;;  %v1530_v13 = vpack.c.bf16 %v1522_v50, %v1521_v49 }
 0x55e   : > { %2611 = vmax.xlane.f32.xlu1 %v7150_v56  ;;  %5598 = vrcp.f32 %v1932_v26 }
 0x55f   : > { %v1529_v1 = vpack.c.bf16 %v1520_v14, %v1519_v32  ;;  %5600 = vrcp.f32 %v1926_v45  ;;  %v3052_v50 = vpop.permute.xlu0 %3051 }
 0x560   : > { %5602 = vrcp.f32 %v1930_v8 }
 0x561   : > { %v1928_v40 = vpop.xlane.xlu1 %1927  ;;  %5022 = vmatprep.mubr.bf16.mxu0 %v1529_v1 }
 0x562   : > { %5604 = vrcp.f32 %v1928_v40  ;;  %2615 = vmax.xlane.f32.xlu1 %v7162_v38  ;;  %5023 = vmatmul.mubr.bf16.gmra.mrb[44].mxu0 %v1530_v13 }
 0x563   : > { %5606 = vrcp.f32 %v7104_v11 }
 0x565   : > { %v1936_v15 = vpop.xlane.xlu1 %1935 }
 0x566   : > { %5608 = vrcp.f32 %v1936_v15  ;;  %2619 = vmax.xlane.f32.xlu1 %v7166_v27 }
 0x567   : > { %5610 = vrcp.f32 %v7110_v34  ;;  %3033 = vrot.lane.b32.xlu0 %v6502_v54, %s5886_s23 }
 0x568   : > { %5612 = vrcp.f32 %v7101_v48  ;;  %v5599_v57 = vpop.eup %5598 }
 0x569   : > { %5614 = vrcp.f32 %v7128_v25  ;;  %v1944_v8 = vpop.xlane.xlu1 %1943  ;;  %v5601_v9 = vpop.eup %5600  ;;  %v1976_v11 = vmul.f32 %v5599_v57, %v7020_v42 }
 0x56a   : > { %5616 = vrcp.f32 %v1944_v8  ;;  %v5603_v36 = vpop.eup %5602  ;;  %v1973_v22 = vmul.f32 %v5601_v9, %v7014_v51  ;;  %v8179_v8 = vld [vmem:[#allocation31_spill] sm:$0xff] }
 0x56b   : > { %v1975_v54 = vmul.f32 %v5603_v36, %v7006_v16  ;;  %5618 = vrcp.f32 %v7134_v30  ;;  %v2579_v9 = vmul.f32 0.25, %v8179_v8 }
 0x56c   : > { %v5605_v2 = vpop.eup %5604  ;;  %5620 = vrcp.f32 %v7117_v47 }
 0x56d   : > { %v1954_v24 = vpop.xlane.xlu1 %1953  ;;  %v1974_v34 = vmul.f32 %v5605_v2, %v7025_v31  ;;  %v5607_v45 = vpop.eup %5606  ;;  %v1990_v25 = vpack.c.bf16 %v1976_v11, %v1975_v54  ;;  %5622 = vrcp.f32 %v1952_v20  ;;  %v8181_v54 = vld [vmem:[#allocation33_spill] sm:$0xff] }
 0x56e   : > { %v1977_v42 = vmul.f32 %v5607_v45, %v6960_v44 }
 0x56f   : > { %v1989_v48 = vpack.c.bf16 %v1974_v34, %v1973_v22 }
 0x570   : > { %v5609_v29 = vpop.eup %5608 }
 0x571   : > { %v5611_v53 = vpop.eup %5610  ;;  %v1950_v5 = vpop.xlane.xlu1 %1949  ;;  %5074 = vmatprep.mubr.bf16.mxu0 %v1989_v48  ;;  %v1978_v51 = vmul.f32 %v5609_v29, %v7028_v58  ;;  %v2580_v48 = vmul.f32 0.25, %v8181_v54 }
 0x572   : > { %v5613_v4 = vpop.eup %5612  ;;  %5624 = vrcp.f32 %v1950_v5  ;;  %5075 = vmatmul.mubr.bf16.vlgmr.msra.gmra.mrb[48].mxu0 %v1990_v25  ;;  %v1980_v30 = vmul.f32 %v5611_v53, %v6970_v62  ;;  %v8182_v53 = vld [vmem:[#allocation5_spill] sm:$0xff] }
 0x573   : > { %v5615_v31 = vpop.eup %5614  ;;  %v1991_v16 = vpack.c.bf16 %v1978_v51, %v1977_v42  ;;  %v1979_v44 = vmul.f32 %v5613_v4, %v6949_v12  ;;  %5626 = vrcp.f32 %v1954_v24  ;;  %v8183_v42 = vld [vmem:[#allocation7_spill] sm:$0xff]  ;;  %v8184_v51 = vld [vmem:[#allocation8_spill] sm:$0xff] }
 0x574   : > { %v5617_v59 = vpop.eup %5616  ;;  %v1981_v58 = vmul.f32 %v5615_v31, %v6988_v33  ;;  %5628 = vrcp.f32 %v7138_v41  ;;  %v3099_v33 = vsel %vm1195_vm2, %v3052_v50, 0  ;;  %v8185_v4 = vld [vmem:[#allocation12_spill] sm:$0xff] }
 0x575   : > { %v3050_v19 = vpop.permute.xlu1 %3049  ;;  %5078 = vmatprep.mubr.bf16.mxu0 %v1991_v16  ;;  %v1982_v47 = vmul.f32 %v5617_v59, %v7031_v6  ;;  %v1992_v62 = vpack.c.bf16 %v1980_v30, %v1979_v44  ;;  %v5619_v26 = vpop.eup %5618  ;;  %v8186_v16 = vld [vmem:[#allocation6_spill] sm:$0xff] }
 0x576   : > { %5416 = vmatprep.subr.msk.bf16.mxu1 %vm1195_vm2, %v3050_v19  ;;  %v3096_v20 = vsel %vm1195_vm2, %v3050_v19, 0  ;;  %v5621_v32 = vpop.eup %5620  ;;  %v8187_v30 = vld [vmem:[#allocation10_spill] sm:$0xff] }
 0x577   : > { %3035 = vrot.lane.b32.xlu1 %v6515_v60, %s5886_s23  ;;  %5221 = vmatpush3.bf16.xpose.msra.mxu1 %v3096_v20  ;;  %v1993_v3 = vpack.c.bf16 %v1982_v47, %v1981_v58  ;;  %v5623_v12 = vpop.eup %5622  ;;  %v1984_v60 = vmul.f32 %v5619_v26, %v6996_v28  ;;  %v1983_v1 = vmul.f32 %v5621_v32, %v6980_v39  ;;  %v7204_v28 = vld [vmem:[%s8144_s1] ss:$0 sm:$0xff]  ;;  %v8188_v47 = vld [vmem:[#allocation11_spill] sm:$0xff]  ;;  %v5446_v20 = vld [vmem:[%s6000_s20 + $0x8] sm:$0xff]  }
 0x578   : > { %5417 = vmatprep.subr.msk.bf16.mxu1 %vm1195_vm2, %v3052_v50  ;;  %v1986_v41 = vmul.f32 %v5623_v12, %v7012_v21  ;;  %v7207_v39 = vadd.f32 %v7204_v28, %v2578_v0  ;;  %v7215_v11 = vadd.f32 %v7204_v28, %v2579_v9  ;;  %v7226_v29 = vadd.f32 %v7204_v28, %v2580_v48  ;;  %v7248_v50 = vld [vmem:[%s6000_s20] sm:$0xff]  }
 0x579   : > { %v3022_v6 = vpop.permute.xlu1 %3021  ;;  %v1994_v13 = vpack.c.bf16 %v1984_v60, %v1983_v1  ;;  %5090 = vmatprep.subr.bf16.mxu0 %v5446_v20 }
 0x57a   : > { %5079 = vmatmul.mubr.bf16.gmra.mrb[52].mxu0 %v1992_v62  ;;  %5224 = vmatprep.mubr.msk.bf16.mxu1 %vm1195_vm2, %v3022_v6 }
 0x57b   : > { %5082 = vmatprep.mubr.bf16.mxu0 %v1993_v3  ;;  %5091 = vmatpush3.bf16.msra.mxu0 %v5446_v20 }
 0x57c   : > { %v5625_v14 = vpop.eup %5624  ;;  %5108 = vmatprep.subr.bf16.mxu0 %v7248_v50 }
 0x57d   : > { %v1985_v49 = vmul.f32 %v5625_v14, %v7039_v43  ;;  %v5627_v40 = vpop.eup %5626  ;;  %v3024_v43 = vpop.permute.xlu0 %3023 }
 0x57e   : > { %v5629_v57 = vpop.eup %5628  ;;  %v1987_v21 = vmul.f32 %v5627_v40, %v7034_v61  ;;  %v3026_v36 = vpop.permute.xlu1 %3025  ;;  %v8180_v61 = vld [vmem:[#allocation32_spill] sm:$0xff] }
 0x57f   : > { %5223 = vmatpush3.bf16.xpose.msra.mxu1 %v3099_v33  ;;  %v1995_v15 = vpack.c.bf16 %v1986_v41, %v1985_v49  ;;  %v1988_v2 = vmul.f32 %v5629_v57, %v7002_v17  ;;  %v2577_v34 = vmul.f32 0.25, %v8180_v61 }
 0x581   : > { %v1996_v24 = vpack.c.bf16 %v1988_v2, %v1987_v21  ;;  %v3028_v22 = vpop.permute.xlu0 %3027  ;;  %v7221_v45 = vadd.f32 %v7204_v28, %v2577_v34 }
 0x582   : > { %5083 = vmatmul.mubr.bf16.gmra.mrb[56].mxu0 %v1994_v13 }
 0x583   : > { %5086 = vmatprep.mubr.bf16.mxu0 %v1995_v15 }
 0x586   : > { %2623 = vmax.xlane.f32.xlu0 %v7207_v39  ;;  %5225 = vmatmul.mubr.msk.bf16.vlgmr.msra.gmra.mrb[48].mxu1 %vm1195_vm2, %v3024_v43 }
 0x587   : > { %5228 = vmatprep.mubr.msk.bf16.mxu1 %vm1195_vm2, %v3026_v36 }
 0x58a   : > { %2625 = vmax.xlane.f32.xlu0 %v7215_v11  ;;  %5087 = vmatmul.mubr.bf16.gmra.mrb[60].mxu0 %v1996_v24 }
 0x58e   : > { %5229 = vmatmul.mubr.msk.bf16.gmra.mrb[52].mxu1 %vm1195_vm2, %v3028_v22 }
 0x598   : > { %v2600_v17 = vpop.xlane.xlu0 %2599 }
 0x599   : > { %v2630_v32 = vsub.f32 %v7065_v55, %v2600_v17 }
 0x59b   : > { %2621 = vmax.xlane.f32.xlu1 %v7221_v45  ;;  %v2647_v60 = vmul.f32 1.442695, %v2630_v32 }
 0x59c   : > { %v2602_v25 = vpop.xlane.xlu0 %2601 }
 0x59d   : > { %v2631_v44 = vsub.f32 %v7070_v35, %v2602_v25 }
 0x59f   : > { %2627 = vmax.xlane.f32.xlu1 %v7226_v29  ;;  %v2649_v58 = vmul.f32 1.442695, %v2631_v44 }
 0x5a0   : > { %2749 = vrot.lane.b32.xlu0 %v8182_v53, %s5884_s26  ;;  %v3030_v5 = vpop.permute.xlu0 %3029 }
 0x5a1   : > { %5232 = vmatprep.mubr.msk.bf16.mxu1 %vm1195_vm2, %v3030_v5  ;;  %5630 = vpow2.f32 %v2649_v58 }
 0x5a4   : > { %2753 = vrot.lane.b32.xlu0 %v8183_v42, %s5884_s26 }
 0x5a8   : > { %2755 = vrot.lane.b32.xlu0 %v8184_v51, %s5884_s26 }
 0x5ab   : > { %v7256_v41 = vpop.eup %5630 }
 0x5ac   : > { %2761 = vrot.lane.b32.xlu0 %v8185_v4, %s5884_s26 }
 0x5ae   : > { %v2598_v31 = vpop.xlane.xlu1 %2597 }
 0x5af   : > { %v2629_v62 = vsub.f32 %v7084_v46, %v2598_v31 }
 0x5b0   : > { %2751 = vrot.lane.b32.xlu1 %v8186_v16, %s5884_s26 }
 0x5b1   : > { %v2645_v26 = vmul.f32 1.442695, %v2629_v62 }
 0x5b2   : > { %v2604_v59 = vpop.xlane.xlu1 %2603 }
 0x5b3   : > { %v2632_v6 = vsub.f32 %v7091_v63, %v2604_v59  ;;  %5632 = vpow2.f32 %v2645_v26 }
 0x5b4   : > { %2757 = vrot.lane.b32.xlu1 %v8187_v30, %s5884_s26 }
 0x5b5   : > { %v2651_v12 = vmul.f32 1.442695, %v2632_v6 }
 0x5b6   : > { %v3032_v19 = vpop.permute.xlu1 %3031 }
 0x5b7   : > { %5233 = vmatmul.mubr.msk.bf16.gmra.mrb[56].mxu1 %vm1195_vm2, %v3032_v19  ;;  %5634 = vpow2.f32 %v2651_v12 }
 0x5b8   : > { %2759 = vrot.lane.b32.xlu1 %v8188_v47, %s5884_s26 }
 0x5bd   : > { %v7259_v55 = vpop.eup %5632 }
 0x5c1   : > { %v7272_v15 = vpop.eup %5634 }
 0x5d2   : > { %v2608_v3 = vpop.xlane.xlu0 %2607 }
 0x5d3   : > { %v2634_v49 = vsub.f32 %v7108_v23, %v2608_v3 }
 0x5d5   : > { %v2655_v46 = vmul.f32 1.442695, %v2634_v49 }
 0x5d6   : > { %v2610_v14 = vpop.xlane.xlu0 %2609 }
 0x5d7   : > { %v2635_v35 = vsub.f32 %v7114_v52, %v2610_v14 }
 0x5d9   : > { %v2657_v33 = vmul.f32 1.442695, %v2635_v35 }
 0x5da   : > { %v2614_v1 = vpop.xlane.xlu0 %2613 }
 0x5db   : > { %5636 = vpow2.f32 %v2657_v33  ;;  %v2637_v17 = vsub.f32 %v7126_v37, %v2614_v1  ;;  %v8189_v37 = vmov 0  }
 0x5dc   : > { %2681 = vadd.xlane.f32.xlu1 %v7256_v41  ;;  %5638 = vpow2.f32 %v2647_v60 }
 0x5dd   : > { %5640 = vpow2.f32 %v2655_v46  ;;  %v2661_v31 = vmul.f32 1.442695, %v2637_v17 }
 0x5de   : > { %v2618_v63 = vpop.xlane.xlu0 %2617  ;;  %v7261_v18 = vpop.f32.mrb[32].mxu0 }
 0x5df   : > { %v7263_v0 = vpop.f32.mrb[33].mxu0  ;;  %v2639_v24 = vsub.f32 %v7132_v7, %v2618_v63 }
 0x5e0   : > { %2677 = vadd.xlane.f32.xlu1 %v7259_v55  ;;  %v7266_v23 = vpop.f32.mrb[34].mxu0 }
 0x5e1   : > { %v7270_v13 = vpop.f32.mrb[35].mxu0  ;;  %v2665_v54 = vmul.f32 1.442695, %v2639_v24 }
 0x5e2   : > { %v3034_v40 = vpop.permute.xlu0 %3033  ;;  %v1628_v57 = vpack.c.bf16 %v7270_v13, %v7263_v0 }
 0x5e3   : > { %5236 = vmatprep.mubr.msk.bf16.mxu1 %vm1195_vm2, %v3034_v40 }
 0x5e4   : > { %2683 = vadd.xlane.f32.xlu1 %v7272_v15 }
 0x5e5   : > { %v7278_v8 = vpop.eup %5636 }
 0x5e6   : > { %2689 = vadd.xlane.f32.xlu0 %v7278_v8  ;;  %v7281_v9 = vpop.eup %5638 }
 0x5e7   : > { %v2606_v21 = vpop.xlane.xlu1 %2605  ;;  %v7285_v2 = vpop.eup %5640 }
 0x5e8   : > { %v2633_v43 = vsub.f32 %v7145_v10, %v2606_v21  ;;  %2679 = vadd.xlane.f32.xlu1 %v7281_v9 }
 0x5ea   : > { %v2653_v36 = vmul.f32 1.442695, %v2633_v43 }
 0x5eb   : > { %v2612_v22 = vpop.xlane.xlu1 %2611 }
 0x5ec   : > { %5642 = vpow2.f32 %v2653_v36  ;;  %v2636_v61 = vsub.f32 %v7150_v56, %v2612_v22  ;;  %2687 = vadd.xlane.f32.xlu1 %v7285_v2 }
 0x5ee   : > { %v2659_v34 = vmul.f32 1.442695, %v2636_v61 }
 0x5ef   : > { %v2616_v48 = vpop.xlane.xlu1 %2615 }
 0x5f0   : > { %5644 = vpow2.f32 %v2659_v34  ;;  %v2638_v10 = vsub.f32 %v7162_v38, %v2616_v48 }
 0x5f1   : > { %5646 = vpow2.f32 %v2665_v54 }
 0x5f2   : > { %v2663_v25 = vmul.f32 1.442695, %v2638_v10 }
 0x5f3   : > { %v2620_v5 = vpop.xlane.xlu1 %2619 }
 0x5f4   : > { %5648 = vpow2.f32 %v2663_v25  ;;  %v2640_v7 = vsub.f32 %v7166_v27, %v2620_v5 }
 0x5f5   : > { %5650 = vpow2.f32 %v2661_v31 }
 0x5f6   : > { %v7293_v59 = vpop.eup %5642  ;;  %v2667_v19 = vmul.f32 1.442695, %v2640_v7 }
 0x5f7   : > { %v3036_v56 = vpop.permute.xlu1 %3035  ;;  %2685 = vadd.xlane.f32.xlu0 %v7293_v59 }
 0x5f8   : > { %5237 = vmatmul.mubr.msk.bf16.gmra.mrb[60].mxu1 %vm1195_vm2, %v3036_v56  ;;  %5652 = vpow2.f32 %v2667_v19 }
 0x5f9   : > { %4088 = vmatprep.mubr.bf16.mxu1 %v8189_v37 }
 0x5fa   : > { %v7298_v20 = vpop.eup %5644 }
 0x5fb   : > { %2691 = vadd.xlane.f32.xlu0 %v7298_v20  ;;  %v7301_v38 = vpop.eup %5646 }
 0x5fe   : > { %v7303_v44 = vpop.eup %5648 }
 0x5ff   : > { %2695 = vadd.xlane.f32.xlu1 %v7303_v44  ;;  %2697 = vadd.xlane.f32.xlu0 %v7301_v38  ;;  %v7307_v27 = vpop.eup %5650 }
 0x602   : > { %v7310_v58 = vpop.eup %5652 }
 0x603   : > { %2693 = vadd.xlane.f32.xlu0 %v7307_v27 }
 0x607   : > { %2699 = vadd.xlane.f32.xlu0 %v7310_v58 }
 0x613   : > { %v2624_v62 = vpop.xlane.xlu0 %2623 }
 0x614   : > { %v2642_v26 = vsub.f32 %v7207_v39, %v2624_v62 }
 0x616   : > { %v2671_v6 = vmul.f32 1.442695, %v2642_v26 }
 0x617   : > { %v2626_v3 = vpop.xlane.xlu0 %2625 }
 0x618   : > { %5654 = vpow2.f32 %v2671_v6  ;;  %v2643_v32 = vsub.f32 %v7215_v11, %v2626_v3 }
 0x61a   : > { %v2673_v12 = vmul.f32 1.442695, %v2643_v32  ;;  %v8190_v32 = vld [vmem:[#allocation13_spill] sm:$0xff] }
 0x61c   : > { %5656 = vpow2.f32 %v2673_v12  ;;  %v2750_v12 = vpop.permute.xlu0 %2749 }
 0x621   : > { %v7315_v14 = vpop.f32.mrb[36].mxu0 }
 0x622   : > { %v7317_v35 = vpop.eup %5654  ;;  %v7319_v60 = vpop.f32.mrb[37].mxu0 }
 0x623   : > { %v7321_v49 = vpop.f32.mrb[38].mxu0  ;;  %2703 = vadd.xlane.f32.xlu0 %v7317_v35 }
 0x624   : > { %v7326_v33 = vpop.f32.mrb[39].mxu0 }
 0x626   : > { %v7330_v1 = vpop.eup %5656 }
 0x627   : > { %2705 = vadd.xlane.f32.xlu1 %v7330_v1 }
 0x628   : > { %v2622_v46 = vpop.xlane.xlu1 %2621 }
 0x629   : > { %v2641_v63 = vsub.f32 %v7221_v45, %v2622_v46 }
 0x62b   : > { %v2669_v40 = vmul.f32 1.442695, %v2641_v63 }
 0x62c   : > { %v2628_v21 = vpop.xlane.xlu1 %2627 }
 0x62d   : > { %5658 = vpow2.f32 %v2669_v40  ;;  %v2644_v43 = vsub.f32 %v7226_v29, %v2628_v21  ;;  %v7335_v36 = vpop.f32.mrb[40].mxu0 }
 0x62e   : > { %v7337_v24 = vpop.f32.mrb[41].mxu0 }
 0x62f   : > { %v2675_v22 = vmul.f32 1.442695, %v2644_v43  ;;  %v7339_v61 = vpop.f32.mrb[42].mxu0 }
 0x630   : > { %v7343_v54 = vpop.f32.mrb[43].mxu0 }
 0x631   : > { %5660 = vpow2.f32 %v2675_v22 }
 0x635   : > { %v7347_v48 = vpop.f32.mrb[44].mxu0 }
 0x636   : > { %v7349_v17 = vpop.f32.mrb[45].mxu0 }
 0x637   : > { %v7351_v29 = vpop.eup %5658  ;;  %v7353_v10 = vpop.f32.mrb[46].mxu0 }
 0x638   : > { %v7357_v5 = vpop.f32.mrb[47].mxu0  ;;  %2701 = vadd.xlane.f32.xlu1 %v7351_v29 }
 0x63b   : > { %v7362_v7 = vpop.eup %5660 }
 0x63c   : > { %2707 = vadd.xlane.f32.xlu0 %v7362_v7 }
 0x645   : > { %v5076_v56 = vpop.f32.mrb[48].mxu0 }
 0x646   : > { %v2063_v19 = vpop.f32.mrb[49].mxu0 }
 0x647   : > { %v5077_v62 = vpop.f32.mrb[50].mxu0 }
 0x648   : > { %v2127_v26 = vpack.c.bf16 %v5077_v62, %v5076_v56  ;;  %v2066_v6 = vpop.f32.mrb[51].mxu0 }
 0x649   : > { %v2126_v3 = vpack.c.bf16 %v2066_v6, %v2063_v19  ;;  %2763 = vrot.lane.b32.xlu1 %v8190_v32, %s5884_s26 }
 0x64b   : > { %5092 = vmatprep.mubr.msk.bf16.mxu0 %vm1195_vm2, %v2126_v3 }
 0x64c   : > { %5093 = vmatmul.mubr.msk.bf16.vlgmr.msra.gmra.mrb[64].mxu0 %vm1195_vm2, %v2127_v26  ;;  %v2752_v26 = vpop.permute.xlu1 %2751 }
 0x64d   : > { %5109 = vmatpush3.bf16.msra.mxu0 %v7248_v50  ;;  %v5080_v46 = vpop.f32.mrb[52].mxu0 }
 0x64e   : > { %5158 = vmatprep.subr.bf16.mxu0 %v2750_v12  ;;  %v2079_v63 = vpop.f32.mrb[53].mxu0 }
 0x64f   : > { %v5081_v40 = vpop.f32.mrb[54].mxu0 }
 0x650   : > { %v2129_v21 = vpack.c.bf16 %v5081_v40, %v5080_v46  ;;  %v2082_v43 = vpop.f32.mrb[55].mxu0 }
 0x651   : > { %v2128_v22 = vpack.c.bf16 %v2082_v43, %v2079_v63 }
 0x653   : > { %5096 = vmatprep.mubr.msk.bf16.mxu0 %vm1195_vm2, %v2128_v22  ;;  %v2758_v22 = vpop.permute.xlu1 %2757 }
 0x654   : > { %5097 = vmatmul.mubr.msk.bf16.gmra.mrb[68].mxu0 %vm1195_vm2, %v2129_v21 }
 0x655   : > { %v5084_v56 = vpop.f32.mrb[56].mxu0 }
 0x656   : > { %v2095_v19 = vpop.f32.mrb[57].mxu0 }
 0x657   : > { %v5085_v62 = vpop.f32.mrb[58].mxu0  ;;  %v2760_v11 = vpop.permute.xlu1 %2759 }
 0x658   : > { %v2131_v6 = vpack.c.bf16 %v5085_v62, %v5084_v56  ;;  %v2098_v3 = vpop.f32.mrb[59].mxu0 }
 0x659   : > { %v2130_v25 = vpack.c.bf16 %v2098_v3, %v2095_v19  ;;  %v5226_v31 = vpop.f32.mrb[48].mxu1 }
 0x65a   : > { %v3135_v50 = vpop.f32.mrb[49].mxu1  ;;  %v3200_v3 = vmul.f32 0.25, %v5226_v31 }
 0x65b   : > { %v3198_v34 = vmul.f32 0.25, %v3135_v50  ;;  %5100 = vmatprep.mubr.msk.bf16.mxu0 %vm1195_vm2, %v2130_v25  ;;  %v5227_v45 = vpop.f32.mrb[50].mxu1 }
 0x65c   : > { %5101 = vmatmul.mubr.msk.bf16.gmra.mrb[72].mxu0 %vm1195_vm2, %v2131_v6  ;;  %v3138_v46 = vpop.f32.mrb[51].mxu1  ;;  %v7385_v52 = vadd.f32 %v7204_v28, %v3200_v3  ;;  %v2754_v3 = vpop.permute.xlu0 %2753 }
 0x65d   : > { %v7375_v63 = vadd.f32 %v7204_v28, %v3198_v34  ;;  %v3199_v40 = vmul.f32 0.25, %v3138_v46  ;;  %v5088_v21 = vpop.f32.mrb[60].mxu0 }
 0x65e   : > { %v2111_v43 = vpop.f32.mrb[61].mxu0 }
 0x65f   : > { %v5089_v56 = vpop.f32.mrb[62].mxu0  ;;  %3230 = vmax.xlane.f32.xlu0 %v7375_v63  ;;  %v7379_v50 = vadd.f32 %v7204_v28, %v3199_v40 }
 0x660   : > { %v2133_v19 = vpack.c.bf16 %v5089_v56, %v5088_v21  ;;  %v2114_v62 = vpop.f32.mrb[63].mxu0  ;;  %v3201_v21 = vmul.f32 0.25, %v5227_v45  ;;  %v8191_v45 = vpack.c.bf16 %v7266_v23, %v7261_v18 }
 0x661   : > { %v2132_v25 = vpack.c.bf16 %v2114_v62, %v2111_v43  ;;  %v5230_v39 = vpop.f32.mrb[52].mxu1 }
 0x662   : > { %v3151_v6 = vpop.f32.mrb[53].mxu1  ;;  %v7393_v40 = vadd.f32 %v7204_v28, %v3201_v21  ;;  %v3204_v0 = vmul.f32 0.25, %v5230_v39 }
 0x663   : > { %5104 = vmatprep.mubr.msk.bf16.mxu0 %vm1195_vm2, %v2132_v25  ;;  %v5231_v34 = vpop.f32.mrb[54].mxu1  ;;  %3232 = vmax.xlane.f32.xlu0 %v7379_v50  ;;  %v3202_v43 = vmul.f32 0.25, %v3151_v6  ;;  %v8194_v25 = vpack.c.bf16 %v7343_v54, %v7337_v24  ;;  %v8196_v54 = vpack.c.bf16 %v7357_v5, %v7349_v17 }
 0x664   : > { %5105 = vmatmul.mubr.msk.bf16.gmra.mrb[76].mxu0 %vm1195_vm2, %v2133_v19  ;;  %v3154_v46 = vpop.f32.mrb[55].mxu1  ;;  %v7413_v18 = vadd.f32 %v7204_v28, %v3204_v0  ;;  %v3205_v23 = vmul.f32 0.25, %v5231_v34 }
 0x665   : > { %5110 = vmatprep.mubr.msk.bf16.mxu0 %vm1195_vm2, %v1628_v57  ;;  %v3203_v31 = vmul.f32 0.25, %v3154_v46  ;;  %v7404_v13 = vadd.f32 %v7204_v28, %v3202_v43  ;;  %v8192_v57 = vpack.c.bf16 %v7326_v33, %v7319_v60  ;;  %v8193_v60 = vpack.c.bf16 %v7321_v49, %v7315_v14  ;;  %v2756_v33 = vpop.permute.xlu0 %2755 }
 0x666   : > { %v8195_v49 = vpack.c.bf16 %v7339_v61, %v7335_v36 }
 0x667   : > { %3234 = vmax.xlane.f32.xlu0 %v7385_v52  ;;  %v7397_v19 = vadd.f32 %v7204_v28, %v3203_v31 }
 0x669   : > { %v2682_v56 = vpop.xlane.xlu1 %2681  ;;  %v2762_v61 = vpop.permute.xlu0 %2761 }
 0x66a   : > { %5662 = vrcp.f32 %v2682_v56 }
 0x66b   : > { %3236 = vmax.xlane.f32.xlu0 %v7393_v40 }
 0x66c   : > { %5111 = vmatmul.mubr.msk.bf16.vlgmr.msra.gmra.mrb[64].mxu0 %vm1195_vm2, %v8191_v45 }
 0x66d   : > { %5159 = vmatpush3.bf16.msra.mxu0 %v2750_v12  ;;  %5114 = vmatprep.mubr.msk.bf16.mxu0 %vm1195_vm2, %v8192_v57  ;;  %v2678_v62 = vpop.xlane.xlu1 %2677  ;;  %v7421_v12 = vadd.f32 %v7204_v28, %v3205_v23 }
 0x66e   : > { %3240 = vmax.xlane.f32.xlu1 %v7397_v19  ;;  %5160 = vmatprep.subr.bf16.mxu0 %v2752_v26 }
 0x66f   : > { %3238 = vmax.xlane.f32.xlu0 %v7404_v13 }
 0x671   : > { %5161 = vmatpush3.bf16.msra.mxu0 %v2752_v26  ;;  %v2684_v39 = vpop.xlane.xlu1 %2683 }
 0x672   : > { %5664 = vrcp.f32 %v2684_v39  ;;  %5162 = vmatprep.subr.bf16.mxu0 %v2754_v3 }
 0x673   : > { %3242 = vmax.xlane.f32.xlu0 %v7413_v18  ;;  %5666 = vrcp.f32 %v2678_v62  ;;  %v2690_v62 = vpop.xlane.xlu0 %2689 }
 0x674   : > { %5115 = vmatmul.mubr.msk.bf16.gmra.mrb[68].mxu0 %vm1195_vm2, %v8193_v60  ;;  %v5663_v6 = vpop.eup %5662 }
 0x675   : > { %5163 = vmatpush3.bf16.msra.mxu0 %v2754_v3  ;;  %5118 = vmatprep.mubr.msk.bf16.mxu0 %vm1195_vm2, %v8194_v25  ;;  %v2680_v26 = vpop.xlane.xlu1 %2679  ;;  %v7433_v34 = vmul.f32 %v5663_v6, %v7256_v41 }
 0x676   : > { %5668 = vrcp.f32 %v2680_v26  ;;  %5164 = vmatprep.subr.bf16.mxu0 %v2756_v33 }
 0x677   : > { %3244 = vmax.xlane.f32.xlu0 %v7421_v12 }
 0x679   : > { %5165 = vmatpush3.bf16.msra.mxu0 %v2756_v33  ;;  %v2688_v39 = vpop.xlane.xlu1 %2687 }
 0x67a   : > { %5166 = vmatprep.subr.bf16.mxu0 %v2758_v22 }
 0x67c   : > { %v5665_v14 = vpop.eup %5664  ;;  %5119 = vmatmul.mubr.msk.bf16.gmra.mrb[72].mxu0 %vm1195_vm2, %v8195_v49 }
 0x67d   : > { %v7436_v24 = vmul.f32 %v5665_v14, %v7272_v15  ;;  %5167 = vmatpush3.bf16.msra.mxu0 %v2758_v22  ;;  %5122 = vmatprep.mubr.msk.bf16.mxu0 %vm1195_vm2, %v8196_v54  ;;  %v5667_v46 = vpop.eup %5666  ;;  %v8197_v22 = vpack.c.bf16 %v7353_v10, %v7347_v48 }
 0x67e   : > { %5168 = vmatprep.subr.bf16.mxu0 %v2760_v11  ;;  %v2725_v41 = vmul.f32 %v5667_v46, %v7259_v55 }
 0x67f   : > { %v2742_v21 = vpack.c.bf16 %v7436_v24, %v7433_v34 }
 0x680   : > { %v5669_v36 = vpop.eup %5668 }
 0x681   : > { %5169 = vmatpush3.bf16.msra.mxu0 %v2760_v11  ;;  %v2726_v31 = vmul.f32 %v5669_v36, %v7281_v9 }
 0x682   : > { %5170 = vmatprep.subr.bf16.mxu0 %v2762_v61 }
 0x683   : > { %v2741_v15 = vpack.c.bf16 %v2726_v31, %v2725_v41 }
 0x684   : > { %5123 = vmatmul.mubr.msk.bf16.gmra.mrb[76].mxu0 %vm1195_vm2, %v8197_v22  ;;  %v2686_v3 = vpop.xlane.xlu0 %2685 }
 0x685   : > { %5171 = vmatpush3.bf16.msra.mxu0 %v2762_v61  ;;  %5174 = vmatprep.mubr.bf16.mxu0 %v2741_v15  ;;  %5670 = vrcp.f32 %v2686_v3 }
 0x686   : > { %5672 = vrcp.f32 %v2688_v39 }
 0x688   : > { %v2692_v23 = vpop.xlane.xlu0 %2691 }
 0x689   : > { %5674 = vrcp.f32 %v2692_v23 }
 0x68a   : > { %v5234_v17 = vpop.f32.mrb[56].mxu1 }
 0x68b   : > { %v3167_v5 = vpop.f32.mrb[57].mxu1  ;;  %v3208_v9 = vmul.f32 0.25, %v5234_v17 }
 0x68c   : > { %v3206_v43 = vmul.f32 0.25, %v3167_v5  ;;  %v5235_v56 = vpop.f32.mrb[58].mxu1  ;;  %v2698_v60 = vpop.xlane.xlu0 %2697 }
 0x68d   : > { %v3170_v45 = vpop.f32.mrb[59].mxu1  ;;  %v7459_v48 = vadd.f32 %v7204_v28, %v3208_v9  ;;  %v3209_v10 = vmul.f32 0.25, %v5235_v56  ;;  %v2696_v33 = vpop.xlane.xlu1 %2695 }
 0x68e   : > { %v7451_v11 = vadd.f32 %v7204_v28, %v3206_v43  ;;  %v3207_v55 = vmul.f32 0.25, %v3170_v45 }
 0x68f   : > { %v7463_v57 = vadd.f32 %v7204_v28, %v3209_v10  ;;  %v5671_v14 = vpop.eup %5670 }
 0x690   : > { %3246 = vmax.xlane.f32.xlu0 %v7451_v11  ;;  %v7455_v0 = vadd.f32 %v7204_v28, %v3207_v55  ;;  %v2694_v25 = vpop.xlane.xlu0 %2693  ;;  %v5673_v34 = vpop.eup %5672  ;;  %v2729_v54 = vmul.f32 %v5671_v14, %v7293_v59 }
 0x691   : > { %5676 = vrcp.f32 %v2694_v25  ;;  %v2730_v61 = vmul.f32 %v5673_v34, %v7285_v2 }
 0x692   : > { %5678 = vrcp.f32 %v2690_v62 }
 0x693   : > { %5680 = vrcp.f32 %v2696_v33  ;;  %v5675_v31 = vpop.eup %5674  ;;  %v2743_v17 = vpack.c.bf16 %v2730_v61, %v2729_v54 }
 0x694   : > { %3248 = vmax.xlane.f32.xlu0 %v7455_v0  ;;  %v2700_v49 = vpop.xlane.xlu0 %2699  ;;  %v2732_v62 = vmul.f32 %v5675_v31, %v7298_v20 }
 0x695   : > { %5682 = vrcp.f32 %v2700_v49 }
 0x698   : > { %3250 = vmax.xlane.f32.xlu0 %v7459_v48 }
 0x69b   : > { %v5677_v5 = vpop.eup %5676 }
 0x69c   : > { %3252 = vmax.xlane.f32.xlu0 %v7463_v57  ;;  %v5679_v59 = vpop.eup %5678  ;;  %v2733_v3 = vmul.f32 %v5677_v5, %v7307_v27 }
 0x69d   : > { %v5681_v9 = vpop.eup %5680 }
 0x69f   : > { %v5683_v25 = vpop.eup %5682 }
 0x6a0   : > { %v2736_v49 = vmul.f32 %v5683_v25, %v7310_v58 }
 0x6b0   : > { %v2704_v46 = vpop.xlane.xlu0 %2703 }
 0x6b4   : > { %v2706_v26 = vpop.xlane.xlu1 %2705 }
 0x6c5   : > { %v2702_v6 = vpop.xlane.xlu1 %2701 }
 0x6c6   : > { %5684 = vrcp.f32 %v2702_v6 }
 0x6c7   : > { %5686 = vrcp.f32 %v2698_v60  ;;  %v2734_v60 = vmul.f32 %v5681_v9, %v7303_v44 }
 0x6c8   : > { %5688 = vrcp.f32 %v2704_v46 }
 0x6c9   : > { %v2764_v24 = vpop.permute.xlu1 %2763  ;;  %v2708_v2 = vpop.xlane.xlu0 %2707  ;;  %v2745_v20 = vpack.c.bf16 %v2734_v60, %v2733_v3 }
 0x6ca   : > { %5172 = vmatprep.subr.bf16.mxu0 %v2764_v24  ;;  %5690 = vrcp.f32 %v2708_v2 }
 0x6cb   : > { %5173 = vmatpush3.bf16.msra.mxu0 %v2764_v24  ;;  %v5238_v36 = vpop.f32.mrb[60].mxu1  ;;  %5692 = vrcp.f32 %v2706_v26 }
 0x6cc   : > { %v3183_v41 = vpop.f32.mrb[61].mxu1  ;;  %v3212_v23 = vmul.f32 0.25, %v5238_v36 }
 0x6cd   : > { %v3210_v15 = vmul.f32 0.25, %v3183_v41  ;;  %v5239_v22 = vpop.f32.mrb[62].mxu1 }
 0x6ce   : > { %v3213_v43 = vmul.f32 0.25, %v5239_v22  ;;  %5175 = vmatmul.mubr.bf16.vlgmr.msra.gmra.mrb[80].mxu0 %v2742_v21  ;;  %v3186_v56 = vpop.f32.mrb[63].mxu1  ;;  %v2731_v21 = vmul.f32 %v5679_v59, %v7278_v8  ;;  %v7485_v14 = vadd.f32 %v7204_v28, %v3212_v23 }
 0x6cf   : > { %v7469_v45 = vadd.f32 %v7204_v28, %v3210_v15  ;;  %v3211_v55 = vmul.f32 0.25, %v3186_v56  ;;  %5178 = vmatprep.mubr.bf16.mxu0 %v2743_v17 }
 0x6d0   : > { %v7472_v10 = vadd.f32 %v7204_v28, %v3213_v43  ;;  %v2744_v33 = vpack.c.bf16 %v2732_v62, %v2731_v21  ;;  %v5685_v6 = vpop.eup %5684 }
 0x6d1   : > { %3254 = vmax.xlane.f32.xlu0 %v7469_v45  ;;  %v7480_v39 = vadd.f32 %v7204_v28, %v3211_v55  ;;  %v5687_v27 = vpop.eup %5686  ;;  %v2737_v44 = vmul.f32 %v5685_v6, %v7351_v29 }
 0x6d2   : > { %3260 = vmax.xlane.f32.xlu1 %v7472_v10  ;;  %v5689_v8 = vpop.eup %5688  ;;  %v2735_v26 = vmul.f32 %v5687_v27, %v7301_v38  ;;  %v5448_v38 = vld [vmem:[%s6000_s20 + $0x10] sm:$0xff]  }
 0x6d3   : > { %v2738_v34 = vmul.f32 %v5689_v8, %v7317_v35  ;;  %5190 = vmatprep.subr.bf16.mxu0 %v5448_v38 }
 0x6d4   : > { %v2746_v24 = vpack.c.bf16 %v2736_v49, %v2735_v26  ;;  %v5691_v54 = vpop.eup %5690  ;;  %5191 = vmatpush3.bf16.msra.mxu0 %v5448_v38 }
 0x6d5   : > { %3256 = vmax.xlane.f32.xlu0 %v7480_v39  ;;  %v2747_v46 = vpack.c.bf16 %v2738_v34, %v2737_v44  ;;  %v5693_v36 = vpop.eup %5692  ;;  %v2740_v28 = vmul.f32 %v5691_v54, %v7362_v7 }
 0x6d6   : > { %5179 = vmatmul.mubr.bf16.gmra.mrb[84].mxu0 %v2744_v33  ;;  %v2739_v61 = vmul.f32 %v5693_v36, %v7330_v1 }
 0x6d7   : > { %5182 = vmatprep.mubr.bf16.mxu0 %v2745_v20 }
 0x6d8   : > { %v2748_v58 = vpack.c.bf16 %v2740_v28, %v2739_v61 }
 0x6d9   : > { %3258 = vmax.xlane.f32.xlu0 %v7485_v14 }
 0x6de   : > { %5183 = vmatmul.mubr.bf16.gmra.mrb[88].mxu0 %v2746_v24 }
 0x6df   : > { %5186 = vmatprep.mubr.bf16.mxu0 %v2747_v46 }
 0x6e3   : > { %3384 = vrot.lane.b32.xlu1 %v8186_v16, %s5886_s23 }
 0x6e6   : > { %5187 = vmatmul.mubr.bf16.gmra.mrb[92].mxu0 %v2748_v58 }
 0x6e7   : > { %3392 = vrot.lane.b32.xlu1 %v8188_v47, %s5886_s23 }
 0x6ec   : > { %v3231_v35 = vpop.xlane.xlu0 %3230 }
 0x6ed   : > { %v3262_v47 = vsub.f32 %v7375_v63, %v3231_v35 }
 0x6ef   : > { %3382 = vrot.lane.b32.xlu0 %v8182_v53, %s5886_s23  ;;  %v3278_v15 = vmul.f32 1.442695, %v3262_v47 }
 0x6f0   : > { %v3233_v29 = vpop.xlane.xlu0 %3232 }
 0x6f3   : > { %3386 = vrot.lane.b32.xlu0 %v8183_v42, %s5886_s23  ;;  %v3263_v42 = vsub.f32 %v7379_v50, %v3233_v29 }
 0x6f4   : > { %v3235_v1 = vpop.xlane.xlu0 %3234 }
 0x6f5   : > { %v3264_v16 = vsub.f32 %v7385_v52, %v3235_v1  ;;  %v3280_v52 = vmul.f32 1.442695, %v3263_v42 }
 0x6f7   : > { %3388 = vrot.lane.b32.xlu0 %v8184_v51, %s5886_s23  ;;  %v3282_v41 = vmul.f32 1.442695, %v3264_v16 }
 0x6f8   : > { %v3237_v7 = vpop.xlane.xlu0 %3236 }
 0x6f9   : > { %5694 = vpow2.f32 %v3282_v41  ;;  %v3265_v53 = vsub.f32 %v7393_v40, %v3237_v7 }
 0x6fa   : > { %5696 = vpow2.f32 %v3278_v15 }
 0x6fb   : > { %3390 = vrot.lane.b32.xlu0 %v8187_v30, %s5886_s23  ;;  %v3284_v17 = vmul.f32 1.442695, %v3265_v53  ;;  %v3241_v40 = vpop.xlane.xlu1 %3240 }
 0x6fc   : > { %v3239_v31 = vpop.xlane.xlu0 %3238  ;;  %v3267_v50 = vsub.f32 %v7397_v19, %v3241_v40 }
 0x6fd   : > { %5698 = vpow2.f32 %v3284_v17  ;;  %v3266_v5 = vsub.f32 %v7404_v13, %v3239_v31 }
 0x6fe   : > { %5700 = vpow2.f32 %v3280_v52  ;;  %v3288_v9 = vmul.f32 1.442695, %v3267_v50 }
 0x6ff   : > { %v3286_v59 = vmul.f32 1.442695, %v3266_v5 }
 0x700   : > { %v3243_v22 = vpop.xlane.xlu0 %3242 }
 0x701   : > { %v3268_v51 = vsub.f32 %v7413_v18, %v3243_v22 }
 0x703   : > { %v7513_v43 = vpop.eup %5694  ;;  %v3290_v63 = vmul.f32 1.442695, %v3268_v51 }
 0x704   : > { %v3245_v30 = vpop.xlane.xlu0 %3244  ;;  %v7517_v55 = vpop.eup %5696 }
 0x705   : > { %v3269_v56 = vsub.f32 %v7421_v12, %v3245_v30  ;;  %5702 = vpow2.f32 %v3290_v63 }
 0x706   : > { %5704 = vpow2.f32 %v3286_v59 }
 0x707   : > { %v3292_v18 = vmul.f32 1.442695, %v3269_v56  ;;  %v7521_v13 = vpop.eup %5698 }
 0x708   : > { %v7524_v12 = vpop.eup %5700 }
 0x709   : > { %5706 = vpow2.f32 %v3292_v18 }
 0x70a   : > { %5708 = vpow2.f32 %v3288_v9 }
 0x70b   : > { %3314 = vadd.xlane.f32.xlu1 %v7513_v43 }
 0x70f   : > { %3310 = vadd.xlane.f32.xlu1 %v7517_v55  ;;  %v7527_v2 = vpop.eup %5702 }
 0x710   : > { %v7529_v62 = vpop.eup %5704 }
 0x713   : > { %3316 = vadd.xlane.f32.xlu1 %v7521_v13  ;;  %v7533_v19 = vpop.eup %5706 }
 0x714   : > { %v7536_v3 = vpop.eup %5708 }
 0x717   : > { %3312 = vadd.xlane.f32.xlu1 %v7524_v12 }
 0x71a   : > { %3322 = vadd.xlane.f32.xlu0 %v7527_v2 }
 0x71b   : > { %3318 = vadd.xlane.f32.xlu1 %v7529_v62 }
 0x71d   : > { %v3247_v21 = vpop.xlane.xlu0 %3246 }
 0x71e   : > { %3324 = vadd.xlane.f32.xlu0 %v7533_v19  ;;  %v3270_v33 = vsub.f32 %v7451_v11, %v3247_v21 }
 0x720   : > { %v3294_v20 = vmul.f32 1.442695, %v3270_v33 }
 0x721   : > { %v3249_v23 = vpop.xlane.xlu0 %3248 }
 0x722   : > { %3320 = vadd.xlane.f32.xlu0 %v7536_v3  ;;  %v3271_v27 = vsub.f32 %v7455_v0, %v3249_v23  ;;  %5710 = vpow2.f32 %v3294_v20 }
 0x724   : > { %v3296_v49 = vmul.f32 1.442695, %v3271_v27 }
 0x725   : > { %v3251_v60 = vpop.xlane.xlu0 %3250 }
 0x726   : > { %v3272_v44 = vsub.f32 %v7459_v48, %v3251_v60 }
 0x729   : > { %v3253_v25 = vpop.xlane.xlu0 %3252 }
 0x72a   : > { %v3273_v6 = vsub.f32 %v7463_v57, %v3253_v25 }
 0x72c   : > { %3396 = vrot.lane.b32.xlu1 %v8190_v32, %s5886_s23  ;;  %v3300_v8 = vmul.f32 1.442695, %v3273_v6  ;;  %v3298_v32 = vmul.f32 1.442695, %v3272_v44  ;;  %v7547_v26 = vpop.eup %5710 }
 0x72e   : > { %5712 = vpow2.f32 %v3300_v8 }
 0x72f   : > { %5714 = vpow2.f32 %v3296_v49 }
 0x730   : > { %5716 = vpow2.f32 %v3298_v32 }
 0x738   : > { %3394 = vrot.lane.b32.xlu0 %v8185_v4, %s5886_s23  ;;  %v7550_v4 = vpop.eup %5712 }
 0x739   : > { %v7553_v11 = vpop.eup %5714 }
 0x73a   : > { %v7556_v0 = vpop.eup %5716 }
 0x750   : > { %3326 = vadd.xlane.f32.xlu1 %v7547_v26 }
 0x754   : > { %3332 = vadd.xlane.f32.xlu1 %v7550_v4 }
 0x757   : > { %3328 = vadd.xlane.f32.xlu0 %v7553_v11 }
 0x75b   : > { %3330 = vadd.xlane.f32.xlu0 %v7556_v0 }
 0x75e   : > { %v3255_v48 = vpop.xlane.xlu0 %3254 }
 0x75f   : > { %v3274_v57 = vsub.f32 %v7469_v45, %v3255_v48  ;;  %v3261_v34 = vpop.xlane.xlu1 %3260 }
 0x760   : > { %v3277_v54 = vsub.f32 %v7472_v10, %v3261_v34 }
 0x761   : > { %v3302_v24 = vmul.f32 1.442695, %v3274_v57 }
 0x762   : > { %v3257_v46 = vpop.xlane.xlu0 %3256  ;;  %v3308_v61 = vmul.f32 1.442695, %v3277_v54 }
 0x763   : > { %5718 = vpow2.f32 %v3302_v24  ;;  %v3275_v36 = vsub.f32 %v7480_v39, %v3257_v46 }
 0x765   : > { %v3304_v28 = vmul.f32 1.442695, %v3275_v36 }
 0x766   : > { %v3259_v58 = vpop.xlane.xlu0 %3258 }
 0x767   : > { %5720 = vpow2.f32 %v3304_v28  ;;  %v3276_v38 = vsub.f32 %v7485_v14, %v3259_v58  ;;  %v3385_v14 = vpop.permute.xlu1 %3384 }
 0x768   : > { %5722 = vpow2.f32 %v3308_v61 }
 0x769   : > { %v3306_v35 = vmul.f32 1.442695, %v3276_v38 }
 0x76a   : > { %v3383_v29 = vpop.permute.xlu0 %3382 }
 0x76b   : > { %5724 = vpow2.f32 %v3306_v35  ;;  %5240 = vmatprep.subr.bf16.mxu0 %v3383_v29  ;;  %v7575_v16 = vpop.permute.xlu1 %3392 }
 0x76d   : > { %v7563_v45 = vpop.eup %5718 }
 0x76e   : > { %3334 = vadd.xlane.f32.xlu0 %v7563_v45  ;;  %v3387_v7 = vpop.permute.xlu0 %3386 }
 0x771   : > { %v7566_v10 = vpop.eup %5720 }
 0x772   : > { %3336 = vadd.xlane.f32.xlu1 %v7566_v10  ;;  %v7569_v39 = vpop.eup %5722  ;;  %v3389_v41 = vpop.permute.xlu0 %3388 }
 0x775   : > { %v7571_v1 = vpop.eup %5724 }
 0x776   : > { %3340 = vadd.xlane.f32.xlu1 %v7569_v39  ;;  %3338 = vadd.xlane.f32.xlu0 %v7571_v1  ;;  %v3391_v22 = vpop.permute.xlu0 %3390 }
 0x798   : > { %v3315_v47 = vpop.xlane.xlu1 %3314 }
 0x79c   : > { %v3311_v31 = vpop.xlane.xlu1 %3310 }
 0x7a0   : > { %v3317_v52 = vpop.xlane.xlu1 %3316 }
 0x7a1   : > { %v5176_v15 = vpop.f32.mrb[80].mxu0 }
 0x7a2   : > { %v2807_v53 = vpop.f32.mrb[81].mxu0 }
 0x7a3   : > { %v5177_v42 = vpop.f32.mrb[82].mxu0 }
 0x7a4   : > { %v2871_v17 = vpack.c.bf16 %v5177_v42, %v5176_v15  ;;  %v2810_v51 = vpop.f32.mrb[83].mxu0  ;;  %v3313_v40 = vpop.xlane.xlu1 %3312 }
 0x7a5   : > { %v2870_v5 = vpack.c.bf16 %v2810_v51, %v2807_v53  ;;  %5726 = vrcp.f32 %v3313_v40 }
 0x7a6   : > { %5728 = vrcp.f32 %v3311_v31 }
 0x7a7   : > { %5192 = vmatprep.mubr.msk.bf16.mxu0 %vm1195_vm2, %v2870_v5  ;;  %v3323_v30 = vpop.xlane.xlu0 %3322  ;;  %5730 = vrcp.f32 %v3317_v52 }
 0x7a8   : > { %5193 = vmatmul.mubr.msk.bf16.vlgmr.msra.gmra.mrb[64].mxu0 %vm1195_vm2, %v2871_v17  ;;  %v3319_v27 = vpop.xlane.xlu1 %3318 }
 0x7a9   : > { %5241 = vmatpush3.bf16.msra.mxu0 %v3383_v29  ;;  %v5180_v63 = vpop.f32.mrb[84].mxu0 }
 0x7aa   : > { %5242 = vmatprep.subr.bf16.mxu0 %v3385_v14  ;;  %v2823_v56 = vpop.f32.mrb[85].mxu0 }
 0x7ab   : > { %v5181_v59 = vpop.f32.mrb[86].mxu0  ;;  %v3325_v9 = vpop.xlane.xlu0 %3324 }
 0x7ac   : > { %v2873_v50 = vpack.c.bf16 %v5181_v59, %v5180_v63  ;;  %v2826_v18 = vpop.f32.mrb[87].mxu0 }
 0x7ad   : > { %v2872_v21 = vpack.c.bf16 %v2826_v18, %v2823_v56  ;;  %5243 = vmatpush3.bf16.msra.mxu0 %v3385_v14 }
 0x7ae   : > { %5244 = vmatprep.subr.bf16.mxu0 %v3387_v7 }
 0x7af   : > { %5196 = vmatprep.mubr.msk.bf16.mxu0 %vm1195_vm2, %v2872_v21  ;;  %v3321_v33 = vpop.xlane.xlu0 %3320  ;;  %v5727_v49 = vpop.eup %5726 }
 0x7b0   : > { %5197 = vmatmul.mubr.msk.bf16.gmra.mrb[68].mxu0 %vm1195_vm2, %v2873_v50  ;;  %5732 = vrcp.f32 %v3321_v33  ;;  %v5729_v32 = vpop.eup %5728  ;;  %v3359_v34 = vmul.f32 %v5727_v49, %v7524_v12  ;;  %v3397_v12 = vpop.permute.xlu1 %3396 }
 0x7b1   : > { %5245 = vmatpush3.bf16.msra.mxu0 %v3387_v7  ;;  %v5184_v23 = vpop.f32.mrb[88].mxu0  ;;  %5734 = vrcp.f32 %v3315_v47  ;;  %v3358_v28 = vmul.f32 %v5729_v32, %v7517_v55  ;;  %v5731_v61 = vpop.eup %5730 }
 0x7b2   : > { %5246 = vmatprep.subr.bf16.mxu0 %v3389_v41  ;;  %v2839_v60 = vpop.f32.mrb[89].mxu0  ;;  %5736 = vrcp.f32 %v3319_v27  ;;  %v3361_v14 = vmul.f32 %v5731_v61, %v7521_v13 }
 0x7b3   : > { %v5185_v25 = vpop.f32.mrb[90].mxu0  ;;  %5738 = vrcp.f32 %v3325_v9  ;;  %v3395_v46 = vpop.permute.xlu0 %3394  ;;  %v3374_v58 = vpack.c.bf16 %v3359_v34, %v3358_v28 }
 0x7b4   : > { %v2875_v20 = vpack.c.bf16 %v5185_v25, %v5184_v23  ;;  %v2842_v6 = vpop.f32.mrb[91].mxu0  ;;  %5740 = vrcp.f32 %v3323_v30 }
 0x7b5   : > { %v2874_v8 = vpack.c.bf16 %v2842_v6, %v2839_v60  ;;  %5247 = vmatpush3.bf16.msra.mxu0 %v3389_v41  ;;  %v5449_v6 = vld [vmem:[%s6000_s20 + $0x18] sm:$0xff]  }
 0x7b6   : > { %5248 = vmatprep.subr.bf16.mxu0 %v3391_v22 }
 0x7b7   : > { %5200 = vmatprep.mubr.msk.bf16.mxu0 %vm1195_vm2, %v2874_v8 }
 0x7b8   : > { %5201 = vmatmul.mubr.msk.bf16.gmra.mrb[72].mxu0 %vm1195_vm2, %v2875_v20 }
 0x7b9   : > { %5249 = vmatpush3.bf16.msra.mxu0 %v3391_v22  ;;  %v5188_v44 = vpop.f32.mrb[92].mxu0 }
 0x7ba   : > { %5250 = vmatprep.subr.bf16.mxu0 %v7575_v16  ;;  %v2855_v48 = vpop.f32.mrb[93].mxu0  ;;  %v5733_v38 = vpop.eup %5732 }
 0x7bb   : > { %v5189_v57 = vpop.f32.mrb[94].mxu0  ;;  %v5735_v35 = vpop.eup %5734 }
 0x7bc   : > { %v2877_v24 = vpack.c.bf16 %v5189_v57, %v5188_v44  ;;  %v2858_v54 = vpop.f32.mrb[95].mxu0  ;;  %v5737_v29 = vpop.eup %5736  ;;  %v3360_v55 = vmul.f32 %v5735_v35, %v7513_v43 }
 0x7bd   : > { %v2876_v36 = vpack.c.bf16 %v2858_v54, %v2855_v48  ;;  %5251 = vmatpush3.bf16.msra.mxu0 %v7575_v16  ;;  %v3363_v16 = vmul.f32 %v5733_v38, %v7536_v3  ;;  %v3362_v7 = vmul.f32 %v5737_v29, %v7529_v62  ;;  %v5739_v41 = vpop.eup %5738 }
 0x7be   : > { %5252 = vmatprep.subr.bf16.mxu0 %v3395_v46  ;;  %v3375_v47 = vpack.c.bf16 %v3361_v14, %v3360_v55  ;;  %v5741_v15 = vpop.eup %5740  ;;  %v3365_v53 = vmul.f32 %v5739_v41, %v7533_v19 }
 0x7bf   : > { %5204 = vmatprep.mubr.msk.bf16.mxu0 %vm1195_vm2, %v2876_v36  ;;  %v3376_v31 = vpack.c.bf16 %v3363_v16, %v3362_v7  ;;  %v3364_v22 = vmul.f32 %v5741_v15, %v7527_v2  ;;  %v7617_v16 = vld [vmem:[%s8198_s30] ss:$0 sm:$0xff] }
 0x7c0   : > { %5205 = vmatmul.mubr.msk.bf16.gmra.mrb[76].mxu0 %vm1195_vm2, %v2877_v24 }
 0x7c1   : > { %5253 = vmatpush3.bf16.msra.mxu0 %v3395_v46  ;;  %5256 = vmatprep.mubr.bf16.mxu0 %v3374_v58  ;;  %v3377_v42 = vpack.c.bf16 %v3365_v53, %v3364_v22  ;;  %v5855_v53 = vld [vmem:[%s8079_s14] sm:$0xff] }
 0x7c2   : > { %5254 = vmatprep.subr.bf16.mxu0 %v3397_v12 }
 0x7c5   : > { %5255 = vmatpush3.bf16.msra.mxu0 %v3397_v12 }
 0x7c6   : > { %5272 = vmatprep.subr.bf16.mxu0 %v5449_v6 }
 0x7c8   : > { %5257 = vmatmul.mubr.bf16.vlgmr.msra.gmra.mrb[96].mxu0 %v3375_v47 }
 0x7c9   : > { %5260 = vmatprep.mubr.bf16.mxu0 %v3376_v31  ;;  %5273 = vmatpush3.bf16.msra.mxu0 %v5449_v6 }
 0x7d0   : > { %5261 = vmatmul.mubr.bf16.gmra.mrb[100].mxu0 %v3377_v42 }
 0x7dd   : > { %v3327_v13 = vpop.xlane.xlu1 %3326 }
 0x7de   : > { %5742 = vrcp.f32 %v3327_v13 }
 0x7e1   : > { %v3333_v3 = vpop.xlane.xlu1 %3332 }
 0x7e4   : > { %v3329_v17 = vpop.xlane.xlu0 %3328 }
 0x7e5   : > { %5744 = vrcp.f32 %v3329_v17 }
 0x7e6   : > { %5746 = vrcp.f32 %v3333_v3  ;;  %v5856_v3 = vld [vmem:[%s8079_s14 + $0x10] sm:$0xff] }
 0x7e8   : > { %v3331_v43 = vpop.xlane.xlu0 %3330  ;;  %v5743_v62 = vpop.eup %5742 }
 0x7e9   : > { %5748 = vrcp.f32 %v3331_v43  ;;  %v3366_v52 = vmul.f32 %v5743_v62, %v7547_v26  ;;  %v5857_v43 = vld [vmem:[%s8079_s14 + $0x8] sm:$0xff] }
 0x7ef   : > { %v5745_v51 = vpop.eup %5744 }
 0x7f0   : > { %v3367_v5 = vmul.f32 %v5745_v51, %v7553_v11  ;;  %v5747_v30 = vpop.eup %5746 }
 0x7f1   : > { %v3369_v56 = vmul.f32 %v5747_v30, %v7550_v4 }
 0x7f2   : > { %v3378_v19 = vpack.c.bf16 %v3367_v5, %v3366_v52  ;;  %v5858_v52 = vld [vmem:[%s8079_s14 + $0x18] sm:$0xff] }
 0x7f3   : > { %v5749_v63 = vpop.eup %5748 }
 0x7f4   : > { %5264 = vmatprep.mubr.bf16.mxu0 %v3378_v19  ;;  %v3368_v2 = vmul.f32 %v5749_v63, %v7556_v0 }
 0x7f6   : > { %v3379_v40 = vpack.c.bf16 %v3369_v56, %v3368_v2 }
 0x7f8   : > { %5265 = vmatmul.mubr.bf16.gmra.mrb[104].mxu0 %v3379_v40 }
 0x7fb   : > { %v3335_v59 = vpop.xlane.xlu0 %3334 }
 0x7fc   : > { %5750 = vrcp.f32 %v3335_v59 }
 0x7ff   : > { %v3337_v50 = vpop.xlane.xlu1 %3336 }
 0x800   : > { %5752 = vrcp.f32 %v3337_v50 }
 0x803   : > { %v3341_v18 = vpop.xlane.xlu1 %3340  ;;  %v3339_v9 = vpop.xlane.xlu0 %3338 }
 0x804   : > { %5754 = vrcp.f32 %v3341_v18  ;;  %v5859_v18 = vld [vmem:[%s8079_s14 + $0x20] sm:$0xff] }
 0x805   : > { %5756 = vrcp.f32 %v3339_v9 }
 0x806   : > { %v5751_v26 = vpop.eup %5750 }
 0x807   : > { %v3370_v21 = vmul.f32 %v5751_v26, %v7563_v45 }
 0x80a   : > { %v5753_v11 = vpop.eup %5752 }
 0x80b   : > { %v3371_v23 = vmul.f32 %v5753_v11, %v7566_v10 }
 0x80d   : > { %v3380_v0 = vpack.c.bf16 %v3371_v23, %v3370_v21  ;;  %v5860_v23 = vld [vmem:[%s8079_s14 + $0x30] sm:$0xff] }
 0x80e   : > { %v5755_v60 = vpop.eup %5754 }
 0x80f   : > { %v5757_v4 = vpop.eup %5756  ;;  %5268 = vmatprep.mubr.bf16.mxu0 %v3380_v0  ;;  %v3373_v33 = vmul.f32 %v5755_v60, %v7569_v39  ;;  %v5861_v60 = vld [vmem:[%s8079_s14 + $0x28] sm:$0xff] }
 0x810   : > { %v3372_v25 = vmul.f32 %v5757_v4, %v7571_v1 }
 0x812   : > { %v3381_v20 = vpack.c.bf16 %v3373_v33, %v3372_v25  ;;  %v5862_v25 = vld [vmem:[%s8079_s14 + $0x38] sm:$0xff] }
 0x814   : > { %5269 = vmatmul.mubr.bf16.gmra.mrb[108].mxu0 %v3381_v20 }
 0x89b   : > { %v5258_v27 = vpop.f32.mrb[96].mxu0 }
 0x89c   : > { %v3440_v8 = vpop.f32.mrb[97].mxu0 }
 0x89d   : > { %v5259_v49 = vpop.f32.mrb[98].mxu0 }
 0x89e   : > { %v3504_v44 = vpack.c.bf16 %v5259_v49, %v5258_v27  ;;  %v3443_v45 = vpop.f32.mrb[99].mxu0 }
 0x89f   : > { %v3503_v32 = vpack.c.bf16 %v3443_v45, %v3440_v8 }
 0x8a1   : > { %5274 = vmatprep.mubr.msk.bf16.mxu0 %vm1195_vm2, %v3503_v32 }
 0x8a2   : > { %5275 = vmatmul.mubr.msk.bf16.vlgmr.msra.gmra.mrb[64].mxu0 %vm1195_vm2, %v3504_v44 }
 0x8a3   : > { %v5262_v10 = vpop.f32.mrb[100].mxu0 }
 0x8a4   : > { %v3456_v48 = vpop.f32.mrb[101].mxu0 }
 0x8a5   : > { %v5263_v39 = vpop.f32.mrb[102].mxu0 }
 0x8a6   : > { %v3506_v57 = vpack.c.bf16 %v5263_v39, %v5262_v10  ;;  %v3459_v1 = vpop.f32.mrb[103].mxu0  ;;  %v5863_v39 = vld [vmem:[%s8079_s14 + $0x40] sm:$0xff] }
 0x8a7   : > { %v3505_v34 = vpack.c.bf16 %v3459_v1, %v3456_v48 }
 0x8a9   : > { %5278 = vmatprep.mubr.msk.bf16.mxu0 %vm1195_vm2, %v3505_v34 }
 0x8aa   : > { %5279 = vmatmul.mubr.msk.bf16.gmra.mrb[68].mxu0 %vm1195_vm2, %v3506_v57 }
 0x8cb   : > { %v5266_v24 = vpop.f32.mrb[104].mxu0 }
 0x8cc   : > { %v3472_v54 = vpop.f32.mrb[105].mxu0 }
 0x8cd   : > { %v5267_v46 = vpop.f32.mrb[106].mxu0 }
 0x8ce   : > { %v3508_v36 = vpack.c.bf16 %v5267_v46, %v5266_v24  ;;  %v3475_v28 = vpop.f32.mrb[107].mxu0  ;;  %v5864_v24 = vld [vmem:[%s8079_s14 + $0x50] sm:$0xff]  ;;  %v5865_v46 = vld [vmem:[%s8079_s14 + $0x48] sm:$0xff] }
 0x8cf   : > { %v3507_v61 = vpack.c.bf16 %v3475_v28, %v3472_v54 }
 0x8d1   : > { %5282 = vmatprep.mubr.msk.bf16.mxu0 %vm1195_vm2, %v3507_v61  ;;  %v5866_v61 = vld [vmem:[%s8079_s14 + $0x58] sm:$0xff] }
 0x8d2   : > { %5283 = vmatmul.mubr.msk.bf16.gmra.mrb[72].mxu0 %vm1195_vm2, %v3508_v36 }
 0x8e7   : > { %v5270_v58 = vpop.f32.mrb[108].mxu0 }
 0x8e8   : > { %v3488_v38 = vpop.f32.mrb[109].mxu0 }
 0x8e9   : > { %v5271_v35 = vpop.f32.mrb[110].mxu0 }
 0x8ea   : > { %v3510_v12 = vpack.c.bf16 %v5271_v35, %v5270_v58  ;;  %v3491_v29 = vpop.f32.mrb[111].mxu0 }
 0x8eb   : > { %v3509_v14 = vpack.c.bf16 %v3491_v29, %v3488_v38 }
 0x8ed   : > { %5286 = vmatprep.mubr.msk.bf16.mxu0 %vm1195_vm2, %v3509_v14 }
 0x8ee   : > { %5287 = vmatmul.mubr.msk.bf16.gmra.mrb[76].mxu0 %vm1195_vm2, %v3510_v12 }
 0x975   : > { %v5276_v55 = vpop.f32.mrb[64].mxu0 }
 0x976   : > { %v3575_v7 = vpop.f32.mrb[65].mxu0  ;;  %v3663_v47 = vadd.f32 %v5276_v55, %v7617_v16 }
 0x977   : > { %v3661_v41 = vadd.f32 %v7617_v16, %v3575_v7  ;;  %v5277_v31 = vpop.f32.mrb[66].mxu0 }
 0x978   : > { %v3578_v15 = vpop.f32.mrb[67].mxu0  ;;  %v3664_v42 = vadd.f32 %v5277_v31, %v7617_v16  ;;  %v7631_v17 = vadd.f32 %v5856_v3, %v3663_v47  ;;  %v5867_v31 = vld [vmem:[%s8079_s14 + $0x60] sm:$0xff] }
 0x979   : > { %v7624_v22 = vadd.f32 %v5855_v53, %v3661_v41  ;;  %v3662_v13 = vadd.f32 %v7617_v16, %v3578_v15 }
 0x97a   : > { %v7643_v5 = vadd.f32 %v5858_v52, %v3664_v42  ;;  %v3701_v59 = vsel %vm687_vm1, %v7631_v17, 0.0 }
 0x97b   : > { %v7636_v62 = vadd.f32 %v5857_v43, %v3662_v13  ;;  %v3695_v51 = vsel %vm687_vm1, %v7624_v22, 0.0  ;;  %v5868_v13 = vld [vmem:[%s8079_s14 + $0x70] sm:$0xff]  ;;  %v5869_v43 = vld [vmem:[%s8079_s14 + $0x68] sm:$0xff] }
 0x97c   : > { %3696 = vadd.xlane.f32.xlu0 %v3695_v51  ;;  %v3704_v21 = vsel %vm687_vm1, %v7643_v5, 0.0 }
 0x97d   : > { %v5280_v30 = vpop.f32.mrb[68].mxu0  ;;  %v3698_v19 = vsel %vm687_vm1, %v7636_v62, 0.0 }
 0x97e   : > { %3699 = vadd.xlane.f32.xlu1 %v3698_v19  ;;  %v3591_v63 = vpop.f32.mrb[69].mxu0  ;;  %v3667_v2 = vadd.f32 %v5280_v30, %v7617_v16 }
 0x97f   : > { %v3665_v56 = vadd.f32 %v7617_v16, %v3591_v63  ;;  %v5281_v40 = vpop.f32.mrb[70].mxu0 }
 0x980   : > { %3702 = vadd.xlane.f32.xlu0 %v3701_v59  ;;  %v3594_v50 = vpop.f32.mrb[71].mxu0  ;;  %v3668_v26 = vadd.f32 %v5281_v40, %v7617_v16  ;;  %v7663_v0 = vadd.f32 %v5860_v23, %v3667_v2 }
 0x981   : > { %v7654_v9 = vadd.f32 %v5859_v18, %v3665_v56  ;;  %v3666_v11 = vadd.f32 %v7617_v16, %v3594_v50 }
 0x982   : > { %3705 = vadd.xlane.f32.xlu1 %v3704_v21  ;;  %v7675_v20 = vadd.f32 %v5862_v25, %v3668_v26  ;;  %v3713_v27 = vsel %vm687_vm1, %v7663_v0, 0.0 }
 0x983   : > { %v7668_v4 = vadd.f32 %v5861_v60, %v3666_v11  ;;  %v3707_v33 = vsel %vm687_vm1, %v7654_v9, 0.0 }
 0x984   : > { %3708 = vadd.xlane.f32.xlu0 %v3707_v33  ;;  %v3716_v8 = vsel %vm687_vm1, %v7675_v20, 0.0 }
 0x985   : > { %v3710_v6 = vsel %vm687_vm1, %v7668_v4, 0.0 }
 0x986   : > { %3711 = vadd.xlane.f32.xlu1 %v3710_v6 }
 0x988   : > { %3714 = vadd.xlane.f32.xlu0 %v3713_v27 }
 0x98a   : > { %3717 = vadd.xlane.f32.xlu1 %v3716_v8 }
 0x9a5   : > { %v5284_v49 = vpop.f32.mrb[72].mxu0 }
 0x9a6   : > { %v3607_v44 = vpop.f32.mrb[73].mxu0  ;;  %v3671_v45 = vadd.f32 %v5284_v49, %v7617_v16 }
 0x9a7   : > { %v3669_v32 = vadd.f32 %v7617_v16, %v3607_v44  ;;  %v5285_v10 = vpop.f32.mrb[74].mxu0 }
 0x9a8   : > { %v3610_v48 = vpop.f32.mrb[75].mxu0  ;;  %v3672_v1 = vadd.f32 %v5285_v10, %v7617_v16  ;;  %v7695_v54 = vadd.f32 %v5864_v24, %v3671_v45 }
 0x9a9   : > { %v7688_v57 = vadd.f32 %v5863_v39, %v3669_v32  ;;  %v3670_v34 = vadd.f32 %v7617_v16, %v3610_v48 }
 0x9aa   : > { %v7707_v58 = vadd.f32 %v5866_v61, %v3672_v1  ;;  %v3725_v35 = vsel %vm687_vm1, %v7695_v54, 0.0 }
 0x9ab   : > { %v7700_v36 = vadd.f32 %v5865_v46, %v3670_v34  ;;  %v3719_v28 = vsel %vm687_vm1, %v7688_v57, 0.0 }
 0x9ac   : > { %3720 = vadd.xlane.f32.xlu0 %v3719_v28  ;;  %v3728_v12 = vsel %vm687_vm1, %v7707_v58, 0.0 }
 0x9ad   : > { %v3722_v38 = vsel %vm687_vm1, %v7700_v36, 0.0 }
 0x9ae   : > { %3723 = vadd.xlane.f32.xlu1 %v3722_v38 }
 0x9b0   : > { %3726 = vadd.xlane.f32.xlu0 %v3725_v35 }
 0x9b2   : > { %3729 = vadd.xlane.f32.xlu1 %v3728_v12 }
 0x9c1   : > { %v5288_v29 = vpop.f32.mrb[76].mxu0 }
 0x9c2   : > { %v3623_v14 = vpop.f32.mrb[77].mxu0  ;;  %v3675_v55 = vadd.f32 %v5288_v29, %v7617_v16 }
 0x9c3   : > { %v3673_v7 = vadd.f32 %v7617_v16, %v3623_v14  ;;  %v5289_v47 = vpop.f32.mrb[78].mxu0 }
 0x9c4   : > { %v3626_v41 = vpop.f32.mrb[79].mxu0  ;;  %v3676_v53 = vadd.f32 %v5289_v47, %v7617_v16  ;;  %v7727_v3 = vadd.f32 %v5868_v13, %v3675_v55  ;;  %v5452_v13 = vld [vmem:[%s6013_s16 + $0x4] ss:$8 sps:$4 sm:$0xff]  }
 0x9c5   : > { %v7720_v15 = vadd.f32 %v5867_v31, %v3673_v7  ;;  %v3674_v42 = vadd.f32 %v7617_v16, %v3626_v41  ;;  %v5870_v16 = vld [vmem:[%s8079_s14 + $0x78] sm:$0xff]  ;;  %4056 = vmatprep.subr.bf16.mxu1 %v5452_v13 }
 0x9c6   : > { %v7739_v30 = vadd.f32 %v5870_v16, %v3676_v53  ;;  %v3737_v63 = vsel %vm687_vm1, %v7727_v3, 0.0  ;;  %v5453_v16 = vld [vmem:[%s6013_s16 + $0x10] ss:$8 sps:$4 sm:$0xff]  }
 0x9c7   : > { %v7732_v51 = vadd.f32 %v5869_v43, %v3674_v42  ;;  %v3731_v52 = vsel %vm687_vm1, %v7720_v15, 0.0  ;;  %v5450_v43 = vld [vmem:[%s6013_s16] ss:$8 sps:$4 sm:$0xff]  }
 0x9c8   : > { %3732 = vadd.xlane.f32.xlu0 %v3731_v52  ;;  %v3740_v2 = vsel %vm687_vm1, %v7739_v30, 0.0  ;;  %4057 = vmatpush1.bf16.msra.mxu1 %v5450_v43  ;;  %v5455_v52 = vld [vmem:[%s6013_s16 + $0x14] ss:$8 sps:$4 sm:$0xff]  }
 0x9c9   : > { %v3734_v19 = vsel %vm687_vm1, %v7732_v51, 0.0  ;;  %4058 = vmatprep.subr.bf16.mxu1 %v5455_v52 }
 0x9ca   : > { %3735 = vadd.xlane.f32.xlu1 %v3734_v19  ;;  %v5458_v19 = vld [vmem:[%s6013_s16 + $0x24] ss:$8 sps:$4 sm:$0xff]  }
 0x9cc   : > { %3738 = vadd.xlane.f32.xlu0 %v3737_v63  ;;  %4059 = vmatpush1.bf16.msra.mxu1 %v5453_v16  ;;  %v5456_v63 = vld [vmem:[%s6013_s16 + $0x20] ss:$8 sps:$4 sm:$0xff]  }
 0x9cd   : > { %4060 = vmatprep.subr.bf16.mxu1 %v5458_v19 }
 0x9ce   : > { %3741 = vadd.xlane.f32.xlu1 %v3740_v2  ;;  %v5461_v2 = vld [vmem:[%s6013_s16 + $0x34] ss:$8 sps:$4 sm:$0xff]  }
 0x9d0   : > { %4061 = vmatpush1.bf16.msra.mxu1 %v5456_v63 }
 0x9d1   : > { %4062 = vmatprep.subr.bf16.mxu1 %v5461_v2 }
 0xa09   : > { %v3697_v56 = vpop.xlane.xlu0 %3696 }
 0xa0a   : > { %v3743_v40 = vmul.f32 0.015625, %v3697_v56  ;;  %v5459_v56 = vld [vmem:[%s6013_s16 + $0x30] ss:$8 sps:$4 sm:$0xff]  }
 0xa0b   : > { %v3700_v59 = vpop.xlane.xlu1 %3699  ;;  %4063 = vmatpush1.bf16.msra.mxu1 %v5459_v56 }
 0xa0c   : > { %v7748_v50 = vsub.f32 %v7624_v22, %v3743_v40  ;;  %v3744_v18 = vmul.f32 0.015625, %v3700_v59 }
 0xa0d   : > { %v3703_v26 = vpop.xlane.xlu0 %3702 }
 0xa0e   : > { %v7751_v11 = vsub.f32 %v7636_v62, %v3744_v18  ;;  %v3745_v21 = vmul.f32 0.015625, %v3703_v26  ;;  %v3775_v23 = vmul.f32 %v7748_v50, %v7748_v50 }
 0xa0f   : > { %v3706_v60 = vpop.xlane.xlu1 %3705 }
 0xa10   : > { %v7756_v33 = vsub.f32 %v7631_v17, %v3745_v21  ;;  %v3746_v25 = vmul.f32 0.015625, %v3706_v60  ;;  %v3791_v6 = vsel %vm687_vm1, %v3775_v23, 0.0  ;;  %v3776_v27 = vmul.f32 %v7751_v11, %v7751_v11 }
 0xa11   : > { %v3709_v8 = vpop.xlane.xlu0 %3708  ;;  %3792 = vadd.xlane.f32.xlu0 %v3791_v6 }
 0xa12   : > { %v7762_v49 = vsub.f32 %v7643_v5, %v3746_v25  ;;  %v3747_v44 = vmul.f32 0.015625, %v3709_v8  ;;  %v3794_v45 = vsel %vm687_vm1, %v3776_v27, 0.0  ;;  %v3777_v32 = vmul.f32 %v7756_v33, %v7756_v33 }
 0xa13   : > { %v3712_v10 = vpop.xlane.xlu1 %3711  ;;  %3795 = vadd.xlane.f32.xlu1 %v3794_v45 }
 0xa14   : > { %v7768_v48 = vsub.f32 %v7654_v9, %v3747_v44  ;;  %v3748_v39 = vmul.f32 0.015625, %v3712_v10  ;;  %v3797_v1 = vsel %vm687_vm1, %v3777_v32, 0.0  ;;  %v3778_v34 = vmul.f32 %v7762_v49, %v7762_v49 }
 0xa15   : > { %v3715_v24 = vpop.xlane.xlu0 %3714  ;;  %3798 = vadd.xlane.f32.xlu0 %v3797_v1 }
 0xa16   : > { %v7774_v46 = vsub.f32 %v7668_v4, %v3748_v39  ;;  %v3749_v28 = vmul.f32 0.015625, %v3715_v24  ;;  %v3800_v61 = vsel %vm687_vm1, %v3778_v34, 0.0  ;;  %v3779_v38 = vmul.f32 %v7768_v48, %v7768_v48 }
 0xa17   : > { %v3718_v35 = vpop.xlane.xlu1 %3717  ;;  %3801 = vadd.xlane.f32.xlu1 %v3800_v61 }
 0xa18   : > { %v7780_v12 = vsub.f32 %v7663_v0, %v3749_v28  ;;  %v3750_v29 = vmul.f32 0.015625, %v3718_v35  ;;  %v3803_v14 = vsel %vm687_vm1, %v3779_v38, 0.0  ;;  %v3780_v55 = vmul.f32 %v7774_v46, %v7774_v46 }
 0xa19   : > { %3804 = vadd.xlane.f32.xlu0 %v3803_v14 }
 0xa1a   : > { %v7786_v7 = vsub.f32 %v7675_v20, %v3750_v29  ;;  %v3806_v47 = vsel %vm687_vm1, %v3780_v55, 0.0  ;;  %v3781_v41 = vmul.f32 %v7780_v12, %v7780_v12 }
 0xa1b   : > { %3807 = vadd.xlane.f32.xlu1 %v3806_v47 }
 0xa1c   : > { %v3809_v31 = vsel %vm687_vm1, %v3781_v41, 0.0  ;;  %v3782_v53 = vmul.f32 %v7786_v7, %v7786_v7 }
 0xa1d   : > { %3810 = vadd.xlane.f32.xlu0 %v3809_v31 }
 0xa1e   : > { %v3812_v42 = vsel %vm687_vm1, %v3782_v53, 0.0 }
 0xa1f   : > { %3813 = vadd.xlane.f32.xlu1 %v3812_v42 }
 0xa39   : > { %v3721_v40 = vpop.xlane.xlu0 %3720 }
 0xa3a   : > { %v3751_v59 = vmul.f32 0.015625, %v3721_v40 }
 0xa3b   : > { %v3724_v18 = vpop.xlane.xlu1 %3723 }
 0xa3c   : > { %v7804_v26 = vsub.f32 %v7688_v57, %v3751_v59  ;;  %v3752_v21 = vmul.f32 0.015625, %v3724_v18 }
 0xa3d   : > { %v3727_v23 = vpop.xlane.xlu0 %3726 }
 0xa3e   : > { %v7807_v60 = vsub.f32 %v7700_v36, %v3752_v21  ;;  %v3753_v25 = vmul.f32 0.015625, %v3727_v23  ;;  %v3783_v6 = vmul.f32 %v7804_v26, %v7804_v26 }
 0xa3f   : > { %v3730_v27 = vpop.xlane.xlu1 %3729 }
 0xa40   : > { %v7812_v8 = vsub.f32 %v7695_v54, %v3753_v25  ;;  %v3754_v44 = vmul.f32 0.015625, %v3730_v27  ;;  %v3815_v45 = vsel %vm687_vm1, %v3783_v6, 0.0  ;;  %v3784_v32 = vmul.f32 %v7807_v60, %v7807_v60 }
 0xa41   : > { %3816 = vadd.xlane.f32.xlu0 %v3815_v45 }
 0xa42   : > { %v7818_v10 = vsub.f32 %v7707_v58, %v3754_v44  ;;  %v3818_v39 = vsel %vm687_vm1, %v3784_v32, 0.0  ;;  %v3785_v1 = vmul.f32 %v7812_v8, %v7812_v8 }
 0xa43   : > { %3819 = vadd.xlane.f32.xlu1 %v3818_v39 }
 0xa44   : > { %v3821_v34 = vsel %vm687_vm1, %v3785_v1, 0.0  ;;  %v3786_v24 = vmul.f32 %v7818_v10, %v7818_v10 }
 0xa45   : > { %3822 = vadd.xlane.f32.xlu0 %v3821_v34 }
 0xa46   : > { %v3824_v28 = vsel %vm687_vm1, %v3786_v24, 0.0 }
 0xa47   : > { %3825 = vadd.xlane.f32.xlu1 %v3824_v28 }
 0xa55   : > { %v3733_v61 = vpop.xlane.xlu0 %3732 }
 0xa56   : > { %v3755_v38 = vmul.f32 0.015625, %v3733_v61 }
 0xa57   : > { %v3736_v35 = vpop.xlane.xlu1 %3735 }
 0xa58   : > { %v7828_v29 = vsub.f32 %v7720_v15, %v3755_v38  ;;  %v3756_v14 = vmul.f32 0.015625, %v3736_v35 }
 0xa59   : > { %v3739_v55 = vpop.xlane.xlu0 %3738 }
 0xa5a   : > { %v7831_v47 = vsub.f32 %v7732_v51, %v3756_v14  ;;  %v3757_v41 = vmul.f32 0.015625, %v3739_v55  ;;  %v3787_v31 = vmul.f32 %v7828_v29, %v7828_v29 }
 0xa5b   : > { %v3742_v53 = vpop.xlane.xlu1 %3741 }
 0xa5c   : > { %v7836_v42 = vsub.f32 %v7727_v3, %v3757_v41  ;;  %v3758_v13 = vmul.f32 0.015625, %v3742_v53  ;;  %v3827_v43 = vsel %vm687_vm1, %v3787_v31, 0.0  ;;  %v3788_v52 = vmul.f32 %v7831_v47, %v7831_v47  ;;  %v7856_v31 = vld [vmem:[%s610_s24] ss:$0 sm:$0xff] }
 0xa5d   : > { %3828 = vadd.xlane.f32.xlu0 %v3827_v43 }
 0xa5e   : > { %v7842_v16 = vsub.f32 %v7739_v30, %v3758_v13  ;;  %v3830_v19 = vsel %vm687_vm1, %v3788_v52, 0.0  ;;  %v3789_v63 = vmul.f32 %v7836_v42, %v7836_v42 }
 0xa5f   : > { %3831 = vadd.xlane.f32.xlu1 %v3830_v19 }
 0xa60   : > { %v3833_v2 = vsel %vm687_vm1, %v3789_v63, 0.0  ;;  %v3790_v56 = vmul.f32 %v7842_v16, %v7842_v16 }
 0xa61   : > { %3834 = vadd.xlane.f32.xlu0 %v3833_v2 }
 0xa62   : > { %v3836_v40 = vsel %vm687_vm1, %v3790_v56, 0.0  ;;  %v7866_v56 = vld [vmem:[%s613_s27] ss:$0 sm:$0xff] }
 0xa63   : > { %3837 = vadd.xlane.f32.xlu1 %v3836_v40 }
 0xa9e   : > { %v3793_v59 = vpop.xlane.xlu0 %3792 }
 0xa9f   : > { %v3839_v18 = vmul.f32 0.015625, %v3793_v59 }
 0xaa0   : > { %v3796_v21 = vpop.xlane.xlu1 %3795 }
 0xaa1   : > { %v3855_v23 = vadd.f32 1e-05, %v3839_v18  ;;  %v3840_v25 = vmul.f32 0.015625, %v3796_v21 }
 0xaa2   : > { %v3799_v6 = vpop.xlane.xlu0 %3798 }
 0xaa3   : > { %5758 = vrsqrt.f32 %v3855_v23  ;;  %v3856_v27 = vadd.f32 1e-05, %v3840_v25  ;;  %v3841_v44 = vmul.f32 0.015625, %v3799_v6 }
 0xaa4   : > { %v3802_v45 = vpop.xlane.xlu1 %3801 }
 0xaa5   : > { %5760 = vrsqrt.f32 %v3856_v27  ;;  %v3857_v32 = vadd.f32 1e-05, %v3841_v44  ;;  %v3842_v39 = vmul.f32 0.015625, %v3802_v45 }
 0xaa6   : > { %v3805_v1 = vpop.xlane.xlu0 %3804 }
 0xaa7   : > { %5762 = vrsqrt.f32 %v3857_v32  ;;  %v3858_v34 = vadd.f32 1e-05, %v3842_v39  ;;  %v3843_v24 = vmul.f32 0.015625, %v3805_v1 }
 0xaa8   : > { %v3808_v28 = vpop.xlane.xlu1 %3807 }
 0xaa9   : > { %5764 = vrsqrt.f32 %v3858_v34  ;;  %v3844_v61 = vmul.f32 0.015625, %v3808_v28  ;;  %v3859_v38 = vadd.f32 1e-05, %v3843_v24 }
 0xaaa   : > { %v3811_v14 = vpop.xlane.xlu0 %3810 }
 0xaab   : > { %v3860_v35 = vadd.f32 1e-05, %v3844_v61  ;;  %v3845_v52 = vmul.f32 0.015625, %v3811_v14 }
 0xaac   : > { %v3814_v55 = vpop.xlane.xlu1 %3813 }
 0xaad   : > { %v5759_v41 = vpop.eup %5758  ;;  %5766 = vrsqrt.f32 %v3860_v35  ;;  %v3846_v53 = vmul.f32 0.015625, %v3814_v55  ;;  %v3861_v21 = vadd.f32 1e-05, %v3845_v52 }
 0xaae   : > { %v3887_v13 = vmul.f32 %v5759_v41, %v7748_v50  ;;  %5768 = vrsqrt.f32 %v3859_v38 }
 0xaaf   : > { %v5761_v43 = vpop.eup %5760  ;;  %v3862_v40 = vadd.f32 1e-05, %v3846_v53 }
 0xab0   : > { %v3909_v19 = vmul.f32 %v7856_v31, %v3887_v13  ;;  %v3888_v63 = vmul.f32 %v5761_v43, %v7751_v11 }
 0xab1   : > { %v5763_v2 = vpop.eup %5762  ;;  %5770 = vrsqrt.f32 %v3862_v40 }
 0xab2   : > { %v3910_v59 = vmul.f32 %v7856_v31, %v3888_v63  ;;  %v3931_v50 = vadd.f32 %v7866_v56, %v3909_v19  ;;  %v3889_v25 = vmul.f32 %v5763_v2, %v7756_v33  ;;  %5772 = vrsqrt.f32 %v3861_v21 }
 0xab3   : > { %v5765_v18 = vpop.eup %5764 }
 0xab4   : > { %v3932_v23 = vadd.f32 %v7866_v56, %v3910_v59  ;;  %v3890_v11 = vmul.f32 %v5765_v18, %v7762_v49  ;;  %v3911_v45 = vmul.f32 %v7856_v31, %v3889_v25 }
 0xab6   : > { %v3973_v6 = vpack.c.bf16 %v3932_v23, %v3931_v50  ;;  %v3912_v27 = vmul.f32 %v7856_v31, %v3890_v11  ;;  %v3933_v49 = vadd.f32 %v7866_v56, %v3911_v45 }
 0xab7   : > { %v5767_v44 = vpop.eup %5766 }
 0xab8   : > { %4743 = vmatmul.mubr.msk.bf16.vlgmr.msra.gmra.mrb[64].mxu1 %vm687_vm1, %v3973_v6  ;;  %v5769_v32 = vpop.eup %5768  ;;  %v3892_v39 = vmul.f32 %v5767_v44, %v7774_v46  ;;  %v3934_v1 = vadd.f32 %v7866_v56, %v3912_v27 }
 0xab9   : > { %4098 = vmatprep.mubr.bf16.mxu1 %v8189_v37  ;;  %v3891_v33 = vmul.f32 %v5769_v32, %v7768_v48 }
 0xaba   : > { %v3974_v34 = vpack.c.bf16 %v3934_v1, %v3933_v49  ;;  %v3914_v24 = vmul.f32 %v7856_v31, %v3892_v39 }
 0xabb   : > { %v5771_v28 = vpop.eup %5770  ;;  %v3913_v61 = vmul.f32 %v7856_v31, %v3891_v33 }
 0xabc   : > { %v5773_v38 = vpop.eup %5772  ;;  %v3894_v35 = vmul.f32 %v5771_v28, %v7786_v7  ;;  %v3936_v46 = vadd.f32 %v7866_v56, %v3914_v24 }
 0xabd   : > { %v3893_v14 = vmul.f32 %v5773_v38, %v7780_v12  ;;  %v3935_v48 = vadd.f32 %v7866_v56, %v3913_v61 }
 0xabe   : > { %v3916_v41 = vmul.f32 %v7856_v31, %v3894_v35 }
 0xabf   : > { %v3975_v55 = vpack.c.bf16 %v3936_v46, %v3935_v48  ;;  %v3915_v53 = vmul.f32 %v7856_v31, %v3893_v14 }
 0xac0   : > { %4744 = vmatmul.mubr.msk.bf16.gmra.mrb[68].mxu1 %vm687_vm1, %v3974_v34  ;;  %v3938_v13 = vadd.f32 %v7866_v56, %v3916_v41 }
 0xac1   : > { %4108 = vmatprep.mubr.bf16.mxu1 %v8189_v37  ;;  %v3937_v43 = vadd.f32 %v7866_v56, %v3915_v53 }
 0xac3   : > { %v3976_v52 = vpack.c.bf16 %v3938_v13, %v3937_v43 }
 0xac8   : > { %4745 = vmatmul.mubr.msk.bf16.gmra.mrb[72].mxu1 %vm687_vm1, %v3975_v55 }
 0xac9   : > { %4118 = vmatprep.mubr.bf16.mxu1 %v8189_v37 }
 0xace   : > { %v3817_v7 = vpop.xlane.xlu0 %3816 }
 0xacf   : > { %v3847_v19 = vmul.f32 0.015625, %v3817_v7 }
 0xad0   : > { %4746 = vmatmul.mubr.msk.bf16.gmra.mrb[76].mxu1 %vm687_vm1, %v3976_v52  ;;  %v3820_v12 = vpop.xlane.xlu1 %3819 }
 0xad1   : > { %v3863_v63 = vadd.f32 1e-05, %v3847_v19  ;;  %v3848_v2 = vmul.f32 0.015625, %v3820_v12  ;;  %4128 = vmatprep.mubr.bf16.mxu1 %v8189_v37 }
 0xad2   : > { %v3823_v40 = vpop.xlane.xlu0 %3822 }
 0xad3   : > { %5774 = vrsqrt.f32 %v3863_v63  ;;  %v3864_v59 = vadd.f32 1e-05, %v3848_v2  ;;  %v3849_v18 = vmul.f32 0.015625, %v3823_v40 }
 0xad4   : > { %v3826_v21 = vpop.xlane.xlu1 %3825 }
 0xad5   : > { %5776 = vrsqrt.f32 %v3864_v59  ;;  %v3865_v50 = vadd.f32 1e-05, %v3849_v18  ;;  %v3850_v23 = vmul.f32 0.015625, %v3826_v21 }
 0xad7   : > { %5778 = vrsqrt.f32 %v3865_v50  ;;  %v3866_v25 = vadd.f32 1e-05, %v3850_v23 }
 0xad9   : > { %5780 = vrsqrt.f32 %v3866_v25 }
 0xadd   : > { %v5775_v11 = vpop.eup %5774 }
 0xade   : > { %v3895_v6 = vmul.f32 %v5775_v11, %v7804_v26 }
 0xadf   : > { %v5777_v27 = vpop.eup %5776 }
 0xae0   : > { %v3896_v44 = vmul.f32 %v5777_v27, %v7807_v60  ;;  %v3917_v45 = vmul.f32 %v7856_v31, %v3895_v6 }
 0xae1   : > { %v5779_v32 = vpop.eup %5778 }
 0xae2   : > { %v3918_v39 = vmul.f32 %v7856_v31, %v3896_v44  ;;  %v3897_v33 = vmul.f32 %v5779_v32, %v7812_v8  ;;  %v3939_v34 = vadd.f32 %v7866_v56, %v3917_v45  ;;  %v5462_v44 = vld [vmem:[%s6023_s19] sm:$0xff]   ;;  %v5463_v45 = vld [vmem:[%s6023_s19 + $0x8] sm:$0xff]  }
 0xae3   : > { %v5781_v1 = vpop.eup %5780  ;;  %5290 = vmatprep.subr.bf16.mxu0 %v5462_v44  ;;  %5322 = vmatprep.subr.bf16.mxu1 %v5462_v44  ;;  %v5467_v32 = vld [vmem:[%s6023_s19 + $0x28] sm:$0xff]  }
 0xae4   : > { %v3898_v49 = vmul.f32 %v5781_v1, %v7818_v10  ;;  %v3940_v24 = vadd.f32 %v7866_v56, %v3918_v39  ;;  %v3919_v60 = vmul.f32 %v7856_v31, %v3897_v33  ;;  %5291 = vmatpush3.bf16.msra.mxu0 %v5462_v44  ;;  %5330 = vmatpush3.bf16.msra.mxu1 %v5462_v44  ;;  %v5468_v39 = vld [vmem:[%s6023_s19 + $0x30] sm:$0xff]   ;;  %v5469_v1 = vld [vmem:[%s6023_s19 + $0x38] sm:$0xff]   ;;  %v3955_v33 = vld [vmem:[%s6018_s18] sm:$0x3] }
 0xae5   : > { %5292 = vmatprep.subr.bf16.mxu0 %v5463_v45  ;;  %5323 = vmatprep.subr.bf16.mxu1 %v5463_v45 }
 0xae6   : > { %v3977_v28 = vpack.c.bf16 %v3940_v24, %v3939_v34  ;;  %v3920_v26 = vmul.f32 %v7856_v31, %v3898_v49  ;;  %v3941_v10 = vadd.f32 %v7866_v56, %v3919_v60  ;;  %v8199_v49 = vld [vmem:[#allocation4_spill] sm:$0xff] }
 0xae7   : > { %v8200_v34 = vsub.s32 0, %v8199_v49 }
 0xae8   : > { %4747 = vmatmul.mubr.msk.bf16.gmra.mrb[80].mxu1 %vm687_vm1, %v3977_v28  ;;  %v3942_v38 = vadd.f32 %v7866_v56, %v3920_v26  ;;  %5293 = vmatpush3.bf16.msra.mxu0 %v5463_v45 }
 0xae9   : > { %4138 = vmatprep.mubr.bf16.mxu1 %v8189_v37  ;;  %5331 = vmatpush3.bf16.msra.mxu1 %v5463_v45  ;;  %v7939_v24 = vrot.slane %v3955_v33, %v8200_v34 }
 0xaea   : > { %v3829_v61 = vpop.xlane.xlu0 %3828  ;;  %v3978_v55 = vpack.c.bf16 %v3942_v38, %v3941_v10 }
 0xaeb   : > { %v3851_v35 = vmul.f32 0.015625, %v3829_v61 }
 0xaec   : > { %v3832_v8 = vpop.xlane.xlu1 %3831 }
 0xaed   : > { %v3867_v46 = vadd.f32 1e-05, %v3851_v35  ;;  %v3852_v14 = vmul.f32 0.015625, %v3832_v8 }
 0xaee   : > { %v3835_v48 = vpop.xlane.xlu0 %3834 }
 0xaef   : > { %5782 = vrsqrt.f32 %v3867_v46  ;;  %v3868_v41 = vadd.f32 1e-05, %v3852_v14  ;;  %v3853_v53 = vmul.f32 0.015625, %v3835_v48 }
 0xaf0   : > { %v3838_v13 = vpop.xlane.xlu1 %3837  ;;  %4748 = vmatmul.mubr.msk.bf16.gmra.mrb[84].mxu1 %vm687_vm1, %v3978_v55 }
 0xaf1   : > { %5784 = vrsqrt.f32 %v3868_v41  ;;  %v3869_v43 = vadd.f32 1e-05, %v3853_v53  ;;  %v3854_v7 = vmul.f32 0.015625, %v3838_v13  ;;  %4148 = vmatprep.mubr.bf16.mxu1 %v8189_v37 }
 0xaf3   : > { %5786 = vrsqrt.f32 %v3869_v43  ;;  %v3870_v52 = vadd.f32 1e-05, %v3854_v7 }
 0xaf5   : > { %5788 = vrsqrt.f32 %v3870_v52 }
 0xaf9   : > { %v5783_v19 = vpop.eup %5782 }
 0xafa   : > { %v3899_v12 = vmul.f32 %v5783_v19, %v7828_v29 }
 0xafb   : > { %v5785_v63 = vpop.eup %5784 }
 0xafc   : > { %v3900_v2 = vmul.f32 %v5785_v63, %v7831_v47  ;;  %v3921_v40 = vmul.f32 %v7856_v31, %v3899_v12 }
 0xafd   : > { %v5787_v59 = vpop.eup %5786 }
 0xafe   : > { %v3922_v18 = vmul.f32 %v7856_v31, %v3900_v2  ;;  %v3901_v50 = vmul.f32 %v5787_v59, %v7836_v42  ;;  %v3943_v25 = vadd.f32 %v7866_v56, %v3921_v40 }
 0xaff   : > { %v5789_v21 = vpop.eup %5788 }
 0xb00   : > { %v3902_v23 = vmul.f32 %v5789_v21, %v7842_v16  ;;  %v3944_v11 = vadd.f32 %v7866_v56, %v3922_v18  ;;  %v3923_v47 = vmul.f32 %v7856_v31, %v3901_v50 }
 0xb02   : > { %v3979_v29 = vpack.c.bf16 %v3944_v11, %v3943_v25  ;;  %v3924_v6 = vmul.f32 %v7856_v31, %v3902_v23  ;;  %v3945_v42 = vadd.f32 %v7866_v56, %v3923_v47  ;;  %v5465_v31 = vld [vmem:[%s6023_s19 + $0x18] sm:$0xff]   ;;  %v8201_v47 = vsub.s32 1, %v8199_v49 }
 0xb04   : > { %4749 = vmatmul.mubr.msk.bf16.gmra.mrb[88].mxu1 %vm687_vm1, %v3979_v29  ;;  %v3946_v27 = vadd.f32 %v7866_v56, %v3924_v6  ;;  %v5466_v56 = vld [vmem:[%s6023_s19 + $0x20] sm:$0xff]  }
 0xb05   : > { %4158 = vmatprep.mubr.bf16.mxu1 %v8189_v37  ;;  %v5464_v37 = vld [vmem:[%s6023_s19 + $0x10] sm:$0xff]  }
 0xb06   : > { %v3980_v16 = vpack.c.bf16 %v3946_v27, %v3945_v42  ;;  %5294 = vmatprep.subr.bf16.mxu0 %v5464_v37  ;;  %5324 = vmatprep.subr.bf16.mxu1 %v5464_v37  ;;  %v7949_v27 = vrot.slane %v3955_v33, %v8201_v47 }
 0xb07   : > { %5295 = vmatpush3.bf16.msra.mxu0 %v5464_v37  ;;  %5332 = vmatpush3.bf16.msra.mxu1 %v5464_v37 }
 0xb08   : > { %5296 = vmatprep.subr.bf16.mxu0 %v5465_v31  ;;  %5325 = vmatprep.subr.bf16.mxu1 %v5465_v31 }
 0xb0b   : > { %5297 = vmatpush3.bf16.msra.mxu0 %v5465_v31  ;;  %5333 = vmatpush3.bf16.msra.mxu1 %v5465_v31 }
 0xb0c   : > { %4750 = vmatmul.mubr.msk.bf16.gmra.mrb[92].mxu1 %vm687_vm1, %v3980_v16  ;;  %5298 = vmatprep.subr.bf16.mxu0 %v5466_v56 }
 0xb0d   : > { %5326 = vmatprep.subr.bf16.mxu1 %v5466_v56 }
 0xb0f   : > { %5299 = vmatpush3.bf16.msra.mxu0 %v5466_v56  ;;  %5334 = vmatpush3.bf16.msra.mxu1 %v5466_v56 }
 0xb10   : > { %5300 = vmatprep.subr.bf16.mxu0 %v5467_v32  ;;  %5327 = vmatprep.subr.bf16.mxu1 %v5467_v32 }
 0xb13   : > { %5301 = vmatpush3.bf16.msra.mxu0 %v5467_v32  ;;  %5335 = vmatpush3.bf16.msra.mxu1 %v5467_v32 }
 0xb14   : > { %5302 = vmatprep.subr.bf16.mxu0 %v5468_v39  ;;  %5328 = vmatprep.subr.bf16.mxu1 %v5468_v39 }
 0xb17   : > { %5303 = vmatpush3.bf16.msra.mxu0 %v5468_v39  ;;  %5336 = vmatpush3.bf16.msra.mxu1 %v5468_v39 }
 0xb18   : > { %5304 = vmatprep.subr.bf16.mxu0 %v5469_v1  ;;  %5329 = vmatprep.subr.bf16.mxu1 %v5469_v1 }
 0xb1b   : > { %5305 = vmatpush3.bf16.msra.mxu0 %v5469_v1  ;;  %5337 = vmatpush3.bf16.msra.mxu1 %v5469_v1 }
 0xb8b   : > { %v4090_v28 = vpop.f32.mrb[64].mxu1 }
 0xb8c   : > { %v4091_v26 = vadd.f32 %v4090_v28, %v7939_v24  ;;  %v4092_v60 = vpop.f32.mrb[65].mxu1 }
 0xb8d   : > { %v4094_v61 = vpop.f32.mrb[66].mxu1  ;;  %v4093_v1 = vadd.f32 %v4092_v60, %v7949_v27 }
 0xb8e   : > { %v4751_v38 = vmul.f32 -1.442695, %v4091_v26  ;;  %v4095_v35 = vadd.f32 %v4094_v61, %v7939_v24  ;;  %v4096_v8 = vpop.f32.mrb[67].mxu1 }
 0xb90   : > { %5790 = vpow2.f32 %v4751_v38  ;;  %v4752_v10 = vmul.f32 -1.442695, %v4095_v35  ;;  %v4097_v38 = vadd.f32 %v4096_v8, %v7949_v27 }
 0xb92   : > { %5792 = vpow2.f32 %v4752_v10 }
 0xb93   : > { %v4100_v46 = vpop.f32.mrb[68].mxu1 }
 0xb94   : > { %v4101_v14 = vadd.f32 %v4100_v46, %v7939_v24  ;;  %v4102_v48 = vpop.f32.mrb[69].mxu1 }
 0xb95   : > { %v4104_v55 = vpop.f32.mrb[70].mxu1  ;;  %v4103_v60 = vadd.f32 %v4102_v48, %v7949_v27 }
 0xb96   : > { %v4753_v41 = vmul.f32 -1.442695, %v4101_v14  ;;  %v4105_v53 = vadd.f32 %v4104_v55, %v7939_v24  ;;  %v4106_v13 = vpop.f32.mrb[71].mxu1 }
 0xb98   : > { %5794 = vpow2.f32 %v4753_v41  ;;  %v4754_v43 = vmul.f32 -1.442695, %v4105_v53 }
 0xb9a   : > { %v5791_v7 = vpop.eup %5790  ;;  %5796 = vpow2.f32 %v4754_v43 }
 0xb9b   : > { %v4217_v52 = vadd.f32 1.0, %v5791_v7  ;;  %v4110_v19 = vpop.f32.mrb[72].mxu1 }
 0xb9c   : > { %v5793_v12 = vpop.eup %5792  ;;  %v4111_v63 = vadd.f32 %v4110_v19, %v7939_v24  ;;  %v4112_v2 = vpop.f32.mrb[73].mxu1 }
 0xb9d   : > { %5798 = vrcp.f32 %v4217_v52  ;;  %v4218_v40 = vadd.f32 1.0, %v5793_v12  ;;  %v4114_v59 = vpop.f32.mrb[74].mxu1 }
 0xb9e   : > { %v4755_v18 = vmul.f32 -1.442695, %v4111_v63  ;;  %v4115_v21 = vadd.f32 %v4114_v59, %v7939_v24  ;;  %v4116_v50 = vpop.f32.mrb[75].mxu1 }
 0xb9f   : > { %5800 = vrcp.f32 %v4218_v40 }
 0xba0   : > { %5802 = vpow2.f32 %v4755_v18  ;;  %v4756_v23 = vmul.f32 -1.442695, %v4115_v21 }
 0xba2   : > { %v5795_v25 = vpop.eup %5794  ;;  %5804 = vpow2.f32 %v4756_v23 }
 0xba3   : > { %v4219_v11 = vadd.f32 1.0, %v5795_v25  ;;  %v4120_v29 = vpop.f32.mrb[76].mxu1 }
 0xba4   : > { %v5797_v6 = vpop.eup %5796  ;;  %v4121_v42 = vadd.f32 %v4120_v29, %v7939_v24  ;;  %v4122_v16 = vpop.f32.mrb[77].mxu1 }
 0xba5   : > { %5806 = vrcp.f32 %v4219_v11  ;;  %v4220_v44 = vadd.f32 1.0, %v5797_v6  ;;  %v4124_v45 = vpop.f32.mrb[78].mxu1 }
 0xba6   : > { %v4757_v37 = vmul.f32 -1.442695, %v4121_v42  ;;  %v4125_v31 = vadd.f32 %v4124_v45, %v7939_v24  ;;  %v4126_v56 = vpop.f32.mrb[79].mxu1 }
 0xba7   : > { %v5799_v32 = vpop.eup %5798  ;;  %5808 = vrcp.f32 %v4220_v44  ;;  %v4117_v44 = vadd.f32 %v4116_v50, %v7949_v27 }
 0xba8   : > { %v4265_v39 = vmul.f32 %v5799_v32, %v4091_v26  ;;  %5810 = vpow2.f32 %v4757_v37  ;;  %v4758_v34 = vmul.f32 -1.442695, %v4125_v31 }
 0xba9   : > { %v5801_v49 = vpop.eup %5800 }
 0xbaa   : > { %v5803_v33 = vpop.eup %5802  ;;  %v4281_v28 = vmul.f32 %v4265_v39, %v4093_v1  ;;  %v4266_v61 = vmul.f32 %v5801_v49, %v4095_v35  ;;  %5812 = vpow2.f32 %v4758_v34  ;;  %v4107_v35 = vadd.f32 %v4106_v13, %v7949_v27 }
 0xbab   : > { %v4221_v10 = vadd.f32 1.0, %v5803_v33 }
 0xbac   : > { %v5805_v46 = vpop.eup %5804  ;;  %v4282_v55 = vmul.f32 %v4266_v61, %v4097_v38  ;;  %v4127_v38 = vadd.f32 %v4126_v56, %v7949_v27 }
 0xbad   : > { %5814 = vrcp.f32 %v4221_v10  ;;  %v4222_v41 = vadd.f32 1.0, %v5805_v46 }
 0xbae   : > { %v4297_v43 = vpack.c.bf16 %v4282_v55, %v4281_v28 }
 0xbaf   : > { %v5807_v7 = vpop.eup %5806  ;;  %5816 = vrcp.f32 %v4222_v41 }
 0xbb0   : > { %v4267_v26 = vmul.f32 %v5807_v7, %v4101_v14  ;;  %5306 = vmatprep.mubr.bf16.mxu0 %v4297_v43  ;;  %v4113_v14 = vadd.f32 %v4112_v2, %v7949_v27  ;;  %v4123_v2 = vadd.f32 %v4122_v16, %v7949_v27 }
 0xbb1   : > { %v5809_v52 = vpop.eup %5808 }
 0xbb2   : > { %v5811_v19 = vpop.eup %5810  ;;  %v4283_v12 = vmul.f32 %v4267_v26, %v4103_v60  ;;  %v4268_v40 = vmul.f32 %v5809_v52, %v4105_v53 }
 0xbb3   : > { %v4223_v8 = vadd.f32 1.0, %v5811_v19 }
 0xbb4   : > { %v5813_v59 = vpop.eup %5812  ;;  %v4284_v18 = vmul.f32 %v4268_v40, %v4107_v35 }
 0xbb5   : > { %5818 = vrcp.f32 %v4223_v8  ;;  %v4224_v23 = vadd.f32 1.0, %v5813_v59 }
 0xbb6   : > { %v4298_v25 = vpack.c.bf16 %v4284_v18, %v4283_v12 }
 0xbb7   : > { %v5815_v11 = vpop.eup %5814  ;;  %5820 = vrcp.f32 %v4224_v23 }
 0xbb8   : > { %v4269_v29 = vmul.f32 %v5815_v11, %v4111_v63  ;;  %5307 = vmatmul.mubr.bf16.vlgmr.msra.gmra.mrb[112].mxu0 %v4298_v25 }
 0xbb9   : > { %v5817_v48 = vpop.eup %5816 }
 0xbba   : > { %v4285_v6 = vmul.f32 %v4269_v29, %v4113_v14  ;;  %v4270_v47 = vmul.f32 %v5817_v48, %v4115_v21 }
 0xbbb   : > { %v4130_v53 = vpop.f32.mrb[80].mxu1 }
 0xbbc   : > { %v4286_v45 = vmul.f32 %v4270_v47, %v4117_v44  ;;  %v4131_v13 = vadd.f32 %v4130_v53, %v7939_v24  ;;  %v4132_v37 = vpop.f32.mrb[81].mxu1 }
 0xbbd   : > { %v4134_v32 = vpop.f32.mrb[82].mxu1  ;;  %v4133_v25 = vadd.f32 %v4132_v37, %v7949_v27 }
 0xbbe   : > { %v4759_v39 = vmul.f32 -1.442695, %v4131_v13  ;;  %v4135_v1 = vadd.f32 %v4134_v32, %v7939_v24  ;;  %v4136_v34 = vpop.f32.mrb[83].mxu1  ;;  %v4299_v49 = vpack.c.bf16 %v4286_v45, %v4285_v6 }
 0xbbf   : > { %v5819_v63 = vpop.eup %5818  ;;  %v4137_v48 = vadd.f32 %v4136_v34, %v7949_v27 }
 0xbc0   : > { %v4271_v33 = vmul.f32 %v5819_v63, %v4121_v42  ;;  %5822 = vpow2.f32 %v4759_v39  ;;  %v4760_v28 = vmul.f32 -1.442695, %v4135_v1  ;;  %5310 = vmatprep.mubr.bf16.mxu0 %v4299_v49 }
 0xbc1   : > { %v5821_v21 = vpop.eup %5820 }
 0xbc2   : > { %v4287_v50 = vmul.f32 %v4271_v33, %v4123_v2  ;;  %v4272_v61 = vmul.f32 %v5821_v21, %v4125_v31  ;;  %5824 = vpow2.f32 %v4760_v28 }
 0xbc3   : > { %v4140_v10 = vpop.f32.mrb[84].mxu1 }
 0xbc4   : > { %v4288_v46 = vmul.f32 %v4272_v61, %v4127_v38  ;;  %v4141_v55 = vadd.f32 %v4140_v10, %v7939_v24  ;;  %v4142_v41 = vpop.f32.mrb[85].mxu1 }
 0xbc5   : > { %v4144_v43 = vpop.f32.mrb[86].mxu1  ;;  %v4143_v2 = vadd.f32 %v4142_v41, %v7949_v27 }
 0xbc6   : > { %v4761_v7 = vmul.f32 -1.442695, %v4141_v55  ;;  %v4145_v42 = vadd.f32 %v4144_v43, %v7939_v24  ;;  %v4146_v26 = vpop.f32.mrb[87].mxu1  ;;  %v4300_v16 = vpack.c.bf16 %v4288_v46, %v4287_v50 }
 0xbc8   : > { %5826 = vpow2.f32 %v4761_v7  ;;  %v4762_v60 = vmul.f32 -1.442695, %v4145_v42  ;;  %5311 = vmatmul.mubr.bf16.gmra.mrb[116].mxu0 %v4300_v16 }
 0xbca   : > { %v5823_v52 = vpop.eup %5822  ;;  %5828 = vpow2.f32 %v4762_v60 }
 0xbcb   : > { %v4225_v31 = vadd.f32 1.0, %v5823_v52 }
 0xbcc   : > { %v5825_v19 = vpop.eup %5824 }
 0xbcd   : > { %5830 = vrcp.f32 %v4225_v31  ;;  %v4226_v56 = vadd.f32 1.0, %v5825_v19 }
 0xbcf   : > { %5832 = vrcp.f32 %v4226_v56 }
 0xbd2   : > { %v5827_v12 = vpop.eup %5826 }
 0xbd3   : > { %v4227_v40 = vadd.f32 1.0, %v5827_v12 }
 0xbd4   : > { %v5829_v35 = vpop.eup %5828 }
 0xbd5   : > { %5834 = vrcp.f32 %v4227_v40  ;;  %v4228_v8 = vadd.f32 1.0, %v5829_v35 }
 0xbd7   : > { %v5831_v59 = vpop.eup %5830  ;;  %5836 = vrcp.f32 %v4228_v8  ;;  %v4150_v18 = vpop.f32.mrb[88].mxu1 }
 0xbd8   : > { %v4273_v23 = vmul.f32 %v5831_v59, %v4131_v13  ;;  %v4151_v11 = vadd.f32 %v4150_v18, %v7939_v24  ;;  %v4152_v29 = vpop.f32.mrb[89].mxu1 }
 0xbd9   : > { %v5833_v14 = vpop.eup %5832  ;;  %v4154_v6 = vpop.f32.mrb[90].mxu1  ;;  %v4153_v40 = vadd.f32 %v4152_v29, %v7949_v27 }
 0xbda   : > { %v4289_v47 = vmul.f32 %v4273_v23, %v4133_v25  ;;  %v4274_v44 = vmul.f32 %v5833_v14, %v4135_v1  ;;  %v4763_v53 = vmul.f32 -1.442695, %v4151_v11  ;;  %v4155_v45 = vadd.f32 %v4154_v6, %v7939_v24  ;;  %v4156_v32 = vpop.f32.mrb[91].mxu1 }
 0xbdb   : > { %v4147_v1 = vadd.f32 %v4146_v26, %v7949_v27  ;;  %v4157_v18 = vadd.f32 %v4156_v32, %v7949_v27 }
 0xbdc   : > { %v4290_v39 = vmul.f32 %v4274_v44, %v4137_v48  ;;  %5838 = vpow2.f32 %v4763_v53  ;;  %v4764_v49 = vmul.f32 -1.442695, %v4155_v45 }
 0xbde   : > { %5840 = vpow2.f32 %v4764_v49  ;;  %v4301_v13 = vpack.c.bf16 %v4290_v39, %v4289_v47 }
 0xbdf   : > { %v5835_v63 = vpop.eup %5834  ;;  %v4160_v37 = vpop.f32.mrb[92].mxu1 }
 0xbe0   : > { %v4275_v33 = vmul.f32 %v5835_v63, %v4141_v55  ;;  %v4161_v28 = vadd.f32 %v4160_v37, %v7939_v24  ;;  %v4162_v34 = vpop.f32.mrb[93].mxu1  ;;  %5314 = vmatprep.mubr.bf16.mxu0 %v4301_v13 }
 0xbe1   : > { %v5837_v21 = vpop.eup %5836  ;;  %v4164_v50 = vpop.f32.mrb[94].mxu1  ;;  %v4163_v6 = vadd.f32 %v4162_v34, %v7949_v27 }
 0xbe2   : > { %v4291_v61 = vmul.f32 %v4275_v33, %v4143_v2  ;;  %v4276_v38 = vmul.f32 %v5837_v21, %v4145_v42  ;;  %v4765_v10 = vmul.f32 -1.442695, %v4161_v28  ;;  %v4165_v46 = vadd.f32 %v4164_v50, %v7939_v24  ;;  %v4166_v43 = vpop.f32.mrb[95].mxu1 }
 0xbe4   : > { %v4292_v7 = vmul.f32 %v4276_v38, %v4147_v1  ;;  %5842 = vpow2.f32 %v4765_v10  ;;  %v4766_v16 = vmul.f32 -1.442695, %v4165_v46 }
 0xbe6   : > { %v5839_v55 = vpop.eup %5838  ;;  %5844 = vpow2.f32 %v4766_v16  ;;  %v4302_v41 = vpack.c.bf16 %v4292_v7, %v4291_v61 }
 0xbe7   : > { %v4229_v60 = vadd.f32 1.0, %v5839_v55 }
 0xbe8   : > { %v5841_v52 = vpop.eup %5840  ;;  %5315 = vmatmul.mubr.bf16.gmra.mrb[120].mxu0 %v4302_v41 }
 0xbe9   : > { %5846 = vrcp.f32 %v4229_v60  ;;  %v4230_v31 = vadd.f32 1.0, %v5841_v52 }
 0xbeb   : > { %5848 = vrcp.f32 %v4230_v31 }
 0xbee   : > { %v5843_v26 = vpop.eup %5842 }
 0xbef   : > { %v4231_v19 = vadd.f32 1.0, %v5843_v26 }
 0xbf0   : > { %v5845_v56 = vpop.eup %5844 }
 0xbf1   : > { %5850 = vrcp.f32 %v4231_v19  ;;  %v4232_v42 = vadd.f32 1.0, %v5845_v56 }
 0xbf3   : > { %v5847_v12 = vpop.eup %5846  ;;  %5852 = vrcp.f32 %v4232_v42 }
 0xbf4   : > { %v4277_v24 = vmul.f32 %v5847_v12, %v4151_v11  ;;  %v4167_v11 = vadd.f32 %v4166_v43, %v7949_v27 }
 0xbf5   : > { %v5849_v35 = vpop.eup %5848 }
 0xbf6   : > { %v4293_v8 = vmul.f32 %v4277_v24, %v4153_v40  ;;  %v4278_v59 = vmul.f32 %v5849_v35, %v4155_v45  ;;  %v4767_v45 = vld [vmem:[%s630_s4] ss:$0 sm:$0xff] }
 0xbf8   : > { %v4294_v23 = vmul.f32 %v4278_v59, %v4157_v18 }
 0xbfa   : > { %v4303_v25 = vpack.c.bf16 %v4294_v23, %v4293_v8 }
 0xbfb   : > { %v5851_v14 = vpop.eup %5850 }
 0xbfc   : > { %v4279_v48 = vmul.f32 %v5851_v14, %v4161_v28  ;;  %5318 = vmatprep.mubr.bf16.mxu1 %v4303_v25 }
 0xbfd   : > { %v5853_v47 = vpop.eup %5852 }
 0xbfe   : > { %v4295_v44 = vmul.f32 %v4279_v48, %v4163_v6  ;;  %v4280_v53 = vmul.f32 %v5853_v47, %v4165_v46 }
 0xc00   : > { %v4296_v39 = vmul.f32 %v4280_v53, %v4167_v11 }
 0xc02   : > { %v4304_v29 = vpack.c.bf16 %v4296_v39, %v4295_v44 }
 0xc04   : > { %5319 = vmatmul.mubr.bf16.vlgmr.msra.gmra.mrb[96].mxu1 %v4304_v29 }
 0xc8b   : > { %v5308_v32 = vpop.f32.mrb[112].mxu0 }
 0xc8c   : > { %v4402_v49 = vadd.f32 %v5308_v32, %v4767_v45  ;;  %v4393_v13 = vpop.f32.mrb[113].mxu0 }
 0xc8d   : > { %v4394_v63 = vadd.f32 %v4767_v45, %v4393_v13  ;;  %v5309_v37 = vpop.f32.mrb[114].mxu0 }
 0xc8e   : > { %v4458_v33 = vadd.f32 %v4402_v49, %v7631_v17  ;;  %v4405_v2 = vadd.f32 %v5309_v37, %v4767_v45  ;;  %v4396_v28 = vpop.f32.mrb[115].mxu0 }
 0xc8f   : > { %v4456_v34 = vadd.f32 %v4394_v63, %v7624_v22  ;;  %v4397_v27 = vadd.f32 %v4767_v45, %v4396_v28 }
 0xc90   : > { %4474 = vst.msk [vmem:[%s8079_s14 + $0x10] sm:$0xff] %vm687_vm1, %v4458_v33  ;;  %v4459_v21 = vadd.f32 %v4405_v2, %v7643_v5 }
 0xc91   : > { %4472 = vst.msk [vmem:[%s8079_s14] sm:$0xff] %vm687_vm1, %v4456_v34  ;;  %v4457_v1 = vadd.f32 %v4397_v27, %v7636_v62 }
 0xc92   : > { %4475 = vst.msk [vmem:[%s8079_s14 + $0x18] sm:$0xff] %vm687_vm1, %v4459_v21 }
 0xc93   : > { %4473 = vst.msk [vmem:[%s8079_s14 + $0x8] sm:$0xff] %vm687_vm1, %v4457_v1 }
 0xc9b   : > { %v5312_v22 = vpop.f32.mrb[116].mxu0 }
 0xc9c   : > { %v4418_v17 = vadd.f32 %v5312_v22, %v4767_v45  ;;  %v4409_v5 = vpop.f32.mrb[117].mxu0 }
 0xc9d   : > { %v4410_v50 = vadd.f32 %v4767_v45, %v4409_v5  ;;  %v5313_v61 = vpop.f32.mrb[118].mxu0 }
 0xc9e   : > { %v4462_v38 = vadd.f32 %v4418_v17, %v7663_v0  ;;  %v4421_v10 = vadd.f32 %v5313_v61, %v4767_v45  ;;  %v4412_v46 = vpop.f32.mrb[119].mxu0 }
 0xc9f   : > { %v4460_v62 = vadd.f32 %v4410_v50, %v7654_v9  ;;  %v4413_v43 = vadd.f32 %v4767_v45, %v4412_v46 }
 0xca0   : > { %4478 = vst.msk [vmem:[%s8079_s14 + $0x30] sm:$0xff] %vm687_vm1, %v4462_v38  ;;  %v4463_v7 = vadd.f32 %v4421_v10, %v7675_v20 }
 0xca1   : > { %4476 = vst.msk [vmem:[%s8079_s14 + $0x20] sm:$0xff] %vm687_vm1, %v4460_v62  ;;  %v4461_v16 = vadd.f32 %v4413_v43, %v7668_v4 }
 0xca2   : > { %4479 = vst.msk [vmem:[%s8079_s14 + $0x38] sm:$0xff] %vm687_vm1, %v4463_v7 }
 0xca3   : > { %4477 = vst.msk [vmem:[%s8079_s14 + $0x28] sm:$0xff] %vm687_vm1, %v4461_v16 }
 0xcbb   : > { %v5316_v9 = vpop.f32.mrb[120].mxu0 }
 0xcbc   : > { %v4434_v0 = vadd.f32 %v5316_v9, %v4767_v45  ;;  %v4425_v20 = vpop.f32.mrb[121].mxu0 }
 0xcbd   : > { %v4426_v55 = vadd.f32 %v4767_v45, %v4425_v20  ;;  %v5317_v41 = vpop.f32.mrb[122].mxu0 }
 0xcbe   : > { %v4466_v60 = vadd.f32 %v4434_v0, %v7695_v54  ;;  %v4437_v52 = vadd.f32 %v5317_v41, %v4767_v45  ;;  %v4428_v31 = vpop.f32.mrb[123].mxu0 }
 0xcbf   : > { %v4464_v4 = vadd.f32 %v4426_v55, %v7688_v57  ;;  %v4429_v26 = vadd.f32 %v4767_v45, %v4428_v31 }
 0xcc0   : > { %4482 = vst.msk [vmem:[%s8079_s14 + $0x50] sm:$0xff] %vm687_vm1, %v4466_v60  ;;  %v4467_v19 = vadd.f32 %v4437_v52, %v7707_v58 }
 0xcc1   : > { %4480 = vst.msk [vmem:[%s8079_s14 + $0x40] sm:$0xff] %vm687_vm1, %v4464_v4  ;;  %v4465_v56 = vadd.f32 %v4429_v26, %v7700_v36 }
 0xcc2   : > { %4483 = vst.msk [vmem:[%s8079_s14 + $0x58] sm:$0xff] %vm687_vm1, %v4467_v19 }
 0xcc3   : > { %4481 = vst.msk [vmem:[%s8079_s14 + $0x48] sm:$0xff] %vm687_vm1, %v4465_v56 }
 0xcd7   : > { %v5320_v57 = vpop.f32.mrb[96].mxu1 }
 0xcd8   : > { %v4450_v54 = vadd.f32 %v5320_v57, %v4767_v45  ;;  %v4441_v58 = vpop.f32.mrb[97].mxu1 }
 0xcd9   : > { %v4442_v42 = vadd.f32 %v4767_v45, %v4441_v58  ;;  %v5321_v12 = vpop.f32.mrb[98].mxu1 }
 0xcda   : > { %v4470_v24 = vadd.f32 %v4450_v54, %v7727_v3  ;;  %v4453_v40 = vadd.f32 %v5321_v12, %v4767_v45  ;;  %v4444_v35 = vpop.f32.mrb[99].mxu1 }
 0xcdb   : > { %v4468_v36 = vadd.f32 %v4442_v42, %v7720_v15  ;;  %v4445_v8 = vadd.f32 %v4767_v45, %v4444_v35 }
 0xcdc   : > { %4486 = vst.msk [vmem:[%s8079_s14 + $0x70] sm:$0xff] %vm687_vm1, %v4470_v24  ;;  %v4471_v59 = vadd.f32 %v4453_v40, %v7739_v30 }
 0xcdd   : > { %4484 = vst.msk [vmem:[%s8079_s14 + $0x60] sm:$0xff] %vm687_vm1, %v4468_v36  ;;  %v4469_v18 = vadd.f32 %v4445_v8, %v7732_v51 }
 0xcde   : > { %4487 = vst.msk [vmem:[%s8079_s14 + $0x78] sm:$0xff] %vm687_vm1, %v4471_v59 }
 0xcdf   : > { %4485 = vst.msk [vmem:[%s8079_s14 + $0x68] sm:$0xff] %vm687_vm1, %v4469_v18 }
 0xce0 PF: > { %s8202_s25 = sld [smem:[#allocation2_spill]] }
 0xce6   : > { %s24_s29 = sadd.s32 1, %s8202_s25  }
 0xce7   : > { %p21_p5 = scmp.ge.s32.totalorder %s24_s29, 4  }
 0xce9   :  { %23 = sbr.rel (!%p21_p5) target bundleno = 6 (0x6), region = 139 }

// kernel: _trackformer_core.13
= control target key start
LH: loop header
LB: loop body
LE: loop exit
PB: predicated region body
PF: predicated region fallthrough
CT: control target
= control target key end

     0   :  { %s4651_s6 = smov 1   ;;  %s4652_s10 = smov 2   ;;  %s5530_s0 = inlined_call_operand.smem [shape: u32[35], index: -1, kind: input, shape index: {}] }
   0x1   :  { %s4711_s5 = sld [smem:[%s5530_s0]]   ;;  %s4653_s14 = smov 3  }
   0x2   :  { %s4716_s9 = sld [smem:[%s5530_s0 + %s4651_s6]]   ;;  %s4654_s18 = smov 4  }
   0x3   :  { %s4721_s13 = sld [smem:[%s5530_s0 + %s4652_s10]]   ;;  %s4655_s22 = smov 5  }
   0x4   :  { %s4726_s17 = sld [smem:[%s5530_s0 + %s4653_s14]]   ;;  %s4656_s26 = smov 6  }
   0x5   :  { %s4731_s21 = sld [smem:[%s5530_s0 + %s4654_s18]]   ;;  %s4657_s30 = smov 7  }
   0x6   :  { %s4736_s25 = sld [smem:[%s5530_s0 + %s4655_s22]]   ;;  %s4658_s4 = smov 8  }
   0x7   :  { %5560 = sst [smem:[#allocation10_spill]] %s4711_s5  ;;  %s4659_s10 = smov 9  }
   0x8   :  { %5561 = sst [smem:[#allocation11_spill]] %s4716_s9  ;;  %s4660_s15 = smov 10  }
   0x9   :  { %5562 = sst [smem:[#allocation12_spill]] %s4721_s13  ;;  %s4661_s20 = smov 11  }
   0xa   :  { %5563 = sst [smem:[#allocation13_spill]] %s4726_s17  ;;  %s4663_s1 = smov 13  }
   0xb   :  { %5564 = sst [smem:[#allocation14_spill]] %s4731_s21  ;;  %s4664_s7 = smov 14  }
   0xc   :  { %5565 = sst [smem:[#allocation15_spill]] %s4736_s25  ;;  %s4666_s22 = smov 16  }
   0xd   :  { %s4741_s29 = sld [smem:[%s5530_s0 + %s4656_s26]]   ;;  %s4662_s26 = smov 12  }
   0xe   :  { %s4746_s3 = sld [smem:[%s5530_s0 + %s4657_s30]]   ;;  %s4667_s28 = smov 17  }
   0xf   :  { %s4751_s8 = sld [smem:[%s5530_s0 + %s4658_s4]]   ;;  %s4673_s16 = smov 23  }
  0x10   :  { %s4756_s14 = sld [smem:[%s5530_s0 + %s4659_s10]]   ;;  %s4672_s10 = smov 22  }
  0x11   :  { %s4761_s19 = sld [smem:[%s5530_s0 + %s4660_s15]]   ;;  %s4665_s15 = smov 15  }
  0x12   :  { %s4766_s24 = sld [smem:[%s5530_s0 + %s4661_s20]]   ;;  %s4674_s23 = smov 24  }
  0x13   :  { %5566 = sst [smem:[#allocation16_spill]] %s4741_s29 }
  0x14   :  { %5567 = sst [smem:[#allocation17_spill]] %s4746_s3 }
  0x15   :  { %5568 = sst [smem:[#allocation18_spill]] %s4751_s8 }
  0x16   :  { %s4771_s30 = sld [smem:[%s5530_s0 + %s4662_s26]]  }
  0x17   :  { %s4776_s6 = sld [smem:[%s5530_s0 + %s4663_s1]]   ;;  %s4675_s1 = smov 25  }
  0x18   :  { %s4781_s12 = sld [smem:[%s5530_s0 + %s4664_s7]]   ;;  %s4668_s7 = smov 18  }
  0x19   :  { %s4786_s20 = sld [smem:[%s5530_s0 + %s4665_s15]]   ;;  %s4669_s15 = smov 19  }
  0x1a   :  { %s4791_s27 = sld [smem:[%s5530_s0 + %s4666_s22]]   ;;  %s4670_s22 = smov 20  }
  0x1b   :  { %s4796_s4 = sld [smem:[%s5530_s0 + %s4667_s28]]   ;;  %s4671_s28 = smov 21  }
  0x1c   :  { %s4801_s17 = sld [smem:[%s5530_s0 + %s4668_s7]]   ;;  %s4680_s7 = smov 30  }
  0x1d   :  { %5569 = sst [smem:[#allocation19_spill]] %s4776_s6 }
  0x1e   :  { %s4806_s9 = sld [smem:[%s5530_s0 + %s4669_s15]]  }
  0x1f   :  { %s4811_s13 = sld [smem:[%s5530_s0 + %s4670_s22]]  }
  0x20   :  { %s3785_s5 = sld [smem:[%s5530_s0 + %s4671_s28]]  }
  0x21   :  { %5570 = sst [smem:[#allocation20_spill]] %s4796_s4 }
  0x22   :  { %5571 = sst [smem:[#allocation21_spill]] %s4801_s17 }
  0x23   :  { %s4819_s17 = sld [smem:[%s5530_s0 + %s4672_s10]]   ;;  %s4676_s10 = smov 26  }
  0x24   :  { %5572 = sst [smem:[#allocation22_spill]] %s4806_s9 }
  0x25   :  { %5573 = sst [smem:[#allocation23_spill]] %s4811_s13 }
  0x26   :  { %s4824_s9 = sld [smem:[%s5530_s0 + %s4673_s16]]   ;;  %s4677_s16 = smov 27   ;;  %v75_v0 = vstv %s3785_s5 }
  0x27   :  { %s4829_s13 = sld [smem:[%s5530_s0 + %s4674_s23]]   ;;  %s4678_s23 = smov 28   ;;  %76 = vst [vmem:[#allocation3] sm:$0x1] %v75_v0 }
  0x28   :  { %s4834_s4 = sld [smem:[%s5530_s0 + %s4675_s1]]   ;;  %s4679_s1 = smov 29  }
  0x29   :  { %5574 = sst [smem:[#allocation24_spill]] %s4819_s17  ;;  %s4681_s5 = smov 31  }
  0x2a   :  { %s4839_s17 = sld [smem:[%s5530_s0 + %s4676_s10]]  }
  0x2b   :  { %s4849_s28 = sld [smem:[%s5530_s0 + %s4678_s23]]   ;;  %s4682_s23 = smov 32  }
  0x2c   :  { %5575 = sst [smem:[#allocation25_spill]] %s4824_s9 }
  0x2d   :  { %5576 = sst [smem:[#allocation26_spill]] %s4829_s13 }
  0x2e   :  { %5577 = sst [smem:[#allocation27_spill]] %s4834_s4  ;;  %s4683_s4 = smov 33  }
  0x2f   :  { %s4844_s9 = sld [smem:[%s5530_s0 + %s4677_s16]]  }
  0x30   :  { %5578 = sst [smem:[#allocation28_spill]] %s4839_s17  ;;  %s4684_s17 = smov 34  }
  0x31   :  { %5580 = sst [smem:[#allocation30_spill]] %s4849_s28 }
  0x32   :  { %s4854_s10 = sld [smem:[%s5530_s0 + %s4679_s1]]  }
  0x33   :  { %s4859_s16 = sld [smem:[%s5530_s0 + %s4680_s7]]  }
  0x34   :  { %s4864_s22 = sld [smem:[%s5530_s0 + %s4681_s5]]  }
  0x35   :  { %5579 = sst [smem:[#allocation29_spill]] %s4844_s9 }
  0x36   :  { %s4869_s28 = sld [smem:[%s5530_s0 + %s4682_s23]]  }
  0x38   :  { %5581 = sst [smem:[#allocation31_spill]] %s4854_s10 }
  0x39   :  { %5582 = sst [smem:[#allocation32_spill]] %s4859_s16 }
  0x3a   :  { %5583 = sst [smem:[#allocation33_spill]] %s4864_s22 }
  0x3b   :  { %s4874_s10 = sld [smem:[%s5530_s0 + %s4683_s4]]  }
  0x3c   :  { %5584 = sst [smem:[#allocation34_spill]] %s4869_s28 }
  0x3d   :  { %s4879_s16 = sld [smem:[%s5530_s0 + %s4684_s17]]  }
  0x43   :  { %5585 = sst [smem:[#allocation35_spill]] %s4879_s16 }
  0x44   :  { %77 = vsyncpa [#allocation5], 0 }
  0x45   :  { %78 = vsyncpa [#allocation7], 0 }
  0x46   :  { %80 = vsyncpa [#allocation7 + $0x1], 0  ;;  %s4881_s5 = smov 0   ;;  %s4883_s9 = smov 0  }
  0x47   :  { %s4885_s15 = smov 0   ;;  %s4887_s18 = smov 0  }
  0x48 LB: > { %s5586_s6 = sld [smem:[#allocation19_spill]]  ;;  %5587 = sst [smem:[#allocation36_spill]] %s4637_s5  ;;  %s4637_s5 = sphi %s4881_s5, %s5648_s5   ;;  %s4649_s18 = sphi %s4887_s18, %s5647_s18   ;;  %s4645_s15 = sphi %s4885_s15, %s5650_s15   ;;  %s4641_s9 = sphi %s4883_s9, %s5649_s9  }
  0x49   : > { %5588 = sst [smem:[#allocation37_spill]] %s4641_s9  ;;  %s4902_s0 = sadd.s32 4294967295, %s4649_s18  }
  0x4a   : > { %5589 = sst [smem:[#allocation38_spill]] %s4645_s15  ;;  %s3800_s23 = sadd.s32 4294967294, %s4649_s18  }
  0x4b   : > { %5590 = sst [smem:[#allocation39_spill]] %s4649_s18  ;;  %s4906_s26 = sadd.s32 1, %s4649_s18  }
  0x4c   : > { %5591 = sst [smem:[#allocation40_spill]] %s4902_s0  ;;  %s882_s4 = sadd.s32 1, %s4645_s15 }
  0x4d   : > { %5592 = sst [smem:[#allocation41_spill]] %s4906_s26  ;;  %s879_s1 = ssub.s32 %s4649_s18, %s4906_s26 }
  0x4e   : > { %p892_p0 = scmp.ne.s32.totalorder %s4645_s15, %s4641_s9  ;;  %p880_p1 = scmp.eq.s32.totalorder %s879_s1, 0 }
  0x4f   : > { %p893_p2 = scmp.eq.s32.totalorder %s4902_s0, 1  ;;  %p898_p3 = scmp.ne.s32.totalorder %s4641_s9, %s4637_s5 }
  0x50   : > { %p899_p4 = scmp.eq.s32.totalorder %s3800_s23, 1  ;;  %p3803_p7 = scmp.ge.s32.totalorder %s4649_s18, 1 }
  0x51   : > { %s4917_s2 = scalar_select %p880_p1, %s4645_s15, %s882_s4  }
  0x52   : > { %p4921_p5 = por %p893_p2, %p892_p0  ;;  %p4925_p6 = por %p899_p4, %p898_p3 }
  0x53   : > { %5593 = sst [smem:[#allocation42_spill]] %s4917_s2  ;;  %p1065_p8 = scmp.lt.s32.totalorder %s4649_s18, 3 }
  0x54   : > { %s5594_s17 = scalar_select %p4921_p5, 1, 0 }
  0x55   : > { %s5596_s7 = scalar_select %p4925_p6, 1, 0 }
  0x56   : > { %5595 = sst [smem:[#allocation43_spill]] %s5594_s17  ;;  %p1066_p9 = pnand %p3803_p7, %p1065_p8 }
  0x57   : > { %5597 = sst [smem:[#allocation44_spill]] %s5596_s7 }
  0x58   : > { %1069 = sbr.rel (%p1066_p9) target bundleno = 6343 (0x18c7), region = 148 }
  0x5f   : > { %s5600_s29 = sld [smem:[#allocation16_spill]]  ;;  %s5601_s3 = sld [smem:[#allocation17_spill]] }
  0x60   : > { %s5602_s8 = sld [smem:[#allocation18_spill]]  ;;  %s5541_s11 = sand.u32 1, %s4641_s9  }
  0x61   : > { %p1203_p10 = scmp.lt.s32.totalorder %s4902_s0, 1  ;;  %s3804_s23 = sshll.u32 %s5541_s11, 4 }
  0x62   : > { %s5603_s2 = sld [smem:[#allocation20_spill]] }
  0x63   : > { %s4936_s4 = scalar_select %p1203_p10, %s4902_s0, 1 }
  0x65   : > { %s3943_s11 = sshll.u32 %s4936_s4, 6  ;;  %s3807_s26 = sshll.u32 %s4936_s4, 1 }
  0x66   : > { %s4945_s7 = scalar_lea.vmem %s5600_s29, %s3943_s11  ;;  %s4948_s5 = scalar_lea.vmem %s5601_s3, %s3807_s26 }
  0x67   : > { %5604 = sst [smem:[#allocation45_spill]] %s4948_s5  ;;  %s3944_s18 = sshll.u32 %s4936_s4, 5 }
  0x68   : > { %s4954_s9 = scalar_lea.vmem %s5602_s8, %s3944_s18  ;;  %s1228_s16 = scalar_lea.vmem %s4761_s19, %s4936_s4 }
  0x69   : > { %s1231_s28 = scalar_lea.vmem %s4766_s24, %s4936_s4  ;;  %s1234_s22 = scalar_lea.vmem %s4771_s30, %s4936_s4 }
  0x6a   : > { %s1237_s13 = scalar_lea.vmem %s5586_s6, %s4936_s4  ;;  %s4965_s1 = scalar_lea.vmem %s4781_s12, %s3943_s11 }
  0x6b   : > { %s4968_s21 = scalar_lea.vmem %s4786_s20, %s3807_s26  ;;  %s4971_s15 = scalar_lea.vmem %s4791_s27, %s3943_s11 }
  0x6c   : > { %s1254_s25 = scalar_lea.vmem %s5603_s2, %s4936_s4  ;;  %s3947_s0 = sshll.u32 %s4936_s4, 4 }
  0x6d   : > { %s4977_s29 = scalar_lea.vmem %s4874_s10, %s3947_s0  ;;  %s4979_s3 = scalar_lea.vmem [#allocation6], %s3804_s23 }
  0x6e   : > { %s5605_s5 = sld [smem:[#allocation40_spill]] }
  0x74   : > { %p3817_p11 = scmp.ne.s32.totalorder %s5605_s5, 0 }
  0x75   : > { %s5606_s18 = sld [smem:[#allocation10_spill]] (!%p3817_p11)  ;;  %vm1267_vm0 = vcmask (!%p3817_p11), 523264   ;;  %v4685_v3 = vmov (!%p3817_p11), 1.0  }
  0x76   : > { %1264 = sbr.rel (%p3817_p11) target bundleno = 126 (0x7e), region = 152  ;;  %1270 = vst [vmem:[#allocation2] sm:$0xff] (!%p3817_p11), %v4685_v3  ;;  %1271 = vst [vmem:[#allocation2 + $0x8] sm:$0xff] (!%p3817_p11), %v4685_v3 }
  0x7b   : > { %s5607_s17 = smov (!%p3817_p11), %s5606_s18  ;;  %v1265_v1 = vld [vmem:[%s5606_s18] sm:$0xff] (!%p3817_p11) }
  0x7c   : > { %v1266_v2 = vld [vmem:[%s5607_s17 + $0x8] sm:$0xff] (!%p3817_p11)  ;;  %1268 = vst.msk [vmem:[#allocation4] sm:$0xff] (!%p3817_p11), %vm1267_vm0, %v1265_v1 }
  0x7d   : > { %1269 = vst.msk [vmem:[#allocation4 + $0x8] sm:$0xff] %vm1267_vm0, %v1266_v2 }
  0x7e PF: > { %vm1309_vm1 = vcmask 523264   ;;  %s5608_s5 = sld [smem:[#allocation12_spill]]  ;;  %v4411_v18 = vld [vmem:[%s4945_s7 + $0x4] ss:$8 sps:$4 sm:$0xff]   ;;  %v4413_v19 = vld [vmem:[%s4945_s7] ss:$8 sps:$4 sm:$0xff]   ;;  %v1364_v61 = vlaneseq }
  0x7f   : > { %1417 = vmatprep.subr.bf16.mxu0 %v4411_v18  ;;  %v4414_v20 = vld [vmem:[%s4945_s7 + $0x14] ss:$8 sps:$4 sm:$0xff]   ;;  %v4416_v21 = vld [vmem:[%s4945_s7 + $0x10] ss:$8 sps:$4 sm:$0xff]   ;;  %v4417_v22 = vld [vmem:[%s4945_s7 + $0x24] ss:$8 sps:$4 sm:$0xff]  }
  0x80   : > { %1418 = vmatpush1.bf16.msra.mxu0 %v4413_v19  ;;  %v4419_v23 = vld [vmem:[%s4945_s7 + $0x20] ss:$8 sps:$4 sm:$0xff]   ;;  %v4420_v40 = vld [vmem:[%s4945_s7 + $0x34] ss:$8 sps:$4 sm:$0xff]   ;;  %s5610_s26 = sld [smem:[#allocation14_spill]]  ;;  %v4686_v42 = vmov 0  }
  0x81   : > { %1419 = vmatprep.subr.bf16.mxu0 %v4414_v20  ;;  %v4422_v41 = vld [vmem:[%s4945_s7 + $0x30] ss:$8 sps:$4 sm:$0xff]   ;;  %1449 = vmatprep.mubr.bf16.mxu0 %v4686_v42  ;;  %s5611_s2 = sld [smem:[#allocation15_spill]]  ;;  %s5613_s7 = sld [smem:[#allocation45_spill]]  ;;  %v4687_v60 = vmov 0.0   ;;  %v5062_v62 = vshrl.u32 %v1364_v61, 7 }
  0x82   : > { %4061 = vmatprep.subr.bf16.mxu1 %v4687_v60  ;;  %vm4688_vm2 = vmmov 0   ;;  %s4689_s18 = smov 48   ;;  %vm1473_vm3 = vcmask 130048  }
  0x83   : > { %v1366_v63 = vsub.s32 0, %v5062_v62  ;;  %v1370_v1 = vsub.s32 1, %v5062_v62  ;;  %4063 = vmatprep.mubr.msk.bf16.mxu1 %vm4688_vm2, %v4687_v60 }
  0x84   : > { %v4984_v4 = vld [vmem:[#allocation4] sm:$0xff]  ;;  %v4986_v5 = vld [vmem:[#allocation4 + $0x8] sm:$0xff]  ;;  %s5609_s0 = smov %s5608_s5  ;;  %1420 = vmatpush1.bf16.msra.mxu0 %v4416_v21 }
  0x85   : > { %v1310_v6 = vsel %vm1309_vm1, %v4984_v4, 0.0  ;;  %v1313_v7 = vsel %vm1309_vm1, %v4986_v5, 0.0  ;;  %v5003_v24 = vld [vmem:[%s5608_s5] sm:$0xf]  ;;  %v5006_v25 = vld [vmem:[%s5609_s0 + $0x4] sm:$0xf]  ;;  %1421 = vmatprep.subr.bf16.mxu0 %v4417_v22 }
  0x86   : > { %1311 = vadd.xlane.f32.xlu0 %v1310_v6  ;;  %v5009_v26 = vld [vmem:[%s5609_s0 + $0x8] sm:$0xf]  ;;  %v5012_v27 = vld [vmem:[%s5609_s0 + $0xc] sm:$0xf]  ;;  %v5015_v28 = vld [vmem:[%s5609_s0 + $0x10] sm:$0xf]  ;;  %s5612_s11 = scalar_lea.vmem %s5610_s26, %s4936_s4 }
  0x87   : > { %v5018_v29 = vld [vmem:[%s5609_s0 + $0x14] sm:$0xf]  ;;  %v5021_v30 = vld [vmem:[%s5609_s0 + $0x18] sm:$0xf]  ;;  %v5024_v31 = vld [vmem:[%s5609_s0 + $0x1c] sm:$0xf]  ;;  %s5614_s23 = scalar_lea.vmem %s5611_s2, %s4936_s4 }
  0x88   : > { %1422 = vmatpush1.bf16.msra.mxu0 %v4419_v23  ;;  %v5027_v32 = vld [vmem:[%s5609_s0 + $0x20] sm:$0xf]  ;;  %v5030_v33 = vld [vmem:[%s5609_s0 + $0x24] sm:$0xf]  ;;  %v5033_v34 = vld [vmem:[%s5609_s0 + $0x28] sm:$0xf] }
  0x89   : > { %v5036_v35 = vld [vmem:[%s5609_s0 + $0x2c] sm:$0xf]  ;;  %v5039_v36 = vld [vmem:[%s5609_s0 + $0x30] sm:$0xf]  ;;  %v5042_v37 = vld [vmem:[%s5609_s0 + $0x34] sm:$0xf]  ;;  %1423 = vmatprep.subr.bf16.mxu0 %v4420_v40 }
  0x8a   : > { %1314 = vadd.xlane.f32.xlu0 %v1313_v7  ;;  %v5045_v38 = vld [vmem:[%s5609_s0 + $0x38] sm:$0xf]  ;;  %v5048_v39 = vld [vmem:[%s5609_s0 + $0x3c] sm:$0xf]  ;;  %v3818_v51 = vld [vmem:[%s5612_s11] ss:$0 sm:$0xff] }
  0x8b   : > { %v3819_v55 = vld [vmem:[%s5614_s23] ss:$0 sm:$0xff]  ;;  %s4690_s5 = smov 64   ;;  %s4691_s26 = smov 112  }
  0x8c   : > { %1424 = vmatpush1.bf16.msra.mxu0 %v4422_v41  ;;  %v1362_v0 = vld [vmem:[%s5613_s7] sm:$0x3]  ;;  %s4692_s2 = smov 96   ;;  %s4693_s11 = smov 32  }
  0x8d   : > { %4055 = vmatprep.subr.bf16.mxu0 %v4687_v60  ;;  %v1367_v2 = vrot.slane %v1362_v0, %v1366_v63  ;;  %v1371_v6 = vrot.slane %v1362_v0, %v1370_v1  ;;  %s4694_s7 = smov 16   ;;  %s4695_s23 = smov 80  }
 0x113   : > { %v1312_v8 = vpop.xlane.xlu0 %1311 }
 0x114   : > { %v1317_v9 = vmul.f32 0.015625, %v1312_v8 }
 0x116   : > { %v1319_v10 = vsub.f32 %v4984_v4, %v1317_v9 }
 0x117   : > { %v1315_v11 = vpop.xlane.xlu0 %1314 }
 0x118   : > { %v1318_v12 = vmul.f32 0.015625, %v1315_v11  ;;  %v1321_v13 = vmul.f32 %v1319_v10, %v1319_v10 }
 0x11a   : > { %v1320_v14 = vsub.f32 %v4986_v5, %v1318_v12  ;;  %v1323_v15 = vsel %vm1309_vm1, %v1321_v13, 0.0 }
 0x11b   : > { %1324 = vadd.xlane.f32.xlu1 %v1323_v15 }
 0x11c   : > { %v1322_v16 = vmul.f32 %v1320_v14, %v1320_v14 }
 0x11e   : > { %v1326_v17 = vsel %vm1309_vm1, %v1322_v16, 0.0 }
 0x11f   : > { %1327 = vadd.xlane.f32.xlu1 %v1326_v17 }
 0x1a8   : > { %v1325_v43 = vpop.xlane.xlu1 %1324 }
 0x1a9   : > { %v1329_v44 = vmul.f32 0.015625, %v1325_v43 }
 0x1ab   : > { %v1331_v45 = vadd.f32 1e-05, %v1329_v44 }
 0x1ac   : > { %v1328_v46 = vpop.xlane.xlu1 %1327 }
 0x1ad   : > { %4455 = vrsqrt.f32 %v1331_v45  ;;  %v1330_v47 = vmul.f32 0.015625, %v1328_v46 }
 0x1af   : > { %v1332_v48 = vadd.f32 1e-05, %v1330_v47 }
 0x1b1   : > { %4457 = vrsqrt.f32 %v1332_v48 }
 0x1b7   : > { %v4456_v49 = vpop.eup %4455 }
 0x1b8   : > { %v1335_v50 = vmul.f32 %v4456_v49, %v1319_v10 }
 0x1ba   : > { %v1343_v54 = vmul.f32 %v3818_v51, %v1335_v50 }
 0x1bb   : > { %v4458_v52 = vpop.eup %4457 }
 0x1bc   : > { %v1336_v53 = vmul.f32 %v4458_v52, %v1320_v14  ;;  %v1351_v57 = vadd.f32 %v3819_v55, %v1343_v54 }
 0x1be   : > { %v1344_v56 = vmul.f32 %v3818_v51, %v1336_v53 }
 0x1c0   : > { %v1352_v58 = vadd.f32 %v3819_v55, %v1344_v56 }
 0x1c2   : > { %v1353_v59 = vpack.c.bf16 %v1352_v58, %v1351_v57 }
 0x1c4   : > { %3828 = vmatmul.mubr.msk.bf16.vlgmr.msra.gmra.mrb[0].mxu0 %vm1309_vm1, %v1353_v59 }
 0x1c5   : > { %4057 = vmatprep.mubr.msk.bf16.mxu0 %vm4688_vm2, %v4687_v60 }
 0x297   : > { %v1451_v3 = vpop.f32.mrb[0].mxu0 }
 0x298   : > { %v1453_v7 = vpop.f32.mrb[1].mxu0  ;;  %v1452_v9 = vadd.f32 %v1451_v3, %v1367_v2 }
 0x299   : > { %v1455_v8 = vpop.f32.mrb[2].mxu0  ;;  %v1454_v12 = vadd.f32 %v1453_v7, %v1371_v6 }
 0x29a   : > { %v1456_v10 = vadd.f32 %v1455_v8, %v1367_v2  ;;  %v1457_v11 = vpop.f32.mrb[3].mxu0 }
 0x29b   : > { %v1458_v13 = vadd.f32 %v1457_v11, %v1371_v6 }
 0x29c   : > { %v5075_v14 = vpack.c.bf16 %v1456_v10, %v1452_v9 }
 0x29d   : > { %v5077_v15 = vpack.c.bf16 %v1458_v13, %v1454_v12 }
 0x29e   : > { %1593 = vrot.lane.b32.xlu1 %v5075_v14, %s4689_s18  ;;  %1471 = vrot.lane.b32.xlu0 %v5075_v14, %s4690_s5  ;;  %s5617_s18 = scalar_lea.vmem %s4756_s14, %s4936_s4  ;;  %s5618_s5 = sld [smem:[#allocation13_spill]] }
 0x29f   : > { %4062 = vmatpush3.bf16.msra.mxu1 %v5077_v15 }
 0x2a0   : > { %4073 = vmatprep.subr.bf16.mxu1 %v4687_v60 }
 0x2a2   : > { %1591 = vrot.lane.b32.xlu1 %v5075_v14, %s4691_s26 }
 0x310   : > { %v1472_v16 = vpop.permute.xlu0 %1471  ;;  %v1594_v18 = vpop.permute.xlu1 %1593 }
 0x311   : > { %v1478_v17 = vsel %vm1473_vm3, %v1472_v16, 0  ;;  %v1599_v19 = vsel %vm1473_vm3, %v1594_v18, 0 }
 0x312   : > { %4056 = vmatpush3.bf16.xpose.msra.mxu0 %v1478_v17 }
 0x313   : > { %4067 = vmatprep.subr.bf16.mxu0 %v4687_v60 }
 0x314   : > { %v1592_v20 = vpop.permute.xlu1 %1591 }
 0x319   : > { %4058 = vmatmul.mubr.msk.bf16.vlgmr.msra.gmra.mrb[4].mxu0 %vm1473_vm3, %v5075_v14 }
 0x31a   : > { %4068 = vmatpush3.bf16.xpose.msra.mxu0 %v1599_v19  ;;  %4069 = vmatprep.mubr.msk.bf16.mxu0 %vm4688_vm2, %v4687_v60 }
 0x31b   : > { %4079 = vmatprep.subr.bf16.mxu0 %v4687_v60 }
 0x321   : > { %4070 = vmatmul.mubr.msk.bf16.vlgmr.msra.gmra.mrb[8].mxu0 %vm1473_vm3, %v1592_v20 }
 0x322   : > { %4081 = vmatprep.mubr.msk.bf16.mxu0 %vm4688_vm2, %v4687_v60 }
 0x3ec   : > { %v1514_v21 = vpop.f32.mrb[4].mxu0 }
 0x3ed   : > { %v1521_v22 = vmul.f32 0.25, %v1514_v21  ;;  %v4059_v23 = vpop.f32.mrb[5].mxu0 }
 0x3ee   : > { %v1517_v40 = vpop.f32.mrb[6].mxu0 }
 0x3ef   : > { %v1522_v41 = vmul.f32 0.25, %v1517_v40  ;;  %v4060_v43 = vpop.f32.mrb[7].mxu0  ;;  %v1523_v44 = vsel %vm1473_vm3, %v1521_v22, -inf }
 0x3f0   : > { %1524 = vmax.xlane.f32.xlu1 %v1523_v44 }
 0x3f1   : > { %v1526_v45 = vsel %vm1473_vm3, %v1522_v41, -inf }
 0x3f2   : > { %1527 = vmax.xlane.f32.xlu0 %v1526_v45 }
 0x3f4   : > { %v1635_v46 = vpop.f32.mrb[8].mxu0 }
 0x3f5   : > { %v1642_v47 = vmul.f32 0.25, %v1635_v46  ;;  %v4071_v48 = vpop.f32.mrb[9].mxu0 }
 0x3f6   : > { %v1638_v49 = vpop.f32.mrb[10].mxu0 }
 0x3f7   : > { %v1643_v50 = vmul.f32 0.25, %v1638_v49  ;;  %v4072_v51 = vpop.f32.mrb[11].mxu0  ;;  %v1644_v52 = vsel %vm1473_vm3, %v1642_v47, -inf }
 0x3f8   : > { %1645 = vmax.xlane.f32.xlu0 %v1644_v52  ;;  %v4424_v51 = vld [vmem:[%s4954_s9 + $0x8] sm:$0xff]  }
 0x3f9   : > { %v1647_v53 = vsel %vm1473_vm3, %v1643_v50, -inf  ;;  %4080 = vmatpush3.bf16.msra.mxu0 %v4424_v51 }
 0x3fa   : > { %4091 = vmatprep.subr.bf16.mxu0 %v4687_v60 }
 0x3fc   : > { %1648 = vmax.xlane.f32.xlu0 %v1647_v53 }
 0x47d   : > { %v1525_v54 = vpop.xlane.xlu1 %1524 }
 0x47e   : > { %v1529_v55 = vsub.f32 %v1521_v22, %v1525_v54 }
 0x47f   : > { %v1528_v56 = vpop.xlane.xlu0 %1527 }
 0x480   : > { %v1531_v57 = vmul.f32 1.442695, %v1529_v55  ;;  %v1530_v58 = vsub.f32 %v1522_v41, %v1528_v56 }
 0x482   : > { %4459 = vpow2.f32 %v1531_v57  ;;  %v1533_v59 = vmul.f32 1.442695, %v1530_v58 }
 0x484   : > { %4461 = vpow2.f32 %v1533_v59 }
 0x485   : > { %v1646_v61 = vpop.xlane.xlu0 %1645 }
 0x486   : > { %v1650_v0 = vsub.f32 %v1642_v47, %v1646_v61 }
 0x488   : > { %v1652_v2 = vmul.f32 1.442695, %v1650_v0 }
 0x489   : > { %v1649_v3 = vpop.xlane.xlu0 %1648 }
 0x48a   : > { %4463 = vpow2.f32 %v1652_v2  ;;  %v1651_v6 = vsub.f32 %v1643_v50, %v1649_v3  ;;  %v4423_v50 = vld [vmem:[%s4954_s9] sm:$0xff]  }
 0x48c   : > { %v4460_v7 = vpop.eup %4459  ;;  %v1654_v8 = vmul.f32 1.442695, %v1651_v6 }
 0x48d   : > { %v1535_v9 = vsel %vm1473_vm3, %v4460_v7, 0.0 }
 0x48e   : > { %v4462_v10 = vpop.eup %4461  ;;  %4465 = vpow2.f32 %v1654_v8  ;;  %1536 = vadd.xlane.f32.xlu1 %v1535_v9 }
 0x48f   : > { %v1538_v11 = vsel %vm1473_vm3, %v4462_v10, 0.0 }
 0x490   : > { %1539 = vadd.xlane.f32.xlu0 %v1538_v11 }
 0x494   : > { %v4464_v12 = vpop.eup %4463 }
 0x495   : > { %v1656_v13 = vsel %vm1473_vm3, %v4464_v12, 0.0 }
 0x496   : > { %1657 = vadd.xlane.f32.xlu1 %v1656_v13 }
 0x498   : > { %v4466_v16 = vpop.eup %4465 }
 0x499   : > { %v1659_v17 = vsel %vm1473_vm3, %v4466_v16, 0.0 }
 0x49a   : > { %1660 = vadd.xlane.f32.xlu0 %v1659_v17 }
 0x4a7   : > { %1668 = vrot.lane.b32.xlu1 %v5077_v15, %s4691_s26 }
 0x4ab   : > { %1816 = vrot.lane.b32.xlu1 %v5075_v14, %s4692_s2 }
 0x4b0   : > { %1818 = vrot.lane.b32.xlu0 %v5075_v14, %s4693_s11 }
 0x51b   : > { %v1537_v18 = vpop.xlane.xlu1 %1536 }
 0x51c   : > { %4467 = vrcp.f32 %v1537_v18 }
 0x51d   : > { %v1540_v19 = vpop.xlane.xlu0 %1539 }
 0x51e   : > { %4469 = vrcp.f32 %v1540_v19 }
 0x523   : > { %v1658_v20 = vpop.xlane.xlu1 %1657 }
 0x524   : > { %4471 = vrcp.f32 %v1658_v20 }
 0x526   : > { %v4468_v21 = vpop.eup %4467 }
 0x527   : > { %v1661_v22 = vpop.xlane.xlu0 %1660  ;;  %v1543_v40 = vmul.f32 %v4468_v21, %v4460_v7  ;;  %v1669_v44 = vpop.permute.xlu1 %1668 }
 0x528   : > { %v4470_v23 = vpop.eup %4469  ;;  %4473 = vrcp.f32 %v1661_v22 }
 0x529   : > { %v1544_v41 = vmul.f32 %v4470_v23, %v4462_v10 }
 0x52b   : > { %v1545_v43 = vpack.c.bf16 %v1544_v41, %v1543_v40  ;;  %v1819_v59 = vpop.permute.xlu0 %1818  ;;  %v1817_v6 = vpop.permute.xlu1 %1816 }
 0x52c   : > { %v1824_v3 = vsel %vm1473_vm3, %v1819_v59, 0 }
 0x52d   : > { %4064 = vmatmul.mubr.msk.bf16.vlgmr.msra.gmra.mrb[0].mxu1 %vm1473_vm3, %v1545_v43 }
 0x52e   : > { %4074 = vmatpush3.bf16.msra.mxu1 %v1669_v44  ;;  %4075 = vmatprep.mubr.msk.bf16.mxu1 %vm4688_vm2, %v4687_v60  ;;  %v4472_v45 = vpop.eup %4471 }
 0x52f   : > { %4085 = vmatprep.subr.bf16.mxu1 %v4687_v60  ;;  %v1664_v47 = vmul.f32 %v4472_v45, %v4464_v12 }
 0x532   : > { %v4474_v46 = vpop.eup %4473 }
 0x533   : > { %v1665_v48 = vmul.f32 %v4474_v46, %v4466_v16 }
 0x535   : > { %v1666_v49 = vpack.c.bf16 %v1665_v48, %v1664_v47 }
 0x537   : > { %4076 = vmatmul.mubr.msk.bf16.vlgmr.msra.gmra.mrb[4].mxu1 %vm1473_vm3, %v1666_v49 }
 0x538   : > { %4087 = vmatprep.mubr.msk.bf16.mxu1 %vm4688_vm2, %v4687_v60  ;;  %4086 = vmatpush3.bf16.msra.mxu1 %v4423_v50 }
 0x539   : > { %4097 = vmatprep.subr.bf16.mxu1 %v4687_v60 }
 0x600   : > { %v1583_v52 = vpop.f32.mrb[0].mxu1 }
 0x601   : > { %v4065_v53 = vpop.f32.mrb[1].mxu1 }
 0x602   : > { %v1586_v54 = vpop.f32.mrb[2].mxu1 }
 0x603   : > { %v1590_v55 = vpack.c.bf16 %v1586_v54, %v1583_v52  ;;  %v4066_v56 = vpop.f32.mrb[3].mxu1 }
 0x605   : > { %4088 = vmatmul.mubr.msk.bf16.vlgmr.msra.gmra.mrb[8].mxu1 %vm1473_vm3, %v1590_v55 }
 0x606   : > { %4099 = vmatprep.mubr.msk.bf16.mxu1 %vm4688_vm2, %v4687_v60 }
 0x60a   : > { %v1708_v57 = vpop.f32.mrb[4].mxu1 }
 0x60b   : > { %v4077_v58 = vpop.f32.mrb[5].mxu1 }
 0x60c   : > { %v1711_v61 = vpop.f32.mrb[6].mxu1 }
 0x60d   : > { %v1715_v0 = vpack.c.bf16 %v1711_v61, %v1708_v57  ;;  %v4078_v2 = vpop.f32.mrb[7].mxu1 }
 0x60f   : > { %4082 = vmatmul.mubr.msk.bf16.vlgmr.msra.gmra.mrb[12].mxu0 %vm1473_vm3, %v1715_v0 }
 0x610   : > { %4092 = vmatpush3.bf16.xpose.msra.mxu0 %v1824_v3  ;;  %4093 = vmatprep.mubr.msk.bf16.mxu0 %vm4688_vm2, %v4687_v60 }
 0x611   : > { %4103 = vmatprep.subr.bf16.mxu0 %v4687_v60 }
 0x617   : > { %4094 = vmatmul.mubr.msk.bf16.vlgmr.msra.gmra.mrb[16].mxu0 %vm1473_vm3, %v1817_v6  ;;  %v4425_v6 = vld [vmem:[%s4954_s9 + $0x10] sm:$0xff]  }
 0x618   : > { %4105 = vmatprep.mubr.msk.bf16.mxu0 %vm4688_vm2, %v4687_v60  ;;  %4104 = vmatpush3.bf16.msra.mxu0 %v4425_v6 }
 0x619   : > { %4115 = vmatprep.subr.bf16.mxu0 %v4687_v60 }
 0x6d8   : > { %v1809_v7 = vpop.f32.mrb[8].mxu1 }
 0x6d9   : > { %v4089_v8 = vpop.f32.mrb[9].mxu1 }
 0x6da   : > { %v1812_v9 = vpop.f32.mrb[10].mxu1 }
 0x6db   : > { %v4090_v10 = vpop.f32.mrb[11].mxu1 }
 0x6e2   : > { %v1759_v11 = vpop.f32.mrb[12].mxu0 }
 0x6e3   : > { %v5131_v12 = vadd.f32 %v1809_v7, %v1759_v11  ;;  %v4083_v13 = vpop.f32.mrb[13].mxu0 }
 0x6e4   : > { %v1762_v16 = vpop.f32.mrb[14].mxu0 }
 0x6e5   : > { %v5133_v17 = vadd.f32 %v1812_v9, %v1762_v16  ;;  %v4084_v18 = vpop.f32.mrb[15].mxu0 }
 0x6ea   : > { %v1860_v19 = vpop.f32.mrb[16].mxu0 }
 0x6eb   : > { %v1867_v20 = vmul.f32 0.25, %v1860_v19  ;;  %v4095_v21 = vpop.f32.mrb[17].mxu0 }
 0x6ec   : > { %v1863_v22 = vpop.f32.mrb[18].mxu0 }
 0x6ed   : > { %v1868_v23 = vmul.f32 0.25, %v1863_v22  ;;  %v4096_v40 = vpop.f32.mrb[19].mxu0  ;;  %v1869_v41 = vsel %vm1473_vm3, %v1867_v20, -inf }
 0x6ee   : > { %1870 = vmax.xlane.f32.xlu1 %v1869_v41 }
 0x6ef   : > { %v1872_v43 = vsel %vm1473_vm3, %v1868_v23, -inf }
 0x6f0   : > { %1873 = vmax.xlane.f32.xlu0 %v1872_v43 }
 0x77b   : > { %v1871_v44 = vpop.xlane.xlu1 %1870 }
 0x77c   : > { %v1875_v45 = vsub.f32 %v1867_v20, %v1871_v44 }
 0x77d   : > { %v1874_v46 = vpop.xlane.xlu0 %1873 }
 0x77e   : > { %v1877_v47 = vmul.f32 1.442695, %v1875_v45  ;;  %v1876_v48 = vsub.f32 %v1868_v23, %v1874_v46 }
 0x780   : > { %4475 = vpow2.f32 %v1877_v47  ;;  %v1879_v49 = vmul.f32 1.442695, %v1876_v48 }
 0x782   : > { %4477 = vpow2.f32 %v1879_v49 }
 0x78a   : > { %v4476_v50 = vpop.eup %4475 }
 0x78b   : > { %v1881_v51 = vsel %vm1473_vm3, %v4476_v50, 0.0 }
 0x78c   : > { %v4478_v52 = vpop.eup %4477  ;;  %1882 = vadd.xlane.f32.xlu0 %v1881_v51  ;;  %v4426_v51 = vld [vmem:[%s4954_s9 + $0x18] sm:$0xff]   ;;  %s5615_s9 = sld [smem:[#allocation11_spill]] }
 0x78d   : > { %v1884_v53 = vsel %vm1473_vm3, %v4478_v52, 0.0 }
 0x78e   : > { %1885 = vadd.xlane.f32.xlu1 %v1884_v53 }
 0x792   : > { %s5616_s26 = smov %s5615_s9 }
 0x79f   : > { %1994 = vrot.lane.b32.xlu1 %v5075_v14, %s4694_s7 }
 0x7a2   : > { %1892 = vrot.lane.b32.xlu0 %v5077_v15, %s4692_s2 }
 0x7a3   : > { %1992 = vrot.lane.b32.xlu1 %v5075_v14, %s4695_s23 }
 0x819   : > { %v1883_v54 = vpop.xlane.xlu0 %1882 }
 0x81a   : > { %4479 = vrcp.f32 %v1883_v54 }
 0x81b   : > { %v1886_v55 = vpop.xlane.xlu1 %1885 }
 0x81c   : > { %4481 = vrcp.f32 %v1886_v55 }
 0x81d   : > { %v1893_v56 = vpop.permute.xlu0 %1892 }
 0x81e   : > { %4098 = vmatpush3.bf16.msra.mxu1 %v1893_v56 }
 0x81f   : > { %4109 = vmatprep.subr.bf16.mxu1 %v4687_v60  ;;  %v1995_v0 = vpop.permute.xlu1 %1994 }
 0x820   : > { %v2000_v3 = vsel %vm1473_vm3, %v1995_v0, 0 }
 0x823   : > { %v1993_v14 = vpop.permute.xlu1 %1992 }
 0x824   : > { %v4480_v57 = vpop.eup %4479 }
 0x825   : > { %v1889_v59 = vmul.f32 %v4480_v57, %v4476_v50 }
 0x826   : > { %v4482_v58 = vpop.eup %4481 }
 0x827   : > { %v1890_v61 = vmul.f32 %v4482_v58, %v4478_v52 }
 0x829   : > { %v1891_v2 = vpack.c.bf16 %v1890_v61, %v1889_v59 }
 0x82b   : > { %4100 = vmatmul.mubr.msk.bf16.vlgmr.msra.gmra.mrb[12].mxu1 %vm1473_vm3, %v1891_v2 }
 0x82c   : > { %4110 = vmatpush3.bf16.xpose.msra.mxu1 %v2000_v3  ;;  %4111 = vmatprep.mubr.msk.bf16.mxu1 %vm4688_vm2, %v4687_v60 }
 0x82d   : > { %4121 = vmatprep.subr.bf16.mxu1 %v4687_v60 }
 0x833   : > { %4112 = vmatmul.mubr.msk.bf16.vlgmr.msra.gmra.mrb[16].mxu1 %vm1473_vm3, %v1993_v14 }
 0x834   : > { %4123 = vmatprep.mubr.msk.bf16.mxu1 %vm4688_vm2, %v4687_v60  ;;  %4122 = vmatpush3.bf16.msra.mxu1 %v4426_v51 }
 0x835   : > { %4147 = vmatprep.subr.bf16.mxu1 %v4687_v60 }
 0x8fe   : > { %v1932_v7 = vpop.f32.mrb[12].mxu1 }
 0x8ff   : > { %v4101_v8 = vpop.f32.mrb[13].mxu1 }
 0x900   : > { %v1935_v9 = vpop.f32.mrb[14].mxu1 }
 0x901   : > { %v1939_v10 = vpack.c.bf16 %v1935_v9, %v1932_v7  ;;  %v4102_v11 = vpop.f32.mrb[15].mxu1 }
 0x903   : > { %4106 = vmatmul.mubr.msk.bf16.vlgmr.msra.gmra.mrb[20].mxu0 %vm1473_vm3, %v1939_v10  ;;  %v3845_v10 = vld [vmem:[%s5617_s18] ss:$0 sm:$0xff] }
 0x904   : > { %4117 = vmatprep.mubr.msk.bf16.mxu0 %vm4688_vm2, %v4687_v60 }
 0x906   : > { %v2036_v13 = vpop.f32.mrb[16].mxu1 }
 0x907   : > { %v2043_v16 = vmul.f32 0.25, %v2036_v13  ;;  %v4113_v18 = vpop.f32.mrb[17].mxu1 }
 0x908   : > { %v2039_v19 = vpop.f32.mrb[18].mxu1 }
 0x909   : > { %v2044_v20 = vmul.f32 0.25, %v2039_v19  ;;  %v4114_v21 = vpop.f32.mrb[19].mxu1  ;;  %v2045_v22 = vsel %vm1473_vm3, %v2043_v16, -inf }
 0x90a   : > { %2046 = vmax.xlane.f32.xlu1 %v2045_v22 }
 0x90b   : > { %v2048_v23 = vsel %vm1473_vm3, %v2044_v20, -inf }
 0x90c   : > { %2049 = vmax.xlane.f32.xlu0 %v2048_v23 }
 0x91b   : > { %2068 = vrot.lane.b32.xlu1 %v5077_v15, %s4695_s23 }
 0x997   : > { %v2047_v40 = vpop.xlane.xlu1 %2046 }
 0x998   : > { %v2051_v41 = vsub.f32 %v2043_v16, %v2047_v40 }
 0x999   : > { %v2050_v43 = vpop.xlane.xlu0 %2049 }
 0x99a   : > { %v2053_v44 = vmul.f32 1.442695, %v2051_v41  ;;  %v2052_v45 = vsub.f32 %v2044_v20, %v2050_v43  ;;  %v4427_v43 = vld [vmem:[%s5615_s9] sm:$0xff]  }
 0x99b   : > { %v2069_v46 = vpop.permute.xlu1 %2068 }
 0x99c   : > { %4483 = vpow2.f32 %v2053_v44  ;;  %v2055_v47 = vmul.f32 1.442695, %v2052_v45  ;;  %4116 = vmatpush3.bf16.msra.mxu0 %v2069_v46  ;;  %v5190_v44 = vsel %vm1309_vm1, %v4427_v43, 0  ;;  %v4429_v45 = vld [vmem:[%s5616_s26 + $0x10] sm:$0xff]   ;;  %v4430_v46 = vld [vmem:[%s5616_s26 + $0x18] sm:$0xff]  }
 0x99d   : > { %4127 = vmatprep.subr.bf16.mxu0 %v4687_v60 }
 0x99e   : > { %4485 = vpow2.f32 %v2055_v47  ;;  %v5207_v47 = vsel %vm1309_vm1, %v4429_v45, 0 }
 0x9a6   : > { %v4484_v48 = vpop.eup %4483 }
 0x9a7   : > { %v2057_v49 = vsel %vm1473_vm3, %v4484_v48, 0.0 }
 0x9a8   : > { %v4486_v50 = vpop.eup %4485  ;;  %2058 = vadd.xlane.f32.xlu0 %v2057_v49  ;;  %v5214_v49 = vsel %vm1309_vm1, %v4430_v46, 0 }
 0x9a9   : > { %v2060_v15 = vsel %vm1473_vm3, %v4486_v50, 0.0 }
 0x9ac   : > { %2061 = vadd.xlane.f32.xlu0 %v2060_v15 }
 0x9d6   : > { %v1983_v52 = vpop.f32.mrb[20].mxu0 }
 0x9d7   : > { %v1990_v53 = vadd.f32 %v1983_v52, %v5131_v12  ;;  %v4107_v54 = vpop.f32.mrb[21].mxu0 }
 0x9d8   : > { %v1986_v55 = vpop.f32.mrb[22].mxu0 }
 0x9d9   : > { %v1991_v56 = vadd.f32 %v1986_v55, %v5133_v17  ;;  %v4108_v57 = vpop.f32.mrb[23].mxu0 }
 0xa35   : > { %v2059_v58 = vpop.xlane.xlu0 %2058 }
 0xa36   : > { %4487 = vrcp.f32 %v2059_v58 }
 0xa39   : > { %v2062_v59 = vpop.xlane.xlu0 %2061 }
 0xa3a   : > { %4489 = vrcp.f32 %v2062_v59 }
 0xa40   : > { %v4488_v61 = vpop.eup %4487 }
 0xa41   : > { %v2065_v2 = vmul.f32 %v4488_v61, %v4484_v48  ;;  %v4431_v48 = vld [vmem:[%s5616_s26 + $0x20] sm:$0xff]   ;;  %v4432_v61 = vld [vmem:[%s5616_s26 + $0x28] sm:$0xff]  }
 0xa44   : > { %v4490_v0 = vpop.eup %4489 }
 0xa45   : > { %v2066_v3 = vmul.f32 %v4490_v0, %v4486_v50  ;;  %v5219_v50 = vsel %vm1309_vm1, %v4431_v48, 0  ;;  %v5229_v0 = vsel %vm1309_vm1, %v4432_v61, 0 }
 0xa47   : > { %v2067_v14 = vpack.c.bf16 %v2066_v3, %v2065_v2  ;;  %v4433_v2 = vld [vmem:[%s5616_s26 + $0x30] sm:$0xff]  }
 0xa48   : > { %v5236_v3 = vsel %vm1309_vm1, %v4433_v2, 0 }
 0xa49   : > { %4118 = vmatmul.mubr.msk.bf16.vlgmr.msra.gmra.mrb[24].mxu0 %vm1473_vm3, %v2067_v14  ;;  %v4434_v14 = vld [vmem:[%s5616_s26 + $0x38] sm:$0xff]  }
 0xa4a   : > { %4143 = vmatprep.mubr.msk.bf16.mxu0 %vm4688_vm2, %v4687_v60  ;;  %4128 = vmatpush3.bf16.xpose.msra.mxu0 %v5190_v44 }
 0xa4b   : > { %4129 = vmatprep.subr.bf16.mxu0 %v4687_v60 }
 0xb1c   : > { %v2108_v12 = vpop.f32.mrb[24].mxu0 }
 0xb1d   : > { %v4119_v6 = vpop.f32.mrb[25].mxu0 }
 0xb1e   : > { %v2111_v17 = vpop.f32.mrb[26].mxu0 }
 0xb1f   : > { %v2115_v7 = vpack.c.bf16 %v2111_v17, %v2108_v12  ;;  %v4120_v8 = vpop.f32.mrb[27].mxu0  ;;  %v5243_v12 = vsel %vm1309_vm1, %v4434_v14, 0 }
 0xb21   : > { %4124 = vmatmul.mubr.msk.bf16.vlgmr.msra.gmra.mrb[20].mxu1 %vm1473_vm3, %v2115_v7 }
 0xb22   : > { %4163 = vmatprep.mubr.msk.bf16.mxu1 %vm4688_vm2, %v4687_v60  ;;  %4148 = vmatpush3.bf16.msra.mxu1 %v4427_v43 }
 0xb23   : > { %4149 = vmatprep.subr.bf16.mxu1 %v4687_v60 }
 0xbf4   : > { %v2159_v9 = vpop.f32.mrb[20].mxu1 }
 0xbf5   : > { %v2166_v11 = vadd.f32 %v2159_v9, %v1990_v53  ;;  %v4125_v13 = vpop.f32.mrb[21].mxu1 }
 0xbf6   : > { %v2162_v16 = vpop.f32.mrb[22].mxu1 }
 0xbf7   : > { %v2175_v18 = vadd.f32 %v3845_v10, %v2166_v11  ;;  %v2167_v19 = vadd.f32 %v2162_v16, %v1991_v56  ;;  %v4126_v20 = vpop.f32.mrb[23].mxu1  ;;  %v3846_v16 = vld [vmem:[%s1228_s16] ss:$0 sm:$0xff] }
 0xbf9   : > { %v5179_v21 = vadd.f32 %v2175_v18, %v4984_v4  ;;  %v2176_v22 = vadd.f32 %v3845_v10, %v2167_v19  ;;  %v4428_v4 = vld [vmem:[%s5616_s26 + $0x8] sm:$0xff]  }
 0xbfa   : > { %4150 = vmatpush3.bf16.msra.mxu1 %v4428_v4 }
 0xbfb   : > { %v5182_v23 = vadd.f32 %v2176_v22, %v4986_v5  ;;  %v2181_v40 = vsel %vm1309_vm1, %v5179_v21, 0.0  ;;  %4151 = vmatprep.subr.bf16.mxu1 %v4687_v60  ;;  %v5198_v5 = vsel %vm1309_vm1, %v4428_v4, 0  ;;  %v3847_v22 = vld [vmem:[%s1231_s28] ss:$0 sm:$0xff] }
 0xbfc   : > { %2182 = vadd.xlane.f32.xlu0 %v2181_v40  ;;  %4130 = vmatpush3.bf16.xpose.msra.mxu0 %v5198_v5 }
 0xbfd   : > { %v2184_v41 = vsel %vm1309_vm1, %v5182_v23, 0.0  ;;  %4131 = vmatprep.subr.bf16.mxu0 %v4687_v60 }
 0xbfe   : > { %4152 = vmatpush3.bf16.msra.mxu1 %v4429_v45  ;;  %v2342_v45 = vld [vmem:[#allocation2] sm:$0xff] }
 0xbff   : > { %4153 = vmatprep.subr.bf16.mxu1 %v4687_v60 }
 0xc00   : > { %2185 = vadd.xlane.f32.xlu0 %v2184_v41 }
 0xc02   : > { %4154 = vmatpush3.bf16.msra.mxu1 %v4430_v46  ;;  %v2343_v46 = vld [vmem:[#allocation2 + $0x8] sm:$0xff] }
 0xc03   : > { %4155 = vmatprep.subr.bf16.mxu1 %v4687_v60 }
 0xc04   : > { %4132 = vmatpush3.bf16.xpose.msra.mxu0 %v5207_v47 }
 0xc05   : > { %4133 = vmatprep.subr.bf16.mxu0 %v4687_v60 }
 0xc06   : > { %4156 = vmatpush3.bf16.msra.mxu1 %v4431_v48  ;;  %v2344_v48 = vmax.f32 %v2342_v45, 1e-30 }
 0xc07   : > { %4157 = vmatprep.subr.bf16.mxu1 %v4687_v60 }
 0xc0a   : > { %4158 = vmatpush3.bf16.msra.mxu1 %v4432_v61 }
 0xc0b   : > { %4159 = vmatprep.subr.bf16.mxu1 %v4687_v60 }
 0xc0c   : > { %4134 = vmatpush3.bf16.xpose.msra.mxu0 %v5214_v49 }
 0xc0d   : > { %4135 = vmatprep.subr.bf16.mxu0 %v4687_v60 }
 0xc0e   : > { %4160 = vmatpush3.bf16.msra.mxu1 %v4433_v2 }
 0xc0f   : > { %4161 = vmatprep.subr.bf16.mxu1 %v4687_v60 }
 0xc12   : > { %4162 = vmatpush3.bf16.msra.mxu1 %v4434_v14 }
 0xc14   : > { %4136 = vmatpush3.bf16.xpose.msra.mxu0 %v5219_v50 }
 0xc15   : > { %4137 = vmatprep.subr.bf16.mxu0 %v4687_v60 }
 0xc1c   : > { %4138 = vmatpush3.bf16.xpose.msra.mxu0 %v5229_v0 }
 0xc1d   : > { %4139 = vmatprep.subr.bf16.mxu0 %v4687_v60 }
 0xc24   : > { %4140 = vmatpush3.bf16.xpose.msra.mxu0 %v5236_v3 }
 0xc25   : > { %4141 = vmatprep.subr.bf16.mxu0 %v4687_v60 }
 0xc2c   : > { %4142 = vmatpush3.bf16.xpose.msra.mxu0 %v5243_v12 }
 0xc89   : > { %v2183_v15 = vpop.xlane.xlu0 %2182 }
 0xc8a   : > { %v2187_v51 = vmul.f32 0.015625, %v2183_v15  ;;  %v2345_v15 = vmax.f32 %v2343_v46, 1e-30 }
 0xc8c   : > { %v2189_v52 = vsub.f32 %v5179_v21, %v2187_v51 }
 0xc8d   : > { %v2186_v53 = vpop.xlane.xlu0 %2185 }
 0xc8e   : > { %v2188_v54 = vmul.f32 0.015625, %v2186_v53  ;;  %v2191_v55 = vmul.f32 %v2189_v52, %v2189_v52  ;;  %v3857_v53 = vld [vmem:[%s5618_s5] ss:$0 sm:$0xff] }
 0xc90   : > { %v2190_v56 = vsub.f32 %v5182_v23, %v2188_v54  ;;  %v2193_v57 = vsel %vm1309_vm1, %v2191_v55, 0.0 }
 0xc91   : > { %2194 = vadd.xlane.f32.xlu0 %v2193_v57 }
 0xc92   : > { %v2192_v58 = vmul.f32 %v2190_v56, %v2190_v56 }
 0xc94   : > { %v2196_v59 = vsel %vm1309_vm1, %v2192_v58, 0.0 }
 0xc95   : > { %2197 = vadd.xlane.f32.xlu0 %v2196_v59 }
 0xd1e   : > { %v2195_v6 = vpop.xlane.xlu0 %2194 }
 0xd1f   : > { %v2199_v17 = vmul.f32 0.015625, %v2195_v6 }
 0xd21   : > { %v2201_v7 = vadd.f32 1e-05, %v2199_v17 }
 0xd22   : > { %v2198_v8 = vpop.xlane.xlu0 %2197 }
 0xd23   : > { %4491 = vrsqrt.f32 %v2201_v7  ;;  %v2200_v9 = vmul.f32 0.015625, %v2198_v8 }
 0xd25   : > { %v2202_v10 = vadd.f32 1e-05, %v2200_v9 }
 0xd27   : > { %4493 = vrsqrt.f32 %v2202_v10 }
 0xd28   : > { %4495 = vlog2.f32 %v2344_v48 }
 0xd29   : > { %4497 = vlog2.f32 %v2345_v15 }
 0xd2d   : > { %v4492_v11 = vpop.eup %4491 }
 0xd2e   : > { %v2205_v13 = vmul.f32 %v4492_v11, %v2189_v52 }
 0xd30   : > { %v2213_v19 = vmul.f32 %v3846_v16, %v2205_v13 }
 0xd31   : > { %v4494_v18 = vpop.eup %4493 }
 0xd32   : > { %v2206_v20 = vmul.f32 %v4494_v18, %v2190_v56  ;;  %v2221_v41 = vadd.f32 %v3847_v22, %v2213_v19  ;;  %v4496_v51 = vpop.eup %4495 }
 0xd33   : > { %v4498_v52 = vpop.eup %4497  ;;  %v2347_v57 = vmul.f32 0.6931472, %v4496_v51 }
 0xd34   : > { %v2214_v40 = vmul.f32 %v3846_v16, %v2206_v20  ;;  %v2349_v14 = vmul.f32 0.6931472, %v4498_v52 }
 0xd36   : > { %v2222_v43 = vadd.f32 %v3847_v22, %v2214_v40 }
 0xd38   : > { %v2223_v4 = vpack.c.bf16 %v2222_v43, %v2221_v41 }
 0xd3a   : > { %4144 = vmatmul.mubr.msk.bf16.vlgmr.msra.gmra.mrb[28].mxu0 %vm1309_vm1, %v2223_v4 }
 0xe0d   : > { %v2325_v54 = vpop.f32.mrb[28].mxu0 }
 0xe0e   : > { %v2332_v55 = vmul.f32 0.125, %v2325_v54  ;;  %v4145_v56 = vpop.f32.mrb[29].mxu0 }
 0xe0f   : > { %v2328_v58 = vpop.f32.mrb[30].mxu0 }
 0xe10   : > { %v2340_v59 = vadd.f32 %v3857_v53, %v2332_v55  ;;  %v2333_v61 = vmul.f32 0.125, %v2328_v58  ;;  %v4146_v2 = vpop.f32.mrb[31].mxu0 }
 0xe12   : > { %v2341_v6 = vadd.f32 %v3857_v53, %v2333_v61  ;;  %v2350_v17 = vadd.f32 %v2347_v57, %v2340_v59 }
 0xe14   : > { %2352 = vmax.xlane.f32.xlu1 %v2350_v17  ;;  %v2351_v7 = vadd.f32 %v2349_v14, %v2341_v6  ;;  %v4437_v6 = vld [vmem:[%s4965_s1 + $0x4] ss:$8 sps:$4 sm:$0xff]  }
 0xe15   : > { %2547 = vmatprep.subr.bf16.mxu1 %v4437_v6 }
 0xe16   : > { %2354 = vmax.xlane.f32.xlu0 %v2351_v7 }
 0xea1   : > { %v2353_v8 = vpop.xlane.xlu1 %2352 }
 0xea2   : > { %v2356_v9 = vsub.f32 %v2350_v17, %v2353_v8  ;;  %v4435_v17 = vld [vmem:[%s4965_s1] ss:$8 sps:$4 sm:$0xff]   ;;  %v4438_v8 = vld [vmem:[%s4965_s1 + $0x10] ss:$8 sps:$4 sm:$0xff]  }
 0xea3   : > { %v2355_v10 = vpop.xlane.xlu0 %2354 }
 0xea4   : > { %v2358_v11 = vmul.f32 1.442695, %v2356_v9  ;;  %v2357_v13 = vsub.f32 %v2351_v7, %v2355_v10  ;;  %v4440_v7 = vld [vmem:[%s4965_s1 + $0x14] ss:$8 sps:$4 sm:$0xff]   ;;  %v4443_v9 = vld [vmem:[%s4965_s1 + $0x24] ss:$8 sps:$4 sm:$0xff]  }
 0xea5   : > { %v4441_v10 = vld [vmem:[%s4965_s1 + $0x20] ss:$8 sps:$4 sm:$0xff]  }
 0xea6   : > { %4499 = vpow2.f32 %v2358_v11  ;;  %v2360_v16 = vmul.f32 1.442695, %v2357_v13  ;;  %v4444_v11 = vld [vmem:[%s4965_s1 + $0x30] ss:$8 sps:$4 sm:$0xff]   ;;  %v4446_v13 = vld [vmem:[%s4965_s1 + $0x34] ss:$8 sps:$4 sm:$0xff]  }
 0xea8   : > { %4501 = vpow2.f32 %v2360_v16 }
 0xeb0   : > { %v4500_v18 = vpop.eup %4499 }
 0xeb1   : > { %2362 = vadd.xlane.f32.xlu0 %v4500_v18 }
 0xeb2   : > { %v4502_v19 = vpop.eup %4501 }
 0xeb5   : > { %2364 = vadd.xlane.f32.xlu0 %v4502_v19 }
 0xf3e   : > { %v2363_v20 = vpop.xlane.xlu0 %2362 }
 0xf3f   : > { %4503 = vrcp.f32 %v2363_v20 }
 0xf42   : > { %v2365_v22 = vpop.xlane.xlu0 %2364 }
 0xf43   : > { %4505 = vrcp.f32 %v2365_v22 }
 0xf49   : > { %v4504_v40 = vpop.eup %4503 }
 0xf4a   : > { %v2368_v43 = vmul.f32 %v4504_v40, %v4500_v18 }
 0xf4d   : > { %v4506_v41 = vpop.eup %4505 }
 0xf4e   : > { %v2369_v4 = vmul.f32 %v4506_v41, %v4502_v19 }
 0xf50   : > { %v2370_v45 = vpack.c.bf16 %v2369_v4, %v2368_v43  ;;  %v3858_v4 = vld [vmem:[%s1234_s22] ss:$0 sm:$0xff] }
 0xf52   : > { %4164 = vmatmul.mubr.bf16.vlgmr.msra.gmra.mrb[24].mxu1 %v2370_v45 }
 0xf53   : > { %2579 = vmatprep.mubr.bf16.mxu1 %v4686_v42  ;;  %2548 = vmatpush1.bf16.msra.mxu1 %v4435_v17 }
 0xf54   : > { %2549 = vmatprep.subr.bf16.mxu1 %v4440_v7 }
 0xf57   : > { %2550 = vmatpush1.bf16.msra.mxu1 %v4438_v8 }
 0xf58   : > { %2551 = vmatprep.subr.bf16.mxu1 %v4443_v9 }
 0xf5b   : > { %2552 = vmatpush1.bf16.msra.mxu1 %v4441_v10 }
 0xf5c   : > { %2553 = vmatprep.subr.bf16.mxu1 %v4446_v13 }
 0xf5f   : > { %2554 = vmatpush1.bf16.msra.mxu1 %v4444_v11 }
 0xf60   : > { %4167 = vmatprep.subr.bf16.mxu1 %v4687_v60 }
0x1025   : > { %v2413_v46 = vpop.f32.mrb[24].mxu1 }
0x1026   : > { %v5256_v48 = vadd.f32 %v2413_v46, %v5179_v21  ;;  %v4165_v15 = vpop.f32.mrb[25].mxu1 }
0x1027   : > { %v2416_v51 = vpop.f32.mrb[26].mxu1 }
0x1028   : > { %v5259_v52 = vadd.f32 %v2416_v51, %v5182_v23  ;;  %v4166_v53 = vpop.f32.mrb[27].mxu1  ;;  %v2424_v54 = vsel %vm1309_vm1, %v5256_v48, 0.0  ;;  %v3859_v51 = vld [vmem:[%s1237_s13] ss:$0 sm:$0xff] }
0x1029   : > { %2425 = vadd.xlane.f32.xlu0 %v2424_v54 }
0x102a   : > { %v2427_v55 = vsel %vm1309_vm1, %v5259_v52, 0.0 }
0x102d   : > { %2428 = vadd.xlane.f32.xlu0 %v2427_v55 }
0x10b6   : > { %v2426_v42 = vpop.xlane.xlu0 %2425 }
0x10b7   : > { %v2430_v21 = vmul.f32 0.015625, %v2426_v42 }
0x10b9   : > { %v2432_v56 = vsub.f32 %v5256_v48, %v2430_v21  ;;  %v4447_v21 = vld [vmem:[%s4971_s15] sm:$0xff]  }
0x10ba   : > { %v2429_v57 = vpop.xlane.xlu0 %2428 }
0x10bb   : > { %v2431_v23 = vmul.f32 0.015625, %v2429_v57  ;;  %v2434_v58 = vmul.f32 %v2432_v56, %v2432_v56  ;;  %v4449_v57 = vld [vmem:[%s4971_s15 + $0x10] sm:$0xff]  }
0x10bd   : > { %v2433_v59 = vsub.f32 %v5259_v52, %v2431_v23  ;;  %v2436_v61 = vsel %vm1309_vm1, %v2434_v58, 0.0  ;;  %v4450_v23 = vld [vmem:[%s4971_s15 + $0x18] sm:$0xff]   ;;  %v4451_v58 = vld [vmem:[%s4971_s15 + $0x20] sm:$0xff]  }
0x10be   : > { %2437 = vadd.xlane.f32.xlu0 %v2436_v61  ;;  %v4453_v61 = vld [vmem:[%s4971_s15 + $0x30] sm:$0xff]  }
0x10bf   : > { %v2435_v2 = vmul.f32 %v2433_v59, %v2433_v59 }
0x10c1   : > { %v2439_v14 = vsel %vm1309_vm1, %v2435_v2, 0.0  ;;  %v4454_v2 = vld [vmem:[%s4971_s15 + $0x38] sm:$0xff]  }
0x10c2   : > { %2440 = vadd.xlane.f32.xlu0 %v2439_v14  ;;  %v2474_v14 = vld [vmem:[%s4968_s21] sm:$0x3]  ;;  %s5620_s21 = sld [smem:[#allocation40_spill]] }
0x10c3   : > { %v2497_v6 = vrot.slane %v2474_v14, %v1366_v63  ;;  %v2501_v63 = vrot.slane %v2474_v14, %v1370_v1 }
0x10c8   : > { %p3880_p12 = scmp.ge.s32.totalorder %s5620_s21, 1 }
0x10c9   : > { %vm4697_vm4 = vmmov (!%p3880_p12), 0  }
0x114b   : > { %v2438_v16 = vpop.xlane.xlu0 %2437 }
0x114c   : > { %v2442_v18 = vmul.f32 0.015625, %v2438_v16 }
0x114e   : > { %v2444_v19 = vadd.f32 1e-05, %v2442_v18 }
0x114f   : > { %v2441_v20 = vpop.xlane.xlu0 %2440 }
0x1150   : > { %4507 = vrsqrt.f32 %v2444_v19  ;;  %v2443_v22 = vmul.f32 0.015625, %v2441_v20 }
0x1152   : > { %v2445_v40 = vadd.f32 1e-05, %v2443_v22 }
0x1154   : > { %4509 = vrsqrt.f32 %v2445_v40 }
0x115a   : > { %v4508_v41 = vpop.eup %4507 }
0x115b   : > { %v2448_v43 = vmul.f32 %v4508_v41, %v2432_v56  ;;  %v4448_v56 = vld [vmem:[%s4971_s15 + $0x8] sm:$0xff]  }
0x115d   : > { %v2456_v46 = vmul.f32 %v3858_v4, %v2448_v43 }
0x115e   : > { %v4510_v45 = vpop.eup %4509 }
0x115f   : > { %v2449_v15 = vmul.f32 %v4510_v45, %v2433_v59  ;;  %v2464_v54 = vadd.f32 %v3859_v51, %v2456_v46  ;;  %v4452_v59 = vld [vmem:[%s4971_s15 + $0x28] sm:$0xff]  }
0x1161   : > { %v2457_v53 = vmul.f32 %v3858_v4, %v2449_v15 }
0x1163   : > { %v2465_v55 = vadd.f32 %v3859_v51, %v2457_v53 }
0x1165   : > { %v2492_v42 = vpack.c.bf16 %v2465_v55, %v2464_v54  ;;  %v3871_v54 = vld [vmem:[%s1254_s25] ss:$0 sm:$0xff] }
0x1167   : > { %3868 = vmatmul.mubr.msk.bf16.vlgmr.msra.gmra.mrb[28].mxu1 %vm1309_vm1, %v2492_v42 }
0x1168   : > { %4183 = vmatprep.mubr.msk.bf16.mxu1 %vm4688_vm2, %v4687_v60  ;;  %4168 = vmatpush3.bf16.msra.mxu1 %v4447_v21 }
0x1169   : > { %4169 = vmatprep.subr.bf16.mxu1 %v4687_v60 }
0x116c   : > { %4170 = vmatpush3.bf16.msra.mxu1 %v4448_v56 }
0x116d   : > { %4171 = vmatprep.subr.bf16.mxu1 %v4687_v60 }
0x1170   : > { %4172 = vmatpush3.bf16.msra.mxu1 %v4449_v57 }
0x1171   : > { %4173 = vmatprep.subr.bf16.mxu1 %v4687_v60 }
0x1174   : > { %4174 = vmatpush3.bf16.msra.mxu1 %v4450_v23 }
0x1175   : > { %4175 = vmatprep.subr.bf16.mxu1 %v4687_v60 }
0x1178   : > { %4176 = vmatpush3.bf16.msra.mxu1 %v4451_v58  ;;  %v4696_v58 = vmov (!%p3880_p12), 0.0  }
0x1179   : > { %4177 = vmatprep.subr.bf16.mxu1 %v4687_v60  ;;  %4187 = vmatprep.subr.bf16.mxu0 (!%p3880_p12), %v4696_v58 }
0x117a   : > { %4203 = vmatprep.mubr.msk.bf16.mxu0 (!%p3880_p12), %vm4697_vm4, %v4696_v58  ;;  %4188 = vmatpush3.bf16.xpose.msra.mxu0 (!%p3880_p12), %v5190_v44 }
0x117b   : > { %4189 = vmatprep.subr.bf16.mxu0 (!%p3880_p12), %v4696_v58 }
0x117c   : > { %4178 = vmatpush3.bf16.msra.mxu1 %v4452_v59 }
0x117d   : > { %4179 = vmatprep.subr.bf16.mxu1 %v4687_v60 }
0x1180   : > { %4180 = vmatpush3.bf16.msra.mxu1 %v4453_v61 }
0x1181   : > { %4181 = vmatprep.subr.bf16.mxu1 %v4687_v60 }
0x1182   : > { %4190 = vmatpush3.bf16.xpose.msra.mxu0 (!%p3880_p12), %v5198_v5 }
0x1183   : > { %4191 = vmatprep.subr.bf16.mxu0 (!%p3880_p12), %v4696_v58 }
0x1184   : > { %4182 = vmatpush3.bf16.msra.mxu1 %v4454_v2 }
0x118a   : > { %4192 = vmatpush3.bf16.xpose.msra.mxu0 (!%p3880_p12), %v5207_v47 }
0x118b   : > { %4193 = vmatprep.subr.bf16.mxu0 (!%p3880_p12), %v4696_v58 }
0x1192   : > { %4194 = vmatpush3.bf16.xpose.msra.mxu0 (!%p3880_p12), %v5214_v49 }
0x1193   : > { %4195 = vmatprep.subr.bf16.mxu0 (!%p3880_p12), %v4696_v58 }
0x119a   : > { %4196 = vmatpush3.bf16.xpose.msra.mxu0 (!%p3880_p12), %v5219_v50 }
0x119b   : > { %4197 = vmatprep.subr.bf16.mxu0 (!%p3880_p12), %v4696_v58 }
0x11a2   : > { %4198 = vmatpush3.bf16.xpose.msra.mxu0 (!%p3880_p12), %v5229_v0 }
0x11a3   : > { %4199 = vmatprep.subr.bf16.mxu0 (!%p3880_p12), %v4696_v58 }
0x11aa   : > { %4200 = vmatpush3.bf16.xpose.msra.mxu0 (!%p3880_p12), %v5236_v3 }
0x11ab   : > { %4201 = vmatprep.subr.bf16.mxu0 (!%p3880_p12), %v4696_v58 }
0x11b2   : > { %4202 = vmatpush3.bf16.xpose.msra.mxu0 (!%p3880_p12), %v5243_v12 }
0x123a   : > { %v2581_v17 = vpop.f32.mrb[28].mxu1 }
0x123b   : > { %v2582_v7 = vadd.f32 %v2581_v17, %v2497_v6  ;;  %v2583_v8 = vpop.f32.mrb[29].mxu1 }
0x123c   : > { %v2585_v9 = vpop.f32.mrb[30].mxu1  ;;  %v2584_v43 = vadd.f32 %v2583_v8, %v2501_v63 }
0x123d   : > { %v3869_v10 = vmul.f32 -1.442695, %v2582_v7  ;;  %v2586_v11 = vadd.f32 %v2585_v9, %v2497_v6  ;;  %v2587_v13 = vpop.f32.mrb[31].mxu1 }
0x123e   : > { %v2588_v15 = vadd.f32 %v2587_v13, %v2501_v63 }
0x123f   : > { %4511 = vpow2.f32 %v3869_v10  ;;  %v3870_v16 = vmul.f32 -1.442695, %v2586_v11 }
0x1241   : > { %4513 = vpow2.f32 %v3870_v16 }
0x1249   : > { %v4512_v18 = vpop.eup %4511 }
0x124a   : > { %v2596_v19 = vadd.f32 1.0, %v4512_v18 }
0x124b   : > { %v4514_v20 = vpop.eup %4513 }
0x124c   : > { %4515 = vrcp.f32 %v2596_v19  ;;  %v2597_v22 = vadd.f32 1.0, %v4514_v20 }
0x124e   : > { %4517 = vrcp.f32 %v2597_v22 }
0x1256   : > { %v4516_v40 = vpop.eup %4515 }
0x1257   : > { %v2602_v41 = vmul.f32 %v4516_v40, %v2582_v7 }
0x1258   : > { %v4518_v4 = vpop.eup %4517 }
0x1259   : > { %v2604_v45 = vmul.f32 %v2602_v41, %v2584_v43  ;;  %v2603_v46 = vmul.f32 %v4518_v4, %v2586_v11 }
0x125b   : > { %v2605_v51 = vmul.f32 %v2603_v46, %v2588_v15 }
0x125d   : > { %v2606_v53 = vpack.c.bf16 %v2605_v51, %v2604_v45 }
0x125f   : > { %4184 = vmatmul.mubr.bf16.vlgmr.msra.gmra.mrb[32].mxu1 %v2606_v53 }
0x1332   : > { %v2695_v55 = vpop.f32.mrb[32].mxu1 }
0x1333   : > { %v2696_v42 = vadd.f32 %v3871_v54, %v2695_v55  ;;  %v4185_v21 = vpop.f32.mrb[33].mxu1  ;;  %2709 = sbr.rel (%p3880_p12) target bundleno = 5164 (0x142c), region = 156 }
0x1334   : > { %v2698_v56 = vpop.f32.mrb[34].mxu1 }
0x1335   : > { %v5311_v57 = vadd.f32 %v2696_v42, %v5256_v48  ;;  %v2699_v62 = vadd.f32 %v3871_v54, %v2698_v56  ;;  %v4186_v1 = vpop.f32.mrb[35].mxu1 }
0x1337   : > { %2704 = vst.msk [vmem:[#allocation4] sm:$0xff] %vm1309_vm1, %v5311_v57  ;;  %v2703_v23 = vadd.f32 %v2699_v62, %v5259_v52 }
0x1339   : > { %2705 = vst.msk [vmem:[#allocation4 + $0x8] sm:$0xff] %vm1309_vm1, %v2703_v23  ;;  %v2710_v44 = vpack.c.bf16 (!%p3880_p12), %v2703_v23, %v5311_v57 }
0x133b   : > { %4204 = vmatmul.mubr.msk.bf16.vlgmr.msra.gmra.mrb[0].mxu0 %vm1309_vm1, %v2710_v44 }
0x140e   : > { %v2748_v5 = vpop.f32.mrb[0].mxu0 }
0x140f   : > { %v3882_v47 = vmul.f32 -1.442695, %v2748_v5  ;;  %v4205_v48 = vpop.f32.mrb[1].mxu0 }
0x1410   : > { %v2751_v49 = vpop.f32.mrb[2].mxu0 }
0x1411   : > { %4519 = vpow2.f32 %v3882_v47  ;;  %v3883_v52 = vmul.f32 -1.442695, %v2751_v49  ;;  %v4206_v50 = vpop.f32.mrb[3].mxu0 }
0x1413   : > { %4521 = vpow2.f32 %v3883_v52 }
0x141b   : > { %v4520_v59 = vpop.eup %4519 }
0x141c   : > { %v2761_v0 = vadd.f32 1.0, %v4520_v59 }
0x141d   : > { %v4522_v61 = vpop.eup %4521 }
0x141e   : > { %4523 = vrcp.f32 %v2761_v0  ;;  %v2762_v3 = vadd.f32 1.0, %v4522_v61 }
0x1420   : > { %4525 = vrcp.f32 %v2762_v3 }
0x1428   : > { %v4524_v2 = vpop.eup %4523 }
0x1429   : > { %2767 = vst [vmem:[#allocation2] sm:$0xff] %v4524_v2 }
0x142a   : > { %v4526_v12 = vpop.eup %4525 }
0x142b   : > { %2768 = vst [vmem:[#allocation2 + $0x8] sm:$0xff] %v4526_v12 }
0x142c PF: > { %s5621_s25 = sld [smem:[#allocation21_spill]]  ;;  %s5622_s28 = sld [smem:[#allocation23_spill]]  ;;  %4207 = vmatprep.subr.bf16.mxu0 %v4687_v60  ;;  %4215 = vmatprep.mubr.msk.bf16.mxu0 %vm4688_vm2, %v4687_v60  ;;  %v5343_v9 = vpack.c.bf16 %v2703_v23, %v5311_v57  ;;  %vm3131_vm5 = vcmask 261120   ;;  %vm3488_vm6 = vcmask 7168   ;;  %vm3491_vm7 = vcmask 39936  }
0x142d   : > { %4243 = vmatprep.subr.bf16.mxu1 %v4687_v60  ;;  %4251 = vmatprep.mubr.msk.bf16.mxu1 %vm4688_vm2, %v4687_v60  ;;  %s5623_s16 = sld [smem:[#allocation22_spill]]  ;;  %s5624_s22 = sld [smem:[#allocation24_spill]]  ;;  %vm3494_vm8 = vcmask 64512  }
0x142e   : > { %s5625_s15 = sld [smem:[#allocation26_spill]]  ;;  %s5627_s1 = sld [smem:[#allocation25_spill]] }
0x142f   : > { %s5628_s2 = sld [smem:[#allocation30_spill]]  ;;  %s5629_s11 = sld [smem:[#allocation28_spill]] }
0x1430   : > { %s5630_s7 = sld [smem:[#allocation27_spill]]  ;;  %s5631_s23 = sld [smem:[#allocation32_spill]] }
0x1431   : > { %s5632_s9 = sld [smem:[#allocation31_spill]]  ;;  %s5633_s18 = sld [smem:[#allocation29_spill]] }
0x1432   : > { %v4527_v14 = vld [vmem:[%s5621_s25] sm:$0xff]   ;;  %v4528_v6 = vld [vmem:[%s5621_s25 + $0x8] sm:$0xff]   ;;  %v4529_v17 = vld [vmem:[%s5621_s25 + $0x10] sm:$0xff]   ;;  %s5634_s5 = sld [smem:[#allocation33_spill]]  ;;  %s4698_s13 = smov 1  }
0x1433   : > { %4208 = vmatpush3.bf16.msra.mxu0 %v4527_v14  ;;  %v4530_v7 = vld [vmem:[%s5621_s25 + $0x18] sm:$0xff]   ;;  %v4531_v8 = vld [vmem:[%s5622_s28] sm:$0xff]   ;;  %v4532_v10 = vld [vmem:[%s5622_s28 + $0x8] sm:$0xff]   ;;  %v3927_v14 = vcombine.low %v5003_v24, %v5006_v25  ;;  %v3930_v24 = vcombine.low %v5021_v30, %v5024_v31  ;;  %s5635_s21 = sld [smem:[#allocation40_spill]] }
0x1434   : > { %4209 = vmatprep.subr.bf16.mxu0 %v4687_v60  ;;  %v4533_v11 = vld [vmem:[%s5622_s28 + $0x10] sm:$0xff]   ;;  %v4534_v13 = vld [vmem:[%s5622_s28 + $0x18] sm:$0xff]   ;;  %v3884_v16 = vld [vmem:[%s5623_s16] ss:$0 sm:$0xff]  ;;  %s5626_s4 = smov %s5625_s15  ;;  %s4699_s16 = smov [#allocation4]  }
0x1435   : > { %v4535_v4 = vld [vmem:[%s5624_s22] sm:$0xff]   ;;  %v4536_v46 = vld [vmem:[%s5624_s22 + $0x8] sm:$0xff]   ;;  %v4537_v15 = vld [vmem:[%s5624_s22 + $0x10] sm:$0xff]   ;;  %v3425_v25 = vsel %vm1309_vm1, %v3930_v24, 0 }
0x1436   : > { %v4538_v51 = vld [vmem:[%s5624_s22 + $0x18] sm:$0xff]   ;;  %v4539_v53 = vld [vmem:[%s5625_s15] sm:$0xff]   ;;  %v4540_v54 = vld [vmem:[%s5626_s4 + $0x8] sm:$0xff]   ;;  %s3515_s15 = sshll.u32 %s4699_s16, 4  ;;  %s3516_s15 = int_to_ptr.vmem [resolvable:$true] %s3515_s15 }
0x1437   : > { %4210 = vmatpush3.bf16.msra.mxu0 %v4528_v6  ;;  %4244 = vmatpush3.bf16.msra.mxu1 %v4539_v53  ;;  %v4541_v55 = vld [vmem:[%s5626_s4 + $0x10] sm:$0xff]   ;;  %v4542_v42 = vld [vmem:[%s5626_s4 + $0x18] sm:$0xff]   ;;  %v3896_v1 = vld [vmem:[%s5627_s1] ss:$0 sm:$0xff]  ;;  %v3416_v6 = vsel %vm1309_vm1, %v3927_v14, 0  ;;  %s4557_s1 = scalar_lea.vmem %s3516_s15, 256  ;;  %p4564_p3 = scmp.lt.s32.totalorder %s3516_s15, %s3516_s15 }
0x1438   : > { %4211 = vmatprep.subr.bf16.mxu0 %v4687_v60  ;;  %4245 = vmatprep.subr.bf16.mxu1 %v4687_v60  ;;  %v4543_v50 = vld [vmem:[%s5628_s2] sm:$0xff]   ;;  %v4544_v0 = vld [vmem:[%s5628_s2 + $0x8] sm:$0xff]   ;;  %v4545_v61 = vld [vmem:[%s5628_s2 + $0x10] sm:$0xff]   ;;  %p4558_p13 = scmp.ne.s32.totalorder %s3516_s15, %s4557_s1  ;;  %p4565_p4 = scmp.lt.s32.totalorder %s4557_s1, %s4557_s1 }
0x1439   : > { %v4546_v3 = vld [vmem:[%s5628_s2 + $0x18] sm:$0xff]   ;;  %v4547_v2 = vld [vmem:[%s5629_s11] sm:$0xff]   ;;  %v4548_v12 = vld [vmem:[%s5629_s11 + $0x8] sm:$0xff]  }
0x143a   : > { %v4549_v30 = vld [vmem:[%s5631_s23] sm:$0xff]   ;;  %p4559_p0 = pnand %p4558_p13, %p893_p2  ;;  %p4566_p7 = por %p4565_p4, %p4564_p3 }
0x143b   : > { %4212 = vmatpush3.bf16.msra.mxu0 %v4529_v17  ;;  %4246 = vmatpush3.bf16.msra.mxu1 %v4540_v54  ;;  %v3928_v17 = vcombine.low %v5009_v26, %v5012_v27  ;;  %v3902_v26 = vld [vmem:[%s5630_s7] ss:$0 sm:$0xff] }
0x143c   : > { %4213 = vmatprep.subr.bf16.mxu0 %v4687_v60  ;;  %4247 = vmatprep.subr.bf16.mxu1 %v4687_v60  ;;  %v4553_v53 = vld [vmem:[%s5631_s23 + $0x20] sm:$0xff]   ;;  %p4560_p1 = pneg %p4559_p0 }
0x143e   : > { %p4567_p8 = pnand %p4566_p7, %p4560_p1 }
0x143f   : > { %4214 = vmatpush3.bf16.msra.mxu0 %v4530_v7  ;;  %4248 = vmatpush3.bf16.msra.mxu1 %v4541_v55  ;;  %v3419_v7 = vsel %vm1309_vm1, %v3928_v17, 0  ;;  %v4554_v55 = vld [vmem:[%s5631_s23 + $0x28] sm:$0xff]  }
0x1440   : > { %4219 = vmatprep.subr.bf16.mxu0 %v4687_v60  ;;  %4249 = vmatprep.subr.bf16.mxu1 %v4687_v60 }
0x1442   : > { %4216 = vmatmul.mubr.msk.bf16.vlgmr.msra.gmra.mrb[0].mxu0 %vm1309_vm1, %v5343_v9 }
0x1443   : > { %4220 = vmatpush3.bf16.msra.mxu0 %v4531_v8  ;;  %4227 = vmatprep.mubr.msk.bf16.mxu0 %vm4688_vm2, %v4687_v60  ;;  %v3929_v8 = vcombine.low %v5015_v28, %v5018_v29 }
0x1444   : > { %4221 = vmatprep.subr.bf16.mxu0 %v4687_v60  ;;  %4250 = vmatpush3.bf16.msra.mxu1 %v4542_v42  ;;  %v4555_v42 = vld [vmem:[%s5631_s23 + $0x30] sm:$0xff]  }
0x1445   : > { %4263 = vmatprep.subr.bf16.mxu1 %v4687_v60 }
0x1447   : > { %4222 = vmatpush3.bf16.msra.mxu0 %v4532_v10 }
0x1448   : > { %4223 = vmatprep.subr.bf16.mxu0 %v4687_v60 }
0x144b   : > { %4224 = vmatpush3.bf16.msra.mxu0 %v4533_v11 }
0x144c   : > { %4225 = vmatprep.subr.bf16.mxu0 %v4687_v60 }
0x144f   : > { %4226 = vmatpush3.bf16.msra.mxu0 %v4534_v13 }
0x1450   : > { %4231 = vmatprep.subr.bf16.mxu0 %v4687_v60 }
0x1515   : > { %v2846_v18 = vpop.f32.mrb[0].mxu0 }
0x1516   : > { %v2847_v19 = vadd.f32 %v3884_v16, %v2846_v18  ;;  %v4217_v20 = vpop.f32.mrb[1].mxu0 }
0x1517   : > { %v2849_v22 = vpop.f32.mrb[2].mxu0  ;;  %v4551_v20 = vld [vmem:[%s5631_s23 + $0x10] sm:$0xff]  }
0x1518   : > { %v2850_v63 = vadd.f32 %v3884_v16, %v2849_v22  ;;  %v4218_v40 = vpop.f32.mrb[3].mxu0  ;;  %v2853_v41 = vmax.f32 %v2847_v19, 0.0  ;;  %v4550_v19 = vld [vmem:[%s5631_s23 + $0x8] sm:$0xff]   ;;  %v3912_v22 = vld [vmem:[%s5632_s9] ss:$0 sm:$0xff] }
0x151a   : > { %v2854_v43 = vmax.f32 %v2850_v63, 0.0 }
0x151c   : > { %v2855_v45 = vpack.c.bf16 %v2854_v43, %v2853_v41  ;;  %v4552_v43 = vld [vmem:[%s5631_s23 + $0x18] sm:$0xff]  }
0x151e   : > { %4228 = vmatmul.mubr.msk.bf16.vlgmr.msra.gmra.mrb[4].mxu0 %vm1309_vm1, %v2855_v45 }
0x151f   : > { %4232 = vmatpush3.bf16.msra.mxu0 %v4535_v4  ;;  %4239 = vmatprep.mubr.msk.bf16.mxu0 %vm4688_vm2, %v4687_v60 }
0x1520   : > { %4233 = vmatprep.subr.bf16.mxu0 %v4687_v60 }
0x1523   : > { %4234 = vmatpush3.bf16.msra.mxu0 %v4536_v46 }
0x1524   : > { %4235 = vmatprep.subr.bf16.mxu0 %v4687_v60 }
0x1527   : > { %4236 = vmatpush3.bf16.msra.mxu0 %v4537_v15 }
0x1528   : > { %4237 = vmatprep.subr.bf16.mxu0 %v4687_v60 }
0x152b   : > { %4238 = vmatpush3.bf16.msra.mxu0 %v4538_v51 }
0x152c   : > { %4255 = vmatprep.subr.bf16.mxu0 %v4687_v60 }
0x152e   : > { %4240 = vmatmul.mubr.msk.bf16.vlgmr.msra.gmra.mrb[8].mxu0 %vm1309_vm1, %v5343_v9 }
0x152f   : > { %4259 = vmatprep.mubr.msk.bf16.mxu0 %vm4688_vm2, %v4687_v60  ;;  %4256 = vmatpush3.bf16.msra.mxu0 %v4547_v2 }
0x1530   : > { %4257 = vmatprep.subr.bf16.mxu0 %v4687_v60 }
0x1533   : > { %4258 = vmatpush3.bf16.msra.mxu0 %v4548_v12 }
0x1534   : > { %4275 = vmatprep.subr.bf16.mxu0 %v4687_v60 }
0x15f1   : > { %v5381_v21 = vpop.f32.mrb[4].mxu0 }
0x15f2   : > { %v4229_v56 = vpop.f32.mrb[5].mxu0 }
0x15f3   : > { %v5383_v57 = vpop.f32.mrb[6].mxu0  ;;  %v4556_v56 = vld [vmem:[%s5631_s23 + $0x38] sm:$0xff]  }
0x15f4   : > { %v4230_v62 = vpop.f32.mrb[7].mxu0 }
0x15f5   : > { %v3931_v62 = vcombine.low %v5027_v32, %v5030_v33  ;;  %v3934_v32 = vcombine.low %v5045_v38, %v5048_v39 }
0x15f7   : > { %v3437_v33 = vsel %vm1309_vm1, %v3934_v32, 0 }
0x1601   : > { %v3012_v23 = vpop.f32.mrb[8].mxu0 }
0x1602   : > { %v3013_v58 = vadd.f32 %v3896_v1, %v3012_v23  ;;  %v4241_v44 = vpop.f32.mrb[9].mxu0  ;;  %v3932_v23 = vcombine.low %v5033_v34, %v5036_v35  ;;  %v3908_v34 = vld [vmem:[%s5633_s18] ss:$0 sm:$0xff] }
0x1603   : > { %v3015_v5 = vpop.f32.mrb[10].mxu0  ;;  %v3933_v44 = vcombine.low %v5039_v36, %v5042_v37 }
0x1604   : > { %v3016_v47 = vadd.f32 %v3896_v1, %v3015_v5  ;;  %v4242_v48 = vpop.f32.mrb[11].mxu0  ;;  %v3019_v49 = vmax.f32 %v3013_v58, 0.0  ;;  %v3428_v1 = vsel %vm1309_vm1, %v3931_v62, 0  ;;  %v3431_v58 = vsel %vm1309_vm1, %v3932_v23, 0 }
0x1605   : > { %v3434_v5 = vsel %vm1309_vm1, %v3933_v44, 0 }
0x1606   : > { %v3020_v52 = vmax.f32 %v3016_v47, 0.0 }
0x1608   : > { %v3021_v59 = vpack.c.bf16 %v3020_v52, %v3019_v49  ;;  %v3918_v52 = vld [vmem:[%s5634_s5] ss:$0 sm:$0xff] }
0x160a   : > { %4252 = vmatmul.mubr.msk.bf16.vlgmr.msra.gmra.mrb[0].mxu1 %vm1309_vm1, %v3021_v59 }
0x160b   : > { %4264 = vmatpush3.bf16.msra.mxu1 %v4543_v50  ;;  %4271 = vmatprep.mubr.msk.bf16.mxu1 %vm4688_vm2, %v4687_v60 }
0x160c   : > { %4265 = vmatprep.subr.bf16.mxu1 %v4687_v60 }
0x160f   : > { %4266 = vmatpush3.bf16.msra.mxu1 %v4544_v0 }
0x1610   : > { %4267 = vmatprep.subr.bf16.mxu1 %v4687_v60 }
0x1613   : > { %4268 = vmatpush3.bf16.msra.mxu1 %v4545_v61 }
0x1614   : > { %4269 = vmatprep.subr.bf16.mxu1 %v4687_v60 }
0x1617   : > { %4270 = vmatpush3.bf16.msra.mxu1 %v4546_v3  ;;  %v3890_v3 = vld [vmem:[#allocation3] ss:$0 sm:$0xff] }
0x1618   : > { %4295 = vmatprep.subr.bf16.mxu1 %v4687_v60  ;;  %v2933_v2 = vadd.f32 %v3890_v3, %v5381_v21  ;;  %v2936_v17 = vadd.f32 %v3890_v3, %v5383_v57 }
0x161a   : > { %4272 = vmatmul.mubr.msk.bf16.vlgmr.msra.gmra.mrb[4].mxu1 %vm1309_vm1, %v5343_v9  ;;  %v3422_v9 = vsel %vm1309_vm1, %v3929_v8, 0 }
0x161b   : > { %4311 = vmatprep.mubr.msk.bf16.mxu1 %vm4688_vm2, %v4687_v60 }
0x1620   : > { %4296 = vmatpush3.bf16.xpose.msra.mxu1 %v3416_v6 }
0x1621   : > { %4297 = vmatprep.subr.bf16.mxu1 %v4687_v60 }
0x1628   : > { %4298 = vmatpush3.bf16.xpose.msra.mxu1 %v3419_v7 }
0x1629   : > { %4299 = vmatprep.subr.bf16.mxu1 %v4687_v60 }
0x1630   : > { %4300 = vmatpush3.bf16.xpose.msra.mxu1 %v3422_v9 }
0x1631   : > { %4301 = vmatprep.subr.bf16.mxu1 %v4687_v60 }
0x1638   : > { %4302 = vmatpush3.bf16.xpose.msra.mxu1 %v3425_v25 }
0x1639   : > { %4303 = vmatprep.subr.bf16.mxu1 %v4687_v60 }
0x1640   : > { %4304 = vmatpush3.bf16.xpose.msra.mxu1 %v3428_v1 }
0x1641   : > { %4305 = vmatprep.subr.bf16.mxu1 %v4687_v60 }
0x1648   : > { %4306 = vmatpush3.bf16.xpose.msra.mxu1 %v3431_v58 }
0x1649   : > { %4307 = vmatprep.subr.bf16.mxu1 %v4687_v60 }
0x1650   : > { %4308 = vmatpush3.bf16.xpose.msra.mxu1 %v3434_v5 }
0x1651   : > { %4309 = vmatprep.subr.bf16.mxu1 %v4687_v60 }
0x1658   : > { %4310 = vmatpush3.bf16.xpose.msra.mxu1 %v3437_v33 }
0x16dd   : > { %v3098_v27 = vpop.f32.mrb[0].mxu1 }
0x16de   : > { %v3099_v10 = vadd.f32 %v3902_v26, %v3098_v27  ;;  %v4253_v28 = vpop.f32.mrb[1].mxu1 }
0x16df   : > { %v3101_v29 = vpop.f32.mrb[2].mxu1 }
0x16e0   : > { %v3102_v11 = vadd.f32 %v3902_v26, %v3101_v29  ;;  %v4254_v13 = vpop.f32.mrb[3].mxu1  ;;  %v3105_v16 = vmax.f32 %v3099_v10, 0.0 }
0x16e2   : > { %v3106_v18 = vmax.f32 %v3102_v11, 0.0 }
0x16e4   : > { %v3107_v31 = vpack.c.bf16 %v3106_v18, %v3105_v16 }
0x16e6   : > { %4260 = vmatmul.mubr.msk.bf16.vlgmr.msra.gmra.mrb[12].mxu0 %vm3131_vm5, %v3107_v31 }
0x16e7   : > { %4276 = vmatpush3.bf16.msra.mxu0 %v4549_v30  ;;  %4291 = vmatprep.mubr.msk.bf16.mxu0 %vm4688_vm2, %v4687_v60 }
0x16e8   : > { %4277 = vmatprep.subr.bf16.mxu0 %v4687_v60 }
0x16eb   : > { %4278 = vmatpush3.bf16.msra.mxu0 %v4550_v19 }
0x16ec   : > { %4279 = vmatprep.subr.bf16.mxu0 %v4687_v60 }
0x16ed   : > { %v3249_v63 = vpop.f32.mrb[4].mxu1 }
0x16ee   : > { %v3250_v40 = vadd.f32 %v3912_v22, %v3249_v63  ;;  %v4273_v41 = vpop.f32.mrb[5].mxu1 }
0x16ef   : > { %4280 = vmatpush3.bf16.msra.mxu0 %v4551_v20  ;;  %v3252_v4 = vpop.f32.mrb[6].mxu1 }
0x16f0   : > { %4281 = vmatprep.subr.bf16.mxu0 %v4687_v60  ;;  %v3256_v45 = vmax.f32 %v3250_v40, 0.0  ;;  %v3253_v46 = vadd.f32 %v3912_v22, %v3252_v4  ;;  %v4274_v15 = vpop.f32.mrb[7].mxu1 }
0x16f2   : > { %v3257_v51 = vmax.f32 %v3253_v46, 0.0 }
0x16f3   : > { %4282 = vmatpush3.bf16.msra.mxu0 %v4552_v43 }
0x16f4   : > { %4283 = vmatprep.subr.bf16.mxu0 %v4687_v60  ;;  %v3258_v54 = vpack.c.bf16 %v3257_v51, %v3256_v45 }
0x16f7   : > { %4284 = vmatpush3.bf16.msra.mxu0 %v4553_v53 }
0x16f8   : > { %4285 = vmatprep.subr.bf16.mxu0 %v4687_v60 }
0x16fb   : > { %4286 = vmatpush3.bf16.msra.mxu0 %v4554_v55 }
0x16fc   : > { %4287 = vmatprep.subr.bf16.mxu0 %v4687_v60 }
0x16ff   : > { %4288 = vmatpush3.bf16.msra.mxu0 %v4555_v42 }
0x1700   : > { %4289 = vmatprep.subr.bf16.mxu0 %v4687_v60 }
0x1703   : > { %4290 = vmatpush3.bf16.msra.mxu0 %v4556_v56 }
0x1706   : > { %4292 = vmatmul.mubr.bf16.vlgmr.msra.gmra.mrb[16].mxu0 %v3258_v54 }
0x17b9   : > { %v3169_v35 = vpop.f32.mrb[12].mxu0 }
0x17ba   : > { %v3170_v47 = vadd.f32 %v3908_v34, %v3169_v35  ;;  %v4261_v48 = vpop.f32.mrb[13].mxu0 }
0x17bb   : > { %v3172_v49 = vpop.f32.mrb[14].mxu0 }
0x17bc   : > { %3482 = vrot.lane.b32.xlu0 %v3170_v47, %s4698_s13  ;;  %v4262_v36 = vpop.f32.mrb[15].mxu0  ;;  %v3173_v37 = vadd.f32 %v3908_v34, %v3172_v49 }
0x17c0   : > { %3484 = vrot.lane.b32.xlu0 %v3173_v37, %s4698_s13 }
0x17d9   : > { %v3364_v50 = vpop.f32.mrb[16].mxu0 }
0x17da   : > { %v4293_v59 = vpop.f32.mrb[17].mxu0  ;;  %v3365_v0 = vadd.f32 %v3918_v52, %v3364_v50 }
0x17db   : > { %v3367_v60 = vpop.f32.mrb[18].mxu0 }
0x17dc   : > { %v3368_v38 = vadd.f32 %v3918_v52, %v3367_v60  ;;  %v4294_v39 = vpop.f32.mrb[19].mxu0 }
0x17de   : > { %v3371_v61 = vpack.c.bf16 %v3368_v38, %v3365_v0 }
0x17e0   : > { %4312 = vmatmul.mubr.msk.bf16.vlgmr.msra.gmra.mrb[8].mxu1 %vm1309_vm1, %v3371_v61 }
0x182e   : > { %v3483_v12 = vpop.permute.xlu0 %3482 }
0x182f   : > { %v3489_v14 = vsel %vm3488_vm6, %v2933_v2, %v3483_v12 }
0x1830   : > { %v3492_v6 = vsel %vm3491_vm7, %v3489_v14, 0.0 }
0x1831   : > { %3495 = vst.msk [vmem:[%s4977_s29] sm:$0xff] %vm3494_vm8, %v3492_v6 }
0x1832   : > { %v3485_v7 = vpop.permute.xlu0 %3484 }
0x1833   : > { %v3490_v8 = vsel %vm3488_vm6, %v2936_v17, %v3485_v7 }
0x1834   : > { %v3493_v9 = vsel %vm3491_vm7, %v3490_v8, 0.0 }
0x1835   : > { %3496 = vst.msk [vmem:[%s4977_s29 + $0x8] sm:$0xff] %vm3494_vm8, %v3493_v9 }
0x1836   : > { %4570 = shalt.err (!%p4567_p8)
}
0x1837   : > { %s5636_s7 = sld [smem:[#allocation34_spill]] }
0x183d   : > { %s4571_s9 = scalar_lea.hbm %s5636_s7, 256 }
0x183e   : > { %p4572_p9 = scmp.ne.s32.totalorder %s5636_s7, %s4571_s9  ;;  %p4577_p12 = scmp.lt.u32.totalorder %s4571_s9, %s5636_s7 }
0x1840   : > { %p4573_p10 = pnand %p4572_p9, %p893_p2 }
0x1842   : > { %p4574_p11 = pneg %p4573_p10 }
0x1844   : > { %p4579_p6 = pnand %p4577_p12, %p4574_p11 }
0x1846   : > { %4582 = shalt.err (!%p4579_p6)
}
0x1847   : > { %s5559_s29 = smov 128   ;;  %s5637_s18 = sld [smem:[#allocation35_spill]] }
0x1848   : > { %s5639_s5 = sld [smem:[#allocation37_spill]]  ;;  %s4701_s1 = smov 8  }
0x1849   : > { %4316 = dma.vmem_to_hbm [thread:$0]  (%p893_p2), %s3516_s15, 256, %s5636_s7, [#allocation5], %s5559_s29, %s5559_s29, %s4701_s1  }
0x184a   : > { %s3948_s0 = sshll.u32 %s5635_s21, 8  ;;  %s3534_s9 = sshll.u32 %s4979_s3, 4  ;;  %s5481_s9 = int_to_ptr.vmem [resolvable:$true] %s3534_s9 }
0x184b   : > { %s4583_s8 = scalar_lea.vmem %s5481_s9, 256  ;;  %s4702_s15 = smov [#allocation6]  }
0x184c   : > { %p4584_p6 = scmp.ne.s32.totalorder %s5481_s9, %s4583_s8  ;;  %s4587_s29 = sshll.u32 %s4702_s15, 4  ;;  %s4588_s29 = int_to_ptr.vmem [resolvable:$false] %s4587_s29 }
0x184d   : > { %s5638_s13 = smov %s5637_s18  ;;  %s5479_s2 = scalar_lea.hbm %s5637_s18, %s3948_s0 }
0x184e   : > { %s5641_s4 = sand.u32 1, %s5639_s5   ;;  %p4585_p13 = pnand %p4584_p6, %p4921_p5 }
0x184f   : > { %s5486_s6 = scalar_lea.sflag [#allocation7], %s5641_s4  ;;  %s4589_s0 = scalar_lea.vmem %s4588_s29, 512 }
0x1850   : > { %p4586_p0 = pneg %p4585_p13  ;;  %p4590_p1 = scmp.lt.s32.totalorder %s5481_s9, %s4588_s29 }
0x1851   : > { %p4591_p3 = scmp.lt.s32.totalorder %s4589_s0, %s4583_s8 }
0x1853   : > { %p4592_p4 = por %p4591_p3, %p4590_p1 }
0x1855   : > { %p4593_p7 = pnand %p4592_p4, %p4586_p0 }
0x18b3   : > { %v3473_v21 = vpop.f32.mrb[8].mxu1 }
0x18b4   : > { %3497 = vst [vmem:[%s4979_s3] sm:$0xff] %v3473_v21  ;;  %v4313_v57 = vpop.f32.mrb[9].mxu1 }
0x18b5   : > { %v3476_v24 = vpop.f32.mrb[10].mxu1 }
0x18b6   : > { %3498 = vst [vmem:[%s4979_s3 + $0x8] sm:$0xff] %v3476_v24  ;;  %v4314_v25 = vpop.f32.mrb[11].mxu1 }
0x18b7   : > { %4596 = shalt.err (!%p4593_p7)
}
0x18b8   : > { %s4597_s3 = scalar_lea.hbm %s5479_s2, 256  ;;  %s4601_s4 = scalar_lea.hbm %s5638_s13, 512 }
0x18b9   : > { %p4598_p8 = scmp.ne.s32.totalorder %s5479_s2, %s4597_s3  ;;  %p4602_p11 = scmp.lt.u32.totalorder %s5479_s2, %s5638_s13 }
0x18ba   : > { %p4603_p12 = scmp.lt.u32.totalorder %s4601_s4, %s4597_s3  ;;  %p4605_p13 = scmp.lt.u32.totalorder %s4597_s3, %s5479_s2 }
0x18bb   : > { %p4599_p9 = pnand %p4598_p8, %p4921_p5 }
0x18bc   : > { %p4604_p6 = por %p4603_p12, %p4602_p11 }
0x18bd   : > { %p4600_p10 = pneg %p4599_p9 }
0x18be   : > { %p4606_p1 = por %p4605_p13, %p4604_p6 }
0x18c0   : > { %p4607_p0 = pnand %p4606_p1, %p4600_p10 }
0x18c2   : > { %4610 = shalt.err (!%p4607_p0)
}
0x18c3   : > { %s5642_s8 = smov 128  }
0x18c4   : > { %4317 = dma.vmem_to_hbm [thread:$0]  (%p4921_p5), %s5481_s9, 256, %s5479_s2, %s5486_s6, %s5642_s8, %s5642_s8, %s4701_s1  }
0x18c5   : > { %4628 = dma.done.wait (%p893_p2), [#allocation5], 256  }
0x18c6   : > { %4630 = vsyncadd (%p893_p2), [#allocation5], 4294967040 }
0x18c7 PF: > { %s5643_s29 = sld [smem:[#allocation39_spill]]  ;;  %s5644_s18 = sld [smem:[#allocation36_spill]] }
0x18c8   : > { %s5645_s5 = sld [smem:[#allocation44_spill]] }
0x18cd   : > { %p4327_p3 = scmp.ge.s32.totalorder %s5643_s29, 2  ;;  %s3561_s15 = sand.u32 1, %s5644_s18  }
0x18ce   : > { %p5646_p4 = scmp.ne.s32.totalorder %s5645_s5, 0  ;;  %s3562_s16 = scalar_lea.sflag [#allocation7], %s3561_s15 }
0x18d0   : > { %p4322_p7 = pnand %p4327_p3, %p5646_p4 }
0x18d2   : > { %4632 = dma.done.wait (!%p4322_p7), %s3562_s16, 256  }
0x18d3   : > { %4634 = vsyncadd (!%p4322_p7), %s3562_s16, 4294967040  ;;  %s5647_s18 = sld [smem:[#allocation41_spill]]  ;;  %s5648_s5 = sld [smem:[#allocation37_spill]] }
0x18d4   : > { %s5649_s9 = sld [smem:[#allocation38_spill]]  ;;  %s5650_s15 = sld [smem:[#allocation42_spill]] }
0x18d9   : > { %p83_p5 = scmp.ge.s32.totalorder %s5647_s18, 4  }
0x18db   :  { %85 = sbr.rel (!%p83_p5) target bundleno = 72 (0x48), region = 285 }
0x18e2   :  { %3567 = vsyncpa [#allocation5], 1 }
0x18e3   :  { %3569 = vsyncpa [#allocation5 + $0x1], 1 }
0x18e4   :  { %3570 = vsyncpa [#allocation7], 1 }
0x18e5   :  { %3572 = vsyncpa [#allocation7 + $0x1], 1 }

</bundles_post_ra>
